<compile_context>
chip_gen: v5e
topology: v5e:2x2
jax: 0.10.0
libtpu: 0.0.40
codegen_flags: <defaults>
</compile_context>

<pallas_src>
import functools

import jax
import jax.numpy as jnp
from jax import lax
from jax.experimental import pallas as pl
from jax.experimental.pallas import tpu as pltpu

# ---- synthetic "consts" from the PyTorch module -----------------------------
CPUBIFeatureNum = 2
CPUStrides = 2
BandBIFeatureNum = 1
BandStrides = 2
NodeFeatureNum = 2
C_IN = CPUBIFeatureNum * CPUStrides + BandBIFeatureNum * BandStrides + NodeFeatureNum  # 8
BIConvKernelNum = 16   # K
BIConvKernelSize = 3   # ks

LEAKY_SLOPE = 0.01     # torch.nn.LeakyReLU default negative_slope


def _policy_kernel(x_ref, w1_ref, b1_ref, w2_ref, b2_ref, o_ref,
                   *, c_in, k_out, ks, l1, l2, cpb):
    # x_ref : (cpb, C_in, L, 128)  VMEM  -- batch lives on the 128-lane axis
    # w1_ref: (K, C_in*ks)         SMEM  f32
    # b1_ref: (K,)                 SMEM  f32
    # w2_ref: (K*ks,)              SMEM  f32
    # b2_ref: (1,)                 SMEM  f32
    # o_ref : (cpb, L2, 128)       VMEM  -- lane-dense output
    def chunk_body(j, carry):
        # ---- Conv1d #1 (bias folded into first tap); K accumulators live ----
        a = [None] * k_out
        for c in range(c_in):
            xc = x_ref[j, c, :, :].astype(jnp.float32)        # (L, 128)
            for dk in range(ks):
                xs = xc[dk:dk + l1, :]                        # (L1, 128)
                for k in range(k_out):
                    t = w1_ref[k, c * ks + dk] * xs
                    a[k] = (t + b1_ref[k]) if a[k] is None else (a[k] + t)

        # ---- LeakyReLU + Conv1d #2 (bias folded into first tap) ----
        acc = None
        for k in range(k_out):
            hk = jnp.maximum(a[k], LEAKY_SLOPE * a[k])        # (L1, 128)
            for dk in range(ks):
                t = w2_ref[k * ks + dk] * hk[dk:dk + l2, :]   # (L2, 128)
                acc = (t + b2_ref[0]) if acc is None else (acc + t)

        # ---- Softmax over L2 (sublane axis); batch stays on lanes ----
        m = jnp.max(acc, axis=0, keepdims=True)               # (1, 128)  XLU
        e = jnp.exp(acc - m)                                  # (L2,128)  EUP
        s = jnp.sum(e, axis=0, keepdims=True)                 # (1, 128)  XLU
        r = pl.reciprocal(s, approx=True)                     # EUP slot
        r = r * (2.0 - s * r)                                 # Newton step -> ~f32 exact
        o_ref[j, :, :] = (e * r).astype(o_ref.dtype)
        return carry

    lax.fori_loop(0, cpb, chunk_body, 0)


def policy_forward(x, w1, b1, w2, b2, *, tb=1024, ch=128):
    """x: (N, C_in, L).  Returns (N, 1, L - 2*(ks-1)) softmax probs (like torch)."""
    N, c_in, L = x.shape
    K, c_in2, ks = w1.shape
    assert c_in2 == c_in
    L1 = L - ks + 1
    L2 = L1 - ks + 1
    assert L2 >= 1, "sequence too short for two convolutions"

    # --- batch tile selection: lane-dense multiple of 128, clamped so that ---
    # --- small N still yields >= 2 grid blocks (v7x megacore) / small pad. ---
    tb = max(ch, (tb // ch) * ch)
    half = -(-N // 2)                       # ceil(N/2)
    cap = -(-half // ch) * ch               # rounded up to a lane chunk
    tb = min(tb, max(ch, cap))
    n_blocks = pl.cdiv(N, tb)
    Np = n_blocks * tb
    cpb = tb // ch                          # 128-lane chunks per grid step
    nc = Np // ch                           # total 128-lane chunks

    # --- wrapper-side layout plumbing in the input's NATIVE dtype -----------
    xp = x
    if Np != N:
        xp = jnp.pad(xp, ((0, Np - N), (0, 0), (0, 0)))   # padded rows discarded later
    # (Np, C_in, L) -> (nc, C_in, L, ch): chunk index outermost, batch on lanes.
    xt = jnp.transpose(xp.reshape(nc, ch, c_in, L), (0, 2, 3, 1))

    w1_s = w1.astype(jnp.float32).reshape(K, c_in * ks)
    b1_s = b1.astype(jnp.float32).reshape(K)
    w2_s = w2.astype(jnp.float32).reshape(K * ks)
    b2_s = b2.astype(jnp.float32).reshape(1)

    kernel = functools.partial(_policy_kernel, c_in=c_in, k_out=K, ks=ks,
                               l1=L1, l2=L2, cpb=cpb)

    flops = Np * (2 * K * c_in * ks * L1 + 2 * K * L1 + 2 * K * ks * L2 + 6 * L2)
    cost = pl.CostEstimate(
        flops=int(flops),
        transcendentals=int(Np * (L2 + 2)),
        bytes_accessed=int(xt.size * xt.dtype.itemsize + nc * L2 * ch * 4
                           + (w1_s.size + b1_s.size + w2_s.size + b2_s.size) * 4),
    )

    out = pl.pallas_call(
        kernel,
        out_shape=jax.ShapeDtypeStruct((nc, L2, ch), jnp.float32),
        grid_spec=pl.GridSpec(
            grid=(n_blocks,),
            in_specs=[
                pl.BlockSpec((cpb, c_in, L, ch), lambda n: (n, 0, 0, 0)),
                pl.BlockSpec(memory_space=pltpu.MemorySpace.SMEM),
                pl.BlockSpec(memory_space=pltpu.MemorySpace.SMEM),
                pl.BlockSpec(memory_space=pltpu.MemorySpace.SMEM),
                pl.BlockSpec(memory_space=pltpu.MemorySpace.SMEM),
            ],
            out_specs=pl.BlockSpec((cpb, L2, ch), lambda n: (n, 0, 0)),
        ),
        compiler_params=pltpu.CompilerParams(
            dimension_semantics=("parallel",)),
        cost_estimate=cost,
    )(xt, w1_s, b1_s, w2_s, b2_s)

    # (nc, L2, ch) -> (Np, L2) -> (N, 1, L2) to match torch Conv1d/Softmax layout.
    out = jnp.transpose(out, (0, 2, 1)).reshape(Np, L2)[:N]
    return out.reshape(N, 1, L2).astype(x.dtype)


def _reference_forward(x, w1, b1, w2, b2):
    """Pure-JAX reference (valid cross-correlation conv1d, like PyTorch)."""
    N, C_in, L = x.shape
    K, _, ks = w1.shape
    L1 = L - ks + 1
    L2 = L1 - ks + 1
    y1 = jnp.zeros((N, K, L1), jnp.float32) + b1[None, :, None]
    for dk in range(ks):
        y1 = y1 + jnp.einsum("kc,ncl->nkl", w1[:, :, dk], x[:, :, dk:dk + L1])
    h = jnp.where(y1 > 0, y1, LEAKY_SLOPE * y1)
    y2 = jnp.zeros((N, 1, L2), jnp.float32) + b2[None, :, None]
    for dk in range(ks):
        y2 = y2 + jnp.einsum("ok,nkl->nol", w2[:, :, dk], h[:, :, dk:dk + L2])
    return jax.nn.softmax(y2, axis=-1)


if __name__ == "__main__":
    key = jax.random.PRNGKey(0)
    kx, k1, kb1, k2, kb2, kx2 = jax.random.split(key, 6)

    N, L = 2, 16
    x = jax.random.normal(kx, (N, C_IN, L), dtype=jnp.float32)

    # Deterministic synthetic parameters (shapes match torch Conv1d params).
    w1 = 0.1 * jax.random.normal(k1, (BIConvKernelNum, C_IN, BIConvKernelSize),
                                 dtype=jnp.float32)
    b1 = 0.1 * jax.random.normal(kb1, (BIConvKernelNum,), dtype=jnp.float32)
    w2 = 0.1 * jax.random.normal(k2, (1, BIConvKernelNum, BIConvKernelSize),
                                 dtype=jnp.float32)
    b2 = 0.1 * jax.random.normal(kb2, (1,), dtype=jnp.float32)

    L2_out = L - 2 * (BIConvKernelSize - 1)

    # --- small demo batch (single grid step, single lane chunk) ---
    out = jax.block_until_ready(policy_forward(x, w1, b1, w2, b2))
    ref = _reference_forward(x, w1, b1, w2, b2)
    assert out.shape == ref.shape == (N, 1, L2_out)
    assert jnp.allclose(out, ref, atol=2e-5, rtol=2e-5), "mismatch vs reference (N=2)"

    # --- multi-block grid, multi-chunk inner loop, tail padding ---
    N2 = 600   # -> tb=384 (3 lane chunks / step), 2 grid blocks, padded tail
    x2 = jax.random.normal(kx2, (N2, C_IN, L), dtype=jnp.float32)
    out2 = jax.block_until_ready(policy_forward(x2, w1, b1, w2, b2))
    ref2 = _reference_forward(x2, w1, b1, w2, b2)
    assert out2.shape == ref2.shape == (N2, 1, L2_out)
    assert jnp.allclose(out2, ref2, atol=2e-5, rtol=2e-5), "mismatch vs reference (N=600)"

    print("KERNEL_OK")
</pallas_src>

<mosaic_0001>
module attributes {stable_mosaic.version = 11 : i64} {
  func.func @_policy_kernel(%arg0: i32, %arg1: memref<1x8x16x128xf32, #tpu.memory_space<vmem>>, %arg2: memref<16x24xf32, #tpu.memory_space<smem>>, %arg3: memref<16xf32, #tpu.memory_space<smem>>, %arg4: memref<48xf32, #tpu.memory_space<smem>>, %arg5: memref<1xf32, #tpu.memory_space<smem>>, %arg6: memref<1x12x128xf32, #tpu.memory_space<vmem>>) attributes {dimension_semantics = [#tpu.dimension_semantics<parallel>], iteration_bounds = array<i64: 1>, scalar_prefetch = 0 : i64, scratch_operands = 0 : i64, tpu.core_type = #tpu.core_type<tc>, window_params = [{transform_indices = @transform_0, window_bounds = array<i64: 1, 8, 16, 128>}, {transform_indices = @transform_1, window_bounds = array<i64: 16, 24>}, {transform_indices = @transform_2, window_bounds = array<i64: 16>}, {transform_indices = @transform_3, window_bounds = array<i64: 48>}, {transform_indices = @transform_4, window_bounds = array<i64: 1>}, {transform_indices = @transform_5, window_bounds = array<i64: 1, 12, 128>}]} {
    %c0_i32 = arith.constant 0 : i32
    %0 = arith.index_cast %c0_i32 : i32 to index
    %c0 = arith.constant 0 : index
    %c0_0 = arith.constant 0 : index
    %c0_1 = arith.constant 0 : index
    %1 = vector.load %arg1[%0, %c0, %c0_0, %c0_1] : memref<1x8x16x128xf32, #tpu.memory_space<vmem>>, vector<1x1x16x128xf32>
    %2 = vector.shape_cast %1 : vector<1x1x16x128xf32> to vector<16x128xf32>
    %3 = vector.extract_strided_slice %2 {offsets = [0, 0], sizes = [14, 128], strides = [1, 1]} : vector<16x128xf32> to vector<14x128xf32>
    %c0_2 = arith.constant 0 : index
    %c0_3 = arith.constant 0 : index
    %4 = memref.load %arg2[%c0_2, %c0_3] : memref<16x24xf32, #tpu.memory_space<smem>>
    %5 = vector.broadcast %4 : f32 to vector<14x128xf32>
    %6 = arith.mulf %5, %3 : vector<14x128xf32>
    %c0_4 = arith.constant 0 : index
    %7 = memref.load %arg3[%c0_4] : memref<16xf32, #tpu.memory_space<smem>>
    %8 = vector.broadcast %7 : f32 to vector<14x128xf32>
    %9 = arith.addf %6, %8 : vector<14x128xf32>
    %c1 = arith.constant 1 : index
    %c0_5 = arith.constant 0 : index
    %10 = memref.load %arg2[%c1, %c0_5] : memref<16x24xf32, #tpu.memory_space<smem>>
    %11 = vector.broadcast %10 : f32 to vector<14x128xf32>
    %12 = arith.mulf %11, %3 : vector<14x128xf32>
    %c1_6 = arith.constant 1 : index
    %13 = memref.load %arg3[%c1_6] : memref<16xf32, #tpu.memory_space<smem>>
    %14 = vector.broadcast %13 : f32 to vector<14x128xf32>
    %15 = arith.addf %12, %14 : vector<14x128xf32>
    %c2 = arith.constant 2 : index
    %c0_7 = arith.constant 0 : index
    %16 = memref.load %arg2[%c2, %c0_7] : memref<16x24xf32, #tpu.memory_space<smem>>
    %17 = vector.broadcast %16 : f32 to vector<14x128xf32>
    %18 = arith.mulf %17, %3 : vector<14x128xf32>
    %c2_8 = arith.constant 2 : index
    %19 = memref.load %arg3[%c2_8] : memref<16xf32, #tpu.memory_space<smem>>
    %20 = vector.broadcast %19 : f32 to vector<14x128xf32>
    %21 = arith.addf %18, %20 : vector<14x128xf32>
    %c3 = arith.constant 3 : index
    %c0_9 = arith.constant 0 : index
    %22 = memref.load %arg2[%c3, %c0_9] : memref<16x24xf32, #tpu.memory_space<smem>>
    %23 = vector.broadcast %22 : f32 to vector<14x128xf32>
    %24 = arith.mulf %23, %3 : vector<14x128xf32>
    %c3_10 = arith.constant 3 : index
    %25 = memref.load %arg3[%c3_10] : memref<16xf32, #tpu.memory_space<smem>>
    %26 = vector.broadcast %25 : f32 to vector<14x128xf32>
    %27 = arith.addf %24, %26 : vector<14x128xf32>
    %c4 = arith.constant 4 : index
    %c0_11 = arith.constant 0 : index
    %28 = memref.load %arg2[%c4, %c0_11] : memref<16x24xf32, #tpu.memory_space<smem>>
    %29 = vector.broadcast %28 : f32 to vector<14x128xf32>
    %30 = arith.mulf %29, %3 : vector<14x128xf32>
    %c4_12 = arith.constant 4 : index
    %31 = memref.load %arg3[%c4_12] : memref<16xf32, #tpu.memory_space<smem>>
    %32 = vector.broadcast %31 : f32 to vector<14x128xf32>
    %33 = arith.addf %30, %32 : vector<14x128xf32>
    %c5 = arith.constant 5 : index
    %c0_13 = arith.constant 0 : index
    %34 = memref.load %arg2[%c5, %c0_13] : memref<16x24xf32, #tpu.memory_space<smem>>
    %35 = vector.broadcast %34 : f32 to vector<14x128xf32>
    %36 = arith.mulf %35, %3 : vector<14x128xf32>
    %c5_14 = arith.constant 5 : index
    %37 = memref.load %arg3[%c5_14] : memref<16xf32, #tpu.memory_space<smem>>
    %38 = vector.broadcast %37 : f32 to vector<14x128xf32>
    %39 = arith.addf %36, %38 : vector<14x128xf32>
    %c6 = arith.constant 6 : index
    %c0_15 = arith.constant 0 : index
    %40 = memref.load %arg2[%c6, %c0_15] : memref<16x24xf32, #tpu.memory_space<smem>>
    %41 = vector.broadcast %40 : f32 to vector<14x128xf32>
    %42 = arith.mulf %41, %3 : vector<14x128xf32>
    %c6_16 = arith.constant 6 : index
    %43 = memref.load %arg3[%c6_16] : memref<16xf32, #tpu.memory_space<smem>>
    %44 = vector.broadcast %43 : f32 to vector<14x128xf32>
    %45 = arith.addf %42, %44 : vector<14x128xf32>
    %c7 = arith.constant 7 : index
    %c0_17 = arith.constant 0 : index
    %46 = memref.load %arg2[%c7, %c0_17] : memref<16x24xf32, #tpu.memory_space<smem>>
    %47 = vector.broadcast %46 : f32 to vector<14x128xf32>
    %48 = arith.mulf %47, %3 : vector<14x128xf32>
    %c7_18 = arith.constant 7 : index
    %49 = memref.load %arg3[%c7_18] : memref<16xf32, #tpu.memory_space<smem>>
    %50 = vector.broadcast %49 : f32 to vector<14x128xf32>
    %51 = arith.addf %48, %50 : vector<14x128xf32>
    %c8 = arith.constant 8 : index
    %c0_19 = arith.constant 0 : index
    %52 = memref.load %arg2[%c8, %c0_19] : memref<16x24xf32, #tpu.memory_space<smem>>
    %53 = vector.broadcast %52 : f32 to vector<14x128xf32>
    %54 = arith.mulf %53, %3 : vector<14x128xf32>
    %c8_20 = arith.constant 8 : index
    %55 = memref.load %arg3[%c8_20] : memref<16xf32, #tpu.memory_space<smem>>
    %56 = vector.broadcast %55 : f32 to vector<14x128xf32>
    %57 = arith.addf %54, %56 : vector<14x128xf32>
    %c9 = arith.constant 9 : index
    %c0_21 = arith.constant 0 : index
    %58 = memref.load %arg2[%c9, %c0_21] : memref<16x24xf32, #tpu.memory_space<smem>>
    %59 = vector.broadcast %58 : f32 to vector<14x128xf32>
    %60 = arith.mulf %59, %3 : vector<14x128xf32>
    %c9_22 = arith.constant 9 : index
    %61 = memref.load %arg3[%c9_22] : memref<16xf32, #tpu.memory_space<smem>>
    %62 = vector.broadcast %61 : f32 to vector<14x128xf32>
    %63 = arith.addf %60, %62 : vector<14x128xf32>
    %c10 = arith.constant 10 : index
    %c0_23 = arith.constant 0 : index
    %64 = memref.load %arg2[%c10, %c0_23] : memref<16x24xf32, #tpu.memory_space<smem>>
    %65 = vector.broadcast %64 : f32 to vector<14x128xf32>
    %66 = arith.mulf %65, %3 : vector<14x128xf32>
    %c10_24 = arith.constant 10 : index
    %67 = memref.load %arg3[%c10_24] : memref<16xf32, #tpu.memory_space<smem>>
    %68 = vector.broadcast %67 : f32 to vector<14x128xf32>
    %69 = arith.addf %66, %68 : vector<14x128xf32>
    %c11 = arith.constant 11 : index
    %c0_25 = arith.constant 0 : index
    %70 = memref.load %arg2[%c11, %c0_25] : memref<16x24xf32, #tpu.memory_space<smem>>
    %71 = vector.broadcast %70 : f32 to vector<14x128xf32>
    %72 = arith.mulf %71, %3 : vector<14x128xf32>
    %c11_26 = arith.constant 11 : index
    %73 = memref.load %arg3[%c11_26] : memref<16xf32, #tpu.memory_space<smem>>
    %74 = vector.broadcast %73 : f32 to vector<14x128xf32>
    %75 = arith.addf %72, %74 : vector<14x128xf32>
    %c12 = arith.constant 12 : index
    %c0_27 = arith.constant 0 : index
    %76 = memref.load %arg2[%c12, %c0_27] : memref<16x24xf32, #tpu.memory_space<smem>>
    %77 = vector.broadcast %76 : f32 to vector<14x128xf32>
    %78 = arith.mulf %77, %3 : vector<14x128xf32>
    %c12_28 = arith.constant 12 : index
    %79 = memref.load %arg3[%c12_28] : memref<16xf32, #tpu.memory_space<smem>>
    %80 = vector.broadcast %79 : f32 to vector<14x128xf32>
    %81 = arith.addf %78, %80 : vector<14x128xf32>
    %c13 = arith.constant 13 : index
    %c0_29 = arith.constant 0 : index
    %82 = memref.load %arg2[%c13, %c0_29] : memref<16x24xf32, #tpu.memory_space<smem>>
    %83 = vector.broadcast %82 : f32 to vector<14x128xf32>
    %84 = arith.mulf %83, %3 : vector<14x128xf32>
    %c13_30 = arith.constant 13 : index
    %85 = memref.load %arg3[%c13_30] : memref<16xf32, #tpu.memory_space<smem>>
    %86 = vector.broadcast %85 : f32 to vector<14x128xf32>
    %87 = arith.addf %84, %86 : vector<14x128xf32>
    %c14 = arith.constant 14 : index
    %c0_31 = arith.constant 0 : index
    %88 = memref.load %arg2[%c14, %c0_31] : memref<16x24xf32, #tpu.memory_space<smem>>
    %89 = vector.broadcast %88 : f32 to vector<14x128xf32>
    %90 = arith.mulf %89, %3 : vector<14x128xf32>
    %c14_32 = arith.constant 14 : index
    %91 = memref.load %arg3[%c14_32] : memref<16xf32, #tpu.memory_space<smem>>
    %92 = vector.broadcast %91 : f32 to vector<14x128xf32>
    %93 = arith.addf %90, %92 : vector<14x128xf32>
    %c15 = arith.constant 15 : index
    %c0_33 = arith.constant 0 : index
    %94 = memref.load %arg2[%c15, %c0_33] : memref<16x24xf32, #tpu.memory_space<smem>>
    %95 = vector.broadcast %94 : f32 to vector<14x128xf32>
    %96 = arith.mulf %95, %3 : vector<14x128xf32>
    %c15_34 = arith.constant 15 : index
    %97 = memref.load %arg3[%c15_34] : memref<16xf32, #tpu.memory_space<smem>>
    %98 = vector.broadcast %97 : f32 to vector<14x128xf32>
    %99 = arith.addf %96, %98 : vector<14x128xf32>
    %100 = vector.extract_strided_slice %2 {offsets = [1, 0], sizes = [14, 128], strides = [1, 1]} : vector<16x128xf32> to vector<14x128xf32>
    %c0_35 = arith.constant 0 : index
    %c1_36 = arith.constant 1 : index
    %101 = memref.load %arg2[%c0_35, %c1_36] : memref<16x24xf32, #tpu.memory_space<smem>>
    %102 = vector.broadcast %101 : f32 to vector<14x128xf32>
    %103 = arith.mulf %102, %100 : vector<14x128xf32>
    %104 = arith.addf %9, %103 : vector<14x128xf32>
    %c1_37 = arith.constant 1 : index
    %c1_38 = arith.constant 1 : index
    %105 = memref.load %arg2[%c1_37, %c1_38] : memref<16x24xf32, #tpu.memory_space<smem>>
    %106 = vector.broadcast %105 : f32 to vector<14x128xf32>
    %107 = arith.mulf %106, %100 : vector<14x128xf32>
    %108 = arith.addf %15, %107 : vector<14x128xf32>
    %c2_39 = arith.constant 2 : index
    %c1_40 = arith.constant 1 : index
    %109 = memref.load %arg2[%c2_39, %c1_40] : memref<16x24xf32, #tpu.memory_space<smem>>
    %110 = vector.broadcast %109 : f32 to vector<14x128xf32>
    %111 = arith.mulf %110, %100 : vector<14x128xf32>
    %112 = arith.addf %21, %111 : vector<14x128xf32>
    %c3_41 = arith.constant 3 : index
    %c1_42 = arith.constant 1 : index
    %113 = memref.load %arg2[%c3_41, %c1_42] : memref<16x24xf32, #tpu.memory_space<smem>>
    %114 = vector.broadcast %113 : f32 to vector<14x128xf32>
    %115 = arith.mulf %114, %100 : vector<14x128xf32>
    %116 = arith.addf %27, %115 : vector<14x128xf32>
    %c4_43 = arith.constant 4 : index
    %c1_44 = arith.constant 1 : index
    %117 = memref.load %arg2[%c4_43, %c1_44] : memref<16x24xf32, #tpu.memory_space<smem>>
    %118 = vector.broadcast %117 : f32 to vector<14x128xf32>
    %119 = arith.mulf %118, %100 : vector<14x128xf32>
    %120 = arith.addf %33, %119 : vector<14x128xf32>
    %c5_45 = arith.constant 5 : index
    %c1_46 = arith.constant 1 : index
    %121 = memref.load %arg2[%c5_45, %c1_46] : memref<16x24xf32, #tpu.memory_space<smem>>
    %122 = vector.broadcast %121 : f32 to vector<14x128xf32>
    %123 = arith.mulf %122, %100 : vector<14x128xf32>
    %124 = arith.addf %39, %123 : vector<14x128xf32>
    %c6_47 = arith.constant 6 : index
    %c1_48 = arith.constant 1 : index
    %125 = memref.load %arg2[%c6_47, %c1_48] : memref<16x24xf32, #tpu.memory_space<smem>>
    %126 = vector.broadcast %125 : f32 to vector<14x128xf32>
    %127 = arith.mulf %126, %100 : vector<14x128xf32>
    %128 = arith.addf %45, %127 : vector<14x128xf32>
    %c7_49 = arith.constant 7 : index
    %c1_50 = arith.constant 1 : index
    %129 = memref.load %arg2[%c7_49, %c1_50] : memref<16x24xf32, #tpu.memory_space<smem>>
    %130 = vector.broadcast %129 : f32 to vector<14x128xf32>
    %131 = arith.mulf %130, %100 : vector<14x128xf32>
    %132 = arith.addf %51, %131 : vector<14x128xf32>
    %c8_51 = arith.constant 8 : index
    %c1_52 = arith.constant 1 : index
    %133 = memref.load %arg2[%c8_51, %c1_52] : memref<16x24xf32, #tpu.memory_space<smem>>
    %134 = vector.broadcast %133 : f32 to vector<14x128xf32>
    %135 = arith.mulf %134, %100 : vector<14x128xf32>
    %136 = arith.addf %57, %135 : vector<14x128xf32>
    %c9_53 = arith.constant 9 : index
    %c1_54 = arith.constant 1 : index
    %137 = memref.load %arg2[%c9_53, %c1_54] : memref<16x24xf32, #tpu.memory_space<smem>>
    %138 = vector.broadcast %137 : f32 to vector<14x128xf32>
    %139 = arith.mulf %138, %100 : vector<14x128xf32>
    %140 = arith.addf %63, %139 : vector<14x128xf32>
    %c10_55 = arith.constant 10 : index
    %c1_56 = arith.constant 1 : index
    %141 = memref.load %arg2[%c10_55, %c1_56] : memref<16x24xf32, #tpu.memory_space<smem>>
    %142 = vector.broadcast %141 : f32 to vector<14x128xf32>
    %143 = arith.mulf %142, %100 : vector<14x128xf32>
    %144 = arith.addf %69, %143 : vector<14x128xf32>
    %c11_57 = arith.constant 11 : index
    %c1_58 = arith.constant 1 : index
    %145 = memref.load %arg2[%c11_57, %c1_58] : memref<16x24xf32, #tpu.memory_space<smem>>
    %146 = vector.broadcast %145 : f32 to vector<14x128xf32>
    %147 = arith.mulf %146, %100 : vector<14x128xf32>
    %148 = arith.addf %75, %147 : vector<14x128xf32>
    %c12_59 = arith.constant 12 : index
    %c1_60 = arith.constant 1 : index
    %149 = memref.load %arg2[%c12_59, %c1_60] : memref<16x24xf32, #tpu.memory_space<smem>>
    %150 = vector.broadcast %149 : f32 to vector<14x128xf32>
    %151 = arith.mulf %150, %100 : vector<14x128xf32>
    %152 = arith.addf %81, %151 : vector<14x128xf32>
    %c13_61 = arith.constant 13 : index
    %c1_62 = arith.constant 1 : index
    %153 = memref.load %arg2[%c13_61, %c1_62] : memref<16x24xf32, #tpu.memory_space<smem>>
    %154 = vector.broadcast %153 : f32 to vector<14x128xf32>
    %155 = arith.mulf %154, %100 : vector<14x128xf32>
    %156 = arith.addf %87, %155 : vector<14x128xf32>
    %c14_63 = arith.constant 14 : index
    %c1_64 = arith.constant 1 : index
    %157 = memref.load %arg2[%c14_63, %c1_64] : memref<16x24xf32, #tpu.memory_space<smem>>
    %158 = vector.broadcast %157 : f32 to vector<14x128xf32>
    %159 = arith.mulf %158, %100 : vector<14x128xf32>
    %160 = arith.addf %93, %159 : vector<14x128xf32>
    %c15_65 = arith.constant 15 : index
    %c1_66 = arith.constant 1 : index
    %161 = memref.load %arg2[%c15_65, %c1_66] : memref<16x24xf32, #tpu.memory_space<smem>>
    %162 = vector.broadcast %161 : f32 to vector<14x128xf32>
    %163 = arith.mulf %162, %100 : vector<14x128xf32>
    %164 = arith.addf %99, %163 : vector<14x128xf32>
    %165 = vector.extract_strided_slice %2 {offsets = [2, 0], sizes = [14, 128], strides = [1, 1]} : vector<16x128xf32> to vector<14x128xf32>
    %c0_67 = arith.constant 0 : index
    %c2_68 = arith.constant 2 : index
    %166 = memref.load %arg2[%c0_67, %c2_68] : memref<16x24xf32, #tpu.memory_space<smem>>
    %167 = vector.broadcast %166 : f32 to vector<14x128xf32>
    %168 = arith.mulf %167, %165 : vector<14x128xf32>
    %169 = arith.addf %104, %168 : vector<14x128xf32>
    %c1_69 = arith.constant 1 : index
    %c2_70 = arith.constant 2 : index
    %170 = memref.load %arg2[%c1_69, %c2_70] : memref<16x24xf32, #tpu.memory_space<smem>>
    %171 = vector.broadcast %170 : f32 to vector<14x128xf32>
    %172 = arith.mulf %171, %165 : vector<14x128xf32>
    %173 = arith.addf %108, %172 : vector<14x128xf32>
    %c2_71 = arith.constant 2 : index
    %c2_72 = arith.constant 2 : index
    %174 = memref.load %arg2[%c2_71, %c2_72] : memref<16x24xf32, #tpu.memory_space<smem>>
    %175 = vector.broadcast %174 : f32 to vector<14x128xf32>
    %176 = arith.mulf %175, %165 : vector<14x128xf32>
    %177 = arith.addf %112, %176 : vector<14x128xf32>
    %c3_73 = arith.constant 3 : index
    %c2_74 = arith.constant 2 : index
    %178 = memref.load %arg2[%c3_73, %c2_74] : memref<16x24xf32, #tpu.memory_space<smem>>
    %179 = vector.broadcast %178 : f32 to vector<14x128xf32>
    %180 = arith.mulf %179, %165 : vector<14x128xf32>
    %181 = arith.addf %116, %180 : vector<14x128xf32>
    %c4_75 = arith.constant 4 : index
    %c2_76 = arith.constant 2 : index
    %182 = memref.load %arg2[%c4_75, %c2_76] : memref<16x24xf32, #tpu.memory_space<smem>>
    %183 = vector.broadcast %182 : f32 to vector<14x128xf32>
    %184 = arith.mulf %183, %165 : vector<14x128xf32>
    %185 = arith.addf %120, %184 : vector<14x128xf32>
    %c5_77 = arith.constant 5 : index
    %c2_78 = arith.constant 2 : index
    %186 = memref.load %arg2[%c5_77, %c2_78] : memref<16x24xf32, #tpu.memory_space<smem>>
    %187 = vector.broadcast %186 : f32 to vector<14x128xf32>
    %188 = arith.mulf %187, %165 : vector<14x128xf32>
    %189 = arith.addf %124, %188 : vector<14x128xf32>
    %c6_79 = arith.constant 6 : index
    %c2_80 = arith.constant 2 : index
    %190 = memref.load %arg2[%c6_79, %c2_80] : memref<16x24xf32, #tpu.memory_space<smem>>
    %191 = vector.broadcast %190 : f32 to vector<14x128xf32>
    %192 = arith.mulf %191, %165 : vector<14x128xf32>
    %193 = arith.addf %128, %192 : vector<14x128xf32>
    %c7_81 = arith.constant 7 : index
    %c2_82 = arith.constant 2 : index
    %194 = memref.load %arg2[%c7_81, %c2_82] : memref<16x24xf32, #tpu.memory_space<smem>>
    %195 = vector.broadcast %194 : f32 to vector<14x128xf32>
    %196 = arith.mulf %195, %165 : vector<14x128xf32>
    %197 = arith.addf %132, %196 : vector<14x128xf32>
    %c8_83 = arith.constant 8 : index
    %c2_84 = arith.constant 2 : index
    %198 = memref.load %arg2[%c8_83, %c2_84] : memref<16x24xf32, #tpu.memory_space<smem>>
    %199 = vector.broadcast %198 : f32 to vector<14x128xf32>
    %200 = arith.mulf %199, %165 : vector<14x128xf32>
    %201 = arith.addf %136, %200 : vector<14x128xf32>
    %c9_85 = arith.constant 9 : index
    %c2_86 = arith.constant 2 : index
    %202 = memref.load %arg2[%c9_85, %c2_86] : memref<16x24xf32, #tpu.memory_space<smem>>
    %203 = vector.broadcast %202 : f32 to vector<14x128xf32>
    %204 = arith.mulf %203, %165 : vector<14x128xf32>
    %205 = arith.addf %140, %204 : vector<14x128xf32>
    %c10_87 = arith.constant 10 : index
    %c2_88 = arith.constant 2 : index
    %206 = memref.load %arg2[%c10_87, %c2_88] : memref<16x24xf32, #tpu.memory_space<smem>>
    %207 = vector.broadcast %206 : f32 to vector<14x128xf32>
    %208 = arith.mulf %207, %165 : vector<14x128xf32>
    %209 = arith.addf %144, %208 : vector<14x128xf32>
    %c11_89 = arith.constant 11 : index
    %c2_90 = arith.constant 2 : index
    %210 = memref.load %arg2[%c11_89, %c2_90] : memref<16x24xf32, #tpu.memory_space<smem>>
    %211 = vector.broadcast %210 : f32 to vector<14x128xf32>
    %212 = arith.mulf %211, %165 : vector<14x128xf32>
    %213 = arith.addf %148, %212 : vector<14x128xf32>
    %c12_91 = arith.constant 12 : index
    %c2_92 = arith.constant 2 : index
    %214 = memref.load %arg2[%c12_91, %c2_92] : memref<16x24xf32, #tpu.memory_space<smem>>
    %215 = vector.broadcast %214 : f32 to vector<14x128xf32>
    %216 = arith.mulf %215, %165 : vector<14x128xf32>
    %217 = arith.addf %152, %216 : vector<14x128xf32>
    %c13_93 = arith.constant 13 : index
    %c2_94 = arith.constant 2 : index
    %218 = memref.load %arg2[%c13_93, %c2_94] : memref<16x24xf32, #tpu.memory_space<smem>>
    %219 = vector.broadcast %218 : f32 to vector<14x128xf32>
    %220 = arith.mulf %219, %165 : vector<14x128xf32>
    %221 = arith.addf %156, %220 : vector<14x128xf32>
    %c14_95 = arith.constant 14 : index
    %c2_96 = arith.constant 2 : index
    %222 = memref.load %arg2[%c14_95, %c2_96] : memref<16x24xf32, #tpu.memory_space<smem>>
    %223 = vector.broadcast %222 : f32 to vector<14x128xf32>
    %224 = arith.mulf %223, %165 : vector<14x128xf32>
    %225 = arith.addf %160, %224 : vector<14x128xf32>
    %c15_97 = arith.constant 15 : index
    %c2_98 = arith.constant 2 : index
    %226 = memref.load %arg2[%c15_97, %c2_98] : memref<16x24xf32, #tpu.memory_space<smem>>
    %227 = vector.broadcast %226 : f32 to vector<14x128xf32>
    %228 = arith.mulf %227, %165 : vector<14x128xf32>
    %229 = arith.addf %164, %228 : vector<14x128xf32>
    %230 = arith.index_cast %c0_i32 : i32 to index
    %c1_99 = arith.constant 1 : index
    %c0_100 = arith.constant 0 : index
    %c0_101 = arith.constant 0 : index
    %231 = vector.load %arg1[%230, %c1_99, %c0_100, %c0_101] : memref<1x8x16x128xf32, #tpu.memory_space<vmem>>, vector<1x1x16x128xf32>
    %232 = vector.shape_cast %231 : vector<1x1x16x128xf32> to vector<16x128xf32>
    %233 = vector.extract_strided_slice %232 {offsets = [0, 0], sizes = [14, 128], strides = [1, 1]} : vector<16x128xf32> to vector<14x128xf32>
    %c0_102 = arith.constant 0 : index
    %c3_103 = arith.constant 3 : index
    %234 = memref.load %arg2[%c0_102, %c3_103] : memref<16x24xf32, #tpu.memory_space<smem>>
    %235 = vector.broadcast %234 : f32 to vector<14x128xf32>
    %236 = arith.mulf %235, %233 : vector<14x128xf32>
    %237 = arith.addf %169, %236 : vector<14x128xf32>
    %c1_104 = arith.constant 1 : index
    %c3_105 = arith.constant 3 : index
    %238 = memref.load %arg2[%c1_104, %c3_105] : memref<16x24xf32, #tpu.memory_space<smem>>
    %239 = vector.broadcast %238 : f32 to vector<14x128xf32>
    %240 = arith.mulf %239, %233 : vector<14x128xf32>
    %241 = arith.addf %173, %240 : vector<14x128xf32>
    %c2_106 = arith.constant 2 : index
    %c3_107 = arith.constant 3 : index
    %242 = memref.load %arg2[%c2_106, %c3_107] : memref<16x24xf32, #tpu.memory_space<smem>>
    %243 = vector.broadcast %242 : f32 to vector<14x128xf32>
    %244 = arith.mulf %243, %233 : vector<14x128xf32>
    %245 = arith.addf %177, %244 : vector<14x128xf32>
    %c3_108 = arith.constant 3 : index
    %c3_109 = arith.constant 3 : index
    %246 = memref.load %arg2[%c3_108, %c3_109] : memref<16x24xf32, #tpu.memory_space<smem>>
    %247 = vector.broadcast %246 : f32 to vector<14x128xf32>
    %248 = arith.mulf %247, %233 : vector<14x128xf32>
    %249 = arith.addf %181, %248 : vector<14x128xf32>
    %c4_110 = arith.constant 4 : index
    %c3_111 = arith.constant 3 : index
    %250 = memref.load %arg2[%c4_110, %c3_111] : memref<16x24xf32, #tpu.memory_space<smem>>
    %251 = vector.broadcast %250 : f32 to vector<14x128xf32>
    %252 = arith.mulf %251, %233 : vector<14x128xf32>
    %253 = arith.addf %185, %252 : vector<14x128xf32>
    %c5_112 = arith.constant 5 : index
    %c3_113 = arith.constant 3 : index
    %254 = memref.load %arg2[%c5_112, %c3_113] : memref<16x24xf32, #tpu.memory_space<smem>>
    %255 = vector.broadcast %254 : f32 to vector<14x128xf32>
    %256 = arith.mulf %255, %233 : vector<14x128xf32>
    %257 = arith.addf %189, %256 : vector<14x128xf32>
    %c6_114 = arith.constant 6 : index
    %c3_115 = arith.constant 3 : index
    %258 = memref.load %arg2[%c6_114, %c3_115] : memref<16x24xf32, #tpu.memory_space<smem>>
    %259 = vector.broadcast %258 : f32 to vector<14x128xf32>
    %260 = arith.mulf %259, %233 : vector<14x128xf32>
    %261 = arith.addf %193, %260 : vector<14x128xf32>
    %c7_116 = arith.constant 7 : index
    %c3_117 = arith.constant 3 : index
    %262 = memref.load %arg2[%c7_116, %c3_117] : memref<16x24xf32, #tpu.memory_space<smem>>
    %263 = vector.broadcast %262 : f32 to vector<14x128xf32>
    %264 = arith.mulf %263, %233 : vector<14x128xf32>
    %265 = arith.addf %197, %264 : vector<14x128xf32>
    %c8_118 = arith.constant 8 : index
    %c3_119 = arith.constant 3 : index
    %266 = memref.load %arg2[%c8_118, %c3_119] : memref<16x24xf32, #tpu.memory_space<smem>>
    %267 = vector.broadcast %266 : f32 to vector<14x128xf32>
    %268 = arith.mulf %267, %233 : vector<14x128xf32>
    %269 = arith.addf %201, %268 : vector<14x128xf32>
    %c9_120 = arith.constant 9 : index
    %c3_121 = arith.constant 3 : index
    %270 = memref.load %arg2[%c9_120, %c3_121] : memref<16x24xf32, #tpu.memory_space<smem>>
    %271 = vector.broadcast %270 : f32 to vector<14x128xf32>
    %272 = arith.mulf %271, %233 : vector<14x128xf32>
    %273 = arith.addf %205, %272 : vector<14x128xf32>
    %c10_122 = arith.constant 10 : index
    %c3_123 = arith.constant 3 : index
    %274 = memref.load %arg2[%c10_122, %c3_123] : memref<16x24xf32, #tpu.memory_space<smem>>
    %275 = vector.broadcast %274 : f32 to vector<14x128xf32>
    %276 = arith.mulf %275, %233 : vector<14x128xf32>
    %277 = arith.addf %209, %276 : vector<14x128xf32>
    %c11_124 = arith.constant 11 : index
    %c3_125 = arith.constant 3 : index
    %278 = memref.load %arg2[%c11_124, %c3_125] : memref<16x24xf32, #tpu.memory_space<smem>>
    %279 = vector.broadcast %278 : f32 to vector<14x128xf32>
    %280 = arith.mulf %279, %233 : vector<14x128xf32>
    %281 = arith.addf %213, %280 : vector<14x128xf32>
    %c12_126 = arith.constant 12 : index
    %c3_127 = arith.constant 3 : index
    %282 = memref.load %arg2[%c12_126, %c3_127] : memref<16x24xf32, #tpu.memory_space<smem>>
    %283 = vector.broadcast %282 : f32 to vector<14x128xf32>
    %284 = arith.mulf %283, %233 : vector<14x128xf32>
    %285 = arith.addf %217, %284 : vector<14x128xf32>
    %c13_128 = arith.constant 13 : index
    %c3_129 = arith.constant 3 : index
    %286 = memref.load %arg2[%c13_128, %c3_129] : memref<16x24xf32, #tpu.memory_space<smem>>
    %287 = vector.broadcast %286 : f32 to vector<14x128xf32>
    %288 = arith.mulf %287, %233 : vector<14x128xf32>
    %289 = arith.addf %221, %288 : vector<14x128xf32>
    %c14_130 = arith.constant 14 : index
    %c3_131 = arith.constant 3 : index
    %290 = memref.load %arg2[%c14_130, %c3_131] : memref<16x24xf32, #tpu.memory_space<smem>>
    %291 = vector.broadcast %290 : f32 to vector<14x128xf32>
    %292 = arith.mulf %291, %233 : vector<14x128xf32>
    %293 = arith.addf %225, %292 : vector<14x128xf32>
    %c15_132 = arith.constant 15 : index
    %c3_133 = arith.constant 3 : index
    %294 = memref.load %arg2[%c15_132, %c3_133] : memref<16x24xf32, #tpu.memory_space<smem>>
    %295 = vector.broadcast %294 : f32 to vector<14x128xf32>
    %296 = arith.mulf %295, %233 : vector<14x128xf32>
    %297 = arith.addf %229, %296 : vector<14x128xf32>
    %298 = vector.extract_strided_slice %232 {offsets = [1, 0], sizes = [14, 128], strides = [1, 1]} : vector<16x128xf32> to vector<14x128xf32>
    %c0_134 = arith.constant 0 : index
    %c4_135 = arith.constant 4 : index
    %299 = memref.load %arg2[%c0_134, %c4_135] : memref<16x24xf32, #tpu.memory_space<smem>>
    %300 = vector.broadcast %299 : f32 to vector<14x128xf32>
    %301 = arith.mulf %300, %298 : vector<14x128xf32>
    %302 = arith.addf %237, %301 : vector<14x128xf32>
    %c1_136 = arith.constant 1 : index
    %c4_137 = arith.constant 4 : index
    %303 = memref.load %arg2[%c1_136, %c4_137] : memref<16x24xf32, #tpu.memory_space<smem>>
    %304 = vector.broadcast %303 : f32 to vector<14x128xf32>
    %305 = arith.mulf %304, %298 : vector<14x128xf32>
    %306 = arith.addf %241, %305 : vector<14x128xf32>
    %c2_138 = arith.constant 2 : index
    %c4_139 = arith.constant 4 : index
    %307 = memref.load %arg2[%c2_138, %c4_139] : memref<16x24xf32, #tpu.memory_space<smem>>
    %308 = vector.broadcast %307 : f32 to vector<14x128xf32>
    %309 = arith.mulf %308, %298 : vector<14x128xf32>
    %310 = arith.addf %245, %309 : vector<14x128xf32>
    %c3_140 = arith.constant 3 : index
    %c4_141 = arith.constant 4 : index
    %311 = memref.load %arg2[%c3_140, %c4_141] : memref<16x24xf32, #tpu.memory_space<smem>>
    %312 = vector.broadcast %311 : f32 to vector<14x128xf32>
    %313 = arith.mulf %312, %298 : vector<14x128xf32>
    %314 = arith.addf %249, %313 : vector<14x128xf32>
    %c4_142 = arith.constant 4 : index
    %c4_143 = arith.constant 4 : index
    %315 = memref.load %arg2[%c4_142, %c4_143] : memref<16x24xf32, #tpu.memory_space<smem>>
    %316 = vector.broadcast %315 : f32 to vector<14x128xf32>
    %317 = arith.mulf %316, %298 : vector<14x128xf32>
    %318 = arith.addf %253, %317 : vector<14x128xf32>
    %c5_144 = arith.constant 5 : index
    %c4_145 = arith.constant 4 : index
    %319 = memref.load %arg2[%c5_144, %c4_145] : memref<16x24xf32, #tpu.memory_space<smem>>
    %320 = vector.broadcast %319 : f32 to vector<14x128xf32>
    %321 = arith.mulf %320, %298 : vector<14x128xf32>
    %322 = arith.addf %257, %321 : vector<14x128xf32>
    %c6_146 = arith.constant 6 : index
    %c4_147 = arith.constant 4 : index
    %323 = memref.load %arg2[%c6_146, %c4_147] : memref<16x24xf32, #tpu.memory_space<smem>>
    %324 = vector.broadcast %323 : f32 to vector<14x128xf32>
    %325 = arith.mulf %324, %298 : vector<14x128xf32>
    %326 = arith.addf %261, %325 : vector<14x128xf32>
    %c7_148 = arith.constant 7 : index
    %c4_149 = arith.constant 4 : index
    %327 = memref.load %arg2[%c7_148, %c4_149] : memref<16x24xf32, #tpu.memory_space<smem>>
    %328 = vector.broadcast %327 : f32 to vector<14x128xf32>
    %329 = arith.mulf %328, %298 : vector<14x128xf32>
    %330 = arith.addf %265, %329 : vector<14x128xf32>
    %c8_150 = arith.constant 8 : index
    %c4_151 = arith.constant 4 : index
    %331 = memref.load %arg2[%c8_150, %c4_151] : memref<16x24xf32, #tpu.memory_space<smem>>
    %332 = vector.broadcast %331 : f32 to vector<14x128xf32>
    %333 = arith.mulf %332, %298 : vector<14x128xf32>
    %334 = arith.addf %269, %333 : vector<14x128xf32>
    %c9_152 = arith.constant 9 : index
    %c4_153 = arith.constant 4 : index
    %335 = memref.load %arg2[%c9_152, %c4_153] : memref<16x24xf32, #tpu.memory_space<smem>>
    %336 = vector.broadcast %335 : f32 to vector<14x128xf32>
    %337 = arith.mulf %336, %298 : vector<14x128xf32>
    %338 = arith.addf %273, %337 : vector<14x128xf32>
    %c10_154 = arith.constant 10 : index
    %c4_155 = arith.constant 4 : index
    %339 = memref.load %arg2[%c10_154, %c4_155] : memref<16x24xf32, #tpu.memory_space<smem>>
    %340 = vector.broadcast %339 : f32 to vector<14x128xf32>
    %341 = arith.mulf %340, %298 : vector<14x128xf32>
    %342 = arith.addf %277, %341 : vector<14x128xf32>
    %c11_156 = arith.constant 11 : index
    %c4_157 = arith.constant 4 : index
    %343 = memref.load %arg2[%c11_156, %c4_157] : memref<16x24xf32, #tpu.memory_space<smem>>
    %344 = vector.broadcast %343 : f32 to vector<14x128xf32>
    %345 = arith.mulf %344, %298 : vector<14x128xf32>
    %346 = arith.addf %281, %345 : vector<14x128xf32>
    %c12_158 = arith.constant 12 : index
    %c4_159 = arith.constant 4 : index
    %347 = memref.load %arg2[%c12_158, %c4_159] : memref<16x24xf32, #tpu.memory_space<smem>>
    %348 = vector.broadcast %347 : f32 to vector<14x128xf32>
    %349 = arith.mulf %348, %298 : vector<14x128xf32>
    %350 = arith.addf %285, %349 : vector<14x128xf32>
    %c13_160 = arith.constant 13 : index
    %c4_161 = arith.constant 4 : index
    %351 = memref.load %arg2[%c13_160, %c4_161] : memref<16x24xf32, #tpu.memory_space<smem>>
    %352 = vector.broadcast %351 : f32 to vector<14x128xf32>
    %353 = arith.mulf %352, %298 : vector<14x128xf32>
    %354 = arith.addf %289, %353 : vector<14x128xf32>
    %c14_162 = arith.constant 14 : index
    %c4_163 = arith.constant 4 : index
    %355 = memref.load %arg2[%c14_162, %c4_163] : memref<16x24xf32, #tpu.memory_space<smem>>
    %356 = vector.broadcast %355 : f32 to vector<14x128xf32>
    %357 = arith.mulf %356, %298 : vector<14x128xf32>
    %358 = arith.addf %293, %357 : vector<14x128xf32>
    %c15_164 = arith.constant 15 : index
    %c4_165 = arith.constant 4 : index
    %359 = memref.load %arg2[%c15_164, %c4_165] : memref<16x24xf32, #tpu.memory_space<smem>>
    %360 = vector.broadcast %359 : f32 to vector<14x128xf32>
    %361 = arith.mulf %360, %298 : vector<14x128xf32>
    %362 = arith.addf %297, %361 : vector<14x128xf32>
    %363 = vector.extract_strided_slice %232 {offsets = [2, 0], sizes = [14, 128], strides = [1, 1]} : vector<16x128xf32> to vector<14x128xf32>
    %c0_166 = arith.constant 0 : index
    %c5_167 = arith.constant 5 : index
    %364 = memref.load %arg2[%c0_166, %c5_167] : memref<16x24xf32, #tpu.memory_space<smem>>
    %365 = vector.broadcast %364 : f32 to vector<14x128xf32>
    %366 = arith.mulf %365, %363 : vector<14x128xf32>
    %367 = arith.addf %302, %366 : vector<14x128xf32>
    %c1_168 = arith.constant 1 : index
    %c5_169 = arith.constant 5 : index
    %368 = memref.load %arg2[%c1_168, %c5_169] : memref<16x24xf32, #tpu.memory_space<smem>>
    %369 = vector.broadcast %368 : f32 to vector<14x128xf32>
    %370 = arith.mulf %369, %363 : vector<14x128xf32>
    %371 = arith.addf %306, %370 : vector<14x128xf32>
    %c2_170 = arith.constant 2 : index
    %c5_171 = arith.constant 5 : index
    %372 = memref.load %arg2[%c2_170, %c5_171] : memref<16x24xf32, #tpu.memory_space<smem>>
    %373 = vector.broadcast %372 : f32 to vector<14x128xf32>
    %374 = arith.mulf %373, %363 : vector<14x128xf32>
    %375 = arith.addf %310, %374 : vector<14x128xf32>
    %c3_172 = arith.constant 3 : index
    %c5_173 = arith.constant 5 : index
    %376 = memref.load %arg2[%c3_172, %c5_173] : memref<16x24xf32, #tpu.memory_space<smem>>
    %377 = vector.broadcast %376 : f32 to vector<14x128xf32>
    %378 = arith.mulf %377, %363 : vector<14x128xf32>
    %379 = arith.addf %314, %378 : vector<14x128xf32>
    %c4_174 = arith.constant 4 : index
    %c5_175 = arith.constant 5 : index
    %380 = memref.load %arg2[%c4_174, %c5_175] : memref<16x24xf32, #tpu.memory_space<smem>>
    %381 = vector.broadcast %380 : f32 to vector<14x128xf32>
    %382 = arith.mulf %381, %363 : vector<14x128xf32>
    %383 = arith.addf %318, %382 : vector<14x128xf32>
    %c5_176 = arith.constant 5 : index
    %c5_177 = arith.constant 5 : index
    %384 = memref.load %arg2[%c5_176, %c5_177] : memref<16x24xf32, #tpu.memory_space<smem>>
    %385 = vector.broadcast %384 : f32 to vector<14x128xf32>
    %386 = arith.mulf %385, %363 : vector<14x128xf32>
    %387 = arith.addf %322, %386 : vector<14x128xf32>
    %c6_178 = arith.constant 6 : index
    %c5_179 = arith.constant 5 : index
    %388 = memref.load %arg2[%c6_178, %c5_179] : memref<16x24xf32, #tpu.memory_space<smem>>
    %389 = vector.broadcast %388 : f32 to vector<14x128xf32>
    %390 = arith.mulf %389, %363 : vector<14x128xf32>
    %391 = arith.addf %326, %390 : vector<14x128xf32>
    %c7_180 = arith.constant 7 : index
    %c5_181 = arith.constant 5 : index
    %392 = memref.load %arg2[%c7_180, %c5_181] : memref<16x24xf32, #tpu.memory_space<smem>>
    %393 = vector.broadcast %392 : f32 to vector<14x128xf32>
    %394 = arith.mulf %393, %363 : vector<14x128xf32>
    %395 = arith.addf %330, %394 : vector<14x128xf32>
    %c8_182 = arith.constant 8 : index
    %c5_183 = arith.constant 5 : index
    %396 = memref.load %arg2[%c8_182, %c5_183] : memref<16x24xf32, #tpu.memory_space<smem>>
    %397 = vector.broadcast %396 : f32 to vector<14x128xf32>
    %398 = arith.mulf %397, %363 : vector<14x128xf32>
    %399 = arith.addf %334, %398 : vector<14x128xf32>
    %c9_184 = arith.constant 9 : index
    %c5_185 = arith.constant 5 : index
    %400 = memref.load %arg2[%c9_184, %c5_185] : memref<16x24xf32, #tpu.memory_space<smem>>
    %401 = vector.broadcast %400 : f32 to vector<14x128xf32>
    %402 = arith.mulf %401, %363 : vector<14x128xf32>
    %403 = arith.addf %338, %402 : vector<14x128xf32>
    %c10_186 = arith.constant 10 : index
    %c5_187 = arith.constant 5 : index
    %404 = memref.load %arg2[%c10_186, %c5_187] : memref<16x24xf32, #tpu.memory_space<smem>>
    %405 = vector.broadcast %404 : f32 to vector<14x128xf32>
    %406 = arith.mulf %405, %363 : vector<14x128xf32>
    %407 = arith.addf %342, %406 : vector<14x128xf32>
    %c11_188 = arith.constant 11 : index
    %c5_189 = arith.constant 5 : index
    %408 = memref.load %arg2[%c11_188, %c5_189] : memref<16x24xf32, #tpu.memory_space<smem>>
    %409 = vector.broadcast %408 : f32 to vector<14x128xf32>
    %410 = arith.mulf %409, %363 : vector<14x128xf32>
    %411 = arith.addf %346, %410 : vector<14x128xf32>
    %c12_190 = arith.constant 12 : index
    %c5_191 = arith.constant 5 : index
    %412 = memref.load %arg2[%c12_190, %c5_191] : memref<16x24xf32, #tpu.memory_space<smem>>
    %413 = vector.broadcast %412 : f32 to vector<14x128xf32>
    %414 = arith.mulf %413, %363 : vector<14x128xf32>
    %415 = arith.addf %350, %414 : vector<14x128xf32>
    %c13_192 = arith.constant 13 : index
    %c5_193 = arith.constant 5 : index
    %416 = memref.load %arg2[%c13_192, %c5_193] : memref<16x24xf32, #tpu.memory_space<smem>>
    %417 = vector.broadcast %416 : f32 to vector<14x128xf32>
    %418 = arith.mulf %417, %363 : vector<14x128xf32>
    %419 = arith.addf %354, %418 : vector<14x128xf32>
    %c14_194 = arith.constant 14 : index
    %c5_195 = arith.constant 5 : index
    %420 = memref.load %arg2[%c14_194, %c5_195] : memref<16x24xf32, #tpu.memory_space<smem>>
    %421 = vector.broadcast %420 : f32 to vector<14x128xf32>
    %422 = arith.mulf %421, %363 : vector<14x128xf32>
    %423 = arith.addf %358, %422 : vector<14x128xf32>
    %c15_196 = arith.constant 15 : index
    %c5_197 = arith.constant 5 : index
    %424 = memref.load %arg2[%c15_196, %c5_197] : memref<16x24xf32, #tpu.memory_space<smem>>
    %425 = vector.broadcast %424 : f32 to vector<14x128xf32>
    %426 = arith.mulf %425, %363 : vector<14x128xf32>
    %427 = arith.addf %362, %426 : vector<14x128xf32>
    %428 = arith.index_cast %c0_i32 : i32 to index
    %c2_198 = arith.constant 2 : index
    %c0_199 = arith.constant 0 : index
    %c0_200 = arith.constant 0 : index
    %429 = vector.load %arg1[%428, %c2_198, %c0_199, %c0_200] : memref<1x8x16x128xf32, #tpu.memory_space<vmem>>, vector<1x1x16x128xf32>
    %430 = vector.shape_cast %429 : vector<1x1x16x128xf32> to vector<16x128xf32>
    %431 = vector.extract_strided_slice %430 {offsets = [0, 0], sizes = [14, 128], strides = [1, 1]} : vector<16x128xf32> to vector<14x128xf32>
    %c0_201 = arith.constant 0 : index
    %c6_202 = arith.constant 6 : index
    %432 = memref.load %arg2[%c0_201, %c6_202] : memref<16x24xf32, #tpu.memory_space<smem>>
    %433 = vector.broadcast %432 : f32 to vector<14x128xf32>
    %434 = arith.mulf %433, %431 : vector<14x128xf32>
    %435 = arith.addf %367, %434 : vector<14x128xf32>
    %c1_203 = arith.constant 1 : index
    %c6_204 = arith.constant 6 : index
    %436 = memref.load %arg2[%c1_203, %c6_204] : memref<16x24xf32, #tpu.memory_space<smem>>
    %437 = vector.broadcast %436 : f32 to vector<14x128xf32>
    %438 = arith.mulf %437, %431 : vector<14x128xf32>
    %439 = arith.addf %371, %438 : vector<14x128xf32>
    %c2_205 = arith.constant 2 : index
    %c6_206 = arith.constant 6 : index
    %440 = memref.load %arg2[%c2_205, %c6_206] : memref<16x24xf32, #tpu.memory_space<smem>>
    %441 = vector.broadcast %440 : f32 to vector<14x128xf32>
    %442 = arith.mulf %441, %431 : vector<14x128xf32>
    %443 = arith.addf %375, %442 : vector<14x128xf32>
    %c3_207 = arith.constant 3 : index
    %c6_208 = arith.constant 6 : index
    %444 = memref.load %arg2[%c3_207, %c6_208] : memref<16x24xf32, #tpu.memory_space<smem>>
    %445 = vector.broadcast %444 : f32 to vector<14x128xf32>
    %446 = arith.mulf %445, %431 : vector<14x128xf32>
    %447 = arith.addf %379, %446 : vector<14x128xf32>
    %c4_209 = arith.constant 4 : index
    %c6_210 = arith.constant 6 : index
    %448 = memref.load %arg2[%c4_209, %c6_210] : memref<16x24xf32, #tpu.memory_space<smem>>
    %449 = vector.broadcast %448 : f32 to vector<14x128xf32>
    %450 = arith.mulf %449, %431 : vector<14x128xf32>
    %451 = arith.addf %383, %450 : vector<14x128xf32>
    %c5_211 = arith.constant 5 : index
    %c6_212 = arith.constant 6 : index
    %452 = memref.load %arg2[%c5_211, %c6_212] : memref<16x24xf32, #tpu.memory_space<smem>>
    %453 = vector.broadcast %452 : f32 to vector<14x128xf32>
    %454 = arith.mulf %453, %431 : vector<14x128xf32>
    %455 = arith.addf %387, %454 : vector<14x128xf32>
    %c6_213 = arith.constant 6 : index
    %c6_214 = arith.constant 6 : index
    %456 = memref.load %arg2[%c6_213, %c6_214] : memref<16x24xf32, #tpu.memory_space<smem>>
    %457 = vector.broadcast %456 : f32 to vector<14x128xf32>
    %458 = arith.mulf %457, %431 : vector<14x128xf32>
    %459 = arith.addf %391, %458 : vector<14x128xf32>
    %c7_215 = arith.constant 7 : index
    %c6_216 = arith.constant 6 : index
    %460 = memref.load %arg2[%c7_215, %c6_216] : memref<16x24xf32, #tpu.memory_space<smem>>
    %461 = vector.broadcast %460 : f32 to vector<14x128xf32>
    %462 = arith.mulf %461, %431 : vector<14x128xf32>
    %463 = arith.addf %395, %462 : vector<14x128xf32>
    %c8_217 = arith.constant 8 : index
    %c6_218 = arith.constant 6 : index
    %464 = memref.load %arg2[%c8_217, %c6_218] : memref<16x24xf32, #tpu.memory_space<smem>>
    %465 = vector.broadcast %464 : f32 to vector<14x128xf32>
    %466 = arith.mulf %465, %431 : vector<14x128xf32>
    %467 = arith.addf %399, %466 : vector<14x128xf32>
    %c9_219 = arith.constant 9 : index
    %c6_220 = arith.constant 6 : index
    %468 = memref.load %arg2[%c9_219, %c6_220] : memref<16x24xf32, #tpu.memory_space<smem>>
    %469 = vector.broadcast %468 : f32 to vector<14x128xf32>
    %470 = arith.mulf %469, %431 : vector<14x128xf32>
    %471 = arith.addf %403, %470 : vector<14x128xf32>
    %c10_221 = arith.constant 10 : index
    %c6_222 = arith.constant 6 : index
    %472 = memref.load %arg2[%c10_221, %c6_222] : memref<16x24xf32, #tpu.memory_space<smem>>
    %473 = vector.broadcast %472 : f32 to vector<14x128xf32>
    %474 = arith.mulf %473, %431 : vector<14x128xf32>
    %475 = arith.addf %407, %474 : vector<14x128xf32>
    %c11_223 = arith.constant 11 : index
    %c6_224 = arith.constant 6 : index
    %476 = memref.load %arg2[%c11_223, %c6_224] : memref<16x24xf32, #tpu.memory_space<smem>>
    %477 = vector.broadcast %476 : f32 to vector<14x128xf32>
    %478 = arith.mulf %477, %431 : vector<14x128xf32>
    %479 = arith.addf %411, %478 : vector<14x128xf32>
    %c12_225 = arith.constant 12 : index
    %c6_226 = arith.constant 6 : index
    %480 = memref.load %arg2[%c12_225, %c6_226] : memref<16x24xf32, #tpu.memory_space<smem>>
    %481 = vector.broadcast %480 : f32 to vector<14x128xf32>
    %482 = arith.mulf %481, %431 : vector<14x128xf32>
    %483 = arith.addf %415, %482 : vector<14x128xf32>
    %c13_227 = arith.constant 13 : index
    %c6_228 = arith.constant 6 : index
    %484 = memref.load %arg2[%c13_227, %c6_228] : memref<16x24xf32, #tpu.memory_space<smem>>
    %485 = vector.broadcast %484 : f32 to vector<14x128xf32>
    %486 = arith.mulf %485, %431 : vector<14x128xf32>
    %487 = arith.addf %419, %486 : vector<14x128xf32>
    %c14_229 = arith.constant 14 : index
    %c6_230 = arith.constant 6 : index
    %488 = memref.load %arg2[%c14_229, %c6_230] : memref<16x24xf32, #tpu.memory_space<smem>>
    %489 = vector.broadcast %488 : f32 to vector<14x128xf32>
    %490 = arith.mulf %489, %431 : vector<14x128xf32>
    %491 = arith.addf %423, %490 : vector<14x128xf32>
    %c15_231 = arith.constant 15 : index
    %c6_232 = arith.constant 6 : index
    %492 = memref.load %arg2[%c15_231, %c6_232] : memref<16x24xf32, #tpu.memory_space<smem>>
    %493 = vector.broadcast %492 : f32 to vector<14x128xf32>
    %494 = arith.mulf %493, %431 : vector<14x128xf32>
    %495 = arith.addf %427, %494 : vector<14x128xf32>
    %496 = vector.extract_strided_slice %430 {offsets = [1, 0], sizes = [14, 128], strides = [1, 1]} : vector<16x128xf32> to vector<14x128xf32>
    %c0_233 = arith.constant 0 : index
    %c7_234 = arith.constant 7 : index
    %497 = memref.load %arg2[%c0_233, %c7_234] : memref<16x24xf32, #tpu.memory_space<smem>>
    %498 = vector.broadcast %497 : f32 to vector<14x128xf32>
    %499 = arith.mulf %498, %496 : vector<14x128xf32>
    %500 = arith.addf %435, %499 : vector<14x128xf32>
    %c1_235 = arith.constant 1 : index
    %c7_236 = arith.constant 7 : index
    %501 = memref.load %arg2[%c1_235, %c7_236] : memref<16x24xf32, #tpu.memory_space<smem>>
    %502 = vector.broadcast %501 : f32 to vector<14x128xf32>
    %503 = arith.mulf %502, %496 : vector<14x128xf32>
    %504 = arith.addf %439, %503 : vector<14x128xf32>
    %c2_237 = arith.constant 2 : index
    %c7_238 = arith.constant 7 : index
    %505 = memref.load %arg2[%c2_237, %c7_238] : memref<16x24xf32, #tpu.memory_space<smem>>
    %506 = vector.broadcast %505 : f32 to vector<14x128xf32>
    %507 = arith.mulf %506, %496 : vector<14x128xf32>
    %508 = arith.addf %443, %507 : vector<14x128xf32>
    %c3_239 = arith.constant 3 : index
    %c7_240 = arith.constant 7 : index
    %509 = memref.load %arg2[%c3_239, %c7_240] : memref<16x24xf32, #tpu.memory_space<smem>>
    %510 = vector.broadcast %509 : f32 to vector<14x128xf32>
    %511 = arith.mulf %510, %496 : vector<14x128xf32>
    %512 = arith.addf %447, %511 : vector<14x128xf32>
    %c4_241 = arith.constant 4 : index
    %c7_242 = arith.constant 7 : index
    %513 = memref.load %arg2[%c4_241, %c7_242] : memref<16x24xf32, #tpu.memory_space<smem>>
    %514 = vector.broadcast %513 : f32 to vector<14x128xf32>
    %515 = arith.mulf %514, %496 : vector<14x128xf32>
    %516 = arith.addf %451, %515 : vector<14x128xf32>
    %c5_243 = arith.constant 5 : index
    %c7_244 = arith.constant 7 : index
    %517 = memref.load %arg2[%c5_243, %c7_244] : memref<16x24xf32, #tpu.memory_space<smem>>
    %518 = vector.broadcast %517 : f32 to vector<14x128xf32>
    %519 = arith.mulf %518, %496 : vector<14x128xf32>
    %520 = arith.addf %455, %519 : vector<14x128xf32>
    %c6_245 = arith.constant 6 : index
    %c7_246 = arith.constant 7 : index
    %521 = memref.load %arg2[%c6_245, %c7_246] : memref<16x24xf32, #tpu.memory_space<smem>>
    %522 = vector.broadcast %521 : f32 to vector<14x128xf32>
    %523 = arith.mulf %522, %496 : vector<14x128xf32>
    %524 = arith.addf %459, %523 : vector<14x128xf32>
    %c7_247 = arith.constant 7 : index
    %c7_248 = arith.constant 7 : index
    %525 = memref.load %arg2[%c7_247, %c7_248] : memref<16x24xf32, #tpu.memory_space<smem>>
    %526 = vector.broadcast %525 : f32 to vector<14x128xf32>
    %527 = arith.mulf %526, %496 : vector<14x128xf32>
    %528 = arith.addf %463, %527 : vector<14x128xf32>
    %c8_249 = arith.constant 8 : index
    %c7_250 = arith.constant 7 : index
    %529 = memref.load %arg2[%c8_249, %c7_250] : memref<16x24xf32, #tpu.memory_space<smem>>
    %530 = vector.broadcast %529 : f32 to vector<14x128xf32>
    %531 = arith.mulf %530, %496 : vector<14x128xf32>
    %532 = arith.addf %467, %531 : vector<14x128xf32>
    %c9_251 = arith.constant 9 : index
    %c7_252 = arith.constant 7 : index
    %533 = memref.load %arg2[%c9_251, %c7_252] : memref<16x24xf32, #tpu.memory_space<smem>>
    %534 = vector.broadcast %533 : f32 to vector<14x128xf32>
    %535 = arith.mulf %534, %496 : vector<14x128xf32>
    %536 = arith.addf %471, %535 : vector<14x128xf32>
    %c10_253 = arith.constant 10 : index
    %c7_254 = arith.constant 7 : index
    %537 = memref.load %arg2[%c10_253, %c7_254] : memref<16x24xf32, #tpu.memory_space<smem>>
    %538 = vector.broadcast %537 : f32 to vector<14x128xf32>
    %539 = arith.mulf %538, %496 : vector<14x128xf32>
    %540 = arith.addf %475, %539 : vector<14x128xf32>
    %c11_255 = arith.constant 11 : index
    %c7_256 = arith.constant 7 : index
    %541 = memref.load %arg2[%c11_255, %c7_256] : memref<16x24xf32, #tpu.memory_space<smem>>
    %542 = vector.broadcast %541 : f32 to vector<14x128xf32>
    %543 = arith.mulf %542, %496 : vector<14x128xf32>
    %544 = arith.addf %479, %543 : vector<14x128xf32>
    %c12_257 = arith.constant 12 : index
    %c7_258 = arith.constant 7 : index
    %545 = memref.load %arg2[%c12_257, %c7_258] : memref<16x24xf32, #tpu.memory_space<smem>>
    %546 = vector.broadcast %545 : f32 to vector<14x128xf32>
    %547 = arith.mulf %546, %496 : vector<14x128xf32>
    %548 = arith.addf %483, %547 : vector<14x128xf32>
    %c13_259 = arith.constant 13 : index
    %c7_260 = arith.constant 7 : index
    %549 = memref.load %arg2[%c13_259, %c7_260] : memref<16x24xf32, #tpu.memory_space<smem>>
    %550 = vector.broadcast %549 : f32 to vector<14x128xf32>
    %551 = arith.mulf %550, %496 : vector<14x128xf32>
    %552 = arith.addf %487, %551 : vector<14x128xf32>
    %c14_261 = arith.constant 14 : index
    %c7_262 = arith.constant 7 : index
    %553 = memref.load %arg2[%c14_261, %c7_262] : memref<16x24xf32, #tpu.memory_space<smem>>
    %554 = vector.broadcast %553 : f32 to vector<14x128xf32>
    %555 = arith.mulf %554, %496 : vector<14x128xf32>
    %556 = arith.addf %491, %555 : vector<14x128xf32>
    %c15_263 = arith.constant 15 : index
    %c7_264 = arith.constant 7 : index
    %557 = memref.load %arg2[%c15_263, %c7_264] : memref<16x24xf32, #tpu.memory_space<smem>>
    %558 = vector.broadcast %557 : f32 to vector<14x128xf32>
    %559 = arith.mulf %558, %496 : vector<14x128xf32>
    %560 = arith.addf %495, %559 : vector<14x128xf32>
    %561 = vector.extract_strided_slice %430 {offsets = [2, 0], sizes = [14, 128], strides = [1, 1]} : vector<16x128xf32> to vector<14x128xf32>
    %c0_265 = arith.constant 0 : index
    %c8_266 = arith.constant 8 : index
    %562 = memref.load %arg2[%c0_265, %c8_266] : memref<16x24xf32, #tpu.memory_space<smem>>
    %563 = vector.broadcast %562 : f32 to vector<14x128xf32>
    %564 = arith.mulf %563, %561 : vector<14x128xf32>
    %565 = arith.addf %500, %564 : vector<14x128xf32>
    %c1_267 = arith.constant 1 : index
    %c8_268 = arith.constant 8 : index
    %566 = memref.load %arg2[%c1_267, %c8_268] : memref<16x24xf32, #tpu.memory_space<smem>>
    %567 = vector.broadcast %566 : f32 to vector<14x128xf32>
    %568 = arith.mulf %567, %561 : vector<14x128xf32>
    %569 = arith.addf %504, %568 : vector<14x128xf32>
    %c2_269 = arith.constant 2 : index
    %c8_270 = arith.constant 8 : index
    %570 = memref.load %arg2[%c2_269, %c8_270] : memref<16x24xf32, #tpu.memory_space<smem>>
    %571 = vector.broadcast %570 : f32 to vector<14x128xf32>
    %572 = arith.mulf %571, %561 : vector<14x128xf32>
    %573 = arith.addf %508, %572 : vector<14x128xf32>
    %c3_271 = arith.constant 3 : index
    %c8_272 = arith.constant 8 : index
    %574 = memref.load %arg2[%c3_271, %c8_272] : memref<16x24xf32, #tpu.memory_space<smem>>
    %575 = vector.broadcast %574 : f32 to vector<14x128xf32>
    %576 = arith.mulf %575, %561 : vector<14x128xf32>
    %577 = arith.addf %512, %576 : vector<14x128xf32>
    %c4_273 = arith.constant 4 : index
    %c8_274 = arith.constant 8 : index
    %578 = memref.load %arg2[%c4_273, %c8_274] : memref<16x24xf32, #tpu.memory_space<smem>>
    %579 = vector.broadcast %578 : f32 to vector<14x128xf32>
    %580 = arith.mulf %579, %561 : vector<14x128xf32>
    %581 = arith.addf %516, %580 : vector<14x128xf32>
    %c5_275 = arith.constant 5 : index
    %c8_276 = arith.constant 8 : index
    %582 = memref.load %arg2[%c5_275, %c8_276] : memref<16x24xf32, #tpu.memory_space<smem>>
    %583 = vector.broadcast %582 : f32 to vector<14x128xf32>
    %584 = arith.mulf %583, %561 : vector<14x128xf32>
    %585 = arith.addf %520, %584 : vector<14x128xf32>
    %c6_277 = arith.constant 6 : index
    %c8_278 = arith.constant 8 : index
    %586 = memref.load %arg2[%c6_277, %c8_278] : memref<16x24xf32, #tpu.memory_space<smem>>
    %587 = vector.broadcast %586 : f32 to vector<14x128xf32>
    %588 = arith.mulf %587, %561 : vector<14x128xf32>
    %589 = arith.addf %524, %588 : vector<14x128xf32>
    %c7_279 = arith.constant 7 : index
    %c8_280 = arith.constant 8 : index
    %590 = memref.load %arg2[%c7_279, %c8_280] : memref<16x24xf32, #tpu.memory_space<smem>>
    %591 = vector.broadcast %590 : f32 to vector<14x128xf32>
    %592 = arith.mulf %591, %561 : vector<14x128xf32>
    %593 = arith.addf %528, %592 : vector<14x128xf32>
    %c8_281 = arith.constant 8 : index
    %c8_282 = arith.constant 8 : index
    %594 = memref.load %arg2[%c8_281, %c8_282] : memref<16x24xf32, #tpu.memory_space<smem>>
    %595 = vector.broadcast %594 : f32 to vector<14x128xf32>
    %596 = arith.mulf %595, %561 : vector<14x128xf32>
    %597 = arith.addf %532, %596 : vector<14x128xf32>
    %c9_283 = arith.constant 9 : index
    %c8_284 = arith.constant 8 : index
    %598 = memref.load %arg2[%c9_283, %c8_284] : memref<16x24xf32, #tpu.memory_space<smem>>
    %599 = vector.broadcast %598 : f32 to vector<14x128xf32>
    %600 = arith.mulf %599, %561 : vector<14x128xf32>
    %601 = arith.addf %536, %600 : vector<14x128xf32>
    %c10_285 = arith.constant 10 : index
    %c8_286 = arith.constant 8 : index
    %602 = memref.load %arg2[%c10_285, %c8_286] : memref<16x24xf32, #tpu.memory_space<smem>>
    %603 = vector.broadcast %602 : f32 to vector<14x128xf32>
    %604 = arith.mulf %603, %561 : vector<14x128xf32>
    %605 = arith.addf %540, %604 : vector<14x128xf32>
    %c11_287 = arith.constant 11 : index
    %c8_288 = arith.constant 8 : index
    %606 = memref.load %arg2[%c11_287, %c8_288] : memref<16x24xf32, #tpu.memory_space<smem>>
    %607 = vector.broadcast %606 : f32 to vector<14x128xf32>
    %608 = arith.mulf %607, %561 : vector<14x128xf32>
    %609 = arith.addf %544, %608 : vector<14x128xf32>
    %c12_289 = arith.constant 12 : index
    %c8_290 = arith.constant 8 : index
    %610 = memref.load %arg2[%c12_289, %c8_290] : memref<16x24xf32, #tpu.memory_space<smem>>
    %611 = vector.broadcast %610 : f32 to vector<14x128xf32>
    %612 = arith.mulf %611, %561 : vector<14x128xf32>
    %613 = arith.addf %548, %612 : vector<14x128xf32>
    %c13_291 = arith.constant 13 : index
    %c8_292 = arith.constant 8 : index
    %614 = memref.load %arg2[%c13_291, %c8_292] : memref<16x24xf32, #tpu.memory_space<smem>>
    %615 = vector.broadcast %614 : f32 to vector<14x128xf32>
    %616 = arith.mulf %615, %561 : vector<14x128xf32>
    %617 = arith.addf %552, %616 : vector<14x128xf32>
    %c14_293 = arith.constant 14 : index
    %c8_294 = arith.constant 8 : index
    %618 = memref.load %arg2[%c14_293, %c8_294] : memref<16x24xf32, #tpu.memory_space<smem>>
    %619 = vector.broadcast %618 : f32 to vector<14x128xf32>
    %620 = arith.mulf %619, %561 : vector<14x128xf32>
    %621 = arith.addf %556, %620 : vector<14x128xf32>
    %c15_295 = arith.constant 15 : index
    %c8_296 = arith.constant 8 : index
    %622 = memref.load %arg2[%c15_295, %c8_296] : memref<16x24xf32, #tpu.memory_space<smem>>
    %623 = vector.broadcast %622 : f32 to vector<14x128xf32>
    %624 = arith.mulf %623, %561 : vector<14x128xf32>
    %625 = arith.addf %560, %624 : vector<14x128xf32>
    %626 = arith.index_cast %c0_i32 : i32 to index
    %c3_297 = arith.constant 3 : index
    %c0_298 = arith.constant 0 : index
    %c0_299 = arith.constant 0 : index
    %627 = vector.load %arg1[%626, %c3_297, %c0_298, %c0_299] : memref<1x8x16x128xf32, #tpu.memory_space<vmem>>, vector<1x1x16x128xf32>
    %628 = vector.shape_cast %627 : vector<1x1x16x128xf32> to vector<16x128xf32>
    %629 = vector.extract_strided_slice %628 {offsets = [0, 0], sizes = [14, 128], strides = [1, 1]} : vector<16x128xf32> to vector<14x128xf32>
    %c0_300 = arith.constant 0 : index
    %c9_301 = arith.constant 9 : index
    %630 = memref.load %arg2[%c0_300, %c9_301] : memref<16x24xf32, #tpu.memory_space<smem>>
    %631 = vector.broadcast %630 : f32 to vector<14x128xf32>
    %632 = arith.mulf %631, %629 : vector<14x128xf32>
    %633 = arith.addf %565, %632 : vector<14x128xf32>
    %c1_302 = arith.constant 1 : index
    %c9_303 = arith.constant 9 : index
    %634 = memref.load %arg2[%c1_302, %c9_303] : memref<16x24xf32, #tpu.memory_space<smem>>
    %635 = vector.broadcast %634 : f32 to vector<14x128xf32>
    %636 = arith.mulf %635, %629 : vector<14x128xf32>
    %637 = arith.addf %569, %636 : vector<14x128xf32>
    %c2_304 = arith.constant 2 : index
    %c9_305 = arith.constant 9 : index
    %638 = memref.load %arg2[%c2_304, %c9_305] : memref<16x24xf32, #tpu.memory_space<smem>>
    %639 = vector.broadcast %638 : f32 to vector<14x128xf32>
    %640 = arith.mulf %639, %629 : vector<14x128xf32>
    %641 = arith.addf %573, %640 : vector<14x128xf32>
    %c3_306 = arith.constant 3 : index
    %c9_307 = arith.constant 9 : index
    %642 = memref.load %arg2[%c3_306, %c9_307] : memref<16x24xf32, #tpu.memory_space<smem>>
    %643 = vector.broadcast %642 : f32 to vector<14x128xf32>
    %644 = arith.mulf %643, %629 : vector<14x128xf32>
    %645 = arith.addf %577, %644 : vector<14x128xf32>
    %c4_308 = arith.constant 4 : index
    %c9_309 = arith.constant 9 : index
    %646 = memref.load %arg2[%c4_308, %c9_309] : memref<16x24xf32, #tpu.memory_space<smem>>
    %647 = vector.broadcast %646 : f32 to vector<14x128xf32>
    %648 = arith.mulf %647, %629 : vector<14x128xf32>
    %649 = arith.addf %581, %648 : vector<14x128xf32>
    %c5_310 = arith.constant 5 : index
    %c9_311 = arith.constant 9 : index
    %650 = memref.load %arg2[%c5_310, %c9_311] : memref<16x24xf32, #tpu.memory_space<smem>>
    %651 = vector.broadcast %650 : f32 to vector<14x128xf32>
    %652 = arith.mulf %651, %629 : vector<14x128xf32>
    %653 = arith.addf %585, %652 : vector<14x128xf32>
    %c6_312 = arith.constant 6 : index
    %c9_313 = arith.constant 9 : index
    %654 = memref.load %arg2[%c6_312, %c9_313] : memref<16x24xf32, #tpu.memory_space<smem>>
    %655 = vector.broadcast %654 : f32 to vector<14x128xf32>
    %656 = arith.mulf %655, %629 : vector<14x128xf32>
    %657 = arith.addf %589, %656 : vector<14x128xf32>
    %c7_314 = arith.constant 7 : index
    %c9_315 = arith.constant 9 : index
    %658 = memref.load %arg2[%c7_314, %c9_315] : memref<16x24xf32, #tpu.memory_space<smem>>
    %659 = vector.broadcast %658 : f32 to vector<14x128xf32>
    %660 = arith.mulf %659, %629 : vector<14x128xf32>
    %661 = arith.addf %593, %660 : vector<14x128xf32>
    %c8_316 = arith.constant 8 : index
    %c9_317 = arith.constant 9 : index
    %662 = memref.load %arg2[%c8_316, %c9_317] : memref<16x24xf32, #tpu.memory_space<smem>>
    %663 = vector.broadcast %662 : f32 to vector<14x128xf32>
    %664 = arith.mulf %663, %629 : vector<14x128xf32>
    %665 = arith.addf %597, %664 : vector<14x128xf32>
    %c9_318 = arith.constant 9 : index
    %c9_319 = arith.constant 9 : index
    %666 = memref.load %arg2[%c9_318, %c9_319] : memref<16x24xf32, #tpu.memory_space<smem>>
    %667 = vector.broadcast %666 : f32 to vector<14x128xf32>
    %668 = arith.mulf %667, %629 : vector<14x128xf32>
    %669 = arith.addf %601, %668 : vector<14x128xf32>
    %c10_320 = arith.constant 10 : index
    %c9_321 = arith.constant 9 : index
    %670 = memref.load %arg2[%c10_320, %c9_321] : memref<16x24xf32, #tpu.memory_space<smem>>
    %671 = vector.broadcast %670 : f32 to vector<14x128xf32>
    %672 = arith.mulf %671, %629 : vector<14x128xf32>
    %673 = arith.addf %605, %672 : vector<14x128xf32>
    %c11_322 = arith.constant 11 : index
    %c9_323 = arith.constant 9 : index
    %674 = memref.load %arg2[%c11_322, %c9_323] : memref<16x24xf32, #tpu.memory_space<smem>>
    %675 = vector.broadcast %674 : f32 to vector<14x128xf32>
    %676 = arith.mulf %675, %629 : vector<14x128xf32>
    %677 = arith.addf %609, %676 : vector<14x128xf32>
    %c12_324 = arith.constant 12 : index
    %c9_325 = arith.constant 9 : index
    %678 = memref.load %arg2[%c12_324, %c9_325] : memref<16x24xf32, #tpu.memory_space<smem>>
    %679 = vector.broadcast %678 : f32 to vector<14x128xf32>
    %680 = arith.mulf %679, %629 : vector<14x128xf32>
    %681 = arith.addf %613, %680 : vector<14x128xf32>
    %c13_326 = arith.constant 13 : index
    %c9_327 = arith.constant 9 : index
    %682 = memref.load %arg2[%c13_326, %c9_327] : memref<16x24xf32, #tpu.memory_space<smem>>
    %683 = vector.broadcast %682 : f32 to vector<14x128xf32>
    %684 = arith.mulf %683, %629 : vector<14x128xf32>
    %685 = arith.addf %617, %684 : vector<14x128xf32>
    %c14_328 = arith.constant 14 : index
    %c9_329 = arith.constant 9 : index
    %686 = memref.load %arg2[%c14_328, %c9_329] : memref<16x24xf32, #tpu.memory_space<smem>>
    %687 = vector.broadcast %686 : f32 to vector<14x128xf32>
    %688 = arith.mulf %687, %629 : vector<14x128xf32>
    %689 = arith.addf %621, %688 : vector<14x128xf32>
    %c15_330 = arith.constant 15 : index
    %c9_331 = arith.constant 9 : index
    %690 = memref.load %arg2[%c15_330, %c9_331] : memref<16x24xf32, #tpu.memory_space<smem>>
    %691 = vector.broadcast %690 : f32 to vector<14x128xf32>
    %692 = arith.mulf %691, %629 : vector<14x128xf32>
    %693 = arith.addf %625, %692 : vector<14x128xf32>
    %694 = vector.extract_strided_slice %628 {offsets = [1, 0], sizes = [14, 128], strides = [1, 1]} : vector<16x128xf32> to vector<14x128xf32>
    %c0_332 = arith.constant 0 : index
    %c10_333 = arith.constant 10 : index
    %695 = memref.load %arg2[%c0_332, %c10_333] : memref<16x24xf32, #tpu.memory_space<smem>>
    %696 = vector.broadcast %695 : f32 to vector<14x128xf32>
    %697 = arith.mulf %696, %694 : vector<14x128xf32>
    %698 = arith.addf %633, %697 : vector<14x128xf32>
    %c1_334 = arith.constant 1 : index
    %c10_335 = arith.constant 10 : index
    %699 = memref.load %arg2[%c1_334, %c10_335] : memref<16x24xf32, #tpu.memory_space<smem>>
    %700 = vector.broadcast %699 : f32 to vector<14x128xf32>
    %701 = arith.mulf %700, %694 : vector<14x128xf32>
    %702 = arith.addf %637, %701 : vector<14x128xf32>
    %c2_336 = arith.constant 2 : index
    %c10_337 = arith.constant 10 : index
    %703 = memref.load %arg2[%c2_336, %c10_337] : memref<16x24xf32, #tpu.memory_space<smem>>
    %704 = vector.broadcast %703 : f32 to vector<14x128xf32>
    %705 = arith.mulf %704, %694 : vector<14x128xf32>
    %706 = arith.addf %641, %705 : vector<14x128xf32>
    %c3_338 = arith.constant 3 : index
    %c10_339 = arith.constant 10 : index
    %707 = memref.load %arg2[%c3_338, %c10_339] : memref<16x24xf32, #tpu.memory_space<smem>>
    %708 = vector.broadcast %707 : f32 to vector<14x128xf32>
    %709 = arith.mulf %708, %694 : vector<14x128xf32>
    %710 = arith.addf %645, %709 : vector<14x128xf32>
    %c4_340 = arith.constant 4 : index
    %c10_341 = arith.constant 10 : index
    %711 = memref.load %arg2[%c4_340, %c10_341] : memref<16x24xf32, #tpu.memory_space<smem>>
    %712 = vector.broadcast %711 : f32 to vector<14x128xf32>
    %713 = arith.mulf %712, %694 : vector<14x128xf32>
    %714 = arith.addf %649, %713 : vector<14x128xf32>
    %c5_342 = arith.constant 5 : index
    %c10_343 = arith.constant 10 : index
    %715 = memref.load %arg2[%c5_342, %c10_343] : memref<16x24xf32, #tpu.memory_space<smem>>
    %716 = vector.broadcast %715 : f32 to vector<14x128xf32>
    %717 = arith.mulf %716, %694 : vector<14x128xf32>
    %718 = arith.addf %653, %717 : vector<14x128xf32>
    %c6_344 = arith.constant 6 : index
    %c10_345 = arith.constant 10 : index
    %719 = memref.load %arg2[%c6_344, %c10_345] : memref<16x24xf32, #tpu.memory_space<smem>>
    %720 = vector.broadcast %719 : f32 to vector<14x128xf32>
    %721 = arith.mulf %720, %694 : vector<14x128xf32>
    %722 = arith.addf %657, %721 : vector<14x128xf32>
    %c7_346 = arith.constant 7 : index
    %c10_347 = arith.constant 10 : index
    %723 = memref.load %arg2[%c7_346, %c10_347] : memref<16x24xf32, #tpu.memory_space<smem>>
    %724 = vector.broadcast %723 : f32 to vector<14x128xf32>
    %725 = arith.mulf %724, %694 : vector<14x128xf32>
    %726 = arith.addf %661, %725 : vector<14x128xf32>
    %c8_348 = arith.constant 8 : index
    %c10_349 = arith.constant 10 : index
    %727 = memref.load %arg2[%c8_348, %c10_349] : memref<16x24xf32, #tpu.memory_space<smem>>
    %728 = vector.broadcast %727 : f32 to vector<14x128xf32>
    %729 = arith.mulf %728, %694 : vector<14x128xf32>
    %730 = arith.addf %665, %729 : vector<14x128xf32>
    %c9_350 = arith.constant 9 : index
    %c10_351 = arith.constant 10 : index
    %731 = memref.load %arg2[%c9_350, %c10_351] : memref<16x24xf32, #tpu.memory_space<smem>>
    %732 = vector.broadcast %731 : f32 to vector<14x128xf32>
    %733 = arith.mulf %732, %694 : vector<14x128xf32>
    %734 = arith.addf %669, %733 : vector<14x128xf32>
    %c10_352 = arith.constant 10 : index
    %c10_353 = arith.constant 10 : index
    %735 = memref.load %arg2[%c10_352, %c10_353] : memref<16x24xf32, #tpu.memory_space<smem>>
    %736 = vector.broadcast %735 : f32 to vector<14x128xf32>
    %737 = arith.mulf %736, %694 : vector<14x128xf32>
    %738 = arith.addf %673, %737 : vector<14x128xf32>
    %c11_354 = arith.constant 11 : index
    %c10_355 = arith.constant 10 : index
    %739 = memref.load %arg2[%c11_354, %c10_355] : memref<16x24xf32, #tpu.memory_space<smem>>
    %740 = vector.broadcast %739 : f32 to vector<14x128xf32>
    %741 = arith.mulf %740, %694 : vector<14x128xf32>
    %742 = arith.addf %677, %741 : vector<14x128xf32>
    %c12_356 = arith.constant 12 : index
    %c10_357 = arith.constant 10 : index
    %743 = memref.load %arg2[%c12_356, %c10_357] : memref<16x24xf32, #tpu.memory_space<smem>>
    %744 = vector.broadcast %743 : f32 to vector<14x128xf32>
    %745 = arith.mulf %744, %694 : vector<14x128xf32>
    %746 = arith.addf %681, %745 : vector<14x128xf32>
    %c13_358 = arith.constant 13 : index
    %c10_359 = arith.constant 10 : index
    %747 = memref.load %arg2[%c13_358, %c10_359] : memref<16x24xf32, #tpu.memory_space<smem>>
    %748 = vector.broadcast %747 : f32 to vector<14x128xf32>
    %749 = arith.mulf %748, %694 : vector<14x128xf32>
    %750 = arith.addf %685, %749 : vector<14x128xf32>
    %c14_360 = arith.constant 14 : index
    %c10_361 = arith.constant 10 : index
    %751 = memref.load %arg2[%c14_360, %c10_361] : memref<16x24xf32, #tpu.memory_space<smem>>
    %752 = vector.broadcast %751 : f32 to vector<14x128xf32>
    %753 = arith.mulf %752, %694 : vector<14x128xf32>
    %754 = arith.addf %689, %753 : vector<14x128xf32>
    %c15_362 = arith.constant 15 : index
    %c10_363 = arith.constant 10 : index
    %755 = memref.load %arg2[%c15_362, %c10_363] : memref<16x24xf32, #tpu.memory_space<smem>>
    %756 = vector.broadcast %755 : f32 to vector<14x128xf32>
    %757 = arith.mulf %756, %694 : vector<14x128xf32>
    %758 = arith.addf %693, %757 : vector<14x128xf32>
    %759 = vector.extract_strided_slice %628 {offsets = [2, 0], sizes = [14, 128], strides = [1, 1]} : vector<16x128xf32> to vector<14x128xf32>
    %c0_364 = arith.constant 0 : index
    %c11_365 = arith.constant 11 : index
    %760 = memref.load %arg2[%c0_364, %c11_365] : memref<16x24xf32, #tpu.memory_space<smem>>
    %761 = vector.broadcast %760 : f32 to vector<14x128xf32>
    %762 = arith.mulf %761, %759 : vector<14x128xf32>
    %763 = arith.addf %698, %762 : vector<14x128xf32>
    %c1_366 = arith.constant 1 : index
    %c11_367 = arith.constant 11 : index
    %764 = memref.load %arg2[%c1_366, %c11_367] : memref<16x24xf32, #tpu.memory_space<smem>>
    %765 = vector.broadcast %764 : f32 to vector<14x128xf32>
    %766 = arith.mulf %765, %759 : vector<14x128xf32>
    %767 = arith.addf %702, %766 : vector<14x128xf32>
    %c2_368 = arith.constant 2 : index
    %c11_369 = arith.constant 11 : index
    %768 = memref.load %arg2[%c2_368, %c11_369] : memref<16x24xf32, #tpu.memory_space<smem>>
    %769 = vector.broadcast %768 : f32 to vector<14x128xf32>
    %770 = arith.mulf %769, %759 : vector<14x128xf32>
    %771 = arith.addf %706, %770 : vector<14x128xf32>
    %c3_370 = arith.constant 3 : index
    %c11_371 = arith.constant 11 : index
    %772 = memref.load %arg2[%c3_370, %c11_371] : memref<16x24xf32, #tpu.memory_space<smem>>
    %773 = vector.broadcast %772 : f32 to vector<14x128xf32>
    %774 = arith.mulf %773, %759 : vector<14x128xf32>
    %775 = arith.addf %710, %774 : vector<14x128xf32>
    %c4_372 = arith.constant 4 : index
    %c11_373 = arith.constant 11 : index
    %776 = memref.load %arg2[%c4_372, %c11_373] : memref<16x24xf32, #tpu.memory_space<smem>>
    %777 = vector.broadcast %776 : f32 to vector<14x128xf32>
    %778 = arith.mulf %777, %759 : vector<14x128xf32>
    %779 = arith.addf %714, %778 : vector<14x128xf32>
    %c5_374 = arith.constant 5 : index
    %c11_375 = arith.constant 11 : index
    %780 = memref.load %arg2[%c5_374, %c11_375] : memref<16x24xf32, #tpu.memory_space<smem>>
    %781 = vector.broadcast %780 : f32 to vector<14x128xf32>
    %782 = arith.mulf %781, %759 : vector<14x128xf32>
    %783 = arith.addf %718, %782 : vector<14x128xf32>
    %c6_376 = arith.constant 6 : index
    %c11_377 = arith.constant 11 : index
    %784 = memref.load %arg2[%c6_376, %c11_377] : memref<16x24xf32, #tpu.memory_space<smem>>
    %785 = vector.broadcast %784 : f32 to vector<14x128xf32>
    %786 = arith.mulf %785, %759 : vector<14x128xf32>
    %787 = arith.addf %722, %786 : vector<14x128xf32>
    %c7_378 = arith.constant 7 : index
    %c11_379 = arith.constant 11 : index
    %788 = memref.load %arg2[%c7_378, %c11_379] : memref<16x24xf32, #tpu.memory_space<smem>>
    %789 = vector.broadcast %788 : f32 to vector<14x128xf32>
    %790 = arith.mulf %789, %759 : vector<14x128xf32>
    %791 = arith.addf %726, %790 : vector<14x128xf32>
    %c8_380 = arith.constant 8 : index
    %c11_381 = arith.constant 11 : index
    %792 = memref.load %arg2[%c8_380, %c11_381] : memref<16x24xf32, #tpu.memory_space<smem>>
    %793 = vector.broadcast %792 : f32 to vector<14x128xf32>
    %794 = arith.mulf %793, %759 : vector<14x128xf32>
    %795 = arith.addf %730, %794 : vector<14x128xf32>
    %c9_382 = arith.constant 9 : index
    %c11_383 = arith.constant 11 : index
    %796 = memref.load %arg2[%c9_382, %c11_383] : memref<16x24xf32, #tpu.memory_space<smem>>
    %797 = vector.broadcast %796 : f32 to vector<14x128xf32>
    %798 = arith.mulf %797, %759 : vector<14x128xf32>
    %799 = arith.addf %734, %798 : vector<14x128xf32>
    %c10_384 = arith.constant 10 : index
    %c11_385 = arith.constant 11 : index
    %800 = memref.load %arg2[%c10_384, %c11_385] : memref<16x24xf32, #tpu.memory_space<smem>>
    %801 = vector.broadcast %800 : f32 to vector<14x128xf32>
    %802 = arith.mulf %801, %759 : vector<14x128xf32>
    %803 = arith.addf %738, %802 : vector<14x128xf32>
    %c11_386 = arith.constant 11 : index
    %c11_387 = arith.constant 11 : index
    %804 = memref.load %arg2[%c11_386, %c11_387] : memref<16x24xf32, #tpu.memory_space<smem>>
    %805 = vector.broadcast %804 : f32 to vector<14x128xf32>
    %806 = arith.mulf %805, %759 : vector<14x128xf32>
    %807 = arith.addf %742, %806 : vector<14x128xf32>
    %c12_388 = arith.constant 12 : index
    %c11_389 = arith.constant 11 : index
    %808 = memref.load %arg2[%c12_388, %c11_389] : memref<16x24xf32, #tpu.memory_space<smem>>
    %809 = vector.broadcast %808 : f32 to vector<14x128xf32>
    %810 = arith.mulf %809, %759 : vector<14x128xf32>
    %811 = arith.addf %746, %810 : vector<14x128xf32>
    %c13_390 = arith.constant 13 : index
    %c11_391 = arith.constant 11 : index
    %812 = memref.load %arg2[%c13_390, %c11_391] : memref<16x24xf32, #tpu.memory_space<smem>>
    %813 = vector.broadcast %812 : f32 to vector<14x128xf32>
    %814 = arith.mulf %813, %759 : vector<14x128xf32>
    %815 = arith.addf %750, %814 : vector<14x128xf32>
    %c14_392 = arith.constant 14 : index
    %c11_393 = arith.constant 11 : index
    %816 = memref.load %arg2[%c14_392, %c11_393] : memref<16x24xf32, #tpu.memory_space<smem>>
    %817 = vector.broadcast %816 : f32 to vector<14x128xf32>
    %818 = arith.mulf %817, %759 : vector<14x128xf32>
    %819 = arith.addf %754, %818 : vector<14x128xf32>
    %c15_394 = arith.constant 15 : index
    %c11_395 = arith.constant 11 : index
    %820 = memref.load %arg2[%c15_394, %c11_395] : memref<16x24xf32, #tpu.memory_space<smem>>
    %821 = vector.broadcast %820 : f32 to vector<14x128xf32>
    %822 = arith.mulf %821, %759 : vector<14x128xf32>
    %823 = arith.addf %758, %822 : vector<14x128xf32>
    %824 = arith.index_cast %c0_i32 : i32 to index
    %c4_396 = arith.constant 4 : index
    %c0_397 = arith.constant 0 : index
    %c0_398 = arith.constant 0 : index
    %825 = vector.load %arg1[%824, %c4_396, %c0_397, %c0_398] : memref<1x8x16x128xf32, #tpu.memory_space<vmem>>, vector<1x1x16x128xf32>
    %826 = vector.shape_cast %825 : vector<1x1x16x128xf32> to vector<16x128xf32>
    %827 = vector.extract_strided_slice %826 {offsets = [0, 0], sizes = [14, 128], strides = [1, 1]} : vector<16x128xf32> to vector<14x128xf32>
    %c0_399 = arith.constant 0 : index
    %c12_400 = arith.constant 12 : index
    %828 = memref.load %arg2[%c0_399, %c12_400] : memref<16x24xf32, #tpu.memory_space<smem>>
    %829 = vector.broadcast %828 : f32 to vector<14x128xf32>
    %830 = arith.mulf %829, %827 : vector<14x128xf32>
    %831 = arith.addf %763, %830 : vector<14x128xf32>
    %c1_401 = arith.constant 1 : index
    %c12_402 = arith.constant 12 : index
    %832 = memref.load %arg2[%c1_401, %c12_402] : memref<16x24xf32, #tpu.memory_space<smem>>
    %833 = vector.broadcast %832 : f32 to vector<14x128xf32>
    %834 = arith.mulf %833, %827 : vector<14x128xf32>
    %835 = arith.addf %767, %834 : vector<14x128xf32>
    %c2_403 = arith.constant 2 : index
    %c12_404 = arith.constant 12 : index
    %836 = memref.load %arg2[%c2_403, %c12_404] : memref<16x24xf32, #tpu.memory_space<smem>>
    %837 = vector.broadcast %836 : f32 to vector<14x128xf32>
    %838 = arith.mulf %837, %827 : vector<14x128xf32>
    %839 = arith.addf %771, %838 : vector<14x128xf32>
    %c3_405 = arith.constant 3 : index
    %c12_406 = arith.constant 12 : index
    %840 = memref.load %arg2[%c3_405, %c12_406] : memref<16x24xf32, #tpu.memory_space<smem>>
    %841 = vector.broadcast %840 : f32 to vector<14x128xf32>
    %842 = arith.mulf %841, %827 : vector<14x128xf32>
    %843 = arith.addf %775, %842 : vector<14x128xf32>
    %c4_407 = arith.constant 4 : index
    %c12_408 = arith.constant 12 : index
    %844 = memref.load %arg2[%c4_407, %c12_408] : memref<16x24xf32, #tpu.memory_space<smem>>
    %845 = vector.broadcast %844 : f32 to vector<14x128xf32>
    %846 = arith.mulf %845, %827 : vector<14x128xf32>
    %847 = arith.addf %779, %846 : vector<14x128xf32>
    %c5_409 = arith.constant 5 : index
    %c12_410 = arith.constant 12 : index
    %848 = memref.load %arg2[%c5_409, %c12_410] : memref<16x24xf32, #tpu.memory_space<smem>>
    %849 = vector.broadcast %848 : f32 to vector<14x128xf32>
    %850 = arith.mulf %849, %827 : vector<14x128xf32>
    %851 = arith.addf %783, %850 : vector<14x128xf32>
    %c6_411 = arith.constant 6 : index
    %c12_412 = arith.constant 12 : index
    %852 = memref.load %arg2[%c6_411, %c12_412] : memref<16x24xf32, #tpu.memory_space<smem>>
    %853 = vector.broadcast %852 : f32 to vector<14x128xf32>
    %854 = arith.mulf %853, %827 : vector<14x128xf32>
    %855 = arith.addf %787, %854 : vector<14x128xf32>
    %c7_413 = arith.constant 7 : index
    %c12_414 = arith.constant 12 : index
    %856 = memref.load %arg2[%c7_413, %c12_414] : memref<16x24xf32, #tpu.memory_space<smem>>
    %857 = vector.broadcast %856 : f32 to vector<14x128xf32>
    %858 = arith.mulf %857, %827 : vector<14x128xf32>
    %859 = arith.addf %791, %858 : vector<14x128xf32>
    %c8_415 = arith.constant 8 : index
    %c12_416 = arith.constant 12 : index
    %860 = memref.load %arg2[%c8_415, %c12_416] : memref<16x24xf32, #tpu.memory_space<smem>>
    %861 = vector.broadcast %860 : f32 to vector<14x128xf32>
    %862 = arith.mulf %861, %827 : vector<14x128xf32>
    %863 = arith.addf %795, %862 : vector<14x128xf32>
    %c9_417 = arith.constant 9 : index
    %c12_418 = arith.constant 12 : index
    %864 = memref.load %arg2[%c9_417, %c12_418] : memref<16x24xf32, #tpu.memory_space<smem>>
    %865 = vector.broadcast %864 : f32 to vector<14x128xf32>
    %866 = arith.mulf %865, %827 : vector<14x128xf32>
    %867 = arith.addf %799, %866 : vector<14x128xf32>
    %c10_419 = arith.constant 10 : index
    %c12_420 = arith.constant 12 : index
    %868 = memref.load %arg2[%c10_419, %c12_420] : memref<16x24xf32, #tpu.memory_space<smem>>
    %869 = vector.broadcast %868 : f32 to vector<14x128xf32>
    %870 = arith.mulf %869, %827 : vector<14x128xf32>
    %871 = arith.addf %803, %870 : vector<14x128xf32>
    %c11_421 = arith.constant 11 : index
    %c12_422 = arith.constant 12 : index
    %872 = memref.load %arg2[%c11_421, %c12_422] : memref<16x24xf32, #tpu.memory_space<smem>>
    %873 = vector.broadcast %872 : f32 to vector<14x128xf32>
    %874 = arith.mulf %873, %827 : vector<14x128xf32>
    %875 = arith.addf %807, %874 : vector<14x128xf32>
    %c12_423 = arith.constant 12 : index
    %c12_424 = arith.constant 12 : index
    %876 = memref.load %arg2[%c12_423, %c12_424] : memref<16x24xf32, #tpu.memory_space<smem>>
    %877 = vector.broadcast %876 : f32 to vector<14x128xf32>
    %878 = arith.mulf %877, %827 : vector<14x128xf32>
    %879 = arith.addf %811, %878 : vector<14x128xf32>
    %c13_425 = arith.constant 13 : index
    %c12_426 = arith.constant 12 : index
    %880 = memref.load %arg2[%c13_425, %c12_426] : memref<16x24xf32, #tpu.memory_space<smem>>
    %881 = vector.broadcast %880 : f32 to vector<14x128xf32>
    %882 = arith.mulf %881, %827 : vector<14x128xf32>
    %883 = arith.addf %815, %882 : vector<14x128xf32>
    %c14_427 = arith.constant 14 : index
    %c12_428 = arith.constant 12 : index
    %884 = memref.load %arg2[%c14_427, %c12_428] : memref<16x24xf32, #tpu.memory_space<smem>>
    %885 = vector.broadcast %884 : f32 to vector<14x128xf32>
    %886 = arith.mulf %885, %827 : vector<14x128xf32>
    %887 = arith.addf %819, %886 : vector<14x128xf32>
    %c15_429 = arith.constant 15 : index
    %c12_430 = arith.constant 12 : index
    %888 = memref.load %arg2[%c15_429, %c12_430] : memref<16x24xf32, #tpu.memory_space<smem>>
    %889 = vector.broadcast %888 : f32 to vector<14x128xf32>
    %890 = arith.mulf %889, %827 : vector<14x128xf32>
    %891 = arith.addf %823, %890 : vector<14x128xf32>
    %892 = vector.extract_strided_slice %826 {offsets = [1, 0], sizes = [14, 128], strides = [1, 1]} : vector<16x128xf32> to vector<14x128xf32>
    %c0_431 = arith.constant 0 : index
    %c13_432 = arith.constant 13 : index
    %893 = memref.load %arg2[%c0_431, %c13_432] : memref<16x24xf32, #tpu.memory_space<smem>>
    %894 = vector.broadcast %893 : f32 to vector<14x128xf32>
    %895 = arith.mulf %894, %892 : vector<14x128xf32>
    %896 = arith.addf %831, %895 : vector<14x128xf32>
    %c1_433 = arith.constant 1 : index
    %c13_434 = arith.constant 13 : index
    %897 = memref.load %arg2[%c1_433, %c13_434] : memref<16x24xf32, #tpu.memory_space<smem>>
    %898 = vector.broadcast %897 : f32 to vector<14x128xf32>
    %899 = arith.mulf %898, %892 : vector<14x128xf32>
    %900 = arith.addf %835, %899 : vector<14x128xf32>
    %c2_435 = arith.constant 2 : index
    %c13_436 = arith.constant 13 : index
    %901 = memref.load %arg2[%c2_435, %c13_436] : memref<16x24xf32, #tpu.memory_space<smem>>
    %902 = vector.broadcast %901 : f32 to vector<14x128xf32>
    %903 = arith.mulf %902, %892 : vector<14x128xf32>
    %904 = arith.addf %839, %903 : vector<14x128xf32>
    %c3_437 = arith.constant 3 : index
    %c13_438 = arith.constant 13 : index
    %905 = memref.load %arg2[%c3_437, %c13_438] : memref<16x24xf32, #tpu.memory_space<smem>>
    %906 = vector.broadcast %905 : f32 to vector<14x128xf32>
    %907 = arith.mulf %906, %892 : vector<14x128xf32>
    %908 = arith.addf %843, %907 : vector<14x128xf32>
    %c4_439 = arith.constant 4 : index
    %c13_440 = arith.constant 13 : index
    %909 = memref.load %arg2[%c4_439, %c13_440] : memref<16x24xf32, #tpu.memory_space<smem>>
    %910 = vector.broadcast %909 : f32 to vector<14x128xf32>
    %911 = arith.mulf %910, %892 : vector<14x128xf32>
    %912 = arith.addf %847, %911 : vector<14x128xf32>
    %c5_441 = arith.constant 5 : index
    %c13_442 = arith.constant 13 : index
    %913 = memref.load %arg2[%c5_441, %c13_442] : memref<16x24xf32, #tpu.memory_space<smem>>
    %914 = vector.broadcast %913 : f32 to vector<14x128xf32>
    %915 = arith.mulf %914, %892 : vector<14x128xf32>
    %916 = arith.addf %851, %915 : vector<14x128xf32>
    %c6_443 = arith.constant 6 : index
    %c13_444 = arith.constant 13 : index
    %917 = memref.load %arg2[%c6_443, %c13_444] : memref<16x24xf32, #tpu.memory_space<smem>>
    %918 = vector.broadcast %917 : f32 to vector<14x128xf32>
    %919 = arith.mulf %918, %892 : vector<14x128xf32>
    %920 = arith.addf %855, %919 : vector<14x128xf32>
    %c7_445 = arith.constant 7 : index
    %c13_446 = arith.constant 13 : index
    %921 = memref.load %arg2[%c7_445, %c13_446] : memref<16x24xf32, #tpu.memory_space<smem>>
    %922 = vector.broadcast %921 : f32 to vector<14x128xf32>
    %923 = arith.mulf %922, %892 : vector<14x128xf32>
    %924 = arith.addf %859, %923 : vector<14x128xf32>
    %c8_447 = arith.constant 8 : index
    %c13_448 = arith.constant 13 : index
    %925 = memref.load %arg2[%c8_447, %c13_448] : memref<16x24xf32, #tpu.memory_space<smem>>
    %926 = vector.broadcast %925 : f32 to vector<14x128xf32>
    %927 = arith.mulf %926, %892 : vector<14x128xf32>
    %928 = arith.addf %863, %927 : vector<14x128xf32>
    %c9_449 = arith.constant 9 : index
    %c13_450 = arith.constant 13 : index
    %929 = memref.load %arg2[%c9_449, %c13_450] : memref<16x24xf32, #tpu.memory_space<smem>>
    %930 = vector.broadcast %929 : f32 to vector<14x128xf32>
    %931 = arith.mulf %930, %892 : vector<14x128xf32>
    %932 = arith.addf %867, %931 : vector<14x128xf32>
    %c10_451 = arith.constant 10 : index
    %c13_452 = arith.constant 13 : index
    %933 = memref.load %arg2[%c10_451, %c13_452] : memref<16x24xf32, #tpu.memory_space<smem>>
    %934 = vector.broadcast %933 : f32 to vector<14x128xf32>
    %935 = arith.mulf %934, %892 : vector<14x128xf32>
    %936 = arith.addf %871, %935 : vector<14x128xf32>
    %c11_453 = arith.constant 11 : index
    %c13_454 = arith.constant 13 : index
    %937 = memref.load %arg2[%c11_453, %c13_454] : memref<16x24xf32, #tpu.memory_space<smem>>
    %938 = vector.broadcast %937 : f32 to vector<14x128xf32>
    %939 = arith.mulf %938, %892 : vector<14x128xf32>
    %940 = arith.addf %875, %939 : vector<14x128xf32>
    %c12_455 = arith.constant 12 : index
    %c13_456 = arith.constant 13 : index
    %941 = memref.load %arg2[%c12_455, %c13_456] : memref<16x24xf32, #tpu.memory_space<smem>>
    %942 = vector.broadcast %941 : f32 to vector<14x128xf32>
    %943 = arith.mulf %942, %892 : vector<14x128xf32>
    %944 = arith.addf %879, %943 : vector<14x128xf32>
    %c13_457 = arith.constant 13 : index
    %c13_458 = arith.constant 13 : index
    %945 = memref.load %arg2[%c13_457, %c13_458] : memref<16x24xf32, #tpu.memory_space<smem>>
    %946 = vector.broadcast %945 : f32 to vector<14x128xf32>
    %947 = arith.mulf %946, %892 : vector<14x128xf32>
    %948 = arith.addf %883, %947 : vector<14x128xf32>
    %c14_459 = arith.constant 14 : index
    %c13_460 = arith.constant 13 : index
    %949 = memref.load %arg2[%c14_459, %c13_460] : memref<16x24xf32, #tpu.memory_space<smem>>
    %950 = vector.broadcast %949 : f32 to vector<14x128xf32>
    %951 = arith.mulf %950, %892 : vector<14x128xf32>
    %952 = arith.addf %887, %951 : vector<14x128xf32>
    %c15_461 = arith.constant 15 : index
    %c13_462 = arith.constant 13 : index
    %953 = memref.load %arg2[%c15_461, %c13_462] : memref<16x24xf32, #tpu.memory_space<smem>>
    %954 = vector.broadcast %953 : f32 to vector<14x128xf32>
    %955 = arith.mulf %954, %892 : vector<14x128xf32>
    %956 = arith.addf %891, %955 : vector<14x128xf32>
    %957 = vector.extract_strided_slice %826 {offsets = [2, 0], sizes = [14, 128], strides = [1, 1]} : vector<16x128xf32> to vector<14x128xf32>
    %c0_463 = arith.constant 0 : index
    %c14_464 = arith.constant 14 : index
    %958 = memref.load %arg2[%c0_463, %c14_464] : memref<16x24xf32, #tpu.memory_space<smem>>
    %959 = vector.broadcast %958 : f32 to vector<14x128xf32>
    %960 = arith.mulf %959, %957 : vector<14x128xf32>
    %961 = arith.addf %896, %960 : vector<14x128xf32>
    %c1_465 = arith.constant 1 : index
    %c14_466 = arith.constant 14 : index
    %962 = memref.load %arg2[%c1_465, %c14_466] : memref<16x24xf32, #tpu.memory_space<smem>>
    %963 = vector.broadcast %962 : f32 to vector<14x128xf32>
    %964 = arith.mulf %963, %957 : vector<14x128xf32>
    %965 = arith.addf %900, %964 : vector<14x128xf32>
    %c2_467 = arith.constant 2 : index
    %c14_468 = arith.constant 14 : index
    %966 = memref.load %arg2[%c2_467, %c14_468] : memref<16x24xf32, #tpu.memory_space<smem>>
    %967 = vector.broadcast %966 : f32 to vector<14x128xf32>
    %968 = arith.mulf %967, %957 : vector<14x128xf32>
    %969 = arith.addf %904, %968 : vector<14x128xf32>
    %c3_469 = arith.constant 3 : index
    %c14_470 = arith.constant 14 : index
    %970 = memref.load %arg2[%c3_469, %c14_470] : memref<16x24xf32, #tpu.memory_space<smem>>
    %971 = vector.broadcast %970 : f32 to vector<14x128xf32>
    %972 = arith.mulf %971, %957 : vector<14x128xf32>
    %973 = arith.addf %908, %972 : vector<14x128xf32>
    %c4_471 = arith.constant 4 : index
    %c14_472 = arith.constant 14 : index
    %974 = memref.load %arg2[%c4_471, %c14_472] : memref<16x24xf32, #tpu.memory_space<smem>>
    %975 = vector.broadcast %974 : f32 to vector<14x128xf32>
    %976 = arith.mulf %975, %957 : vector<14x128xf32>
    %977 = arith.addf %912, %976 : vector<14x128xf32>
    %c5_473 = arith.constant 5 : index
    %c14_474 = arith.constant 14 : index
    %978 = memref.load %arg2[%c5_473, %c14_474] : memref<16x24xf32, #tpu.memory_space<smem>>
    %979 = vector.broadcast %978 : f32 to vector<14x128xf32>
    %980 = arith.mulf %979, %957 : vector<14x128xf32>
    %981 = arith.addf %916, %980 : vector<14x128xf32>
    %c6_475 = arith.constant 6 : index
    %c14_476 = arith.constant 14 : index
    %982 = memref.load %arg2[%c6_475, %c14_476] : memref<16x24xf32, #tpu.memory_space<smem>>
    %983 = vector.broadcast %982 : f32 to vector<14x128xf32>
    %984 = arith.mulf %983, %957 : vector<14x128xf32>
    %985 = arith.addf %920, %984 : vector<14x128xf32>
    %c7_477 = arith.constant 7 : index
    %c14_478 = arith.constant 14 : index
    %986 = memref.load %arg2[%c7_477, %c14_478] : memref<16x24xf32, #tpu.memory_space<smem>>
    %987 = vector.broadcast %986 : f32 to vector<14x128xf32>
    %988 = arith.mulf %987, %957 : vector<14x128xf32>
    %989 = arith.addf %924, %988 : vector<14x128xf32>
    %c8_479 = arith.constant 8 : index
    %c14_480 = arith.constant 14 : index
    %990 = memref.load %arg2[%c8_479, %c14_480] : memref<16x24xf32, #tpu.memory_space<smem>>
    %991 = vector.broadcast %990 : f32 to vector<14x128xf32>
    %992 = arith.mulf %991, %957 : vector<14x128xf32>
    %993 = arith.addf %928, %992 : vector<14x128xf32>
    %c9_481 = arith.constant 9 : index
    %c14_482 = arith.constant 14 : index
    %994 = memref.load %arg2[%c9_481, %c14_482] : memref<16x24xf32, #tpu.memory_space<smem>>
    %995 = vector.broadcast %994 : f32 to vector<14x128xf32>
    %996 = arith.mulf %995, %957 : vector<14x128xf32>
    %997 = arith.addf %932, %996 : vector<14x128xf32>
    %c10_483 = arith.constant 10 : index
    %c14_484 = arith.constant 14 : index
    %998 = memref.load %arg2[%c10_483, %c14_484] : memref<16x24xf32, #tpu.memory_space<smem>>
    %999 = vector.broadcast %998 : f32 to vector<14x128xf32>
    %1000 = arith.mulf %999, %957 : vector<14x128xf32>
    %1001 = arith.addf %936, %1000 : vector<14x128xf32>
    %c11_485 = arith.constant 11 : index
    %c14_486 = arith.constant 14 : index
    %1002 = memref.load %arg2[%c11_485, %c14_486] : memref<16x24xf32, #tpu.memory_space<smem>>
    %1003 = vector.broadcast %1002 : f32 to vector<14x128xf32>
    %1004 = arith.mulf %1003, %957 : vector<14x128xf32>
    %1005 = arith.addf %940, %1004 : vector<14x128xf32>
    %c12_487 = arith.constant 12 : index
    %c14_488 = arith.constant 14 : index
    %1006 = memref.load %arg2[%c12_487, %c14_488] : memref<16x24xf32, #tpu.memory_space<smem>>
    %1007 = vector.broadcast %1006 : f32 to vector<14x128xf32>
    %1008 = arith.mulf %1007, %957 : vector<14x128xf32>
    %1009 = arith.addf %944, %1008 : vector<14x128xf32>
    %c13_489 = arith.constant 13 : index
    %c14_490 = arith.constant 14 : index
    %1010 = memref.load %arg2[%c13_489, %c14_490] : memref<16x24xf32, #tpu.memory_space<smem>>
    %1011 = vector.broadcast %1010 : f32 to vector<14x128xf32>
    %1012 = arith.mulf %1011, %957 : vector<14x128xf32>
    %1013 = arith.addf %948, %1012 : vector<14x128xf32>
    %c14_491 = arith.constant 14 : index
    %c14_492 = arith.constant 14 : index
    %1014 = memref.load %arg2[%c14_491, %c14_492] : memref<16x24xf32, #tpu.memory_space<smem>>
    %1015 = vector.broadcast %1014 : f32 to vector<14x128xf32>
    %1016 = arith.mulf %1015, %957 : vector<14x128xf32>
    %1017 = arith.addf %952, %1016 : vector<14x128xf32>
    %c15_493 = arith.constant 15 : index
    %c14_494 = arith.constant 14 : index
    %1018 = memref.load %arg2[%c15_493, %c14_494] : memref<16x24xf32, #tpu.memory_space<smem>>
    %1019 = vector.broadcast %1018 : f32 to vector<14x128xf32>
    %1020 = arith.mulf %1019, %957 : vector<14x128xf32>
    %1021 = arith.addf %956, %1020 : vector<14x128xf32>
    %1022 = arith.index_cast %c0_i32 : i32 to index
    %c5_495 = arith.constant 5 : index
    %c0_496 = arith.constant 0 : index
    %c0_497 = arith.constant 0 : index
    %1023 = vector.load %arg1[%1022, %c5_495, %c0_496, %c0_497] : memref<1x8x16x128xf32, #tpu.memory_space<vmem>>, vector<1x1x16x128xf32>
    %1024 = vector.shape_cast %1023 : vector<1x1x16x128xf32> to vector<16x128xf32>
    %1025 = vector.extract_strided_slice %1024 {offsets = [0, 0], sizes = [14, 128], strides = [1, 1]} : vector<16x128xf32> to vector<14x128xf32>
    %c0_498 = arith.constant 0 : index
    %c15_499 = arith.constant 15 : index
    %1026 = memref.load %arg2[%c0_498, %c15_499] : memref<16x24xf32, #tpu.memory_space<smem>>
    %1027 = vector.broadcast %1026 : f32 to vector<14x128xf32>
    %1028 = arith.mulf %1027, %1025 : vector<14x128xf32>
    %1029 = arith.addf %961, %1028 : vector<14x128xf32>
    %c1_500 = arith.constant 1 : index
    %c15_501 = arith.constant 15 : index
    %1030 = memref.load %arg2[%c1_500, %c15_501] : memref<16x24xf32, #tpu.memory_space<smem>>
    %1031 = vector.broadcast %1030 : f32 to vector<14x128xf32>
    %1032 = arith.mulf %1031, %1025 : vector<14x128xf32>
    %1033 = arith.addf %965, %1032 : vector<14x128xf32>
    %c2_502 = arith.constant 2 : index
    %c15_503 = arith.constant 15 : index
    %1034 = memref.load %arg2[%c2_502, %c15_503] : memref<16x24xf32, #tpu.memory_space<smem>>
    %1035 = vector.broadcast %1034 : f32 to vector<14x128xf32>
    %1036 = arith.mulf %1035, %1025 : vector<14x128xf32>
    %1037 = arith.addf %969, %1036 : vector<14x128xf32>
    %c3_504 = arith.constant 3 : index
    %c15_505 = arith.constant 15 : index
    %1038 = memref.load %arg2[%c3_504, %c15_505] : memref<16x24xf32, #tpu.memory_space<smem>>
    %1039 = vector.broadcast %1038 : f32 to vector<14x128xf32>
    %1040 = arith.mulf %1039, %1025 : vector<14x128xf32>
    %1041 = arith.addf %973, %1040 : vector<14x128xf32>
    %c4_506 = arith.constant 4 : index
    %c15_507 = arith.constant 15 : index
    %1042 = memref.load %arg2[%c4_506, %c15_507] : memref<16x24xf32, #tpu.memory_space<smem>>
    %1043 = vector.broadcast %1042 : f32 to vector<14x128xf32>
    %1044 = arith.mulf %1043, %1025 : vector<14x128xf32>
    %1045 = arith.addf %977, %1044 : vector<14x128xf32>
    %c5_508 = arith.constant 5 : index
    %c15_509 = arith.constant 15 : index
    %1046 = memref.load %arg2[%c5_508, %c15_509] : memref<16x24xf32, #tpu.memory_space<smem>>
    %1047 = vector.broadcast %1046 : f32 to vector<14x128xf32>
    %1048 = arith.mulf %1047, %1025 : vector<14x128xf32>
    %1049 = arith.addf %981, %1048 : vector<14x128xf32>
    %c6_510 = arith.constant 6 : index
    %c15_511 = arith.constant 15 : index
    %1050 = memref.load %arg2[%c6_510, %c15_511] : memref<16x24xf32, #tpu.memory_space<smem>>
    %1051 = vector.broadcast %1050 : f32 to vector<14x128xf32>
    %1052 = arith.mulf %1051, %1025 : vector<14x128xf32>
    %1053 = arith.addf %985, %1052 : vector<14x128xf32>
    %c7_512 = arith.constant 7 : index
    %c15_513 = arith.constant 15 : index
    %1054 = memref.load %arg2[%c7_512, %c15_513] : memref<16x24xf32, #tpu.memory_space<smem>>
    %1055 = vector.broadcast %1054 : f32 to vector<14x128xf32>
    %1056 = arith.mulf %1055, %1025 : vector<14x128xf32>
    %1057 = arith.addf %989, %1056 : vector<14x128xf32>
    %c8_514 = arith.constant 8 : index
    %c15_515 = arith.constant 15 : index
    %1058 = memref.load %arg2[%c8_514, %c15_515] : memref<16x24xf32, #tpu.memory_space<smem>>
    %1059 = vector.broadcast %1058 : f32 to vector<14x128xf32>
    %1060 = arith.mulf %1059, %1025 : vector<14x128xf32>
    %1061 = arith.addf %993, %1060 : vector<14x128xf32>
    %c9_516 = arith.constant 9 : index
    %c15_517 = arith.constant 15 : index
    %1062 = memref.load %arg2[%c9_516, %c15_517] : memref<16x24xf32, #tpu.memory_space<smem>>
    %1063 = vector.broadcast %1062 : f32 to vector<14x128xf32>
    %1064 = arith.mulf %1063, %1025 : vector<14x128xf32>
    %1065 = arith.addf %997, %1064 : vector<14x128xf32>
    %c10_518 = arith.constant 10 : index
    %c15_519 = arith.constant 15 : index
    %1066 = memref.load %arg2[%c10_518, %c15_519] : memref<16x24xf32, #tpu.memory_space<smem>>
    %1067 = vector.broadcast %1066 : f32 to vector<14x128xf32>
    %1068 = arith.mulf %1067, %1025 : vector<14x128xf32>
    %1069 = arith.addf %1001, %1068 : vector<14x128xf32>
    %c11_520 = arith.constant 11 : index
    %c15_521 = arith.constant 15 : index
    %1070 = memref.load %arg2[%c11_520, %c15_521] : memref<16x24xf32, #tpu.memory_space<smem>>
    %1071 = vector.broadcast %1070 : f32 to vector<14x128xf32>
    %1072 = arith.mulf %1071, %1025 : vector<14x128xf32>
    %1073 = arith.addf %1005, %1072 : vector<14x128xf32>
    %c12_522 = arith.constant 12 : index
    %c15_523 = arith.constant 15 : index
    %1074 = memref.load %arg2[%c12_522, %c15_523] : memref<16x24xf32, #tpu.memory_space<smem>>
    %1075 = vector.broadcast %1074 : f32 to vector<14x128xf32>
    %1076 = arith.mulf %1075, %1025 : vector<14x128xf32>
    %1077 = arith.addf %1009, %1076 : vector<14x128xf32>
    %c13_524 = arith.constant 13 : index
    %c15_525 = arith.constant 15 : index
    %1078 = memref.load %arg2[%c13_524, %c15_525] : memref<16x24xf32, #tpu.memory_space<smem>>
    %1079 = vector.broadcast %1078 : f32 to vector<14x128xf32>
    %1080 = arith.mulf %1079, %1025 : vector<14x128xf32>
    %1081 = arith.addf %1013, %1080 : vector<14x128xf32>
    %c14_526 = arith.constant 14 : index
    %c15_527 = arith.constant 15 : index
    %1082 = memref.load %arg2[%c14_526, %c15_527] : memref<16x24xf32, #tpu.memory_space<smem>>
    %1083 = vector.broadcast %1082 : f32 to vector<14x128xf32>
    %1084 = arith.mulf %1083, %1025 : vector<14x128xf32>
    %1085 = arith.addf %1017, %1084 : vector<14x128xf32>
    %c15_528 = arith.constant 15 : index
    %c15_529 = arith.constant 15 : index
    %1086 = memref.load %arg2[%c15_528, %c15_529] : memref<16x24xf32, #tpu.memory_space<smem>>
    %1087 = vector.broadcast %1086 : f32 to vector<14x128xf32>
    %1088 = arith.mulf %1087, %1025 : vector<14x128xf32>
    %1089 = arith.addf %1021, %1088 : vector<14x128xf32>
    %1090 = vector.extract_strided_slice %1024 {offsets = [1, 0], sizes = [14, 128], strides = [1, 1]} : vector<16x128xf32> to vector<14x128xf32>
    %c0_530 = arith.constant 0 : index
    %c16 = arith.constant 16 : index
    %1091 = memref.load %arg2[%c0_530, %c16] : memref<16x24xf32, #tpu.memory_space<smem>>
    %1092 = vector.broadcast %1091 : f32 to vector<14x128xf32>
    %1093 = arith.mulf %1092, %1090 : vector<14x128xf32>
    %1094 = arith.addf %1029, %1093 : vector<14x128xf32>
    %c1_531 = arith.constant 1 : index
    %c16_532 = arith.constant 16 : index
    %1095 = memref.load %arg2[%c1_531, %c16_532] : memref<16x24xf32, #tpu.memory_space<smem>>
    %1096 = vector.broadcast %1095 : f32 to vector<14x128xf32>
    %1097 = arith.mulf %1096, %1090 : vector<14x128xf32>
    %1098 = arith.addf %1033, %1097 : vector<14x128xf32>
    %c2_533 = arith.constant 2 : index
    %c16_534 = arith.constant 16 : index
    %1099 = memref.load %arg2[%c2_533, %c16_534] : memref<16x24xf32, #tpu.memory_space<smem>>
    %1100 = vector.broadcast %1099 : f32 to vector<14x128xf32>
    %1101 = arith.mulf %1100, %1090 : vector<14x128xf32>
    %1102 = arith.addf %1037, %1101 : vector<14x128xf32>
    %c3_535 = arith.constant 3 : index
    %c16_536 = arith.constant 16 : index
    %1103 = memref.load %arg2[%c3_535, %c16_536] : memref<16x24xf32, #tpu.memory_space<smem>>
    %1104 = vector.broadcast %1103 : f32 to vector<14x128xf32>
    %1105 = arith.mulf %1104, %1090 : vector<14x128xf32>
    %1106 = arith.addf %1041, %1105 : vector<14x128xf32>
    %c4_537 = arith.constant 4 : index
    %c16_538 = arith.constant 16 : index
    %1107 = memref.load %arg2[%c4_537, %c16_538] : memref<16x24xf32, #tpu.memory_space<smem>>
    %1108 = vector.broadcast %1107 : f32 to vector<14x128xf32>
    %1109 = arith.mulf %1108, %1090 : vector<14x128xf32>
    %1110 = arith.addf %1045, %1109 : vector<14x128xf32>
    %c5_539 = arith.constant 5 : index
    %c16_540 = arith.constant 16 : index
    %1111 = memref.load %arg2[%c5_539, %c16_540] : memref<16x24xf32, #tpu.memory_space<smem>>
    %1112 = vector.broadcast %1111 : f32 to vector<14x128xf32>
    %1113 = arith.mulf %1112, %1090 : vector<14x128xf32>
    %1114 = arith.addf %1049, %1113 : vector<14x128xf32>
    %c6_541 = arith.constant 6 : index
    %c16_542 = arith.constant 16 : index
    %1115 = memref.load %arg2[%c6_541, %c16_542] : memref<16x24xf32, #tpu.memory_space<smem>>
    %1116 = vector.broadcast %1115 : f32 to vector<14x128xf32>
    %1117 = arith.mulf %1116, %1090 : vector<14x128xf32>
    %1118 = arith.addf %1053, %1117 : vector<14x128xf32>
    %c7_543 = arith.constant 7 : index
    %c16_544 = arith.constant 16 : index
    %1119 = memref.load %arg2[%c7_543, %c16_544] : memref<16x24xf32, #tpu.memory_space<smem>>
    %1120 = vector.broadcast %1119 : f32 to vector<14x128xf32>
    %1121 = arith.mulf %1120, %1090 : vector<14x128xf32>
    %1122 = arith.addf %1057, %1121 : vector<14x128xf32>
    %c8_545 = arith.constant 8 : index
    %c16_546 = arith.constant 16 : index
    %1123 = memref.load %arg2[%c8_545, %c16_546] : memref<16x24xf32, #tpu.memory_space<smem>>
    %1124 = vector.broadcast %1123 : f32 to vector<14x128xf32>
    %1125 = arith.mulf %1124, %1090 : vector<14x128xf32>
    %1126 = arith.addf %1061, %1125 : vector<14x128xf32>
    %c9_547 = arith.constant 9 : index
    %c16_548 = arith.constant 16 : index
    %1127 = memref.load %arg2[%c9_547, %c16_548] : memref<16x24xf32, #tpu.memory_space<smem>>
    %1128 = vector.broadcast %1127 : f32 to vector<14x128xf32>
    %1129 = arith.mulf %1128, %1090 : vector<14x128xf32>
    %1130 = arith.addf %1065, %1129 : vector<14x128xf32>
    %c10_549 = arith.constant 10 : index
    %c16_550 = arith.constant 16 : index
    %1131 = memref.load %arg2[%c10_549, %c16_550] : memref<16x24xf32, #tpu.memory_space<smem>>
    %1132 = vector.broadcast %1131 : f32 to vector<14x128xf32>
    %1133 = arith.mulf %1132, %1090 : vector<14x128xf32>
    %1134 = arith.addf %1069, %1133 : vector<14x128xf32>
    %c11_551 = arith.constant 11 : index
    %c16_552 = arith.constant 16 : index
    %1135 = memref.load %arg2[%c11_551, %c16_552] : memref<16x24xf32, #tpu.memory_space<smem>>
    %1136 = vector.broadcast %1135 : f32 to vector<14x128xf32>
    %1137 = arith.mulf %1136, %1090 : vector<14x128xf32>
    %1138 = arith.addf %1073, %1137 : vector<14x128xf32>
    %c12_553 = arith.constant 12 : index
    %c16_554 = arith.constant 16 : index
    %1139 = memref.load %arg2[%c12_553, %c16_554] : memref<16x24xf32, #tpu.memory_space<smem>>
    %1140 = vector.broadcast %1139 : f32 to vector<14x128xf32>
    %1141 = arith.mulf %1140, %1090 : vector<14x128xf32>
    %1142 = arith.addf %1077, %1141 : vector<14x128xf32>
    %c13_555 = arith.constant 13 : index
    %c16_556 = arith.constant 16 : index
    %1143 = memref.load %arg2[%c13_555, %c16_556] : memref<16x24xf32, #tpu.memory_space<smem>>
    %1144 = vector.broadcast %1143 : f32 to vector<14x128xf32>
    %1145 = arith.mulf %1144, %1090 : vector<14x128xf32>
    %1146 = arith.addf %1081, %1145 : vector<14x128xf32>
    %c14_557 = arith.constant 14 : index
    %c16_558 = arith.constant 16 : index
    %1147 = memref.load %arg2[%c14_557, %c16_558] : memref<16x24xf32, #tpu.memory_space<smem>>
    %1148 = vector.broadcast %1147 : f32 to vector<14x128xf32>
    %1149 = arith.mulf %1148, %1090 : vector<14x128xf32>
    %1150 = arith.addf %1085, %1149 : vector<14x128xf32>
    %c15_559 = arith.constant 15 : index
    %c16_560 = arith.constant 16 : index
    %1151 = memref.load %arg2[%c15_559, %c16_560] : memref<16x24xf32, #tpu.memory_space<smem>>
    %1152 = vector.broadcast %1151 : f32 to vector<14x128xf32>
    %1153 = arith.mulf %1152, %1090 : vector<14x128xf32>
    %1154 = arith.addf %1089, %1153 : vector<14x128xf32>
    %1155 = vector.extract_strided_slice %1024 {offsets = [2, 0], sizes = [14, 128], strides = [1, 1]} : vector<16x128xf32> to vector<14x128xf32>
    %c0_561 = arith.constant 0 : index
    %c17 = arith.constant 17 : index
    %1156 = memref.load %arg2[%c0_561, %c17] : memref<16x24xf32, #tpu.memory_space<smem>>
    %1157 = vector.broadcast %1156 : f32 to vector<14x128xf32>
    %1158 = arith.mulf %1157, %1155 : vector<14x128xf32>
    %1159 = arith.addf %1094, %1158 : vector<14x128xf32>
    %c1_562 = arith.constant 1 : index
    %c17_563 = arith.constant 17 : index
    %1160 = memref.load %arg2[%c1_562, %c17_563] : memref<16x24xf32, #tpu.memory_space<smem>>
    %1161 = vector.broadcast %1160 : f32 to vector<14x128xf32>
    %1162 = arith.mulf %1161, %1155 : vector<14x128xf32>
    %1163 = arith.addf %1098, %1162 : vector<14x128xf32>
    %c2_564 = arith.constant 2 : index
    %c17_565 = arith.constant 17 : index
    %1164 = memref.load %arg2[%c2_564, %c17_565] : memref<16x24xf32, #tpu.memory_space<smem>>
    %1165 = vector.broadcast %1164 : f32 to vector<14x128xf32>
    %1166 = arith.mulf %1165, %1155 : vector<14x128xf32>
    %1167 = arith.addf %1102, %1166 : vector<14x128xf32>
    %c3_566 = arith.constant 3 : index
    %c17_567 = arith.constant 17 : index
    %1168 = memref.load %arg2[%c3_566, %c17_567] : memref<16x24xf32, #tpu.memory_space<smem>>
    %1169 = vector.broadcast %1168 : f32 to vector<14x128xf32>
    %1170 = arith.mulf %1169, %1155 : vector<14x128xf32>
    %1171 = arith.addf %1106, %1170 : vector<14x128xf32>
    %c4_568 = arith.constant 4 : index
    %c17_569 = arith.constant 17 : index
    %1172 = memref.load %arg2[%c4_568, %c17_569] : memref<16x24xf32, #tpu.memory_space<smem>>
    %1173 = vector.broadcast %1172 : f32 to vector<14x128xf32>
    %1174 = arith.mulf %1173, %1155 : vector<14x128xf32>
    %1175 = arith.addf %1110, %1174 : vector<14x128xf32>
    %c5_570 = arith.constant 5 : index
    %c17_571 = arith.constant 17 : index
    %1176 = memref.load %arg2[%c5_570, %c17_571] : memref<16x24xf32, #tpu.memory_space<smem>>
    %1177 = vector.broadcast %1176 : f32 to vector<14x128xf32>
    %1178 = arith.mulf %1177, %1155 : vector<14x128xf32>
    %1179 = arith.addf %1114, %1178 : vector<14x128xf32>
    %c6_572 = arith.constant 6 : index
    %c17_573 = arith.constant 17 : index
    %1180 = memref.load %arg2[%c6_572, %c17_573] : memref<16x24xf32, #tpu.memory_space<smem>>
    %1181 = vector.broadcast %1180 : f32 to vector<14x128xf32>
    %1182 = arith.mulf %1181, %1155 : vector<14x128xf32>
    %1183 = arith.addf %1118, %1182 : vector<14x128xf32>
    %c7_574 = arith.constant 7 : index
    %c17_575 = arith.constant 17 : index
    %1184 = memref.load %arg2[%c7_574, %c17_575] : memref<16x24xf32, #tpu.memory_space<smem>>
    %1185 = vector.broadcast %1184 : f32 to vector<14x128xf32>
    %1186 = arith.mulf %1185, %1155 : vector<14x128xf32>
    %1187 = arith.addf %1122, %1186 : vector<14x128xf32>
    %c8_576 = arith.constant 8 : index
    %c17_577 = arith.constant 17 : index
    %1188 = memref.load %arg2[%c8_576, %c17_577] : memref<16x24xf32, #tpu.memory_space<smem>>
    %1189 = vector.broadcast %1188 : f32 to vector<14x128xf32>
    %1190 = arith.mulf %1189, %1155 : vector<14x128xf32>
    %1191 = arith.addf %1126, %1190 : vector<14x128xf32>
    %c9_578 = arith.constant 9 : index
    %c17_579 = arith.constant 17 : index
    %1192 = memref.load %arg2[%c9_578, %c17_579] : memref<16x24xf32, #tpu.memory_space<smem>>
    %1193 = vector.broadcast %1192 : f32 to vector<14x128xf32>
    %1194 = arith.mulf %1193, %1155 : vector<14x128xf32>
    %1195 = arith.addf %1130, %1194 : vector<14x128xf32>
    %c10_580 = arith.constant 10 : index
    %c17_581 = arith.constant 17 : index
    %1196 = memref.load %arg2[%c10_580, %c17_581] : memref<16x24xf32, #tpu.memory_space<smem>>
    %1197 = vector.broadcast %1196 : f32 to vector<14x128xf32>
    %1198 = arith.mulf %1197, %1155 : vector<14x128xf32>
    %1199 = arith.addf %1134, %1198 : vector<14x128xf32>
    %c11_582 = arith.constant 11 : index
    %c17_583 = arith.constant 17 : index
    %1200 = memref.load %arg2[%c11_582, %c17_583] : memref<16x24xf32, #tpu.memory_space<smem>>
    %1201 = vector.broadcast %1200 : f32 to vector<14x128xf32>
    %1202 = arith.mulf %1201, %1155 : vector<14x128xf32>
    %1203 = arith.addf %1138, %1202 : vector<14x128xf32>
    %c12_584 = arith.constant 12 : index
    %c17_585 = arith.constant 17 : index
    %1204 = memref.load %arg2[%c12_584, %c17_585] : memref<16x24xf32, #tpu.memory_space<smem>>
    %1205 = vector.broadcast %1204 : f32 to vector<14x128xf32>
    %1206 = arith.mulf %1205, %1155 : vector<14x128xf32>
    %1207 = arith.addf %1142, %1206 : vector<14x128xf32>
    %c13_586 = arith.constant 13 : index
    %c17_587 = arith.constant 17 : index
    %1208 = memref.load %arg2[%c13_586, %c17_587] : memref<16x24xf32, #tpu.memory_space<smem>>
    %1209 = vector.broadcast %1208 : f32 to vector<14x128xf32>
    %1210 = arith.mulf %1209, %1155 : vector<14x128xf32>
    %1211 = arith.addf %1146, %1210 : vector<14x128xf32>
    %c14_588 = arith.constant 14 : index
    %c17_589 = arith.constant 17 : index
    %1212 = memref.load %arg2[%c14_588, %c17_589] : memref<16x24xf32, #tpu.memory_space<smem>>
    %1213 = vector.broadcast %1212 : f32 to vector<14x128xf32>
    %1214 = arith.mulf %1213, %1155 : vector<14x128xf32>
    %1215 = arith.addf %1150, %1214 : vector<14x128xf32>
    %c15_590 = arith.constant 15 : index
    %c17_591 = arith.constant 17 : index
    %1216 = memref.load %arg2[%c15_590, %c17_591] : memref<16x24xf32, #tpu.memory_space<smem>>
    %1217 = vector.broadcast %1216 : f32 to vector<14x128xf32>
    %1218 = arith.mulf %1217, %1155 : vector<14x128xf32>
    %1219 = arith.addf %1154, %1218 : vector<14x128xf32>
    %1220 = arith.index_cast %c0_i32 : i32 to index
    %c6_592 = arith.constant 6 : index
    %c0_593 = arith.constant 0 : index
    %c0_594 = arith.constant 0 : index
    %1221 = vector.load %arg1[%1220, %c6_592, %c0_593, %c0_594] : memref<1x8x16x128xf32, #tpu.memory_space<vmem>>, vector<1x1x16x128xf32>
    %1222 = vector.shape_cast %1221 : vector<1x1x16x128xf32> to vector<16x128xf32>
    %1223 = vector.extract_strided_slice %1222 {offsets = [0, 0], sizes = [14, 128], strides = [1, 1]} : vector<16x128xf32> to vector<14x128xf32>
    %c0_595 = arith.constant 0 : index
    %c18 = arith.constant 18 : index
    %1224 = memref.load %arg2[%c0_595, %c18] : memref<16x24xf32, #tpu.memory_space<smem>>
    %1225 = vector.broadcast %1224 : f32 to vector<14x128xf32>
    %1226 = arith.mulf %1225, %1223 : vector<14x128xf32>
    %1227 = arith.addf %1159, %1226 : vector<14x128xf32>
    %c1_596 = arith.constant 1 : index
    %c18_597 = arith.constant 18 : index
    %1228 = memref.load %arg2[%c1_596, %c18_597] : memref<16x24xf32, #tpu.memory_space<smem>>
    %1229 = vector.broadcast %1228 : f32 to vector<14x128xf32>
    %1230 = arith.mulf %1229, %1223 : vector<14x128xf32>
    %1231 = arith.addf %1163, %1230 : vector<14x128xf32>
    %c2_598 = arith.constant 2 : index
    %c18_599 = arith.constant 18 : index
    %1232 = memref.load %arg2[%c2_598, %c18_599] : memref<16x24xf32, #tpu.memory_space<smem>>
    %1233 = vector.broadcast %1232 : f32 to vector<14x128xf32>
    %1234 = arith.mulf %1233, %1223 : vector<14x128xf32>
    %1235 = arith.addf %1167, %1234 : vector<14x128xf32>
    %c3_600 = arith.constant 3 : index
    %c18_601 = arith.constant 18 : index
    %1236 = memref.load %arg2[%c3_600, %c18_601] : memref<16x24xf32, #tpu.memory_space<smem>>
    %1237 = vector.broadcast %1236 : f32 to vector<14x128xf32>
    %1238 = arith.mulf %1237, %1223 : vector<14x128xf32>
    %1239 = arith.addf %1171, %1238 : vector<14x128xf32>
    %c4_602 = arith.constant 4 : index
    %c18_603 = arith.constant 18 : index
    %1240 = memref.load %arg2[%c4_602, %c18_603] : memref<16x24xf32, #tpu.memory_space<smem>>
    %1241 = vector.broadcast %1240 : f32 to vector<14x128xf32>
    %1242 = arith.mulf %1241, %1223 : vector<14x128xf32>
    %1243 = arith.addf %1175, %1242 : vector<14x128xf32>
    %c5_604 = arith.constant 5 : index
    %c18_605 = arith.constant 18 : index
    %1244 = memref.load %arg2[%c5_604, %c18_605] : memref<16x24xf32, #tpu.memory_space<smem>>
    %1245 = vector.broadcast %1244 : f32 to vector<14x128xf32>
    %1246 = arith.mulf %1245, %1223 : vector<14x128xf32>
    %1247 = arith.addf %1179, %1246 : vector<14x128xf32>
    %c6_606 = arith.constant 6 : index
    %c18_607 = arith.constant 18 : index
    %1248 = memref.load %arg2[%c6_606, %c18_607] : memref<16x24xf32, #tpu.memory_space<smem>>
    %1249 = vector.broadcast %1248 : f32 to vector<14x128xf32>
    %1250 = arith.mulf %1249, %1223 : vector<14x128xf32>
    %1251 = arith.addf %1183, %1250 : vector<14x128xf32>
    %c7_608 = arith.constant 7 : index
    %c18_609 = arith.constant 18 : index
    %1252 = memref.load %arg2[%c7_608, %c18_609] : memref<16x24xf32, #tpu.memory_space<smem>>
    %1253 = vector.broadcast %1252 : f32 to vector<14x128xf32>
    %1254 = arith.mulf %1253, %1223 : vector<14x128xf32>
    %1255 = arith.addf %1187, %1254 : vector<14x128xf32>
    %c8_610 = arith.constant 8 : index
    %c18_611 = arith.constant 18 : index
    %1256 = memref.load %arg2[%c8_610, %c18_611] : memref<16x24xf32, #tpu.memory_space<smem>>
    %1257 = vector.broadcast %1256 : f32 to vector<14x128xf32>
    %1258 = arith.mulf %1257, %1223 : vector<14x128xf32>
    %1259 = arith.addf %1191, %1258 : vector<14x128xf32>
    %c9_612 = arith.constant 9 : index
    %c18_613 = arith.constant 18 : index
    %1260 = memref.load %arg2[%c9_612, %c18_613] : memref<16x24xf32, #tpu.memory_space<smem>>
    %1261 = vector.broadcast %1260 : f32 to vector<14x128xf32>
    %1262 = arith.mulf %1261, %1223 : vector<14x128xf32>
    %1263 = arith.addf %1195, %1262 : vector<14x128xf32>
    %c10_614 = arith.constant 10 : index
    %c18_615 = arith.constant 18 : index
    %1264 = memref.load %arg2[%c10_614, %c18_615] : memref<16x24xf32, #tpu.memory_space<smem>>
    %1265 = vector.broadcast %1264 : f32 to vector<14x128xf32>
    %1266 = arith.mulf %1265, %1223 : vector<14x128xf32>
    %1267 = arith.addf %1199, %1266 : vector<14x128xf32>
    %c11_616 = arith.constant 11 : index
    %c18_617 = arith.constant 18 : index
    %1268 = memref.load %arg2[%c11_616, %c18_617] : memref<16x24xf32, #tpu.memory_space<smem>>
    %1269 = vector.broadcast %1268 : f32 to vector<14x128xf32>
    %1270 = arith.mulf %1269, %1223 : vector<14x128xf32>
    %1271 = arith.addf %1203, %1270 : vector<14x128xf32>
    %c12_618 = arith.constant 12 : index
    %c18_619 = arith.constant 18 : index
    %1272 = memref.load %arg2[%c12_618, %c18_619] : memref<16x24xf32, #tpu.memory_space<smem>>
    %1273 = vector.broadcast %1272 : f32 to vector<14x128xf32>
    %1274 = arith.mulf %1273, %1223 : vector<14x128xf32>
    %1275 = arith.addf %1207, %1274 : vector<14x128xf32>
    %c13_620 = arith.constant 13 : index
    %c18_621 = arith.constant 18 : index
    %1276 = memref.load %arg2[%c13_620, %c18_621] : memref<16x24xf32, #tpu.memory_space<smem>>
    %1277 = vector.broadcast %1276 : f32 to vector<14x128xf32>
    %1278 = arith.mulf %1277, %1223 : vector<14x128xf32>
    %1279 = arith.addf %1211, %1278 : vector<14x128xf32>
    %c14_622 = arith.constant 14 : index
    %c18_623 = arith.constant 18 : index
    %1280 = memref.load %arg2[%c14_622, %c18_623] : memref<16x24xf32, #tpu.memory_space<smem>>
    %1281 = vector.broadcast %1280 : f32 to vector<14x128xf32>
    %1282 = arith.mulf %1281, %1223 : vector<14x128xf32>
    %1283 = arith.addf %1215, %1282 : vector<14x128xf32>
    %c15_624 = arith.constant 15 : index
    %c18_625 = arith.constant 18 : index
    %1284 = memref.load %arg2[%c15_624, %c18_625] : memref<16x24xf32, #tpu.memory_space<smem>>
    %1285 = vector.broadcast %1284 : f32 to vector<14x128xf32>
    %1286 = arith.mulf %1285, %1223 : vector<14x128xf32>
    %1287 = arith.addf %1219, %1286 : vector<14x128xf32>
    %1288 = vector.extract_strided_slice %1222 {offsets = [1, 0], sizes = [14, 128], strides = [1, 1]} : vector<16x128xf32> to vector<14x128xf32>
    %c0_626 = arith.constant 0 : index
    %c19 = arith.constant 19 : index
    %1289 = memref.load %arg2[%c0_626, %c19] : memref<16x24xf32, #tpu.memory_space<smem>>
    %1290 = vector.broadcast %1289 : f32 to vector<14x128xf32>
    %1291 = arith.mulf %1290, %1288 : vector<14x128xf32>
    %1292 = arith.addf %1227, %1291 : vector<14x128xf32>
    %c1_627 = arith.constant 1 : index
    %c19_628 = arith.constant 19 : index
    %1293 = memref.load %arg2[%c1_627, %c19_628] : memref<16x24xf32, #tpu.memory_space<smem>>
    %1294 = vector.broadcast %1293 : f32 to vector<14x128xf32>
    %1295 = arith.mulf %1294, %1288 : vector<14x128xf32>
    %1296 = arith.addf %1231, %1295 : vector<14x128xf32>
    %c2_629 = arith.constant 2 : index
    %c19_630 = arith.constant 19 : index
    %1297 = memref.load %arg2[%c2_629, %c19_630] : memref<16x24xf32, #tpu.memory_space<smem>>
    %1298 = vector.broadcast %1297 : f32 to vector<14x128xf32>
    %1299 = arith.mulf %1298, %1288 : vector<14x128xf32>
    %1300 = arith.addf %1235, %1299 : vector<14x128xf32>
    %c3_631 = arith.constant 3 : index
    %c19_632 = arith.constant 19 : index
    %1301 = memref.load %arg2[%c3_631, %c19_632] : memref<16x24xf32, #tpu.memory_space<smem>>
    %1302 = vector.broadcast %1301 : f32 to vector<14x128xf32>
    %1303 = arith.mulf %1302, %1288 : vector<14x128xf32>
    %1304 = arith.addf %1239, %1303 : vector<14x128xf32>
    %c4_633 = arith.constant 4 : index
    %c19_634 = arith.constant 19 : index
    %1305 = memref.load %arg2[%c4_633, %c19_634] : memref<16x24xf32, #tpu.memory_space<smem>>
    %1306 = vector.broadcast %1305 : f32 to vector<14x128xf32>
    %1307 = arith.mulf %1306, %1288 : vector<14x128xf32>
    %1308 = arith.addf %1243, %1307 : vector<14x128xf32>
    %c5_635 = arith.constant 5 : index
    %c19_636 = arith.constant 19 : index
    %1309 = memref.load %arg2[%c5_635, %c19_636] : memref<16x24xf32, #tpu.memory_space<smem>>
    %1310 = vector.broadcast %1309 : f32 to vector<14x128xf32>
    %1311 = arith.mulf %1310, %1288 : vector<14x128xf32>
    %1312 = arith.addf %1247, %1311 : vector<14x128xf32>
    %c6_637 = arith.constant 6 : index
    %c19_638 = arith.constant 19 : index
    %1313 = memref.load %arg2[%c6_637, %c19_638] : memref<16x24xf32, #tpu.memory_space<smem>>
    %1314 = vector.broadcast %1313 : f32 to vector<14x128xf32>
    %1315 = arith.mulf %1314, %1288 : vector<14x128xf32>
    %1316 = arith.addf %1251, %1315 : vector<14x128xf32>
    %c7_639 = arith.constant 7 : index
    %c19_640 = arith.constant 19 : index
    %1317 = memref.load %arg2[%c7_639, %c19_640] : memref<16x24xf32, #tpu.memory_space<smem>>
    %1318 = vector.broadcast %1317 : f32 to vector<14x128xf32>
    %1319 = arith.mulf %1318, %1288 : vector<14x128xf32>
    %1320 = arith.addf %1255, %1319 : vector<14x128xf32>
    %c8_641 = arith.constant 8 : index
    %c19_642 = arith.constant 19 : index
    %1321 = memref.load %arg2[%c8_641, %c19_642] : memref<16x24xf32, #tpu.memory_space<smem>>
    %1322 = vector.broadcast %1321 : f32 to vector<14x128xf32>
    %1323 = arith.mulf %1322, %1288 : vector<14x128xf32>
    %1324 = arith.addf %1259, %1323 : vector<14x128xf32>
    %c9_643 = arith.constant 9 : index
    %c19_644 = arith.constant 19 : index
    %1325 = memref.load %arg2[%c9_643, %c19_644] : memref<16x24xf32, #tpu.memory_space<smem>>
    %1326 = vector.broadcast %1325 : f32 to vector<14x128xf32>
    %1327 = arith.mulf %1326, %1288 : vector<14x128xf32>
    %1328 = arith.addf %1263, %1327 : vector<14x128xf32>
    %c10_645 = arith.constant 10 : index
    %c19_646 = arith.constant 19 : index
    %1329 = memref.load %arg2[%c10_645, %c19_646] : memref<16x24xf32, #tpu.memory_space<smem>>
    %1330 = vector.broadcast %1329 : f32 to vector<14x128xf32>
    %1331 = arith.mulf %1330, %1288 : vector<14x128xf32>
    %1332 = arith.addf %1267, %1331 : vector<14x128xf32>
    %c11_647 = arith.constant 11 : index
    %c19_648 = arith.constant 19 : index
    %1333 = memref.load %arg2[%c11_647, %c19_648] : memref<16x24xf32, #tpu.memory_space<smem>>
    %1334 = vector.broadcast %1333 : f32 to vector<14x128xf32>
    %1335 = arith.mulf %1334, %1288 : vector<14x128xf32>
    %1336 = arith.addf %1271, %1335 : vector<14x128xf32>
    %c12_649 = arith.constant 12 : index
    %c19_650 = arith.constant 19 : index
    %1337 = memref.load %arg2[%c12_649, %c19_650] : memref<16x24xf32, #tpu.memory_space<smem>>
    %1338 = vector.broadcast %1337 : f32 to vector<14x128xf32>
    %1339 = arith.mulf %1338, %1288 : vector<14x128xf32>
    %1340 = arith.addf %1275, %1339 : vector<14x128xf32>
    %c13_651 = arith.constant 13 : index
    %c19_652 = arith.constant 19 : index
    %1341 = memref.load %arg2[%c13_651, %c19_652] : memref<16x24xf32, #tpu.memory_space<smem>>
    %1342 = vector.broadcast %1341 : f32 to vector<14x128xf32>
    %1343 = arith.mulf %1342, %1288 : vector<14x128xf32>
    %1344 = arith.addf %1279, %1343 : vector<14x128xf32>
    %c14_653 = arith.constant 14 : index
    %c19_654 = arith.constant 19 : index
    %1345 = memref.load %arg2[%c14_653, %c19_654] : memref<16x24xf32, #tpu.memory_space<smem>>
    %1346 = vector.broadcast %1345 : f32 to vector<14x128xf32>
    %1347 = arith.mulf %1346, %1288 : vector<14x128xf32>
    %1348 = arith.addf %1283, %1347 : vector<14x128xf32>
    %c15_655 = arith.constant 15 : index
    %c19_656 = arith.constant 19 : index
    %1349 = memref.load %arg2[%c15_655, %c19_656] : memref<16x24xf32, #tpu.memory_space<smem>>
    %1350 = vector.broadcast %1349 : f32 to vector<14x128xf32>
    %1351 = arith.mulf %1350, %1288 : vector<14x128xf32>
    %1352 = arith.addf %1287, %1351 : vector<14x128xf32>
    %1353 = vector.extract_strided_slice %1222 {offsets = [2, 0], sizes = [14, 128], strides = [1, 1]} : vector<16x128xf32> to vector<14x128xf32>
    %c0_657 = arith.constant 0 : index
    %c20 = arith.constant 20 : index
    %1354 = memref.load %arg2[%c0_657, %c20] : memref<16x24xf32, #tpu.memory_space<smem>>
    %1355 = vector.broadcast %1354 : f32 to vector<14x128xf32>
    %1356 = arith.mulf %1355, %1353 : vector<14x128xf32>
    %1357 = arith.addf %1292, %1356 : vector<14x128xf32>
    %c1_658 = arith.constant 1 : index
    %c20_659 = arith.constant 20 : index
    %1358 = memref.load %arg2[%c1_658, %c20_659] : memref<16x24xf32, #tpu.memory_space<smem>>
    %1359 = vector.broadcast %1358 : f32 to vector<14x128xf32>
    %1360 = arith.mulf %1359, %1353 : vector<14x128xf32>
    %1361 = arith.addf %1296, %1360 : vector<14x128xf32>
    %c2_660 = arith.constant 2 : index
    %c20_661 = arith.constant 20 : index
    %1362 = memref.load %arg2[%c2_660, %c20_661] : memref<16x24xf32, #tpu.memory_space<smem>>
    %1363 = vector.broadcast %1362 : f32 to vector<14x128xf32>
    %1364 = arith.mulf %1363, %1353 : vector<14x128xf32>
    %1365 = arith.addf %1300, %1364 : vector<14x128xf32>
    %c3_662 = arith.constant 3 : index
    %c20_663 = arith.constant 20 : index
    %1366 = memref.load %arg2[%c3_662, %c20_663] : memref<16x24xf32, #tpu.memory_space<smem>>
    %1367 = vector.broadcast %1366 : f32 to vector<14x128xf32>
    %1368 = arith.mulf %1367, %1353 : vector<14x128xf32>
    %1369 = arith.addf %1304, %1368 : vector<14x128xf32>
    %c4_664 = arith.constant 4 : index
    %c20_665 = arith.constant 20 : index
    %1370 = memref.load %arg2[%c4_664, %c20_665] : memref<16x24xf32, #tpu.memory_space<smem>>
    %1371 = vector.broadcast %1370 : f32 to vector<14x128xf32>
    %1372 = arith.mulf %1371, %1353 : vector<14x128xf32>
    %1373 = arith.addf %1308, %1372 : vector<14x128xf32>
    %c5_666 = arith.constant 5 : index
    %c20_667 = arith.constant 20 : index
    %1374 = memref.load %arg2[%c5_666, %c20_667] : memref<16x24xf32, #tpu.memory_space<smem>>
    %1375 = vector.broadcast %1374 : f32 to vector<14x128xf32>
    %1376 = arith.mulf %1375, %1353 : vector<14x128xf32>
    %1377 = arith.addf %1312, %1376 : vector<14x128xf32>
    %c6_668 = arith.constant 6 : index
    %c20_669 = arith.constant 20 : index
    %1378 = memref.load %arg2[%c6_668, %c20_669] : memref<16x24xf32, #tpu.memory_space<smem>>
    %1379 = vector.broadcast %1378 : f32 to vector<14x128xf32>
    %1380 = arith.mulf %1379, %1353 : vector<14x128xf32>
    %1381 = arith.addf %1316, %1380 : vector<14x128xf32>
    %c7_670 = arith.constant 7 : index
    %c20_671 = arith.constant 20 : index
    %1382 = memref.load %arg2[%c7_670, %c20_671] : memref<16x24xf32, #tpu.memory_space<smem>>
    %1383 = vector.broadcast %1382 : f32 to vector<14x128xf32>
    %1384 = arith.mulf %1383, %1353 : vector<14x128xf32>
    %1385 = arith.addf %1320, %1384 : vector<14x128xf32>
    %c8_672 = arith.constant 8 : index
    %c20_673 = arith.constant 20 : index
    %1386 = memref.load %arg2[%c8_672, %c20_673] : memref<16x24xf32, #tpu.memory_space<smem>>
    %1387 = vector.broadcast %1386 : f32 to vector<14x128xf32>
    %1388 = arith.mulf %1387, %1353 : vector<14x128xf32>
    %1389 = arith.addf %1324, %1388 : vector<14x128xf32>
    %c9_674 = arith.constant 9 : index
    %c20_675 = arith.constant 20 : index
    %1390 = memref.load %arg2[%c9_674, %c20_675] : memref<16x24xf32, #tpu.memory_space<smem>>
    %1391 = vector.broadcast %1390 : f32 to vector<14x128xf32>
    %1392 = arith.mulf %1391, %1353 : vector<14x128xf32>
    %1393 = arith.addf %1328, %1392 : vector<14x128xf32>
    %c10_676 = arith.constant 10 : index
    %c20_677 = arith.constant 20 : index
    %1394 = memref.load %arg2[%c10_676, %c20_677] : memref<16x24xf32, #tpu.memory_space<smem>>
    %1395 = vector.broadcast %1394 : f32 to vector<14x128xf32>
    %1396 = arith.mulf %1395, %1353 : vector<14x128xf32>
    %1397 = arith.addf %1332, %1396 : vector<14x128xf32>
    %c11_678 = arith.constant 11 : index
    %c20_679 = arith.constant 20 : index
    %1398 = memref.load %arg2[%c11_678, %c20_679] : memref<16x24xf32, #tpu.memory_space<smem>>
    %1399 = vector.broadcast %1398 : f32 to vector<14x128xf32>
    %1400 = arith.mulf %1399, %1353 : vector<14x128xf32>
    %1401 = arith.addf %1336, %1400 : vector<14x128xf32>
    %c12_680 = arith.constant 12 : index
    %c20_681 = arith.constant 20 : index
    %1402 = memref.load %arg2[%c12_680, %c20_681] : memref<16x24xf32, #tpu.memory_space<smem>>
    %1403 = vector.broadcast %1402 : f32 to vector<14x128xf32>
    %1404 = arith.mulf %1403, %1353 : vector<14x128xf32>
    %1405 = arith.addf %1340, %1404 : vector<14x128xf32>
    %c13_682 = arith.constant 13 : index
    %c20_683 = arith.constant 20 : index
    %1406 = memref.load %arg2[%c13_682, %c20_683] : memref<16x24xf32, #tpu.memory_space<smem>>
    %1407 = vector.broadcast %1406 : f32 to vector<14x128xf32>
    %1408 = arith.mulf %1407, %1353 : vector<14x128xf32>
    %1409 = arith.addf %1344, %1408 : vector<14x128xf32>
    %c14_684 = arith.constant 14 : index
    %c20_685 = arith.constant 20 : index
    %1410 = memref.load %arg2[%c14_684, %c20_685] : memref<16x24xf32, #tpu.memory_space<smem>>
    %1411 = vector.broadcast %1410 : f32 to vector<14x128xf32>
    %1412 = arith.mulf %1411, %1353 : vector<14x128xf32>
    %1413 = arith.addf %1348, %1412 : vector<14x128xf32>
    %c15_686 = arith.constant 15 : index
    %c20_687 = arith.constant 20 : index
    %1414 = memref.load %arg2[%c15_686, %c20_687] : memref<16x24xf32, #tpu.memory_space<smem>>
    %1415 = vector.broadcast %1414 : f32 to vector<14x128xf32>
    %1416 = arith.mulf %1415, %1353 : vector<14x128xf32>
    %1417 = arith.addf %1352, %1416 : vector<14x128xf32>
    %1418 = arith.index_cast %c0_i32 : i32 to index
    %c7_688 = arith.constant 7 : index
    %c0_689 = arith.constant 0 : index
    %c0_690 = arith.constant 0 : index
    %1419 = vector.load %arg1[%1418, %c7_688, %c0_689, %c0_690] : memref<1x8x16x128xf32, #tpu.memory_space<vmem>>, vector<1x1x16x128xf32>
    %1420 = vector.shape_cast %1419 : vector<1x1x16x128xf32> to vector<16x128xf32>
    %1421 = vector.extract_strided_slice %1420 {offsets = [0, 0], sizes = [14, 128], strides = [1, 1]} : vector<16x128xf32> to vector<14x128xf32>
    %c0_691 = arith.constant 0 : index
    %c21 = arith.constant 21 : index
    %1422 = memref.load %arg2[%c0_691, %c21] : memref<16x24xf32, #tpu.memory_space<smem>>
    %1423 = vector.broadcast %1422 : f32 to vector<14x128xf32>
    %1424 = arith.mulf %1423, %1421 : vector<14x128xf32>
    %1425 = arith.addf %1357, %1424 : vector<14x128xf32>
    %c1_692 = arith.constant 1 : index
    %c21_693 = arith.constant 21 : index
    %1426 = memref.load %arg2[%c1_692, %c21_693] : memref<16x24xf32, #tpu.memory_space<smem>>
    %1427 = vector.broadcast %1426 : f32 to vector<14x128xf32>
    %1428 = arith.mulf %1427, %1421 : vector<14x128xf32>
    %1429 = arith.addf %1361, %1428 : vector<14x128xf32>
    %c2_694 = arith.constant 2 : index
    %c21_695 = arith.constant 21 : index
    %1430 = memref.load %arg2[%c2_694, %c21_695] : memref<16x24xf32, #tpu.memory_space<smem>>
    %1431 = vector.broadcast %1430 : f32 to vector<14x128xf32>
    %1432 = arith.mulf %1431, %1421 : vector<14x128xf32>
    %1433 = arith.addf %1365, %1432 : vector<14x128xf32>
    %c3_696 = arith.constant 3 : index
    %c21_697 = arith.constant 21 : index
    %1434 = memref.load %arg2[%c3_696, %c21_697] : memref<16x24xf32, #tpu.memory_space<smem>>
    %1435 = vector.broadcast %1434 : f32 to vector<14x128xf32>
    %1436 = arith.mulf %1435, %1421 : vector<14x128xf32>
    %1437 = arith.addf %1369, %1436 : vector<14x128xf32>
    %c4_698 = arith.constant 4 : index
    %c21_699 = arith.constant 21 : index
    %1438 = memref.load %arg2[%c4_698, %c21_699] : memref<16x24xf32, #tpu.memory_space<smem>>
    %1439 = vector.broadcast %1438 : f32 to vector<14x128xf32>
    %1440 = arith.mulf %1439, %1421 : vector<14x128xf32>
    %1441 = arith.addf %1373, %1440 : vector<14x128xf32>
    %c5_700 = arith.constant 5 : index
    %c21_701 = arith.constant 21 : index
    %1442 = memref.load %arg2[%c5_700, %c21_701] : memref<16x24xf32, #tpu.memory_space<smem>>
    %1443 = vector.broadcast %1442 : f32 to vector<14x128xf32>
    %1444 = arith.mulf %1443, %1421 : vector<14x128xf32>
    %1445 = arith.addf %1377, %1444 : vector<14x128xf32>
    %c6_702 = arith.constant 6 : index
    %c21_703 = arith.constant 21 : index
    %1446 = memref.load %arg2[%c6_702, %c21_703] : memref<16x24xf32, #tpu.memory_space<smem>>
    %1447 = vector.broadcast %1446 : f32 to vector<14x128xf32>
    %1448 = arith.mulf %1447, %1421 : vector<14x128xf32>
    %1449 = arith.addf %1381, %1448 : vector<14x128xf32>
    %c7_704 = arith.constant 7 : index
    %c21_705 = arith.constant 21 : index
    %1450 = memref.load %arg2[%c7_704, %c21_705] : memref<16x24xf32, #tpu.memory_space<smem>>
    %1451 = vector.broadcast %1450 : f32 to vector<14x128xf32>
    %1452 = arith.mulf %1451, %1421 : vector<14x128xf32>
    %1453 = arith.addf %1385, %1452 : vector<14x128xf32>
    %c8_706 = arith.constant 8 : index
    %c21_707 = arith.constant 21 : index
    %1454 = memref.load %arg2[%c8_706, %c21_707] : memref<16x24xf32, #tpu.memory_space<smem>>
    %1455 = vector.broadcast %1454 : f32 to vector<14x128xf32>
    %1456 = arith.mulf %1455, %1421 : vector<14x128xf32>
    %1457 = arith.addf %1389, %1456 : vector<14x128xf32>
    %c9_708 = arith.constant 9 : index
    %c21_709 = arith.constant 21 : index
    %1458 = memref.load %arg2[%c9_708, %c21_709] : memref<16x24xf32, #tpu.memory_space<smem>>
    %1459 = vector.broadcast %1458 : f32 to vector<14x128xf32>
    %1460 = arith.mulf %1459, %1421 : vector<14x128xf32>
    %1461 = arith.addf %1393, %1460 : vector<14x128xf32>
    %c10_710 = arith.constant 10 : index
    %c21_711 = arith.constant 21 : index
    %1462 = memref.load %arg2[%c10_710, %c21_711] : memref<16x24xf32, #tpu.memory_space<smem>>
    %1463 = vector.broadcast %1462 : f32 to vector<14x128xf32>
    %1464 = arith.mulf %1463, %1421 : vector<14x128xf32>
    %1465 = arith.addf %1397, %1464 : vector<14x128xf32>
    %c11_712 = arith.constant 11 : index
    %c21_713 = arith.constant 21 : index
    %1466 = memref.load %arg2[%c11_712, %c21_713] : memref<16x24xf32, #tpu.memory_space<smem>>
    %1467 = vector.broadcast %1466 : f32 to vector<14x128xf32>
    %1468 = arith.mulf %1467, %1421 : vector<14x128xf32>
    %1469 = arith.addf %1401, %1468 : vector<14x128xf32>
    %c12_714 = arith.constant 12 : index
    %c21_715 = arith.constant 21 : index
    %1470 = memref.load %arg2[%c12_714, %c21_715] : memref<16x24xf32, #tpu.memory_space<smem>>
    %1471 = vector.broadcast %1470 : f32 to vector<14x128xf32>
    %1472 = arith.mulf %1471, %1421 : vector<14x128xf32>
    %1473 = arith.addf %1405, %1472 : vector<14x128xf32>
    %c13_716 = arith.constant 13 : index
    %c21_717 = arith.constant 21 : index
    %1474 = memref.load %arg2[%c13_716, %c21_717] : memref<16x24xf32, #tpu.memory_space<smem>>
    %1475 = vector.broadcast %1474 : f32 to vector<14x128xf32>
    %1476 = arith.mulf %1475, %1421 : vector<14x128xf32>
    %1477 = arith.addf %1409, %1476 : vector<14x128xf32>
    %c14_718 = arith.constant 14 : index
    %c21_719 = arith.constant 21 : index
    %1478 = memref.load %arg2[%c14_718, %c21_719] : memref<16x24xf32, #tpu.memory_space<smem>>
    %1479 = vector.broadcast %1478 : f32 to vector<14x128xf32>
    %1480 = arith.mulf %1479, %1421 : vector<14x128xf32>
    %1481 = arith.addf %1413, %1480 : vector<14x128xf32>
    %c15_720 = arith.constant 15 : index
    %c21_721 = arith.constant 21 : index
    %1482 = memref.load %arg2[%c15_720, %c21_721] : memref<16x24xf32, #tpu.memory_space<smem>>
    %1483 = vector.broadcast %1482 : f32 to vector<14x128xf32>
    %1484 = arith.mulf %1483, %1421 : vector<14x128xf32>
    %1485 = arith.addf %1417, %1484 : vector<14x128xf32>
    %1486 = vector.extract_strided_slice %1420 {offsets = [1, 0], sizes = [14, 128], strides = [1, 1]} : vector<16x128xf32> to vector<14x128xf32>
    %c0_722 = arith.constant 0 : index
    %c22 = arith.constant 22 : index
    %1487 = memref.load %arg2[%c0_722, %c22] : memref<16x24xf32, #tpu.memory_space<smem>>
    %1488 = vector.broadcast %1487 : f32 to vector<14x128xf32>
    %1489 = arith.mulf %1488, %1486 : vector<14x128xf32>
    %1490 = arith.addf %1425, %1489 : vector<14x128xf32>
    %c1_723 = arith.constant 1 : index
    %c22_724 = arith.constant 22 : index
    %1491 = memref.load %arg2[%c1_723, %c22_724] : memref<16x24xf32, #tpu.memory_space<smem>>
    %1492 = vector.broadcast %1491 : f32 to vector<14x128xf32>
    %1493 = arith.mulf %1492, %1486 : vector<14x128xf32>
    %1494 = arith.addf %1429, %1493 : vector<14x128xf32>
    %c2_725 = arith.constant 2 : index
    %c22_726 = arith.constant 22 : index
    %1495 = memref.load %arg2[%c2_725, %c22_726] : memref<16x24xf32, #tpu.memory_space<smem>>
    %1496 = vector.broadcast %1495 : f32 to vector<14x128xf32>
    %1497 = arith.mulf %1496, %1486 : vector<14x128xf32>
    %1498 = arith.addf %1433, %1497 : vector<14x128xf32>
    %c3_727 = arith.constant 3 : index
    %c22_728 = arith.constant 22 : index
    %1499 = memref.load %arg2[%c3_727, %c22_728] : memref<16x24xf32, #tpu.memory_space<smem>>
    %1500 = vector.broadcast %1499 : f32 to vector<14x128xf32>
    %1501 = arith.mulf %1500, %1486 : vector<14x128xf32>
    %1502 = arith.addf %1437, %1501 : vector<14x128xf32>
    %c4_729 = arith.constant 4 : index
    %c22_730 = arith.constant 22 : index
    %1503 = memref.load %arg2[%c4_729, %c22_730] : memref<16x24xf32, #tpu.memory_space<smem>>
    %1504 = vector.broadcast %1503 : f32 to vector<14x128xf32>
    %1505 = arith.mulf %1504, %1486 : vector<14x128xf32>
    %1506 = arith.addf %1441, %1505 : vector<14x128xf32>
    %c5_731 = arith.constant 5 : index
    %c22_732 = arith.constant 22 : index
    %1507 = memref.load %arg2[%c5_731, %c22_732] : memref<16x24xf32, #tpu.memory_space<smem>>
    %1508 = vector.broadcast %1507 : f32 to vector<14x128xf32>
    %1509 = arith.mulf %1508, %1486 : vector<14x128xf32>
    %1510 = arith.addf %1445, %1509 : vector<14x128xf32>
    %c6_733 = arith.constant 6 : index
    %c22_734 = arith.constant 22 : index
    %1511 = memref.load %arg2[%c6_733, %c22_734] : memref<16x24xf32, #tpu.memory_space<smem>>
    %1512 = vector.broadcast %1511 : f32 to vector<14x128xf32>
    %1513 = arith.mulf %1512, %1486 : vector<14x128xf32>
    %1514 = arith.addf %1449, %1513 : vector<14x128xf32>
    %c7_735 = arith.constant 7 : index
    %c22_736 = arith.constant 22 : index
    %1515 = memref.load %arg2[%c7_735, %c22_736] : memref<16x24xf32, #tpu.memory_space<smem>>
    %1516 = vector.broadcast %1515 : f32 to vector<14x128xf32>
    %1517 = arith.mulf %1516, %1486 : vector<14x128xf32>
    %1518 = arith.addf %1453, %1517 : vector<14x128xf32>
    %c8_737 = arith.constant 8 : index
    %c22_738 = arith.constant 22 : index
    %1519 = memref.load %arg2[%c8_737, %c22_738] : memref<16x24xf32, #tpu.memory_space<smem>>
    %1520 = vector.broadcast %1519 : f32 to vector<14x128xf32>
    %1521 = arith.mulf %1520, %1486 : vector<14x128xf32>
    %1522 = arith.addf %1457, %1521 : vector<14x128xf32>
    %c9_739 = arith.constant 9 : index
    %c22_740 = arith.constant 22 : index
    %1523 = memref.load %arg2[%c9_739, %c22_740] : memref<16x24xf32, #tpu.memory_space<smem>>
    %1524 = vector.broadcast %1523 : f32 to vector<14x128xf32>
    %1525 = arith.mulf %1524, %1486 : vector<14x128xf32>
    %1526 = arith.addf %1461, %1525 : vector<14x128xf32>
    %c10_741 = arith.constant 10 : index
    %c22_742 = arith.constant 22 : index
    %1527 = memref.load %arg2[%c10_741, %c22_742] : memref<16x24xf32, #tpu.memory_space<smem>>
    %1528 = vector.broadcast %1527 : f32 to vector<14x128xf32>
    %1529 = arith.mulf %1528, %1486 : vector<14x128xf32>
    %1530 = arith.addf %1465, %1529 : vector<14x128xf32>
    %c11_743 = arith.constant 11 : index
    %c22_744 = arith.constant 22 : index
    %1531 = memref.load %arg2[%c11_743, %c22_744] : memref<16x24xf32, #tpu.memory_space<smem>>
    %1532 = vector.broadcast %1531 : f32 to vector<14x128xf32>
    %1533 = arith.mulf %1532, %1486 : vector<14x128xf32>
    %1534 = arith.addf %1469, %1533 : vector<14x128xf32>
    %c12_745 = arith.constant 12 : index
    %c22_746 = arith.constant 22 : index
    %1535 = memref.load %arg2[%c12_745, %c22_746] : memref<16x24xf32, #tpu.memory_space<smem>>
    %1536 = vector.broadcast %1535 : f32 to vector<14x128xf32>
    %1537 = arith.mulf %1536, %1486 : vector<14x128xf32>
    %1538 = arith.addf %1473, %1537 : vector<14x128xf32>
    %c13_747 = arith.constant 13 : index
    %c22_748 = arith.constant 22 : index
    %1539 = memref.load %arg2[%c13_747, %c22_748] : memref<16x24xf32, #tpu.memory_space<smem>>
    %1540 = vector.broadcast %1539 : f32 to vector<14x128xf32>
    %1541 = arith.mulf %1540, %1486 : vector<14x128xf32>
    %1542 = arith.addf %1477, %1541 : vector<14x128xf32>
    %c14_749 = arith.constant 14 : index
    %c22_750 = arith.constant 22 : index
    %1543 = memref.load %arg2[%c14_749, %c22_750] : memref<16x24xf32, #tpu.memory_space<smem>>
    %1544 = vector.broadcast %1543 : f32 to vector<14x128xf32>
    %1545 = arith.mulf %1544, %1486 : vector<14x128xf32>
    %1546 = arith.addf %1481, %1545 : vector<14x128xf32>
    %c15_751 = arith.constant 15 : index
    %c22_752 = arith.constant 22 : index
    %1547 = memref.load %arg2[%c15_751, %c22_752] : memref<16x24xf32, #tpu.memory_space<smem>>
    %1548 = vector.broadcast %1547 : f32 to vector<14x128xf32>
    %1549 = arith.mulf %1548, %1486 : vector<14x128xf32>
    %1550 = arith.addf %1485, %1549 : vector<14x128xf32>
    %1551 = vector.extract_strided_slice %1420 {offsets = [2, 0], sizes = [14, 128], strides = [1, 1]} : vector<16x128xf32> to vector<14x128xf32>
    %c0_753 = arith.constant 0 : index
    %c23 = arith.constant 23 : index
    %1552 = memref.load %arg2[%c0_753, %c23] : memref<16x24xf32, #tpu.memory_space<smem>>
    %1553 = vector.broadcast %1552 : f32 to vector<14x128xf32>
    %1554 = arith.mulf %1553, %1551 : vector<14x128xf32>
    %1555 = arith.addf %1490, %1554 : vector<14x128xf32>
    %c1_754 = arith.constant 1 : index
    %c23_755 = arith.constant 23 : index
    %1556 = memref.load %arg2[%c1_754, %c23_755] : memref<16x24xf32, #tpu.memory_space<smem>>
    %1557 = vector.broadcast %1556 : f32 to vector<14x128xf32>
    %1558 = arith.mulf %1557, %1551 : vector<14x128xf32>
    %1559 = arith.addf %1494, %1558 : vector<14x128xf32>
    %c2_756 = arith.constant 2 : index
    %c23_757 = arith.constant 23 : index
    %1560 = memref.load %arg2[%c2_756, %c23_757] : memref<16x24xf32, #tpu.memory_space<smem>>
    %1561 = vector.broadcast %1560 : f32 to vector<14x128xf32>
    %1562 = arith.mulf %1561, %1551 : vector<14x128xf32>
    %1563 = arith.addf %1498, %1562 : vector<14x128xf32>
    %c3_758 = arith.constant 3 : index
    %c23_759 = arith.constant 23 : index
    %1564 = memref.load %arg2[%c3_758, %c23_759] : memref<16x24xf32, #tpu.memory_space<smem>>
    %1565 = vector.broadcast %1564 : f32 to vector<14x128xf32>
    %1566 = arith.mulf %1565, %1551 : vector<14x128xf32>
    %1567 = arith.addf %1502, %1566 : vector<14x128xf32>
    %c4_760 = arith.constant 4 : index
    %c23_761 = arith.constant 23 : index
    %1568 = memref.load %arg2[%c4_760, %c23_761] : memref<16x24xf32, #tpu.memory_space<smem>>
    %1569 = vector.broadcast %1568 : f32 to vector<14x128xf32>
    %1570 = arith.mulf %1569, %1551 : vector<14x128xf32>
    %1571 = arith.addf %1506, %1570 : vector<14x128xf32>
    %c5_762 = arith.constant 5 : index
    %c23_763 = arith.constant 23 : index
    %1572 = memref.load %arg2[%c5_762, %c23_763] : memref<16x24xf32, #tpu.memory_space<smem>>
    %1573 = vector.broadcast %1572 : f32 to vector<14x128xf32>
    %1574 = arith.mulf %1573, %1551 : vector<14x128xf32>
    %1575 = arith.addf %1510, %1574 : vector<14x128xf32>
    %c6_764 = arith.constant 6 : index
    %c23_765 = arith.constant 23 : index
    %1576 = memref.load %arg2[%c6_764, %c23_765] : memref<16x24xf32, #tpu.memory_space<smem>>
    %1577 = vector.broadcast %1576 : f32 to vector<14x128xf32>
    %1578 = arith.mulf %1577, %1551 : vector<14x128xf32>
    %1579 = arith.addf %1514, %1578 : vector<14x128xf32>
    %c7_766 = arith.constant 7 : index
    %c23_767 = arith.constant 23 : index
    %1580 = memref.load %arg2[%c7_766, %c23_767] : memref<16x24xf32, #tpu.memory_space<smem>>
    %1581 = vector.broadcast %1580 : f32 to vector<14x128xf32>
    %1582 = arith.mulf %1581, %1551 : vector<14x128xf32>
    %1583 = arith.addf %1518, %1582 : vector<14x128xf32>
    %c8_768 = arith.constant 8 : index
    %c23_769 = arith.constant 23 : index
    %1584 = memref.load %arg2[%c8_768, %c23_769] : memref<16x24xf32, #tpu.memory_space<smem>>
    %1585 = vector.broadcast %1584 : f32 to vector<14x128xf32>
    %1586 = arith.mulf %1585, %1551 : vector<14x128xf32>
    %1587 = arith.addf %1522, %1586 : vector<14x128xf32>
    %c9_770 = arith.constant 9 : index
    %c23_771 = arith.constant 23 : index
    %1588 = memref.load %arg2[%c9_770, %c23_771] : memref<16x24xf32, #tpu.memory_space<smem>>
    %1589 = vector.broadcast %1588 : f32 to vector<14x128xf32>
    %1590 = arith.mulf %1589, %1551 : vector<14x128xf32>
    %1591 = arith.addf %1526, %1590 : vector<14x128xf32>
    %c10_772 = arith.constant 10 : index
    %c23_773 = arith.constant 23 : index
    %1592 = memref.load %arg2[%c10_772, %c23_773] : memref<16x24xf32, #tpu.memory_space<smem>>
    %1593 = vector.broadcast %1592 : f32 to vector<14x128xf32>
    %1594 = arith.mulf %1593, %1551 : vector<14x128xf32>
    %1595 = arith.addf %1530, %1594 : vector<14x128xf32>
    %c11_774 = arith.constant 11 : index
    %c23_775 = arith.constant 23 : index
    %1596 = memref.load %arg2[%c11_774, %c23_775] : memref<16x24xf32, #tpu.memory_space<smem>>
    %1597 = vector.broadcast %1596 : f32 to vector<14x128xf32>
    %1598 = arith.mulf %1597, %1551 : vector<14x128xf32>
    %1599 = arith.addf %1534, %1598 : vector<14x128xf32>
    %c12_776 = arith.constant 12 : index
    %c23_777 = arith.constant 23 : index
    %1600 = memref.load %arg2[%c12_776, %c23_777] : memref<16x24xf32, #tpu.memory_space<smem>>
    %1601 = vector.broadcast %1600 : f32 to vector<14x128xf32>
    %1602 = arith.mulf %1601, %1551 : vector<14x128xf32>
    %1603 = arith.addf %1538, %1602 : vector<14x128xf32>
    %c13_778 = arith.constant 13 : index
    %c23_779 = arith.constant 23 : index
    %1604 = memref.load %arg2[%c13_778, %c23_779] : memref<16x24xf32, #tpu.memory_space<smem>>
    %1605 = vector.broadcast %1604 : f32 to vector<14x128xf32>
    %1606 = arith.mulf %1605, %1551 : vector<14x128xf32>
    %1607 = arith.addf %1542, %1606 : vector<14x128xf32>
    %c14_780 = arith.constant 14 : index
    %c23_781 = arith.constant 23 : index
    %1608 = memref.load %arg2[%c14_780, %c23_781] : memref<16x24xf32, #tpu.memory_space<smem>>
    %1609 = vector.broadcast %1608 : f32 to vector<14x128xf32>
    %1610 = arith.mulf %1609, %1551 : vector<14x128xf32>
    %1611 = arith.addf %1546, %1610 : vector<14x128xf32>
    %c15_782 = arith.constant 15 : index
    %c23_783 = arith.constant 23 : index
    %1612 = memref.load %arg2[%c15_782, %c23_783] : memref<16x24xf32, #tpu.memory_space<smem>>
    %1613 = vector.broadcast %1612 : f32 to vector<14x128xf32>
    %1614 = arith.mulf %1613, %1551 : vector<14x128xf32>
    %1615 = arith.addf %1550, %1614 : vector<14x128xf32>
    %cst = arith.constant 0.00999999977 : f32
    %1616 = vector.broadcast %cst : f32 to vector<14x128xf32>
    %1617 = arith.mulf %1616, %1555 : vector<14x128xf32>
    %1618 = arith.maximumf %1555, %1617 : vector<14x128xf32>
    %c0_784 = arith.constant 0 : index
    %1619 = memref.load %arg4[%c0_784] : memref<48xf32, #tpu.memory_space<smem>>
    %1620 = vector.extract_strided_slice %1618 {offsets = [0, 0], sizes = [12, 128], strides = [1, 1]} : vector<14x128xf32> to vector<12x128xf32>
    %1621 = vector.broadcast %1619 : f32 to vector<12x128xf32>
    %1622 = arith.mulf %1621, %1620 : vector<12x128xf32>
    %c0_785 = arith.constant 0 : index
    %1623 = memref.load %arg5[%c0_785] : memref<1xf32, #tpu.memory_space<smem>>
    %1624 = vector.broadcast %1623 : f32 to vector<12x128xf32>
    %1625 = arith.addf %1622, %1624 : vector<12x128xf32>
    %c1_786 = arith.constant 1 : index
    %1626 = memref.load %arg4[%c1_786] : memref<48xf32, #tpu.memory_space<smem>>
    %1627 = vector.extract_strided_slice %1618 {offsets = [1, 0], sizes = [12, 128], strides = [1, 1]} : vector<14x128xf32> to vector<12x128xf32>
    %1628 = vector.broadcast %1626 : f32 to vector<12x128xf32>
    %1629 = arith.mulf %1628, %1627 : vector<12x128xf32>
    %1630 = arith.addf %1625, %1629 : vector<12x128xf32>
    %c2_787 = arith.constant 2 : index
    %1631 = memref.load %arg4[%c2_787] : memref<48xf32, #tpu.memory_space<smem>>
    %1632 = vector.extract_strided_slice %1618 {offsets = [2, 0], sizes = [12, 128], strides = [1, 1]} : vector<14x128xf32> to vector<12x128xf32>
    %1633 = vector.broadcast %1631 : f32 to vector<12x128xf32>
    %1634 = arith.mulf %1633, %1632 : vector<12x128xf32>
    %1635 = arith.addf %1630, %1634 : vector<12x128xf32>
    %cst_788 = arith.constant 0.00999999977 : f32
    %1636 = vector.broadcast %cst_788 : f32 to vector<14x128xf32>
    %1637 = arith.mulf %1636, %1559 : vector<14x128xf32>
    %1638 = arith.maximumf %1559, %1637 : vector<14x128xf32>
    %c3_789 = arith.constant 3 : index
    %1639 = memref.load %arg4[%c3_789] : memref<48xf32, #tpu.memory_space<smem>>
    %1640 = vector.extract_strided_slice %1638 {offsets = [0, 0], sizes = [12, 128], strides = [1, 1]} : vector<14x128xf32> to vector<12x128xf32>
    %1641 = vector.broadcast %1639 : f32 to vector<12x128xf32>
    %1642 = arith.mulf %1641, %1640 : vector<12x128xf32>
    %1643 = arith.addf %1635, %1642 : vector<12x128xf32>
    %c4_790 = arith.constant 4 : index
    %1644 = memref.load %arg4[%c4_790] : memref<48xf32, #tpu.memory_space<smem>>
    %1645 = vector.extract_strided_slice %1638 {offsets = [1, 0], sizes = [12, 128], strides = [1, 1]} : vector<14x128xf32> to vector<12x128xf32>
    %1646 = vector.broadcast %1644 : f32 to vector<12x128xf32>
    %1647 = arith.mulf %1646, %1645 : vector<12x128xf32>
    %1648 = arith.addf %1643, %1647 : vector<12x128xf32>
    %c5_791 = arith.constant 5 : index
    %1649 = memref.load %arg4[%c5_791] : memref<48xf32, #tpu.memory_space<smem>>
    %1650 = vector.extract_strided_slice %1638 {offsets = [2, 0], sizes = [12, 128], strides = [1, 1]} : vector<14x128xf32> to vector<12x128xf32>
    %1651 = vector.broadcast %1649 : f32 to vector<12x128xf32>
    %1652 = arith.mulf %1651, %1650 : vector<12x128xf32>
    %1653 = arith.addf %1648, %1652 : vector<12x128xf32>
    %cst_792 = arith.constant 0.00999999977 : f32
    %1654 = vector.broadcast %cst_792 : f32 to vector<14x128xf32>
    %1655 = arith.mulf %1654, %1563 : vector<14x128xf32>
    %1656 = arith.maximumf %1563, %1655 : vector<14x128xf32>
    %c6_793 = arith.constant 6 : index
    %1657 = memref.load %arg4[%c6_793] : memref<48xf32, #tpu.memory_space<smem>>
    %1658 = vector.extract_strided_slice %1656 {offsets = [0, 0], sizes = [12, 128], strides = [1, 1]} : vector<14x128xf32> to vector<12x128xf32>
    %1659 = vector.broadcast %1657 : f32 to vector<12x128xf32>
    %1660 = arith.mulf %1659, %1658 : vector<12x128xf32>
    %1661 = arith.addf %1653, %1660 : vector<12x128xf32>
    %c7_794 = arith.constant 7 : index
    %1662 = memref.load %arg4[%c7_794] : memref<48xf32, #tpu.memory_space<smem>>
    %1663 = vector.extract_strided_slice %1656 {offsets = [1, 0], sizes = [12, 128], strides = [1, 1]} : vector<14x128xf32> to vector<12x128xf32>
    %1664 = vector.broadcast %1662 : f32 to vector<12x128xf32>
    %1665 = arith.mulf %1664, %1663 : vector<12x128xf32>
    %1666 = arith.addf %1661, %1665 : vector<12x128xf32>
    %c8_795 = arith.constant 8 : index
    %1667 = memref.load %arg4[%c8_795] : memref<48xf32, #tpu.memory_space<smem>>
    %1668 = vector.extract_strided_slice %1656 {offsets = [2, 0], sizes = [12, 128], strides = [1, 1]} : vector<14x128xf32> to vector<12x128xf32>
    %1669 = vector.broadcast %1667 : f32 to vector<12x128xf32>
    %1670 = arith.mulf %1669, %1668 : vector<12x128xf32>
    %1671 = arith.addf %1666, %1670 : vector<12x128xf32>
    %cst_796 = arith.constant 0.00999999977 : f32
    %1672 = vector.broadcast %cst_796 : f32 to vector<14x128xf32>
    %1673 = arith.mulf %1672, %1567 : vector<14x128xf32>
    %1674 = arith.maximumf %1567, %1673 : vector<14x128xf32>
    %c9_797 = arith.constant 9 : index
    %1675 = memref.load %arg4[%c9_797] : memref<48xf32, #tpu.memory_space<smem>>
    %1676 = vector.extract_strided_slice %1674 {offsets = [0, 0], sizes = [12, 128], strides = [1, 1]} : vector<14x128xf32> to vector<12x128xf32>
    %1677 = vector.broadcast %1675 : f32 to vector<12x128xf32>
    %1678 = arith.mulf %1677, %1676 : vector<12x128xf32>
    %1679 = arith.addf %1671, %1678 : vector<12x128xf32>
    %c10_798 = arith.constant 10 : index
    %1680 = memref.load %arg4[%c10_798] : memref<48xf32, #tpu.memory_space<smem>>
    %1681 = vector.extract_strided_slice %1674 {offsets = [1, 0], sizes = [12, 128], strides = [1, 1]} : vector<14x128xf32> to vector<12x128xf32>
    %1682 = vector.broadcast %1680 : f32 to vector<12x128xf32>
    %1683 = arith.mulf %1682, %1681 : vector<12x128xf32>
    %1684 = arith.addf %1679, %1683 : vector<12x128xf32>
    %c11_799 = arith.constant 11 : index
    %1685 = memref.load %arg4[%c11_799] : memref<48xf32, #tpu.memory_space<smem>>
    %1686 = vector.extract_strided_slice %1674 {offsets = [2, 0], sizes = [12, 128], strides = [1, 1]} : vector<14x128xf32> to vector<12x128xf32>
    %1687 = vector.broadcast %1685 : f32 to vector<12x128xf32>
    %1688 = arith.mulf %1687, %1686 : vector<12x128xf32>
    %1689 = arith.addf %1684, %1688 : vector<12x128xf32>
    %cst_800 = arith.constant 0.00999999977 : f32
    %1690 = vector.broadcast %cst_800 : f32 to vector<14x128xf32>
    %1691 = arith.mulf %1690, %1571 : vector<14x128xf32>
    %1692 = arith.maximumf %1571, %1691 : vector<14x128xf32>
    %c12_801 = arith.constant 12 : index
    %1693 = memref.load %arg4[%c12_801] : memref<48xf32, #tpu.memory_space<smem>>
    %1694 = vector.extract_strided_slice %1692 {offsets = [0, 0], sizes = [12, 128], strides = [1, 1]} : vector<14x128xf32> to vector<12x128xf32>
    %1695 = vector.broadcast %1693 : f32 to vector<12x128xf32>
    %1696 = arith.mulf %1695, %1694 : vector<12x128xf32>
    %1697 = arith.addf %1689, %1696 : vector<12x128xf32>
    %c13_802 = arith.constant 13 : index
    %1698 = memref.load %arg4[%c13_802] : memref<48xf32, #tpu.memory_space<smem>>
    %1699 = vector.extract_strided_slice %1692 {offsets = [1, 0], sizes = [12, 128], strides = [1, 1]} : vector<14x128xf32> to vector<12x128xf32>
    %1700 = vector.broadcast %1698 : f32 to vector<12x128xf32>
    %1701 = arith.mulf %1700, %1699 : vector<12x128xf32>
    %1702 = arith.addf %1697, %1701 : vector<12x128xf32>
    %c14_803 = arith.constant 14 : index
    %1703 = memref.load %arg4[%c14_803] : memref<48xf32, #tpu.memory_space<smem>>
    %1704 = vector.extract_strided_slice %1692 {offsets = [2, 0], sizes = [12, 128], strides = [1, 1]} : vector<14x128xf32> to vector<12x128xf32>
    %1705 = vector.broadcast %1703 : f32 to vector<12x128xf32>
    %1706 = arith.mulf %1705, %1704 : vector<12x128xf32>
    %1707 = arith.addf %1702, %1706 : vector<12x128xf32>
    %cst_804 = arith.constant 0.00999999977 : f32
    %1708 = vector.broadcast %cst_804 : f32 to vector<14x128xf32>
    %1709 = arith.mulf %1708, %1575 : vector<14x128xf32>
    %1710 = arith.maximumf %1575, %1709 : vector<14x128xf32>
    %c15_805 = arith.constant 15 : index
    %1711 = memref.load %arg4[%c15_805] : memref<48xf32, #tpu.memory_space<smem>>
    %1712 = vector.extract_strided_slice %1710 {offsets = [0, 0], sizes = [12, 128], strides = [1, 1]} : vector<14x128xf32> to vector<12x128xf32>
    %1713 = vector.broadcast %1711 : f32 to vector<12x128xf32>
    %1714 = arith.mulf %1713, %1712 : vector<12x128xf32>
    %1715 = arith.addf %1707, %1714 : vector<12x128xf32>
    %c16_806 = arith.constant 16 : index
    %1716 = memref.load %arg4[%c16_806] : memref<48xf32, #tpu.memory_space<smem>>
    %1717 = vector.extract_strided_slice %1710 {offsets = [1, 0], sizes = [12, 128], strides = [1, 1]} : vector<14x128xf32> to vector<12x128xf32>
    %1718 = vector.broadcast %1716 : f32 to vector<12x128xf32>
    %1719 = arith.mulf %1718, %1717 : vector<12x128xf32>
    %1720 = arith.addf %1715, %1719 : vector<12x128xf32>
    %c17_807 = arith.constant 17 : index
    %1721 = memref.load %arg4[%c17_807] : memref<48xf32, #tpu.memory_space<smem>>
    %1722 = vector.extract_strided_slice %1710 {offsets = [2, 0], sizes = [12, 128], strides = [1, 1]} : vector<14x128xf32> to vector<12x128xf32>
    %1723 = vector.broadcast %1721 : f32 to vector<12x128xf32>
    %1724 = arith.mulf %1723, %1722 : vector<12x128xf32>
    %1725 = arith.addf %1720, %1724 : vector<12x128xf32>
    %cst_808 = arith.constant 0.00999999977 : f32
    %1726 = vector.broadcast %cst_808 : f32 to vector<14x128xf32>
    %1727 = arith.mulf %1726, %1579 : vector<14x128xf32>
    %1728 = arith.maximumf %1579, %1727 : vector<14x128xf32>
    %c18_809 = arith.constant 18 : index
    %1729 = memref.load %arg4[%c18_809] : memref<48xf32, #tpu.memory_space<smem>>
    %1730 = vector.extract_strided_slice %1728 {offsets = [0, 0], sizes = [12, 128], strides = [1, 1]} : vector<14x128xf32> to vector<12x128xf32>
    %1731 = vector.broadcast %1729 : f32 to vector<12x128xf32>
    %1732 = arith.mulf %1731, %1730 : vector<12x128xf32>
    %1733 = arith.addf %1725, %1732 : vector<12x128xf32>
    %c19_810 = arith.constant 19 : index
    %1734 = memref.load %arg4[%c19_810] : memref<48xf32, #tpu.memory_space<smem>>
    %1735 = vector.extract_strided_slice %1728 {offsets = [1, 0], sizes = [12, 128], strides = [1, 1]} : vector<14x128xf32> to vector<12x128xf32>
    %1736 = vector.broadcast %1734 : f32 to vector<12x128xf32>
    %1737 = arith.mulf %1736, %1735 : vector<12x128xf32>
    %1738 = arith.addf %1733, %1737 : vector<12x128xf32>
    %c20_811 = arith.constant 20 : index
    %1739 = memref.load %arg4[%c20_811] : memref<48xf32, #tpu.memory_space<smem>>
    %1740 = vector.extract_strided_slice %1728 {offsets = [2, 0], sizes = [12, 128], strides = [1, 1]} : vector<14x128xf32> to vector<12x128xf32>
    %1741 = vector.broadcast %1739 : f32 to vector<12x128xf32>
    %1742 = arith.mulf %1741, %1740 : vector<12x128xf32>
    %1743 = arith.addf %1738, %1742 : vector<12x128xf32>
    %cst_812 = arith.constant 0.00999999977 : f32
    %1744 = vector.broadcast %cst_812 : f32 to vector<14x128xf32>
    %1745 = arith.mulf %1744, %1583 : vector<14x128xf32>
    %1746 = arith.maximumf %1583, %1745 : vector<14x128xf32>
    %c21_813 = arith.constant 21 : index
    %1747 = memref.load %arg4[%c21_813] : memref<48xf32, #tpu.memory_space<smem>>
    %1748 = vector.extract_strided_slice %1746 {offsets = [0, 0], sizes = [12, 128], strides = [1, 1]} : vector<14x128xf32> to vector<12x128xf32>
    %1749 = vector.broadcast %1747 : f32 to vector<12x128xf32>
    %1750 = arith.mulf %1749, %1748 : vector<12x128xf32>
    %1751 = arith.addf %1743, %1750 : vector<12x128xf32>
    %c22_814 = arith.constant 22 : index
    %1752 = memref.load %arg4[%c22_814] : memref<48xf32, #tpu.memory_space<smem>>
    %1753 = vector.extract_strided_slice %1746 {offsets = [1, 0], sizes = [12, 128], strides = [1, 1]} : vector<14x128xf32> to vector<12x128xf32>
    %1754 = vector.broadcast %1752 : f32 to vector<12x128xf32>
    %1755 = arith.mulf %1754, %1753 : vector<12x128xf32>
    %1756 = arith.addf %1751, %1755 : vector<12x128xf32>
    %c23_815 = arith.constant 23 : index
    %1757 = memref.load %arg4[%c23_815] : memref<48xf32, #tpu.memory_space<smem>>
    %1758 = vector.extract_strided_slice %1746 {offsets = [2, 0], sizes = [12, 128], strides = [1, 1]} : vector<14x128xf32> to vector<12x128xf32>
    %1759 = vector.broadcast %1757 : f32 to vector<12x128xf32>
    %1760 = arith.mulf %1759, %1758 : vector<12x128xf32>
    %1761 = arith.addf %1756, %1760 : vector<12x128xf32>
    %cst_816 = arith.constant 0.00999999977 : f32
    %1762 = vector.broadcast %cst_816 : f32 to vector<14x128xf32>
    %1763 = arith.mulf %1762, %1587 : vector<14x128xf32>
    %1764 = arith.maximumf %1587, %1763 : vector<14x128xf32>
    %c24 = arith.constant 24 : index
    %1765 = memref.load %arg4[%c24] : memref<48xf32, #tpu.memory_space<smem>>
    %1766 = vector.extract_strided_slice %1764 {offsets = [0, 0], sizes = [12, 128], strides = [1, 1]} : vector<14x128xf32> to vector<12x128xf32>
    %1767 = vector.broadcast %1765 : f32 to vector<12x128xf32>
    %1768 = arith.mulf %1767, %1766 : vector<12x128xf32>
    %1769 = arith.addf %1761, %1768 : vector<12x128xf32>
    %c25 = arith.constant 25 : index
    %1770 = memref.load %arg4[%c25] : memref<48xf32, #tpu.memory_space<smem>>
    %1771 = vector.extract_strided_slice %1764 {offsets = [1, 0], sizes = [12, 128], strides = [1, 1]} : vector<14x128xf32> to vector<12x128xf32>
    %1772 = vector.broadcast %1770 : f32 to vector<12x128xf32>
    %1773 = arith.mulf %1772, %1771 : vector<12x128xf32>
    %1774 = arith.addf %1769, %1773 : vector<12x128xf32>
    %c26 = arith.constant 26 : index
    %1775 = memref.load %arg4[%c26] : memref<48xf32, #tpu.memory_space<smem>>
    %1776 = vector.extract_strided_slice %1764 {offsets = [2, 0], sizes = [12, 128], strides = [1, 1]} : vector<14x128xf32> to vector<12x128xf32>
    %1777 = vector.broadcast %1775 : f32 to vector<12x128xf32>
    %1778 = arith.mulf %1777, %1776 : vector<12x128xf32>
    %1779 = arith.addf %1774, %1778 : vector<12x128xf32>
    %cst_817 = arith.constant 0.00999999977 : f32
    %1780 = vector.broadcast %cst_817 : f32 to vector<14x128xf32>
    %1781 = arith.mulf %1780, %1591 : vector<14x128xf32>
    %1782 = arith.maximumf %1591, %1781 : vector<14x128xf32>
    %c27 = arith.constant 27 : index
    %1783 = memref.load %arg4[%c27] : memref<48xf32, #tpu.memory_space<smem>>
    %1784 = vector.extract_strided_slice %1782 {offsets = [0, 0], sizes = [12, 128], strides = [1, 1]} : vector<14x128xf32> to vector<12x128xf32>
    %1785 = vector.broadcast %1783 : f32 to vector<12x128xf32>
    %1786 = arith.mulf %1785, %1784 : vector<12x128xf32>
    %1787 = arith.addf %1779, %1786 : vector<12x128xf32>
    %c28 = arith.constant 28 : index
    %1788 = memref.load %arg4[%c28] : memref<48xf32, #tpu.memory_space<smem>>
    %1789 = vector.extract_strided_slice %1782 {offsets = [1, 0], sizes = [12, 128], strides = [1, 1]} : vector<14x128xf32> to vector<12x128xf32>
    %1790 = vector.broadcast %1788 : f32 to vector<12x128xf32>
    %1791 = arith.mulf %1790, %1789 : vector<12x128xf32>
    %1792 = arith.addf %1787, %1791 : vector<12x128xf32>
    %c29 = arith.constant 29 : index
    %1793 = memref.load %arg4[%c29] : memref<48xf32, #tpu.memory_space<smem>>
    %1794 = vector.extract_strided_slice %1782 {offsets = [2, 0], sizes = [12, 128], strides = [1, 1]} : vector<14x128xf32> to vector<12x128xf32>
    %1795 = vector.broadcast %1793 : f32 to vector<12x128xf32>
    %1796 = arith.mulf %1795, %1794 : vector<12x128xf32>
    %1797 = arith.addf %1792, %1796 : vector<12x128xf32>
    %cst_818 = arith.constant 0.00999999977 : f32
    %1798 = vector.broadcast %cst_818 : f32 to vector<14x128xf32>
    %1799 = arith.mulf %1798, %1595 : vector<14x128xf32>
    %1800 = arith.maximumf %1595, %1799 : vector<14x128xf32>
    %c30 = arith.constant 30 : index
    %1801 = memref.load %arg4[%c30] : memref<48xf32, #tpu.memory_space<smem>>
    %1802 = vector.extract_strided_slice %1800 {offsets = [0, 0], sizes = [12, 128], strides = [1, 1]} : vector<14x128xf32> to vector<12x128xf32>
    %1803 = vector.broadcast %1801 : f32 to vector<12x128xf32>
    %1804 = arith.mulf %1803, %1802 : vector<12x128xf32>
    %1805 = arith.addf %1797, %1804 : vector<12x128xf32>
    %c31 = arith.constant 31 : index
    %1806 = memref.load %arg4[%c31] : memref<48xf32, #tpu.memory_space<smem>>
    %1807 = vector.extract_strided_slice %1800 {offsets = [1, 0], sizes = [12, 128], strides = [1, 1]} : vector<14x128xf32> to vector<12x128xf32>
    %1808 = vector.broadcast %1806 : f32 to vector<12x128xf32>
    %1809 = arith.mulf %1808, %1807 : vector<12x128xf32>
    %1810 = arith.addf %1805, %1809 : vector<12x128xf32>
    %c32 = arith.constant 32 : index
    %1811 = memref.load %arg4[%c32] : memref<48xf32, #tpu.memory_space<smem>>
    %1812 = vector.extract_strided_slice %1800 {offsets = [2, 0], sizes = [12, 128], strides = [1, 1]} : vector<14x128xf32> to vector<12x128xf32>
    %1813 = vector.broadcast %1811 : f32 to vector<12x128xf32>
    %1814 = arith.mulf %1813, %1812 : vector<12x128xf32>
    %1815 = arith.addf %1810, %1814 : vector<12x128xf32>
    %cst_819 = arith.constant 0.00999999977 : f32
    %1816 = vector.broadcast %cst_819 : f32 to vector<14x128xf32>
    %1817 = arith.mulf %1816, %1599 : vector<14x128xf32>
    %1818 = arith.maximumf %1599, %1817 : vector<14x128xf32>
    %c33 = arith.constant 33 : index
    %1819 = memref.load %arg4[%c33] : memref<48xf32, #tpu.memory_space<smem>>
    %1820 = vector.extract_strided_slice %1818 {offsets = [0, 0], sizes = [12, 128], strides = [1, 1]} : vector<14x128xf32> to vector<12x128xf32>
    %1821 = vector.broadcast %1819 : f32 to vector<12x128xf32>
    %1822 = arith.mulf %1821, %1820 : vector<12x128xf32>
    %1823 = arith.addf %1815, %1822 : vector<12x128xf32>
    %c34 = arith.constant 34 : index
    %1824 = memref.load %arg4[%c34] : memref<48xf32, #tpu.memory_space<smem>>
    %1825 = vector.extract_strided_slice %1818 {offsets = [1, 0], sizes = [12, 128], strides = [1, 1]} : vector<14x128xf32> to vector<12x128xf32>
    %1826 = vector.broadcast %1824 : f32 to vector<12x128xf32>
    %1827 = arith.mulf %1826, %1825 : vector<12x128xf32>
    %1828 = arith.addf %1823, %1827 : vector<12x128xf32>
    %c35 = arith.constant 35 : index
    %1829 = memref.load %arg4[%c35] : memref<48xf32, #tpu.memory_space<smem>>
    %1830 = vector.extract_strided_slice %1818 {offsets = [2, 0], sizes = [12, 128], strides = [1, 1]} : vector<14x128xf32> to vector<12x128xf32>
    %1831 = vector.broadcast %1829 : f32 to vector<12x128xf32>
    %1832 = arith.mulf %1831, %1830 : vector<12x128xf32>
    %1833 = arith.addf %1828, %1832 : vector<12x128xf32>
    %cst_820 = arith.constant 0.00999999977 : f32
    %1834 = vector.broadcast %cst_820 : f32 to vector<14x128xf32>
    %1835 = arith.mulf %1834, %1603 : vector<14x128xf32>
    %1836 = arith.maximumf %1603, %1835 : vector<14x128xf32>
    %c36 = arith.constant 36 : index
    %1837 = memref.load %arg4[%c36] : memref<48xf32, #tpu.memory_space<smem>>
    %1838 = vector.extract_strided_slice %1836 {offsets = [0, 0], sizes = [12, 128], strides = [1, 1]} : vector<14x128xf32> to vector<12x128xf32>
    %1839 = vector.broadcast %1837 : f32 to vector<12x128xf32>
    %1840 = arith.mulf %1839, %1838 : vector<12x128xf32>
    %1841 = arith.addf %1833, %1840 : vector<12x128xf32>
    %c37 = arith.constant 37 : index
    %1842 = memref.load %arg4[%c37] : memref<48xf32, #tpu.memory_space<smem>>
    %1843 = vector.extract_strided_slice %1836 {offsets = [1, 0], sizes = [12, 128], strides = [1, 1]} : vector<14x128xf32> to vector<12x128xf32>
    %1844 = vector.broadcast %1842 : f32 to vector<12x128xf32>
    %1845 = arith.mulf %1844, %1843 : vector<12x128xf32>
    %1846 = arith.addf %1841, %1845 : vector<12x128xf32>
    %c38 = arith.constant 38 : index
    %1847 = memref.load %arg4[%c38] : memref<48xf32, #tpu.memory_space<smem>>
    %1848 = vector.extract_strided_slice %1836 {offsets = [2, 0], sizes = [12, 128], strides = [1, 1]} : vector<14x128xf32> to vector<12x128xf32>
    %1849 = vector.broadcast %1847 : f32 to vector<12x128xf32>
    %1850 = arith.mulf %1849, %1848 : vector<12x128xf32>
    %1851 = arith.addf %1846, %1850 : vector<12x128xf32>
    %cst_821 = arith.constant 0.00999999977 : f32
    %1852 = vector.broadcast %cst_821 : f32 to vector<14x128xf32>
    %1853 = arith.mulf %1852, %1607 : vector<14x128xf32>
    %1854 = arith.maximumf %1607, %1853 : vector<14x128xf32>
    %c39 = arith.constant 39 : index
    %1855 = memref.load %arg4[%c39] : memref<48xf32, #tpu.memory_space<smem>>
    %1856 = vector.extract_strided_slice %1854 {offsets = [0, 0], sizes = [12, 128], strides = [1, 1]} : vector<14x128xf32> to vector<12x128xf32>
    %1857 = vector.broadcast %1855 : f32 to vector<12x128xf32>
    %1858 = arith.mulf %1857, %1856 : vector<12x128xf32>
    %1859 = arith.addf %1851, %1858 : vector<12x128xf32>
    %c40 = arith.constant 40 : index
    %1860 = memref.load %arg4[%c40] : memref<48xf32, #tpu.memory_space<smem>>
    %1861 = vector.extract_strided_slice %1854 {offsets = [1, 0], sizes = [12, 128], strides = [1, 1]} : vector<14x128xf32> to vector<12x128xf32>
    %1862 = vector.broadcast %1860 : f32 to vector<12x128xf32>
    %1863 = arith.mulf %1862, %1861 : vector<12x128xf32>
    %1864 = arith.addf %1859, %1863 : vector<12x128xf32>
    %c41 = arith.constant 41 : index
    %1865 = memref.load %arg4[%c41] : memref<48xf32, #tpu.memory_space<smem>>
    %1866 = vector.extract_strided_slice %1854 {offsets = [2, 0], sizes = [12, 128], strides = [1, 1]} : vector<14x128xf32> to vector<12x128xf32>
    %1867 = vector.broadcast %1865 : f32 to vector<12x128xf32>
    %1868 = arith.mulf %1867, %1866 : vector<12x128xf32>
    %1869 = arith.addf %1864, %1868 : vector<12x128xf32>
    %cst_822 = arith.constant 0.00999999977 : f32
    %1870 = vector.broadcast %cst_822 : f32 to vector<14x128xf32>
    %1871 = arith.mulf %1870, %1611 : vector<14x128xf32>
    %1872 = arith.maximumf %1611, %1871 : vector<14x128xf32>
    %c42 = arith.constant 42 : index
    %1873 = memref.load %arg4[%c42] : memref<48xf32, #tpu.memory_space<smem>>
    %1874 = vector.extract_strided_slice %1872 {offsets = [0, 0], sizes = [12, 128], strides = [1, 1]} : vector<14x128xf32> to vector<12x128xf32>
    %1875 = vector.broadcast %1873 : f32 to vector<12x128xf32>
    %1876 = arith.mulf %1875, %1874 : vector<12x128xf32>
    %1877 = arith.addf %1869, %1876 : vector<12x128xf32>
    %c43 = arith.constant 43 : index
    %1878 = memref.load %arg4[%c43] : memref<48xf32, #tpu.memory_space<smem>>
    %1879 = vector.extract_strided_slice %1872 {offsets = [1, 0], sizes = [12, 128], strides = [1, 1]} : vector<14x128xf32> to vector<12x128xf32>
    %1880 = vector.broadcast %1878 : f32 to vector<12x128xf32>
    %1881 = arith.mulf %1880, %1879 : vector<12x128xf32>
    %1882 = arith.addf %1877, %1881 : vector<12x128xf32>
    %c44 = arith.constant 44 : index
    %1883 = memref.load %arg4[%c44] : memref<48xf32, #tpu.memory_space<smem>>
    %1884 = vector.extract_strided_slice %1872 {offsets = [2, 0], sizes = [12, 128], strides = [1, 1]} : vector<14x128xf32> to vector<12x128xf32>
    %1885 = vector.broadcast %1883 : f32 to vector<12x128xf32>
    %1886 = arith.mulf %1885, %1884 : vector<12x128xf32>
    %1887 = arith.addf %1882, %1886 : vector<12x128xf32>
    %cst_823 = arith.constant 0.00999999977 : f32
    %1888 = vector.broadcast %cst_823 : f32 to vector<14x128xf32>
    %1889 = arith.mulf %1888, %1615 : vector<14x128xf32>
    %1890 = arith.maximumf %1615, %1889 : vector<14x128xf32>
    %c45 = arith.constant 45 : index
    %1891 = memref.load %arg4[%c45] : memref<48xf32, #tpu.memory_space<smem>>
    %1892 = vector.extract_strided_slice %1890 {offsets = [0, 0], sizes = [12, 128], strides = [1, 1]} : vector<14x128xf32> to vector<12x128xf32>
    %1893 = vector.broadcast %1891 : f32 to vector<12x128xf32>
    %1894 = arith.mulf %1893, %1892 : vector<12x128xf32>
    %1895 = arith.addf %1887, %1894 : vector<12x128xf32>
    %c46 = arith.constant 46 : index
    %1896 = memref.load %arg4[%c46] : memref<48xf32, #tpu.memory_space<smem>>
    %1897 = vector.extract_strided_slice %1890 {offsets = [1, 0], sizes = [12, 128], strides = [1, 1]} : vector<14x128xf32> to vector<12x128xf32>
    %1898 = vector.broadcast %1896 : f32 to vector<12x128xf32>
    %1899 = arith.mulf %1898, %1897 : vector<12x128xf32>
    %1900 = arith.addf %1895, %1899 : vector<12x128xf32>
    %c47 = arith.constant 47 : index
    %1901 = memref.load %arg4[%c47] : memref<48xf32, #tpu.memory_space<smem>>
    %1902 = vector.extract_strided_slice %1890 {offsets = [2, 0], sizes = [12, 128], strides = [1, 1]} : vector<14x128xf32> to vector<12x128xf32>
    %1903 = vector.broadcast %1901 : f32 to vector<12x128xf32>
    %1904 = arith.mulf %1903, %1902 : vector<12x128xf32>
    %1905 = arith.addf %1900, %1904 : vector<12x128xf32>
    %cst_824 = arith.constant dense<0xFF800000> : vector<128xf32>
    %1906 = vector.multi_reduction <maximumf>, %1905, %cst_824 [0] : vector<12x128xf32> to vector<128xf32>
    %1907 = vector.shape_cast %1906 : vector<128xf32> to vector<1x128xf32>
    %1908 = vector.broadcast %1907 : vector<1x128xf32> to vector<12x128xf32>
    %1909 = arith.subf %1905, %1908 : vector<12x128xf32>
    %1910 = math.exp %1909 : vector<12x128xf32>
    %cst_825 = arith.constant dense<0.000000e+00> : vector<128xf32>
    %1911 = vector.multi_reduction <add>, %1910, %cst_825 [0] : vector<12x128xf32> to vector<128xf32>
    %1912 = vector.shape_cast %1911 : vector<128xf32> to vector<1x128xf32>
    %1913 = tpu.reciprocal %1912 {approx = true} : vector<1x128xf32> -> vector<1x128xf32>
    %1914 = arith.mulf %1912, %1913 : vector<1x128xf32>
    %cst_826 = arith.constant 2.000000e+00 : f32
    %1915 = vector.broadcast %cst_826 : f32 to vector<1x128xf32>
    %1916 = arith.subf %1915, %1914 : vector<1x128xf32>
    %1917 = arith.mulf %1913, %1916 : vector<1x128xf32>
    %1918 = vector.broadcast %1917 : vector<1x128xf32> to vector<12x128xf32>
    %1919 = arith.mulf %1910, %1918 : vector<12x128xf32>
    %1920 = arith.index_cast %c0_i32 : i32 to index
    %c0_827 = arith.constant 0 : index
    %c0_828 = arith.constant 0 : index
    %1921 = vector.load %arg6[%1920, %c0_827, %c0_828] : memref<1x12x128xf32, #tpu.memory_space<vmem>>, vector<1x12x128xf32>
    %1922 = vector.shape_cast %1921 : vector<1x12x128xf32> to vector<12x128xf32>
    %1923 = vector.shape_cast %1919 : vector<12x128xf32> to vector<1x12x128xf32>
    tpu.vector_store %arg6[%1920, %c0_827, %c0_828], %1923 {strides = array<i32>} : memref<1x12x128xf32, #tpu.memory_space<vmem>>, vector<1x12x128xf32>,
    %c1_i32 = arith.constant 1 : i32
    return
  }
  func.func @transform_0(%arg0: i32) -> (i32, i32, i32, i32) {
    %c0_i32 = arith.constant 0 : i32
    %c0_i32_0 = arith.constant 0 : i32
    %c0_i32_1 = arith.constant 0 : i32
    %c0_i32_2 = arith.constant 0 : i32
    return %arg0, %c0_i32, %c0_i32_0, %c0_i32_1 : i32, i32, i32, i32
  }
  func.func @transform_1(%arg0: i32) -> (i32, i32) {
    %c0_i32 = arith.constant 0 : i32
    %c0_i32_0 = arith.constant 0 : i32
    %c0_i32_1 = arith.constant 0 : i32
    return %c0_i32, %c0_i32_0 : i32, i32
  }
  func.func @transform_2(%arg0: i32) -> i32 {
    %c0_i32 = arith.constant 0 : i32
    %c0_i32_0 = arith.constant 0 : i32
    return %c0_i32 : i32
  }
  func.func @transform_3(%arg0: i32) -> i32 {
    %c0_i32 = arith.constant 0 : i32
    %c0_i32_0 = arith.constant 0 : i32
    return %c0_i32 : i32
  }
  func.func @transform_4(%arg0: i32) -> i32 {
    %c0_i32 = arith.constant 0 : i32
    %c0_i32_0 = arith.constant 0 : i32
    return %c0_i32 : i32
  }
  func.func @transform_5(%arg0: i32) -> (i32, i32, i32) {
    %c0_i32 = arith.constant 0 : i32
    %c0_i32_0 = arith.constant 0 : i32
    %c0_i32_1 = arith.constant 0 : i32
    return %arg0, %c0_i32, %c0_i32_0 : i32, i32, i32
  }
}

</mosaic_0001>

<bundles_post_ra>
// kernel: tpu_custom_call.1
= control target key start
LH: loop header
LB: loop body
LE: loop exit
PB: predicated region body
PF: predicated region fallthrough
CT: control target
= control target key end

     0   :  { %11 = vsyncpa [#allocation4], 0  ;;  %s10189_s0 = inlined_call_operand.hbm [shape: f32[1,8,16,128], index: 0, kind: input, shape index: {}]   ;;  %s10190_s1 = inlined_call_operand.hbm [shape: f32[16,24], index: 1, kind: input, shape index: {}]   ;;  %s10191_s2 = inlined_call_operand.vmem [shape: f32[16], index: 2, kind: input, shape index: {}]   ;;  %s10192_s3 = inlined_call_operand.vmem [shape: f32[48], index: 3, kind: input, shape index: {}]   ;;  %s10193_s4 = inlined_call_operand.<no memory space> [shape: f32[1], index: 4, kind: input, shape index: {}]   ;;  %s10194_s5 = inlined_call_operand.vmem [shape: f32[1,12,128], index: 5, kind: output, shape index: {}]  }
   0x1   :  { %12 = vsyncpa [#allocation5], 0 }
   0x2   :  { %13 = vsyncpa [#allocation6], 0  ;;  %s19_s20 = sshll.u32 %s10189_s0, 4  ;;  %s20_s20 = int_to_ptr.hbm [resolvable:$true] %s19_s20 }
   0x3   :  { %14 = vsyncpa [#allocation10], 0  ;;  %s5371_s21 = smov [#allocation3]   ;;  %s32_s25 = sshll.u32 %s10190_s1, 4  ;;  %s33_s25 = int_to_ptr.hbm [resolvable:$true] %s32_s25 }
   0x4   :  { %s21_s22 = sshll.u32 %s5371_s21, 4  ;;  %s5372_s26 = smov 128   ;;  %s22_s22 = int_to_ptr.vmem [resolvable:$true] %s21_s22 }
   0x5   :  { %s5373_s27 = smov 8   ;;  %s5374_s28 = smov [#allocation7]  }
   0x6   :  { %27 = dma.hbm_to_vmem [thread:$0]  %s20_s20, 2048, %s22_s22, [#allocation4], %s5372_s26, %s5372_s26, %s5373_s27  }
   0x7   :  { %38 = dma.hbm_to_smem %s33_s25, 256, %s5374_s28, [#allocation5], %s5372_s26, %s5372_s26, %s5373_s27  }
   0x8   :  { %s44_s6 = sshll.u32 %s10191_s2, 4  ;;  %s53_s8 = sshll.u32 %s10192_s3, 4  ;;  %s45_s6 = int_to_ptr.vmem [resolvable:$true] %s44_s6  ;;  %s54_s8 = int_to_ptr.vmem [resolvable:$true] %s53_s8 }
   0x9   :  { %s5375_s9 = smov [#allocation8]   ;;  %s5376_s10 = smov [#allocation9]  }
   0xa   :  { %47 = dma.vmem_to_smem %s45_s6, 16, %s5375_s9, [#allocation6]  }
   0xb   :  { %56 = dma.vmem_to_smem %s54_s8, 16, %s5376_s10, [#allocation10]  }
   0xc   :  { %5363 = dma.done.wait [#allocation4], 2048  }
   0xd   :  { %5364 = vsyncadd [#allocation4], 4294965248 }
   0xe   :  { %5365 = dma.done.wait [#allocation5], 256  }
   0xf   :  { %5366 = vsyncadd [#allocation5], 4294967040 }
  0x10   :  { %5367 = dma.done.wait [#allocation6], 16  }
  0x11   :  { %5368 = vsyncadd [#allocation6], 4294967280 }
  0x12   :  { %5369 = dma.done.wait [#allocation10], 16  }
  0x13   :  { %5370 = vsyncadd [#allocation10], 4294967280 }
  0x14   :  { %75 = sfence }
  0x15   :  { %s78_s1 = sld [smem:[#allocation7]]  ;;  %v5439_v0 = vld [vmem:[#allocation3] sm:$0xff]  ;;  %v5441_v1 = vld [vmem:[#allocation3 + $0x8] sm:$0xff]  ;;  %vm212_vm0 = vcmask 1046528   ;;  %vm421_vm1 = vcmask 1045504   ;;  %vm4807_vm2 = vcmask 1043456  }
  0x16   :  { %s5419_s2 = sld [smem:[#allocation8]] }
  0x17   :  { %s4846_s11 = sld [smem:[#allocation7 + $0x80]] }
  0x18   :  { %s5421_s12 = sld [smem:[#allocation8 + $0x1]] }
  0x19   :  { %s4848_s3 = sld [smem:[#allocation7 + $0x100]] }
  0x1a   :  { %s5423_s13 = sld [smem:[#allocation8 + $0x2]] }
  0x1b   :  { %s5425_s14 = sld [smem:[#allocation7 + $0x180]]  ;;  %v79_v2 = vstv %s78_s1 }
  0x1c   :  { %s5427_s15 = sld [smem:[#allocation8 + $0x3]]  ;;  %v80_v5 = vmul.f32 %v79_v2, %v5439_v0  ;;  %v81_v6 = vmul.f32 %v79_v2, %v5441_v1  ;;  %v83_v8 = vstv %s5419_s2 }
  0x1d   :  { %s5429_s16 = sld [smem:[#allocation7 + $0x200]]  ;;  %v87_v3 = vstv %s4846_s11 }
  0x1e   :  { %s5431_s17 = sld [smem:[#allocation8 + $0x4]]  ;;  %v88_v9 = vmul.f32 %v87_v3, %v5439_v0  ;;  %v89_v11 = vmul.f32 %v87_v3, %v5441_v1  ;;  %v91_v12 = vstv %s5421_s12  ;;  %v5471_v19 = vadd.f32 %v83_v8, %v80_v5 }
  0x1f   :  { %s5433_s18 = sld [smem:[#allocation7 + $0x280]]  ;;  %v95_v4 = vstv %s4848_s3  ;;  %v5473_v20 = vadd.f32 %v83_v8, %v81_v6 }
  0x20   :  { %s5435_s19 = sld [smem:[#allocation8 + $0x5]]  ;;  %v96_v13 = vmul.f32 %v95_v4, %v5439_v0  ;;  %v97_v15 = vmul.f32 %v95_v4, %v5441_v1  ;;  %v99_v16 = vstv %s5423_s13  ;;  %v5479_v23 = vadd.f32 %v91_v12, %v88_v9 }
  0x21   :  { %s5437_s20 = sld [smem:[#allocation7 + $0x300]]  ;;  %v103_v7 = vstv %s5425_s14  ;;  %v5486_v27 = vadd.f32 %v91_v12, %v89_v11 }
  0x22   :  { %s5443_s21 = sld [smem:[#allocation8 + $0x6]]  ;;  %v104_v17 = vmul.f32 %v103_v7, %v5439_v0  ;;  %v105_v18 = vmul.f32 %v103_v7, %v5441_v1  ;;  %v107_v21 = vstv %s5427_s15  ;;  %v5488_v28 = vadd.f32 %v99_v16, %v96_v13 }
  0x23   :  { %s5445_s22 = sld [smem:[#allocation7 + $0x380]]  ;;  %v111_v10 = vstv %s5429_s16  ;;  %v5494_v31 = vadd.f32 %v99_v16, %v97_v15 }
  0x24   :  { %s5447_s23 = sld [smem:[#allocation8 + $0x7]]  ;;  %v112_v22 = vmul.f32 %v111_v10, %v5439_v0  ;;  %v113_v24 = vmul.f32 %v111_v10, %v5441_v1  ;;  %v115_v25 = vstv %s5431_s17  ;;  %v5496_v32 = vadd.f32 %v107_v21, %v104_v17 }
  0x25   :  { %s5452_s24 = sld [smem:[#allocation7 + $0x400]]  ;;  %v119_v14 = vstv %s5433_s18  ;;  %v5498_v33 = vadd.f32 %v107_v21, %v105_v18 }
  0x26   :  { %s5457_s25 = sld [smem:[#allocation8 + $0x8]]  ;;  %v120_v26 = vmul.f32 %v119_v14, %v5439_v0  ;;  %v123_v29 = vstv %s5435_s19  ;;  %v5503_v35 = vadd.f32 %v115_v25, %v112_v22  ;;  %v121_v36 = vmul.f32 %v119_v14, %v5441_v1 }
  0x27   :  { %s5463_s26 = sld [smem:[#allocation7 + $0x480]]  ;;  %v127_v30 = vstv %s5437_s20  ;;  %v5510_v39 = vadd.f32 %v115_v25, %v113_v24 }
  0x28   :  { %s5469_s27 = sld [smem:[#allocation8 + $0x9]]  ;;  %v5512_v40 = vadd.f32 %v123_v29, %v120_v26  ;;  %v128_v41 = vmul.f32 %v127_v30, %v5439_v0  ;;  %v129_v42 = vmul.f32 %v127_v30, %v5441_v1  ;;  %v131_v43 = vstv %s5443_s21 }
  0x29   :  { %s5477_s28 = sld [smem:[#allocation7 + $0x500]]  ;;  %v135_v34 = vstv %s5445_s22  ;;  %v5530_v51 = vadd.f32 %v123_v29, %v121_v36 }
  0x2a   :  { %s5484_s29 = sld [smem:[#allocation8 + $0xa]]  ;;  %v136_v44 = vmul.f32 %v135_v34, %v5439_v0  ;;  %v137_v45 = vmul.f32 %v135_v34, %v5441_v1  ;;  %v139_v47 = vstv %s5447_s23  ;;  %v5537_v55 = vadd.f32 %v131_v43, %v128_v41 }
  0x2b   :  { %s5492_s30 = sld [smem:[#allocation7 + $0x580]]  ;;  %v143_v37 = vstv %s5452_s24  ;;  %v5539_v56 = vadd.f32 %v131_v43, %v129_v42 }
  0x2c   :  { %s5501_s6 = sld [smem:[#allocation8 + $0xb]]  ;;  %v144_v48 = vmul.f32 %v143_v37, %v5439_v0  ;;  %v145_v49 = vmul.f32 %v143_v37, %v5441_v1  ;;  %v147_v52 = vstv %s5457_s25  ;;  %v5545_v59 = vadd.f32 %v139_v47, %v136_v44 }
  0x2d   :  { %v151_v38 = vstv %s5463_s26  ;;  %s5508_s0 = sld [smem:[#allocation7 + $0x600]]  ;;  %v5547_v60 = vadd.f32 %v139_v47, %v137_v45 }
  0x2e   :  { %s5516_s7 = sld [smem:[#allocation8 + $0xc]]  ;;  %v152_v50 = vmul.f32 %v151_v38, %v5439_v0  ;;  %v153_v53 = vmul.f32 %v151_v38, %v5441_v1  ;;  %v155_v54 = vstv %s5469_s27  ;;  %v5553_v63 = vadd.f32 %v147_v52, %v144_v48 }
  0x2f   :  { %v159_v46 = vstv %s5477_s28  ;;  %s5522_s8 = sld [smem:[#allocation7 + $0x680]]  ;;  %v5555_v2 = vadd.f32 %v147_v52, %v145_v49 }
  0x30   :  { %s5528_s9 = sld [smem:[#allocation8 + $0xd]]  ;;  %v160_v57 = vmul.f32 %v159_v46, %v5439_v0  ;;  %v163_v61 = vstv %s5484_s29  ;;  %v5557_v3 = vadd.f32 %v155_v54, %v152_v50  ;;  %v161_v4 = vmul.f32 %v159_v46, %v5441_v1 }
  0x31   :  { %s5535_s10 = sld [smem:[#allocation7 + $0x700]]  ;;  %v167_v58 = vstv %s5492_s30  ;;  %v5562_v5 = vadd.f32 %v155_v54, %v153_v53 }
  0x32   :  { %s5543_s1 = sld [smem:[#allocation8 + $0xe]]  ;;  %v168_v6 = vmul.f32 %v167_v58, %v5439_v0  ;;  %v169_v7 = vmul.f32 %v167_v58, %v5441_v1  ;;  %v5569_v9 = vadd.f32 %v163_v61, %v160_v57  ;;  %v171_v10 = vstv %s5501_s6 }
  0x33   :  { %v175_v62 = vstv %s5508_s0  ;;  %s5551_s2 = sld [smem:[#allocation7 + $0x780]]  ;;  %v5582_v17 = vadd.f32 %v163_v61, %v161_v4 }
  0x34   :  { %s5560_s11 = sld [smem:[#allocation8 + $0xf]]  ;;  %v176_v11 = vmul.f32 %v175_v62, %v5439_v0  ;;  %v177_v12 = vmul.f32 %v175_v62, %v5441_v1  ;;  %v179_v13 = vstv %s5516_s7  ;;  %v5589_v24 = vadd.f32 %v171_v10, %v168_v6 }
  0x35   :  { %v183_v8 = vstv %s5522_s8  ;;  %s5567_s12 = sld [smem:[#allocation7 + $0x1]]  ;;  %v5591_v25 = vadd.f32 %v171_v10, %v169_v7 }
  0x36   :  { %s5574_s3 = sld [smem:[#allocation7 + $0x81]]  ;;  %v184_v14 = vmul.f32 %v183_v8, %v5439_v0  ;;  %v185_v15 = vmul.f32 %v183_v8, %v5441_v1  ;;  %v187_v18 = vstv %s5528_s9  ;;  %v5597_v30 = vadd.f32 %v179_v13, %v176_v11 }
  0x37   :  { %v191_v16 = vstv %s5535_s10  ;;  %s5580_s13 = sld [smem:[#allocation7 + $0x101]]  ;;  %v5599_v34 = vadd.f32 %v179_v13, %v177_v12 }
  0x38   :  { %v192_v21 = vmul.f32 %v191_v16, %v5439_v0  ;;  %v193_v22 = vmul.f32 %v191_v16, %v5441_v1  ;;  %s5587_s14 = sld [smem:[#allocation7 + $0x181]]  ;;  %v195_v26 = vstv %s5543_s1  ;;  %v5605_v38 = vadd.f32 %v187_v18, %v184_v14 }
  0x39   :  { %v199_v29 = vstv %s5551_s2  ;;  %s5595_s15 = sld [smem:[#allocation7 + $0x201]]  ;;  %v5607_v41 = vadd.f32 %v187_v18, %v185_v15 }
  0x3a   :  { %v200_v36 = vmul.f32 %v199_v29, %v5439_v0  ;;  %v201_v37 = vmul.f32 %v199_v29, %v5441_v1  ;;  %s5603_s16 = sld [smem:[#allocation7 + $0x281]]  ;;  %v203_v42 = vstv %s5560_s11  ;;  %v5613_v44 = vadd.f32 %v195_v26, %v192_v21 }
  0x3b   :  { %v207_v43 = vstv %s5567_s12  ;;  %s5611_s17 = sld [smem:[#allocation7 + $0x301]]  ;;  %v5615_v45 = vadd.f32 %v195_v26, %v193_v22 }
  0x3c   :  { %v208_v46 = vmul.f32 %v207_v43, %v5439_v0  ;;  %v209_v47 = vmul.f32 %v207_v43, %v5441_v1  ;;  %s5619_s18 = sld [smem:[#allocation7 + $0x381]]  ;;  %v5621_v48 = vadd.f32 %v203_v42, %v200_v36  ;;  %v5623_v49 = vadd.f32 %v203_v42, %v201_v37 }
  0x3d   :  { %v221_v50 = vstv %s5574_s3  ;;  %v234_v52 = vstv %s5580_s13  ;;  %s5627_s19 = sld [smem:[#allocation7 + $0x401]] }
  0x3e   :  { %v213_v53 = vrot.slane %v208_v46, 1  ;;  %v214_v54 = vrot.slane %v209_v47, 1  ;;  %v222_v57 = vmul.f32 %v221_v50, %v5439_v0  ;;  %v223_v58 = vmul.f32 %v221_v50, %v5441_v1  ;;  %s5656_s20 = sld [smem:[#allocation7 + $0x481]] }
  0x3f   :  { %v235_v61 = vmul.f32 %v234_v52, %v5439_v0  ;;  %v236_v62 = vmul.f32 %v234_v52, %v5441_v1  ;;  %v247_v4 = vstv %s5587_s14  ;;  %v260_v6 = vstv %s5595_s15  ;;  %s5662_s21 = sld [smem:[#allocation7 + $0x501]] }
  0x40   :  { %v215_v7 = vsel %vm212_vm0, %v213_v53, %v214_v54  ;;  %v5637_v8 = vadd.f32 %v214_v54, %v5473_v20  ;;  %v226_v10 = vrot.slane %v222_v57, 1  ;;  %v227_v11 = vrot.slane %v223_v58, 1  ;;  %s5668_s22 = sld [smem:[#allocation7 + $0x581]] }
  0x41   :  { %v5640_v12 = vadd.f32 %v215_v7, %v5471_v19  ;;  %v239_v13 = vrot.slane %v235_v61, 1  ;;  %v240_v14 = vrot.slane %v236_v62, 1  ;;  %v248_v15 = vmul.f32 %v247_v4, %v5439_v0  ;;  %s5689_s23 = sld [smem:[#allocation7 + $0x601]] }
  0x42   :  { %v228_v16 = vsel %vm212_vm0, %v226_v10, %v227_v11  ;;  %v5645_v18 = vadd.f32 %v227_v11, %v5486_v27  ;;  %v249_v20 = vmul.f32 %v247_v4, %v5441_v1  ;;  %v261_v21 = vmul.f32 %v260_v6, %v5439_v0  ;;  %s5708_s24 = sld [smem:[#allocation7 + $0x681]] }
  0x43   :  { %v5650_v19 = vadd.f32 %v228_v16, %v5479_v23  ;;  %v241_v22 = vsel %vm212_vm0, %v239_v13, %v240_v14  ;;  %v5654_v26 = vadd.f32 %v240_v14, %v5494_v31  ;;  %v252_v29 = vrot.slane %v248_v15, 1  ;;  %s5719_s25 = sld [smem:[#allocation7 + $0x701]] }
  0x44   :  { %v5659_v36 = vadd.f32 %v241_v22, %v5488_v28  ;;  %v253_v27 = vrot.slane %v249_v20, 1  ;;  %v262_v37 = vmul.f32 %v260_v6, %v5441_v1  ;;  %v265_v42 = vrot.slane %v261_v21, 1  ;;  %s5733_s26 = sld [smem:[#allocation7 + $0x781]] }
  0x45   :  { %v273_v43 = vstv %s5603_s16  ;;  %v286_v23 = vstv %s5611_s17  ;;  %v299_v46 = vstv %s5619_s18  ;;  %v312_v47 = vstv %s5627_s19  ;;  %s5738_s27 = sld [smem:[#allocation7 + $0x2]] }
  0x46   :  { %v254_v31 = vsel %vm212_vm0, %v252_v29, %v253_v27  ;;  %v5672_v50 = vadd.f32 %v253_v27, %v5498_v33  ;;  %v266_v52 = vrot.slane %v262_v37, 1  ;;  %v274_v28 = vmul.f32 %v273_v43, %v5439_v0  ;;  %s5745_s28 = sld [smem:[#allocation7 + $0x82]] }
  0x47   :  { %v5676_v53 = vadd.f32 %v254_v31, %v5496_v32  ;;  %v275_v54 = vmul.f32 %v273_v43, %v5441_v1  ;;  %v287_v57 = vmul.f32 %v286_v23, %v5439_v0  ;;  %v288_v58 = vmul.f32 %v286_v23, %v5441_v1  ;;  %s5751_s29 = sld [smem:[#allocation7 + $0x102]] }
  0x48   :  { %v267_v61 = vsel %vm212_vm0, %v265_v42, %v266_v52  ;;  %v5683_v62 = vadd.f32 %v266_v52, %v5510_v39  ;;  %v278_v4 = vrot.slane %v274_v28, 1  ;;  %v300_v33 = vmul.f32 %v299_v46, %v5439_v0  ;;  %s5758_s30 = sld [smem:[#allocation7 + $0x182]] }
  0x49   :  { %v5687_v6 = vadd.f32 %v267_v61, %v5503_v35  ;;  %v279_v7 = vrot.slane %v275_v54, 1  ;;  %v291_v32 = vrot.slane %v287_v57, 1  ;;  %v292_v10 = vrot.slane %v288_v58, 1  ;;  %s5767_s6 = sld [smem:[#allocation7 + $0x202]] }
  0x4a   :  { %v301_v11 = vmul.f32 %v299_v46, %v5441_v1  ;;  %v304_v13 = vrot.slane %v300_v33, 1  ;;  %v313_v39 = vmul.f32 %v312_v47, %v5439_v0  ;;  %v314_v14 = vmul.f32 %v312_v47, %v5441_v1  ;;  %s5799_s0 = sld [smem:[#allocation7 + $0x282]] }
  0x4b   :  { %v280_v15 = vsel %vm212_vm0, %v278_v4, %v279_v7  ;;  %v5696_v35 = vadd.f32 %v279_v7, %v5530_v51  ;;  %v293_v16 = vsel %vm212_vm0, %v291_v32, %v292_v10  ;;  %v5700_v20 = vadd.f32 %v292_v10, %v5539_v56  ;;  %s5810_s7 = sld [smem:[#allocation7 + $0x302]] }
  0x4c   :  { %v5703_v21 = vadd.f32 %v280_v15, %v5512_v40  ;;  %v5706_v22 = vadd.f32 %v293_v16, %v5537_v55  ;;  %v305_v29 = vrot.slane %v301_v11, 1  ;;  %v317_v27 = vrot.slane %v313_v39, 1  ;;  %s5816_s8 = sld [smem:[#allocation7 + $0x382]] }
  0x4d   :  { %v318_v37 = vrot.slane %v314_v14, 1  ;;  %v325_v42 = vstv %s5656_s20  ;;  %v338_v43 = vstv %s5662_s21  ;;  %v351_v51 = vstv %s5668_s22  ;;  %s5824_s9 = sld [smem:[#allocation7 + $0x402]] }
  0x4e   :  { %v306_v23 = vsel %vm212_vm0, %v304_v13, %v305_v29  ;;  %v5715_v46 = vadd.f32 %v305_v29, %v5547_v60  ;;  %v326_v40 = vmul.f32 %v325_v42, %v5439_v0  ;;  %v327_v56 = vmul.f32 %v325_v42, %v5441_v1  ;;  %s5832_s10 = sld [smem:[#allocation7 + $0x482]] }
  0x4f   :  { %v5722_v55 = vadd.f32 %v306_v23, %v5545_v59  ;;  %v319_v47 = vsel %vm212_vm0, %v317_v27, %v318_v37  ;;  %v5726_v31 = vadd.f32 %v318_v37, %v5555_v2  ;;  %v339_v52 = vmul.f32 %v338_v43, %v5439_v0  ;;  %s5837_s1 = sld [smem:[#allocation7 + $0x502]] }
  0x50   :  { %v5730_v60 = vadd.f32 %v319_v47, %v5553_v63  ;;  %v330_v28 = vrot.slane %v326_v40, 1  ;;  %v331_v54 = vrot.slane %v327_v56, 1  ;;  %v340_v57 = vmul.f32 %v338_v43, %v5441_v1  ;;  %s5871_s2 = sld [smem:[#allocation7 + $0x582]] }
  0x51   :  { %v343_v58 = vrot.slane %v339_v52, 1  ;;  %v352_v59 = vmul.f32 %v351_v51, %v5439_v0  ;;  %v353_v61 = vmul.f32 %v351_v51, %v5441_v1  ;;  %v364_v4 = vstv %s5689_s23  ;;  %s5882_s11 = sld [smem:[#allocation7 + $0x602]] }
  0x52   :  { %v332_v2 = vsel %vm212_vm0, %v330_v28, %v331_v54  ;;  %v5742_v63 = vadd.f32 %v331_v54, %v5562_v5  ;;  %v344_v33 = vrot.slane %v340_v57, 1  ;;  %v365_v7 = vmul.f32 %v364_v4, %v5439_v0  ;;  %s5888_s12 = sld [smem:[#allocation7 + $0x682]] }
  0x53   :  { %v5748_v32 = vadd.f32 %v332_v2, %v5557_v3  ;;  %v356_v10 = vrot.slane %v352_v59, 1  ;;  %v357_v11 = vrot.slane %v353_v61, 1  ;;  %v366_v13 = vmul.f32 %v364_v4, %v5441_v1  ;;  %s5896_s3 = sld [smem:[#allocation7 + $0x702]] }
  0x54   :  { %v345_v39 = vsel %vm212_vm0, %v343_v58, %v344_v33  ;;  %v5755_v5 = vadd.f32 %v344_v33, %v5582_v17  ;;  %v369_v14 = vrot.slane %v365_v7, 1  ;;  %v377_v15 = vstv %s5708_s24  ;;  %s5904_s13 = sld [smem:[#allocation7 + $0x782]] }
  0x55   :  { %v5761_v16 = vadd.f32 %v345_v39, %v5569_v9  ;;  %v358_v3 = vsel %vm212_vm0, %v356_v10, %v357_v11  ;;  %v5765_v29 = vadd.f32 %v357_v11, %v5591_v25  ;;  %v370_v27 = vrot.slane %v366_v13, 1  ;;  %s5909_s14 = sld [smem:[#allocation7 + $0x3]] }
  0x56   :  { %v5770_v37 = vadd.f32 %v358_v3, %v5589_v24  ;;  %v378_v17 = vmul.f32 %v377_v15, %v5439_v0  ;;  %v379_v42 = vmul.f32 %v377_v15, %v5441_v1  ;;  %v390_v43 = vstv %s5719_s25  ;;  %s5943_s15 = sld [smem:[#allocation7 + $0x83]] }
  0x57   :  { %v371_v9 = vsel %vm212_vm0, %v369_v14, %v370_v27  ;;  %v5777_v51 = vadd.f32 %v370_v27, %v5599_v34  ;;  %v391_v25 = vmul.f32 %v390_v43, %v5439_v0  ;;  %v392_v23 = vmul.f32 %v390_v43, %v5441_v1  ;;  %s5954_s16 = sld [smem:[#allocation7 + $0x103]] }
  0x58   :  { %v5782_v40 = vadd.f32 %v371_v9, %v5597_v30  ;;  %v382_v24 = vrot.slane %v378_v17, 1  ;;  %v383_v56 = vrot.slane %v379_v42, 1  ;;  %v403_v47 = vstv %s5733_s26  ;;  %s5960_s17 = sld [smem:[#allocation7 + $0x183]] }
  0x59   :  { %v395_v52 = vrot.slane %v391_v25, 1  ;;  %v396_v28 = vrot.slane %v392_v23, 1  ;;  %v404_v54 = vmul.f32 %v403_v47, %v5439_v0  ;;  %v405_v57 = vmul.f32 %v403_v47, %v5441_v1  ;;  %s5970_s18 = sld [smem:[#allocation7 + $0x203]] }
  0x5a   :  { %v384_v34 = vsel %vm212_vm0, %v382_v24, %v383_v56  ;;  %v5789_v58 = vadd.f32 %v383_v56, %v5607_v41  ;;  %v416_v30 = vstv %s5738_s27  ;;  %v430_v11 = vstv %s5745_s28  ;;  %s5980_s19 = sld [smem:[#allocation7 + $0x283]] }
  0x5b   :  { %v5793_v59 = vadd.f32 %v384_v34, %v5605_v38  ;;  %v397_v61 = vsel %vm212_vm0, %v395_v52, %v396_v28  ;;  %v5797_v4 = vadd.f32 %v396_v28, %v5615_v45  ;;  %v408_v2 = vrot.slane %v404_v54, 1  ;;  %s5985_s20 = sld [smem:[#allocation7 + $0x303]] }
  0x5c   :  { %v5802_v33 = vadd.f32 %v397_v61, %v5613_v44  ;;  %v409_v7 = vrot.slane %v405_v57, 1  ;;  %v417_v41 = vmul.f32 %v416_v30, %v5439_v0  ;;  %v418_v10 = vmul.f32 %v416_v30, %v5441_v1  ;;  %s5989_s21 = sld [smem:[#allocation7 + $0x383]] }
  0x5d   :  { %v443_v13 = vstv %s5751_s29  ;;  %v456_v38 = vstv %s5758_s30  ;;  %v469_v39 = vstv %s5767_s6  ;;  %v431_v27 = vmul.f32 %v430_v11, %v5439_v0  ;;  %s5997_s22 = sld [smem:[#allocation7 + $0x403]] }
  0x5e   :  { %v410_v45 = vsel %vm212_vm0, %v408_v2, %v409_v7  ;;  %v5814_v14 = vadd.f32 %v409_v7, %v5623_v49  ;;  %v422_v15 = vrot.slane %v417_v41, 2  ;;  %v423_v3 = vrot.slane %v418_v10, 2  ;;  %s6006_s23 = sld [smem:[#allocation7 + $0x483]] }
  0x5f   :  { %v5819_v44 = vadd.f32 %v410_v45, %v5621_v48  ;;  %v432_v17 = vmul.f32 %v430_v11, %v5441_v1  ;;  %v444_v42 = vmul.f32 %v443_v13, %v5439_v0  ;;  %v445_v9 = vmul.f32 %v443_v13, %v5441_v1  ;;  %s6018_s24 = sld [smem:[#allocation7 + $0x503]] }
  0x60   :  { %v424_v43 = vsel %vm421_vm1, %v422_v15, %v423_v3  ;;  %v5828_v49 = vadd.f32 %v423_v3, %v5637_v8  ;;  %v457_v25 = vmul.f32 %v456_v38, %v5439_v0  ;;  %v435_v23 = vrot.slane %v431_v27, 2  ;;  %s6026_s25 = sld [smem:[#allocation7 + $0x583]] }
  0x61   :  { %v5835_v48 = vadd.f32 %v424_v43, %v5640_v12  ;;  %v436_v24 = vrot.slane %v432_v17, 2  ;;  %v448_v56 = vrot.slane %v444_v42, 2  ;;  %v449_v47 = vrot.slane %v445_v9, 2  ;;  %s6050_s26 = sld [smem:[#allocation7 + $0x603]] }
  0x62   :  { %v458_v52 = vmul.f32 %v456_v38, %v5441_v1  ;;  %v461_v8 = vrot.slane %v457_v25, 2  ;;  %v470_v28 = vmul.f32 %v469_v39, %v5439_v0  ;;  %v471_v12 = vmul.f32 %v469_v39, %v5441_v1  ;;  %s6056_s27 = sld [smem:[#allocation7 + $0x683]] }
  0x63   :  { %v437_v54 = vsel %vm421_vm1, %v435_v23, %v436_v24  ;;  %v5843_v57 = vadd.f32 %v436_v24, %v5645_v18  ;;  %v482_v34 = vstv %s5799_s0  ;;  %v450_v61 = vsel %vm421_vm1, %v448_v56, %v449_v47  ;;  %s6066_s28 = sld [smem:[#allocation7 + $0x703]] }
  0x64   :  { %v5848_v30 = vadd.f32 %v437_v54, %v5650_v19  ;;  %v5852_v2 = vadd.f32 %v449_v47, %v5654_v26  ;;  %v462_v7 = vrot.slane %v458_v52, 2  ;;  %v5855_v41 = vadd.f32 %v450_v61, %v5659_v36  ;;  %s6080_s29 = sld [smem:[#allocation7 + $0x783]] }
  0x65   :  { %v474_v10 = vrot.slane %v470_v28, 2  ;;  %v475_v11 = vrot.slane %v471_v12, 2  ;;  %v483_v18 = vmul.f32 %v482_v34, %v5439_v0  ;;  %v484_v26 = vmul.f32 %v482_v34, %v5441_v1  ;;  %s6090_s30 = sld [smem:[#allocation7 + $0x4]] }
  0x66   :  { %v463_v13 = vsel %vm421_vm1, %v461_v8, %v462_v7  ;;  %v5860_v19 = vadd.f32 %v462_v7, %v5672_v50  ;;  %v495_v38 = vstv %s5810_s7  ;;  %v508_v42 = vstv %s5816_s8  ;;  %s6104_s6 = sld [smem:[#allocation7 + $0x84]] }
  0x67   :  { %v5865_v39 = vadd.f32 %v463_v13, %v5676_v53  ;;  %v476_v36 = vsel %vm421_vm1, %v474_v10, %v475_v11  ;;  %v5869_v45 = vadd.f32 %v475_v11, %v5683_v62  ;;  %v487_v15 = vrot.slane %v483_v18, 2  ;;  %s6110_s0 = sld [smem:[#allocation7 + $0x104]] }
  0x68   :  { %v5874_v3 = vadd.f32 %v476_v36, %v5687_v6  ;;  %v488_v27 = vrot.slane %v484_v26, 2  ;;  %v496_v50 = vmul.f32 %v495_v38, %v5439_v0  ;;  %v497_v17 = vmul.f32 %v495_v38, %v5441_v1  ;;  %s6116_s7 = sld [smem:[#allocation7 + $0x184]] }
  0x69   :  { %v521_v43 = vstv %s5824_s9  ;;  %v534_v53 = vstv %s5832_s10  ;;  %v547_v9 = vstv %s5837_s1  ;;  %v509_v56 = vmul.f32 %v508_v42, %v5439_v0  ;;  %s6166_s8 = sld [smem:[#allocation7 + $0x204]] }
  0x6a   :  { %v489_v62 = vsel %vm421_vm1, %v487_v15, %v488_v27  ;;  %v5886_v25 = vadd.f32 %v488_v27, %v5696_v35  ;;  %v500_v23 = vrot.slane %v496_v50, 2  ;;  %v501_v24 = vrot.slane %v497_v17, 2  ;;  %s6180_s9 = sld [smem:[#allocation7 + $0x284]] }
  0x6b   :  { %v5891_v6 = vadd.f32 %v489_v62, %v5703_v21  ;;  %v510_v47 = vmul.f32 %v508_v42, %v5441_v1  ;;  %v522_v52 = vmul.f32 %v521_v43, %v5439_v0  ;;  %v523_v28 = vmul.f32 %v521_v43, %v5441_v1  ;;  %s6186_s10 = sld [smem:[#allocation7 + $0x304]] }
  0x6c   :  { %v502_v8 = vsel %vm421_vm1, %v500_v23, %v501_v24  ;;  %v5900_v35 = vadd.f32 %v501_v24, %v5700_v20  ;;  %v535_v54 = vmul.f32 %v534_v53, %v5439_v0  ;;  %v513_v12 = vrot.slane %v509_v56, 2  ;;  %s6192_s1 = sld [smem:[#allocation7 + $0x384]] }
  0x6d   :  { %v5907_v21 = vadd.f32 %v502_v8, %v5706_v22  ;;  %v514_v34 = vrot.slane %v510_v47, 2  ;;  %v526_v61 = vrot.slane %v522_v52, 2  ;;  %v527_v7 = vrot.slane %v523_v28, 2 }
  0x6e   :  { %v536_v10 = vmul.f32 %v534_v53, %v5441_v1  ;;  %v539_v20 = vrot.slane %v535_v54, 2  ;;  %v548_v11 = vmul.f32 %v547_v9, %v5439_v0  ;;  %v549_v22 = vmul.f32 %v547_v9, %v5441_v1 }
  0x6f   :  { %v515_v18 = vsel %vm421_vm1, %v513_v12, %v514_v34  ;;  %v5915_v13 = vadd.f32 %v514_v34, %v5715_v46  ;;  %v560_v26 = vstv %s5871_s2  ;;  %v528_v36 = vsel %vm421_vm1, %v526_v61, %v527_v7  ;;  %s6206_s2 = sld [smem:[#allocation7 + $0x404]] }
  0x70   :  { %v5920_v38 = vadd.f32 %v515_v18, %v5722_v55  ;;  %v5924_v15 = vadd.f32 %v527_v7, %v5726_v31  ;;  %v540_v27 = vrot.slane %v536_v10, 2  ;;  %v5927_v50 = vadd.f32 %v528_v36, %v5730_v60 }
  0x71   :  { %v552_v17 = vrot.slane %v548_v11, 2  ;;  %v553_v42 = vrot.slane %v549_v22, 2  ;;  %v561_v46 = vmul.f32 %v560_v26, %v5439_v0  ;;  %v562_v31 = vmul.f32 %v560_v26, %v5441_v1  ;;  %v5978_v22 = vld [vmem:[#allocation3 + $0x18] sm:$0xff] }
  0x72   :  { %v541_v43 = vsel %vm421_vm1, %v539_v20, %v540_v27  ;;  %v5932_v55 = vadd.f32 %v540_v27, %v5742_v63  ;;  %v573_v53 = vstv %s5882_s11  ;;  %v586_v52 = vstv %s5888_s12  ;;  %v5968_v20 = vld [vmem:[#allocation3 + $0x10] sm:$0xff]  ;;  %s6218_s11 = sld [smem:[#allocation7 + $0x484]] }
  0x73   :  { %v5937_v9 = vadd.f32 %v541_v43, %v5748_v32  ;;  %v554_v60 = vsel %vm421_vm1, %v552_v17, %v553_v42  ;;  %v5941_v62 = vadd.f32 %v553_v42, %v5755_v5  ;;  %v565_v23 = vrot.slane %v561_v46, 2  ;;  %s6228_s12 = sld [smem:[#allocation7 + $0x504]] }
  0x74   :  { %v5946_v24 = vadd.f32 %v554_v60, %v5761_v16  ;;  %v566_v56 = vrot.slane %v562_v31, 2  ;;  %v574_v63 = vmul.f32 %v573_v53, %v5439_v0  ;;  %v575_v47 = vmul.f32 %v573_v53, %v5441_v1 }
  0x75   :  { %v599_v8 = vstv %s5896_s3  ;;  %v612_v32 = vstv %s5904_s13  ;;  %v628_v28 = vstv %s5909_s14  ;;  %v587_v61 = vmul.f32 %v586_v52, %v5439_v0  ;;  %s6242_s3 = sld [smem:[#allocation7 + $0x584]] }
  0x76   :  { %v567_v5 = vsel %vm421_vm1, %v565_v23, %v566_v56  ;;  %v5958_v54 = vadd.f32 %v566_v56, %v5765_v29  ;;  %v578_v12 = vrot.slane %v574_v63, 2  ;;  %v579_v34 = vrot.slane %v575_v47, 2  ;;  %s6257_s13 = sld [smem:[#allocation7 + $0x604]] }
  0x77   :  { %v5963_v16 = vadd.f32 %v567_v5, %v5770_v37  ;;  %v588_v7 = vmul.f32 %v586_v52, %v5441_v1  ;;  %v600_v10 = vmul.f32 %v599_v8, %v5439_v0  ;;  %v601_v18 = vmul.f32 %v599_v8, %v5441_v1  ;;  %s6266_s14 = sld [smem:[#allocation7 + $0x684]] }
  0x78   :  { %v580_v29 = vsel %vm421_vm1, %v578_v12, %v579_v34  ;;  %v5974_v11 = vadd.f32 %v579_v34, %v5777_v51  ;;  %v613_v37 = vmul.f32 %v612_v32, %v5439_v0  ;;  %v591_v36 = vrot.slane %v587_v61, 2 }
  0x79   :  { %v5983_v26 = vadd.f32 %v580_v29, %v5782_v40  ;;  %v592_v27 = vrot.slane %v588_v7, 2  ;;  %v604_v17 = vrot.slane %v600_v10, 2  ;;  %v605_v42 = vrot.slane %v601_v18, 2 }
  0x7a   :  { %v614_v51 = vmul.f32 %v612_v32, %v5441_v1  ;;  %v617_v46 = vrot.slane %v613_v37, 2  ;;  %v629_v43 = vmul.f32 %v628_v28, %v5968_v20  ;;  %v630_v40 = vmul.f32 %v628_v28, %v5978_v22 }
  0x7b   :  { %v593_v0 = vsel %vm421_vm1, %v591_v36, %v592_v27  ;;  %v5993_v31 = vadd.f32 %v592_v27, %v5789_v58  ;;  %v634_v53 = vstv %s5943_s15  ;;  %v606_v1 = vsel %vm421_vm1, %v604_v17, %v605_v42  ;;  %s6274_s15 = sld [smem:[#allocation7 + $0x704]] }
  0x7c   :  { %v6000_v60 = vadd.f32 %v593_v0, %v5793_v59  ;;  %v6004_v23 = vadd.f32 %v605_v42, %v5797_v4  ;;  %v618_v56 = vrot.slane %v614_v51, 2  ;;  %v6009_v58 = vadd.f32 %v606_v1, %v5802_v33 }
  0x7d   :  { %v6012_v63 = vadd.f32 %v629_v43, %v5835_v48  ;;  %v6015_v59 = vadd.f32 %v630_v40, %v5828_v49  ;;  %v635_v47 = vmul.f32 %v634_v53, %v5968_v20  ;;  %v636_v33 = vmul.f32 %v634_v53, %v5978_v22 }
  0x7e   :  { %v619_v4 = vsel %vm421_vm1, %v617_v46, %v618_v56  ;;  %v6022_v52 = vadd.f32 %v618_v56, %v5814_v14  ;;  %v640_v8 = vstv %s5954_s16  ;;  %v646_v14 = vstv %s5960_s17  ;;  %s6290_s16 = sld [smem:[#allocation7 + $0x784]] }
  0x7f   :  { %v6029_v48 = vadd.f32 %v619_v4, %v5819_v44  ;;  %v6032_v49 = vadd.f32 %v635_v47, %v5848_v30  ;;  %v641_v32 = vmul.f32 %v640_v8, %v5968_v20  ;;  %v642_v28 = vmul.f32 %v640_v8, %v5978_v22  ;;  %s6305_s17 = sld [smem:[#allocation7 + $0x5]] }
  0x80   :  { %v6037_v5 = vadd.f32 %v636_v33, %v5843_v57  ;;  %v652_v12 = vstv %s5970_s18  ;;  %v658_v34 = vstv %s5980_s19  ;;  %v647_v30 = vmul.f32 %v646_v14, %v5968_v20  ;;  %s6314_s18 = sld [smem:[#allocation7 + $0x85]] }
  0x81   :  { %v6043_v61 = vadd.f32 %v641_v32, %v5855_v41  ;;  %v6046_v44 = vadd.f32 %v642_v28, %v5852_v2  ;;  %v648_v7 = vmul.f32 %v646_v14, %v5978_v22  ;;  %v653_v57 = vmul.f32 %v652_v12, %v5968_v20  ;;  %s6322_s19 = sld [smem:[#allocation7 + $0x105]] }
  0x82   :  { %v654_v10 = vmul.f32 %v652_v12, %v5978_v22  ;;  %v659_v29 = vmul.f32 %v658_v34, %v5968_v20  ;;  %v660_v18 = vmul.f32 %v658_v34, %v5978_v22  ;;  %v6059_v2 = vadd.f32 %v647_v30, %v5865_v39 }
  0x83   :  { %v6062_v41 = vadd.f32 %v648_v7, %v5860_v19  ;;  %v664_v37 = vstv %s5985_s20  ;;  %v670_v36 = vstv %s5989_s21  ;;  %v6069_v27 = vadd.f32 %v653_v57, %v5874_v3  ;;  %s6338_s20 = sld [smem:[#allocation7 + $0x185]] }
  0x84   :  { %v6072_v17 = vadd.f32 %v654_v10, %v5869_v45  ;;  %v6075_v42 = vadd.f32 %v659_v29, %v5891_v6  ;;  %v6078_v39 = vadd.f32 %v660_v18, %v5886_v25  ;;  %v665_v19 = vmul.f32 %v664_v37, %v5968_v20  ;;  %s6353_s21 = sld [smem:[#allocation7 + $0x205]] }
  0x85   :  { %v666_v51 = vmul.f32 %v664_v37, %v5978_v22  ;;  %v671_v46 = vmul.f32 %v670_v36, %v5968_v20  ;;  %v672_v3 = vmul.f32 %v670_v36, %v5978_v22  ;;  %v676_v43 = vstv %s5997_s22  ;;  %s6362_s22 = sld [smem:[#allocation7 + $0x285]] }
  0x86   :  { %v682_v0 = vstv %s6006_s23  ;;  %v688_v45 = vstv %s6018_s24  ;;  %v694_v40 = vstv %s6026_s25  ;;  %v6093_v6 = vadd.f32 %v665_v19, %v5907_v21  ;;  %s6370_s23 = sld [smem:[#allocation7 + $0x305]] }
  0x87   :  { %v6096_v25 = vadd.f32 %v666_v51, %v5900_v35  ;;  %v6099_v53 = vadd.f32 %v671_v46, %v5920_v38  ;;  %v6102_v1 = vadd.f32 %v672_v3, %v5915_v13  ;;  %v677_v56 = vmul.f32 %v676_v43, %v5968_v20  ;;  %s6386_s24 = sld [smem:[#allocation7 + $0x385]] }
  0x88   :  { %v678_v47 = vmul.f32 %v676_v43, %v5978_v22  ;;  %v683_v4 = vmul.f32 %v682_v0, %v5968_v20  ;;  %v684_v21 = vmul.f32 %v682_v0, %v5978_v22  ;;  %v689_v35 = vmul.f32 %v688_v45, %v5968_v20  ;;  %s6401_s25 = sld [smem:[#allocation7 + $0x405]] }
  0x89   :  { %v690_v13 = vmul.f32 %v688_v45, %v5978_v22  ;;  %v695_v38 = vmul.f32 %v694_v40, %v5968_v20  ;;  %v696_v33 = vmul.f32 %v694_v40, %v5978_v22  ;;  %v6119_v8 = vadd.f32 %v677_v56, %v5927_v50 }
  0x8a   :  { %v6122_v32 = vadd.f32 %v678_v47, %v5924_v15  ;;  %v6125_v28 = vadd.f32 %v683_v4, %v5937_v9  ;;  %v6128_v14 = vadd.f32 %v684_v21, %v5932_v55  ;;  %v6131_v12 = vadd.f32 %v689_v35, %v5946_v24 }
  0x8b   :  { %v6134_v34 = vadd.f32 %v690_v13, %v5941_v62  ;;  %v6137_v30 = vadd.f32 %v695_v38, %v5963_v16  ;;  %v6140_v50 = vadd.f32 %v696_v33, %v5958_v54  ;;  %v700_v15 = vstv %s6050_s26  ;;  %s6410_s26 = sld [smem:[#allocation7 + $0x485]] }
  0x8c   :  { %v706_v7 = vstv %s6056_s27  ;;  %v712_v57 = vstv %s6066_s28  ;;  %v718_v9 = vstv %s6080_s29  ;;  %v701_v10 = vmul.f32 %v700_v15, %v5968_v20  ;;  %s6418_s27 = sld [smem:[#allocation7 + $0x505]] }
  0x8d   :  { %v702_v55 = vmul.f32 %v700_v15, %v5978_v22  ;;  %v707_v24 = vmul.f32 %v706_v7, %v5968_v20  ;;  %v708_v62 = vmul.f32 %v706_v7, %v5978_v22  ;;  %v713_v16 = vmul.f32 %v712_v57, %v5968_v20  ;;  %s6434_s28 = sld [smem:[#allocation7 + $0x585]] }
  0x8e   :  { %v714_v54 = vmul.f32 %v712_v57, %v5978_v22  ;;  %v719_v29 = vmul.f32 %v718_v9, %v5968_v20  ;;  %v720_v18 = vmul.f32 %v718_v9, %v5978_v22  ;;  %v6155_v37 = vadd.f32 %v701_v10, %v5983_v26  ;;  %s6449_s29 = sld [smem:[#allocation7 + $0x605]] }
  0x8f   :  { %v6158_v36 = vadd.f32 %v702_v55, %v5974_v11  ;;  %v6161_v19 = vadd.f32 %v707_v24, %v6000_v60  ;;  %v6164_v51 = vadd.f32 %v708_v62, %v5993_v31  ;;  %v6169_v46 = vadd.f32 %v713_v16, %v6009_v58 }
  0x90   :  { %v6172_v3 = vadd.f32 %v714_v54, %v6004_v23  ;;  %v6175_v26 = vadd.f32 %v719_v29, %v6029_v48  ;;  %v6178_v11 = vadd.f32 %v720_v18, %v6022_v52  ;;  %v724_v60 = vstv %s6090_s30  ;;  %s6458_s30 = sld [smem:[#allocation7 + $0x685]] }
  0x91   :  { %v737_v43 = vstv %s6104_s6  ;;  %v750_v31 = vstv %s6110_s0  ;;  %v763_v0 = vstv %s6116_s7  ;;  %v725_v58 = vmul.f32 %v724_v60, %v5968_v20  ;;  %s6466_s6 = sld [smem:[#allocation7 + $0x705]] }
  0x92   :  { %v726_v45 = vmul.f32 %v724_v60, %v5978_v22  ;;  %v738_v23 = vmul.f32 %v737_v43, %v5968_v20  ;;  %v739_v48 = vmul.f32 %v737_v43, %v5978_v22  ;;  %v751_v52 = vmul.f32 %v750_v31, %v5968_v20  ;;  %s6482_s0 = sld [smem:[#allocation7 + $0x785]] }
  0x93   :  { %v752_v40 = vmul.f32 %v750_v31, %v5978_v22  ;;  %v764_v56 = vmul.f32 %v763_v0, %v5968_v20  ;;  %v765_v47 = vmul.f32 %v763_v0, %v5978_v22  ;;  %v729_v4 = vrot.slane %v725_v58, 1  ;;  %s6497_s7 = sld [smem:[#allocation7 + $0x6]] }
  0x94   :  { %v730_v21 = vrot.slane %v726_v45, 1  ;;  %v742_v35 = vrot.slane %v738_v23, 1  ;;  %v743_v13 = vrot.slane %v739_v48, 1  ;;  %v755_v38 = vrot.slane %v751_v52, 1 }
  0x95   :  { %v756_v33 = vrot.slane %v752_v40, 1  ;;  %v768_v15 = vrot.slane %v764_v56, 1  ;;  %v769_v7 = vrot.slane %v765_v47, 1  ;;  %v776_v29 = vstv %s6166_s8  ;;  %s6506_s8 = sld [smem:[#allocation7 + $0x86]] }
  0x96   :  { %v731_v57 = vsel %vm212_vm0, %v729_v4, %v730_v21  ;;  %v6200_v9 = vadd.f32 %v730_v21, %v6015_v59  ;;  %v744_v10 = vsel %vm212_vm0, %v742_v35, %v743_v13  ;;  %v6204_v55 = vadd.f32 %v743_v13, %v6037_v5 }
  0x97   :  { %v6209_v24 = vadd.f32 %v731_v57, %v6012_v63  ;;  %v6212_v62 = vadd.f32 %v744_v10, %v6032_v49  ;;  %v757_v16 = vsel %vm212_vm0, %v755_v38, %v756_v33  ;;  %v6216_v59 = vadd.f32 %v756_v33, %v6046_v44 }
  0x98   :  { %v6221_v5 = vadd.f32 %v757_v16, %v6043_v61  ;;  %v770_v54 = vsel %vm212_vm0, %v768_v15, %v769_v7  ;;  %v6225_v63 = vadd.f32 %v769_v7, %v6062_v41  ;;  %v777_v18 = vmul.f32 %v776_v29, %v5968_v20 }
  0x99   :  { %v6231_v49 = vadd.f32 %v770_v54, %v6059_v2  ;;  %v778_v44 = vmul.f32 %v776_v29, %v5978_v22  ;;  %v789_v60 = vstv %s6180_s9  ;;  %v802_v31 = vstv %s6186_s10  ;;  %s6514_s9 = sld [smem:[#allocation7 + $0x106]] }
  0x9a   :  { %v790_v43 = vmul.f32 %v789_v60, %v5968_v20  ;;  %v791_v61 = vmul.f32 %v789_v60, %v5978_v22  ;;  %v815_v0 = vstv %s6192_s1  ;;  %v781_v58 = vrot.slane %v777_v18, 1  ;;  %s6530_s10 = sld [smem:[#allocation7 + $0x186]] }
  0x9b   :  { %v782_v41 = vrot.slane %v778_v44, 1  ;;  %v803_v45 = vmul.f32 %v802_v31, %v5968_v20  ;;  %v804_v23 = vmul.f32 %v802_v31, %v5978_v22  ;;  %v816_v52 = vmul.f32 %v815_v0, %v5968_v20  ;;  %s6533_s1 = sld [smem:[#allocation7 + $0x206]] }
  0x9c   :  { %v794_v2 = vrot.slane %v790_v43, 1  ;;  %v795_v48 = vrot.slane %v791_v61, 1  ;;  %v817_v40 = vmul.f32 %v815_v0, %v5978_v22  ;;  %v841_v10 = vstv %s6218_s11  ;;  %s6553_s11 = sld [smem:[#allocation7 + $0x306]] }
  0x9d   :  { %v783_v56 = vsel %vm212_vm0, %v781_v58, %v782_v41  ;;  %v6248_v47 = vadd.f32 %v782_v41, %v6072_v17  ;;  %v807_v4 = vrot.slane %v803_v45, 1  ;;  %v808_v21 = vrot.slane %v804_v23, 1 }
  0x9e   :  { %v6251_v35 = vadd.f32 %v783_v56, %v6069_v27  ;;  %v796_v13 = vsel %vm212_vm0, %v794_v2, %v795_v48  ;;  %v6255_v38 = vadd.f32 %v795_v48, %v6078_v39  ;;  %v820_v33 = vrot.slane %v816_v52, 1 }
  0x9f   :  { %v6260_v15 = vadd.f32 %v796_v13, %v6075_v42  ;;  %v809_v17 = vsel %vm212_vm0, %v807_v4, %v808_v21  ;;  %v6264_v7 = vadd.f32 %v808_v21, %v6096_v25  ;;  %v821_v57 = vrot.slane %v817_v40, 1 }
  0xa0   :  { %v6269_v27 = vadd.f32 %v809_v17, %v6093_v6  ;;  %v828_v39 = vstv %s6206_s2  ;;  %v854_v16 = vstv %s6228_s12  ;;  %v842_v6 = vmul.f32 %v841_v10, %v5968_v20  ;;  %s6540_s2 = sld [smem:[#allocation7 + $0x286]] }
  0xa1   :  { %v822_v42 = vsel %vm212_vm0, %v820_v33, %v821_v57  ;;  %v6278_v54 = vadd.f32 %v821_v57, %v6102_v1  ;;  %v829_v25 = vmul.f32 %v828_v39, %v5968_v20  ;;  %v830_v29 = vmul.f32 %v828_v39, %v5978_v22  ;;  %s6562_s12 = sld [smem:[#allocation7 + $0x386]] }
  0xa2   :  { %v6283_v18 = vadd.f32 %v822_v42, %v6099_v53  ;;  %v843_v44 = vmul.f32 %v841_v10, %v5978_v22  ;;  %v855_v60 = vmul.f32 %v854_v16, %v5968_v20  ;;  %v856_v31 = vmul.f32 %v854_v16, %v5978_v22 }
  0xa3   :  { %v833_v43 = vrot.slane %v829_v25, 1  ;;  %v834_v61 = vrot.slane %v830_v29, 1  ;;  %v867_v0 = vstv %s6242_s3  ;;  %v846_v1 = vrot.slane %v842_v6, 1  ;;  %s6570_s3 = sld [smem:[#allocation7 + $0x406]] }
  0xa4   :  { %v847_v58 = vrot.slane %v843_v44, 1  ;;  %v859_v41 = vrot.slane %v855_v60, 1  ;;  %v868_v45 = vmul.f32 %v867_v0, %v5968_v20  ;;  %v860_v2 = vrot.slane %v856_v31, 1 }
  0xa5   :  { %v835_v53 = vsel %vm212_vm0, %v833_v43, %v834_v61  ;;  %v6295_v23 = vadd.f32 %v834_v61, %v6122_v32  ;;  %v869_v48 = vmul.f32 %v867_v0, %v5978_v22  ;;  %v893_v17 = vstv %s6266_s14  ;;  %s6586_s14 = sld [smem:[#allocation7 + $0x506]] }
  0xa6   :  { %v6299_v52 = vadd.f32 %v835_v53, %v6119_v8  ;;  %v848_v40 = vsel %vm212_vm0, %v846_v1, %v847_v58  ;;  %v6303_v56 = vadd.f32 %v847_v58, %v6128_v14  ;;  %v872_v4 = vrot.slane %v868_v45, 1 }
  0xa7   :  { %v6308_v21 = vadd.f32 %v848_v40, %v6125_v28  ;;  %v861_v32 = vsel %vm212_vm0, %v859_v41, %v860_v2  ;;  %v6312_v13 = vadd.f32 %v860_v2, %v6134_v34  ;;  %v873_v33 = vrot.slane %v869_v48, 1 }
  0xa8   :  { %v6317_v8 = vadd.f32 %v861_v32, %v6131_v12  ;;  %v880_v14 = vstv %s6257_s13  ;;  %v906_v57 = vstv %s6274_s15  ;;  %v894_v12 = vmul.f32 %v893_v17, %v5968_v20  ;;  %s6578_s13 = sld [smem:[#allocation7 + $0x486]] }
  0xa9   :  { %v874_v28 = vsel %vm212_vm0, %v872_v4, %v873_v33  ;;  %v6326_v39 = vadd.f32 %v873_v33, %v6140_v50  ;;  %v881_v34 = vmul.f32 %v880_v14, %v5968_v20  ;;  %v882_v10 = vmul.f32 %v880_v14, %v5978_v22  ;;  %s6606_s15 = sld [smem:[#allocation7 + $0x586]] }
  0xaa   :  { %v6331_v16 = vadd.f32 %v874_v28, %v6137_v30  ;;  %v895_v42 = vmul.f32 %v893_v17, %v5978_v22  ;;  %v907_v25 = vmul.f32 %v906_v57, %v5968_v20  ;;  %v908_v44 = vmul.f32 %v906_v57, %v5978_v22 }
  0xab   :  { %v885_v29 = vrot.slane %v881_v34, 1  ;;  %v886_v6 = vrot.slane %v882_v10, 1  ;;  %v919_v60 = vstv %s6290_s16  ;;  %v898_v50 = vrot.slane %v894_v12, 1  ;;  %s6614_s16 = sld [smem:[#allocation7 + $0x606]] }
  0xac   :  { %v899_v43 = vrot.slane %v895_v42, 1  ;;  %v911_v61 = vrot.slane %v907_v25, 1  ;;  %v920_v31 = vmul.f32 %v919_v60, %v5968_v20  ;;  %v912_v1 = vrot.slane %v908_v44, 1 }
  0xad   :  { %v887_v30 = vsel %vm212_vm0, %v885_v29, %v886_v6  ;;  %v6343_v0 = vadd.f32 %v886_v6, %v6158_v36  ;;  %v921_v58 = vmul.f32 %v919_v60, %v5978_v22  ;;  %v945_v32 = vstv %s6314_s18  ;;  %s6630_s18 = sld [smem:[#allocation7 + $0x706]] }
  0xae   :  { %v6347_v41 = vadd.f32 %v887_v30, %v6155_v37  ;;  %v900_v45 = vsel %vm212_vm0, %v898_v50, %v899_v43  ;;  %v6351_v53 = vadd.f32 %v899_v43, %v6164_v51  ;;  %v924_v2 = vrot.slane %v920_v31, 1 }
  0xaf   :  { %v6356_v48 = vadd.f32 %v900_v45, %v6161_v19  ;;  %v913_v36 = vsel %vm212_vm0, %v911_v61, %v912_v1  ;;  %v6360_v40 = vadd.f32 %v912_v1, %v6172_v3  ;;  %v925_v4 = vrot.slane %v921_v58, 1 }
  0xb0   :  { %v6365_v37 = vadd.f32 %v913_v36, %v6169_v46  ;;  %v932_v51 = vstv %s6305_s17  ;;  %v958_v33 = vstv %s6322_s19  ;;  %v946_v46 = vmul.f32 %v945_v32, %v5968_v20  ;;  %s6622_s17 = sld [smem:[#allocation7 + $0x686]] }
  0xb1   :  { %v926_v19 = vsel %vm212_vm0, %v924_v2, %v925_v4  ;;  %v6374_v14 = vadd.f32 %v925_v4, %v6178_v11  ;;  %v933_v3 = vmul.f32 %v932_v51, %v5968_v20  ;;  %v934_v17 = vmul.f32 %v932_v51, %v5978_v22  ;;  %s6642_s19 = sld [smem:[#allocation7 + $0x786]] }
  0xb2   :  { %v6379_v57 = vadd.f32 %v926_v19, %v6175_v26  ;;  %v947_v28 = vmul.f32 %v945_v32, %v5978_v22  ;;  %v959_v34 = vmul.f32 %v958_v33, %v5968_v20  ;;  %v960_v42 = vmul.f32 %v958_v33, %v5978_v22 }
  0xb3   :  { %v937_v10 = vrot.slane %v933_v3, 2  ;;  %v938_v12 = vrot.slane %v934_v17, 2  ;;  %v971_v25 = vstv %s6338_s20  ;;  %v950_v11 = vrot.slane %v946_v46, 2  ;;  %s6666_s20 = sld [smem:[#allocation7 + $0x7]] }
  0xb4   :  { %v951_v29 = vrot.slane %v947_v28, 2  ;;  %v963_v6 = vrot.slane %v959_v34, 2  ;;  %v972_v44 = vmul.f32 %v971_v25, %v5968_v20  ;;  %v964_v50 = vrot.slane %v960_v42, 2 }
  0xb5   :  { %v939_v26 = vsel %vm421_vm1, %v937_v10, %v938_v12  ;;  %v6391_v60 = vadd.f32 %v938_v12, %v6200_v9  ;;  %v973_v43 = vmul.f32 %v971_v25, %v5978_v22  ;;  %v997_v36 = vstv %s6362_s22  ;;  %s6692_s22 = sld [smem:[#allocation7 + $0x107]] }
  0xb6   :  { %v6395_v61 = vadd.f32 %v939_v26, %v6209_v24  ;;  %v952_v31 = vsel %vm421_vm1, %v950_v11, %v951_v29  ;;  %v6399_v30 = vadd.f32 %v951_v29, %v6204_v55  ;;  %v976_v1 = vrot.slane %v972_v44, 2 }
  0xb7   :  { %v6404_v58 = vadd.f32 %v952_v31, %v6212_v62  ;;  %v965_v9 = vsel %vm421_vm1, %v963_v6, %v964_v50  ;;  %v6408_v45 = vadd.f32 %v964_v50, %v6216_v59  ;;  %v977_v2 = vrot.slane %v973_v43, 2 }
  0xb8   :  { %v6413_v24 = vadd.f32 %v965_v9, %v6221_v5  ;;  %v984_v55 = vstv %s6353_s21  ;;  %v1010_v4 = vstv %s6370_s23  ;;  %v998_v5 = vmul.f32 %v997_v36, %v5968_v20  ;;  %s6678_s21 = sld [smem:[#allocation7 + $0x87]] }
  0xb9   :  { %v978_v62 = vsel %vm421_vm1, %v976_v1, %v977_v2  ;;  %v6422_v51 = vadd.f32 %v977_v2, %v6225_v63  ;;  %v985_v59 = vmul.f32 %v984_v55, %v5968_v20  ;;  %v986_v32 = vmul.f32 %v984_v55, %v5978_v22  ;;  %s6700_s23 = sld [smem:[#allocation7 + $0x187]] }
  0xba   :  { %v6427_v33 = vadd.f32 %v978_v62, %v6231_v49  ;;  %v999_v19 = vmul.f32 %v997_v36, %v5978_v22  ;;  %v1011_v3 = vmul.f32 %v1010_v4, %v5968_v20  ;;  %v1012_v28 = vmul.f32 %v1010_v4, %v5978_v22 }
  0xbb   :  { %v989_v17 = vrot.slane %v985_v59, 2  ;;  %v990_v46 = vrot.slane %v986_v32, 2  ;;  %v1023_v34 = vstv %s6386_s24  ;;  %v1002_v63 = vrot.slane %v998_v5, 2  ;;  %s6722_s24 = sld [smem:[#allocation7 + $0x207]] }
  0xbc   :  { %v1003_v10 = vrot.slane %v999_v19, 2  ;;  %v1015_v12 = vrot.slane %v1011_v3, 2  ;;  %v1024_v42 = vmul.f32 %v1023_v34, %v5968_v20  ;;  %v1016_v11 = vrot.slane %v1012_v28, 2 }
  0xbd   :  { %v991_v49 = vsel %vm421_vm1, %v989_v17, %v990_v46  ;;  %v6439_v25 = vadd.f32 %v990_v46, %v6248_v47  ;;  %v1025_v29 = vmul.f32 %v1023_v34, %v5978_v22  ;;  %v1049_v9 = vstv %s6410_s26  ;;  %s6742_s26 = sld [smem:[#allocation7 + $0x307]] }
  0xbe   :  { %v6443_v6 = vadd.f32 %v991_v49, %v6251_v35  ;;  %v1004_v44 = vsel %vm421_vm1, %v1002_v63, %v1003_v10  ;;  %v6447_v26 = vadd.f32 %v1003_v10, %v6255_v38  ;;  %v1028_v50 = vrot.slane %v1024_v42, 2 }
  0xbf   :  { %v6452_v43 = vadd.f32 %v1004_v44, %v6260_v15  ;;  %v1017_v47 = vsel %vm421_vm1, %v1015_v12, %v1016_v11  ;;  %v6456_v31 = vadd.f32 %v1016_v11, %v6264_v7  ;;  %v1029_v1 = vrot.slane %v1025_v29, 2 }
  0xc0   :  { %v6461_v35 = vadd.f32 %v1017_v47, %v6269_v27  ;;  %v1036_v38 = vstv %s6401_s25  ;;  %v1062_v2 = vstv %s6418_s27  ;;  %v1050_v27 = vmul.f32 %v1049_v9, %v5968_v20  ;;  %s6730_s25 = sld [smem:[#allocation7 + $0x287]] }
  0xc1   :  { %v1030_v15 = vsel %vm421_vm1, %v1028_v50, %v1029_v1  ;;  %v6470_v55 = vadd.f32 %v1029_v1, %v6278_v54  ;;  %v1037_v7 = vmul.f32 %v1036_v38, %v5968_v20  ;;  %v1038_v36 = vmul.f32 %v1036_v38, %v5978_v22  ;;  %s6758_s27 = sld [smem:[#allocation7 + $0x387]] }
  0xc2   :  { %v6475_v4 = vadd.f32 %v1030_v15, %v6283_v18  ;;  %v1051_v62 = vmul.f32 %v1049_v9, %v5978_v22  ;;  %v1063_v59 = vmul.f32 %v1062_v2, %v5968_v20  ;;  %v1064_v19 = vmul.f32 %v1062_v2, %v5978_v22 }
  0xc3   :  { %v1041_v32 = vrot.slane %v1037_v7, 2  ;;  %v1042_v5 = vrot.slane %v1038_v36, 2  ;;  %v1075_v3 = vstv %s6434_s28  ;;  %v1054_v54 = vrot.slane %v1050_v27, 2  ;;  %s6773_s28 = sld [smem:[#allocation7 + $0x407]] }
  0xc4   :  { %v1055_v17 = vrot.slane %v1051_v62, 2  ;;  %v1067_v46 = vrot.slane %v1063_v59, 2  ;;  %v1076_v28 = vmul.f32 %v1075_v3, %v5968_v20  ;;  %v1068_v63 = vrot.slane %v1064_v19, 2 }
  0xc5   :  { %v1043_v18 = vsel %vm421_vm1, %v1041_v32, %v1042_v5  ;;  %v6487_v34 = vadd.f32 %v1042_v5, %v6295_v23  ;;  %v1077_v10 = vmul.f32 %v1075_v3, %v5978_v22  ;;  %v1101_v47 = vstv %s6458_s30  ;;  %s6790_s30 = sld [smem:[#allocation7 + $0x507]] }
  0xc6   :  { %v6491_v12 = vadd.f32 %v1043_v18, %v6299_v52  ;;  %v1056_v42 = vsel %vm421_vm1, %v1054_v54, %v1055_v17  ;;  %v6495_v49 = vadd.f32 %v1055_v17, %v6303_v56  ;;  %v1080_v11 = vrot.slane %v1076_v28, 2 }
  0xc7   :  { %v6500_v29 = vadd.f32 %v1056_v42, %v6308_v21  ;;  %v1069_v23 = vsel %vm421_vm1, %v1067_v46, %v1068_v63  ;;  %v6504_v44 = vadd.f32 %v1068_v63, %v6312_v13  ;;  %v1081_v50 = vrot.slane %v1077_v10, 2  ;;  %v6549_v63 = vld [vmem:[#allocation3 + $0x20] sm:$0xff] }
  0xc8   :  { %v6509_v52 = vadd.f32 %v1069_v23, %v6317_v8  ;;  %v1088_v56 = vstv %s6449_s29  ;;  %v1114_v1 = vstv %s6466_s6  ;;  %v1102_v8 = vmul.f32 %v1101_v47, %v5968_v20  ;;  %s6782_s29 = sld [smem:[#allocation7 + $0x487]] }
  0xc9   :  { %v1082_v21 = vsel %vm421_vm1, %v1080_v11, %v1081_v50  ;;  %v6518_v38 = vadd.f32 %v1081_v50, %v6326_v39  ;;  %v1089_v13 = vmul.f32 %v1088_v56, %v5968_v20  ;;  %v1090_v9 = vmul.f32 %v1088_v56, %v5978_v22  ;;  %s6806_s6 = sld [smem:[#allocation7 + $0x587]] }
  0xca   :  { %v6523_v2 = vadd.f32 %v1082_v21, %v6331_v16  ;;  %v1103_v15 = vmul.f32 %v1101_v47, %v5978_v22  ;;  %v1115_v7 = vmul.f32 %v1114_v1, %v5968_v20  ;;  %v1116_v62 = vmul.f32 %v1114_v1, %v5978_v22 }
  0xcb   :  { %v1093_v36 = vrot.slane %v1089_v13, 2  ;;  %v1094_v27 = vrot.slane %v1090_v9, 2  ;;  %v1127_v59 = vstv %s6482_s0  ;;  %v1106_v39 = vrot.slane %v1102_v8, 2  ;;  %s6821_s0 = sld [smem:[#allocation7 + $0x607]] }
  0xcc   :  { %v1107_v32 = vrot.slane %v1103_v15, 2  ;;  %v1119_v5 = vrot.slane %v1115_v7, 2  ;;  %v1128_v19 = vmul.f32 %v1127_v59, %v5968_v20  ;;  %v1120_v54 = vrot.slane %v1116_v62, 2 }
  0xcd   :  { %v1095_v16 = vsel %vm421_vm1, %v1093_v36, %v1094_v27  ;;  %v6537_v3 = vadd.f32 %v1094_v27, %v6343_v0  ;;  %v1129_v17 = vmul.f32 %v1127_v59, %v5978_v22  ;;  %v6551_v0 = vld [vmem:[#allocation3 + $0x28] sm:$0xff]  ;;  %v1143_v11 = vstv %s6497_s7  ;;  %s6830_s7 = sld [smem:[#allocation7 + $0x687]] }
  0xce   :  { %v6543_v46 = vadd.f32 %v1095_v16, %v6347_v41  ;;  %v1108_v20 = vsel %vm421_vm1, %v1106_v39, %v1107_v32  ;;  %v6547_v28 = vadd.f32 %v1107_v32, %v6351_v53  ;;  %v1132_v18 = vrot.slane %v1128_v19, 2 }
  0xcf   :  { %v6556_v22 = vadd.f32 %v1108_v20, %v6356_v48  ;;  %v1121_v10 = vsel %vm421_vm1, %v1119_v5, %v1120_v54  ;;  %v6560_v41 = vadd.f32 %v1120_v54, %v6360_v40  ;;  %v1133_v42 = vrot.slane %v1129_v17, 2 }
  0xd0   :  { %v6565_v53 = vadd.f32 %v1121_v10, %v6365_v37  ;;  %v1149_v23 = vstv %s6506_s8  ;;  %v1155_v50 = vstv %s6514_s9  ;;  %v1144_v40 = vmul.f32 %v1143_v11, %v6549_v63  ;;  %s6838_s8 = sld [smem:[#allocation7 + $0x707]] }
  0xd1   :  { %v1134_v48 = vsel %vm421_vm1, %v1132_v18, %v1133_v42  ;;  %v6574_v56 = vadd.f32 %v1133_v42, %v6374_v14  ;;  %v1145_v47 = vmul.f32 %v1143_v11, %v6551_v0  ;;  %v1150_v1 = vmul.f32 %v1149_v23, %v6549_v63  ;;  %s6854_s9 = sld [smem:[#allocation7 + $0x787]] }
  0xd2   :  { %v6581_v37 = vadd.f32 %v1134_v48, %v6379_v57  ;;  %v1151_v21 = vmul.f32 %v1149_v23, %v6551_v0  ;;  %v1156_v13 = vmul.f32 %v1155_v50, %v6549_v63  ;;  %v6589_v14 = vadd.f32 %v1144_v40, %v6395_v61 }
  0xd3   :  { %v6592_v9 = vadd.f32 %v1145_v47, %v6391_v60  ;;  %v1157_v8 = vmul.f32 %v1155_v50, %v6551_v0  ;;  %v1161_v57 = vstv %s6530_s10  ;;  %v6597_v15 = vadd.f32 %v1150_v1, %v6404_v58  ;;  %s6869_s10 = sld [smem:[#allocation7 + $0x8]] }
  0xd4   :  { %v6600_v7 = vadd.f32 %v1151_v21, %v6399_v30  ;;  %v6603_v36 = vadd.f32 %v1156_v13, %v6413_v24  ;;  %v1162_v61 = vmul.f32 %v1161_v57, %v6549_v63  ;;  %v1163_v27 = vmul.f32 %v1161_v57, %v6551_v0 }
  0xd5   :  { %v6609_v60 = vadd.f32 %v1157_v8, %v6408_v45  ;;  %v1167_v62 = vstv %s6533_s1  ;;  %v1173_v58 = vstv %s6540_s2  ;;  %v1179_v5 = vstv %s6553_s11  ;;  %s6878_s1 = sld [smem:[#allocation7 + $0x88]] }
  0xd6   :  { %v6617_v30 = vadd.f32 %v1162_v61, %v6427_v33  ;;  %v1168_v24 = vmul.f32 %v1167_v62, %v6549_v63  ;;  %v1169_v59 = vmul.f32 %v1167_v62, %v6551_v0  ;;  %v1174_v39 = vmul.f32 %v1173_v58, %v6549_v63  ;;  %s6886_s2 = sld [smem:[#allocation7 + $0x108]] }
  0xd7   :  { %v6625_v45 = vadd.f32 %v1163_v27, %v6422_v51  ;;  %v1175_v32 = vmul.f32 %v1173_v58, %v6551_v0  ;;  %v1185_v19 = vstv %s6562_s12  ;;  %v1180_v51 = vmul.f32 %v1179_v5, %v6549_v63  ;;  %s6902_s11 = sld [smem:[#allocation7 + $0x188]] }
  0xd8   :  { %v6633_v33 = vadd.f32 %v1168_v24, %v6443_v6  ;;  %v6636_v16 = vadd.f32 %v1169_v59, %v6439_v25  ;;  %v6639_v54 = vadd.f32 %v1174_v39, %v6452_v43  ;;  %v1181_v20 = vmul.f32 %v1179_v5, %v6551_v0  ;;  %s6917_s12 = sld [smem:[#allocation7 + $0x208]] }
  0xd9   :  { %v6645_v17 = vadd.f32 %v1175_v32, %v6447_v26  ;;  %v1186_v18 = vmul.f32 %v1185_v19, %v6549_v63  ;;  %v1187_v6 = vmul.f32 %v1185_v19, %v6551_v0  ;;  %v6651_v25 = vadd.f32 %v1180_v51, %v6461_v35 }
  0xda   :  { %v1191_v43 = vstv %s6570_s3  ;;  %v1197_v10 = vstv %s6578_s13  ;;  %v1203_v42 = vstv %s6586_s14  ;;  %v6657_v11 = vadd.f32 %v1181_v20, %v6456_v31  ;;  %s6926_s3 = sld [smem:[#allocation7 + $0x288]] }
  0xdb   :  { %v6660_v26 = vadd.f32 %v1186_v18, %v6475_v4  ;;  %v6663_v23 = vadd.f32 %v1187_v6, %v6470_v55  ;;  %v1192_v50 = vmul.f32 %v1191_v43, %v6549_v63  ;;  %v1193_v35 = vmul.f32 %v1191_v43, %v6551_v0  ;;  %s6934_s13 = sld [smem:[#allocation7 + $0x308]] }
  0xdc   :  { %v1198_v48 = vmul.f32 %v1197_v10, %v6549_v63  ;;  %v1199_v40 = vmul.f32 %v1197_v10, %v6551_v0  ;;  %v1204_v47 = vmul.f32 %v1203_v42, %v6549_v63  ;;  %v1205_v4 = vmul.f32 %v1203_v42, %v6551_v0  ;;  %s6950_s14 = sld [smem:[#allocation7 + $0x388]] }
  0xdd   :  { %v6673_v31 = vadd.f32 %v1192_v50, %v6491_v12  ;;  %v1209_v55 = vstv %s6606_s15  ;;  %v1215_v1 = vstv %s6614_s16  ;;  %v6681_v21 = vadd.f32 %v1193_v35, %v6487_v34  ;;  %s6965_s15 = sld [smem:[#allocation7 + $0x408]] }
  0xde   :  { %v6684_v13 = vadd.f32 %v1198_v48, %v6500_v29  ;;  %v6687_v8 = vadd.f32 %v1199_v40, %v6495_v49  ;;  %v6690_v12 = vadd.f32 %v1204_v47, %v6509_v52  ;;  %v6695_v57 = vadd.f32 %v1205_v4, %v6504_v44  ;;  %s6974_s16 = sld [smem:[#allocation7 + $0x488]] }
  0xdf   :  { %v1210_v61 = vmul.f32 %v1209_v55, %v6549_v63  ;;  %v1211_v27 = vmul.f32 %v1209_v55, %v6551_v0  ;;  %v1216_v34 = vmul.f32 %v1215_v1, %v6549_v63  ;;  %v1217_v29 = vmul.f32 %v1215_v1, %v6551_v0 }
  0xe0   :  { %v1221_v49 = vstv %s6622_s17  ;;  %v1227_v62 = vstv %s6630_s18  ;;  %v1233_v52 = vstv %s6642_s19  ;;  %v1239_v51 = vstv %s6666_s20  ;;  %s6982_s17 = sld [smem:[#allocation7 + $0x508]] }
  0xe1   :  { %v6707_v58 = vadd.f32 %v1210_v61, %v6523_v2  ;;  %v6710_v44 = vadd.f32 %v1211_v27, %v6518_v38  ;;  %v6713_v24 = vadd.f32 %v1216_v34, %v6543_v46  ;;  %v1222_v59 = vmul.f32 %v1221_v49, %v6549_v63  ;;  %s6998_s18 = sld [smem:[#allocation7 + $0x588]] }
  0xe2   :  { %v6717_v39 = vadd.f32 %v1217_v29, %v6537_v3  ;;  %v1223_v32 = vmul.f32 %v1221_v49, %v6551_v0  ;;  %v1228_v5 = vmul.f32 %v1227_v62, %v6549_v63  ;;  %v1229_v19 = vmul.f32 %v1227_v62, %v6551_v0  ;;  %s7013_s19 = sld [smem:[#allocation7 + $0x608]] }
  0xe3   :  { %v6725_v38 = vadd.f32 %v1222_v59, %v6556_v22  ;;  %v1234_v2 = vmul.f32 %v1233_v52, %v6549_v63  ;;  %v1235_v46 = vmul.f32 %v1233_v52, %v6551_v0  ;;  %v1240_v22 = vmul.f32 %v1239_v51, %v6549_v63  ;;  %s7022_s20 = sld [smem:[#allocation7 + $0x688]] }
  0xe4   :  { %v6733_v3 = vadd.f32 %v1223_v32, %v6547_v28  ;;  %v6736_v20 = vadd.f32 %v1228_v5, %v6565_v53  ;;  %v6739_v18 = vadd.f32 %v1229_v19, %v6560_v41  ;;  %v1241_v28 = vmul.f32 %v1239_v51, %v6551_v0 }
  0xe5   :  { %v6745_v6 = vadd.f32 %v1234_v2, %v6581_v37  ;;  %v6748_v43 = vadd.f32 %v1235_v46, %v6574_v56  ;;  %v1252_v10 = vstv %s6678_s21  ;;  %v1244_v42 = vrot.slane %v1240_v22, 1  ;;  %s7030_s21 = sld [smem:[#allocation7 + $0x708]] }
  0xe6   :  { %v1253_v53 = vmul.f32 %v1252_v10, %v6549_v63  ;;  %v1254_v50 = vmul.f32 %v1252_v10, %v6551_v0  ;;  %v1265_v41 = vstv %s6692_s22  ;;  %v1245_v35 = vrot.slane %v1241_v28, 1  ;;  %s7046_s22 = sld [smem:[#allocation7 + $0x788]] }
  0xe7   :  { %v1266_v48 = vmul.f32 %v1265_v41, %v6549_v63  ;;  %v1267_v40 = vmul.f32 %v1265_v41, %v6551_v0  ;;  %v1278_v47 = vstv %s6700_s23  ;;  %v1304_v19 = vstv %s6730_s25  ;;  %s7061_s23 = sld [smem:[#allocation7 + $0x9]] }
  0xe8   :  { %v1257_v37 = vrot.slane %v1253_v53, 1  ;;  %v1258_v56 = vrot.slane %v1254_v50, 1  ;;  %v1279_v4 = vmul.f32 %v1278_v47, %v6549_v63  ;;  %v1280_v55 = vmul.f32 %v1278_v47, %v6551_v0  ;;  %s7078_s25 = sld [smem:[#allocation7 + $0x109]] }
  0xe9   :  { %v1246_v1 = vsel %vm212_vm0, %v1244_v42, %v1245_v35  ;;  %v6764_v61 = vadd.f32 %v1245_v35, %v6592_v9  ;;  %v1270_v27 = vrot.slane %v1266_v48, 1  ;;  %v1271_v34 = vrot.slane %v1267_v40, 1 }
  0xea   :  { %v6767_v29 = vadd.f32 %v1246_v1, %v6589_v14  ;;  %v1259_v49 = vsel %vm212_vm0, %v1257_v37, %v1258_v56  ;;  %v6771_v62 = vadd.f32 %v1258_v56, %v6600_v7  ;;  %v1283_v52 = vrot.slane %v1279_v4, 1 }
  0xeb   :  { %v6776_v59 = vadd.f32 %v1259_v49, %v6597_v15  ;;  %v1272_v9 = vsel %vm212_vm0, %v1270_v27, %v1271_v34  ;;  %v6780_v32 = vadd.f32 %v1271_v34, %v6609_v60  ;;  %v1284_v5 = vrot.slane %v1280_v55, 1 }
  0xec   :  { %v6785_v14 = vadd.f32 %v1272_v9, %v6603_v36  ;;  %v1291_v7 = vstv %s6722_s24  ;;  %v1317_v2 = vstv %s6742_s26  ;;  %v1305_v36 = vmul.f32 %v1304_v19, %v6549_v63  ;;  %s7070_s24 = sld [smem:[#allocation7 + $0x89]] }
  0xed   :  { %v1285_v15 = vsel %vm212_vm0, %v1283_v52, %v1284_v5  ;;  %v6794_v46 = vadd.f32 %v1284_v5, %v6625_v45  ;;  %v1292_v60 = vmul.f32 %v1291_v7, %v6549_v63  ;;  %v1293_v51 = vmul.f32 %v1291_v7, %v6551_v0  ;;  %s7094_s26 = sld [smem:[#allocation7 + $0x189]] }
  0xee   :  { %v6799_v22 = vadd.f32 %v1285_v15, %v6617_v30  ;;  %v1306_v28 = vmul.f32 %v1304_v19, %v6551_v0  ;;  %v1318_v10 = vmul.f32 %v1317_v2, %v6549_v63  ;;  %v1319_v50 = vmul.f32 %v1317_v2, %v6551_v0 }
  0xef   :  { %v1296_v42 = vrot.slane %v1292_v60, 1  ;;  %v1297_v53 = vrot.slane %v1293_v51, 1  ;;  %v1330_v41 = vstv %s6758_s27  ;;  %v1309_v45 = vrot.slane %v1305_v36, 1  ;;  %s7097_s27 = sld [smem:[#allocation7 + $0x209]] }
  0xf0   :  { %v1310_v35 = vrot.slane %v1306_v28, 1  ;;  %v1322_v48 = vrot.slane %v1318_v10, 1  ;;  %v1331_v40 = vmul.f32 %v1330_v41, %v6549_v63  ;;  %v1323_v37 = vrot.slane %v1319_v50, 1 }
  0xf1   :  { %v1298_v30 = vsel %vm212_vm0, %v1296_v42, %v1297_v53  ;;  %v6811_v47 = vadd.f32 %v1297_v53, %v6636_v16  ;;  %v1332_v56 = vmul.f32 %v1330_v41, %v6551_v0  ;;  %v1356_v9 = vstv %s6782_s29  ;;  %s7117_s29 = sld [smem:[#allocation7 + $0x309]] }
  0xf2   :  { %v6815_v4 = vadd.f32 %v1298_v30, %v6633_v33  ;;  %v1311_v55 = vsel %vm212_vm0, %v1309_v45, %v1310_v35  ;;  %v6819_v1 = vadd.f32 %v1310_v35, %v6645_v17  ;;  %v1335_v27 = vrot.slane %v1331_v40, 1 }
  0xf3   :  { %v6824_v34 = vadd.f32 %v1311_v55, %v6639_v54  ;;  %v1324_v16 = vsel %vm212_vm0, %v1322_v48, %v1323_v37  ;;  %v6828_v49 = vadd.f32 %v1323_v37, %v6657_v11  ;;  %v1336_v52 = vrot.slane %v1332_v56, 1 }
  0xf4   :  { %v6833_v33 = vadd.f32 %v1324_v16, %v6651_v25  ;;  %v1343_v17 = vstv %s6773_s28  ;;  %v1369_v5 = vstv %s6790_s30  ;;  %v1357_v25 = vmul.f32 %v1356_v9, %v6549_v63  ;;  %s7104_s28 = sld [smem:[#allocation7 + $0x289]] }
  0xf5   :  { %v1337_v54 = vsel %vm212_vm0, %v1335_v27, %v1336_v52  ;;  %v6842_v7 = vadd.f32 %v1336_v52, %v6663_v23  ;;  %v1344_v11 = vmul.f32 %v1343_v17, %v6549_v63  ;;  %v1345_v19 = vmul.f32 %v1343_v17, %v6551_v0  ;;  %s7126_s30 = sld [smem:[#allocation7 + $0x389]] }
  0xf6   :  { %v6847_v2 = vadd.f32 %v1337_v54, %v6660_v26  ;;  %v1358_v15 = vmul.f32 %v1356_v9, %v6551_v0  ;;  %v1370_v60 = vmul.f32 %v1369_v5, %v6549_v63  ;;  %v1371_v28 = vmul.f32 %v1369_v5, %v6551_v0 }
  0xf7   :  { %v1348_v51 = vrot.slane %v1344_v11, 1  ;;  %v1349_v36 = vrot.slane %v1345_v19, 1  ;;  %v1382_v10 = vstv %s6806_s6  ;;  %v1361_v23 = vrot.slane %v1357_v25, 1  ;;  %s7134_s6 = sld [smem:[#allocation7 + $0x409]] }
  0xf8   :  { %v1362_v42 = vrot.slane %v1358_v15, 1  ;;  %v1374_v53 = vrot.slane %v1370_v60, 1  ;;  %v1383_v50 = vmul.f32 %v1382_v10, %v6549_v63  ;;  %v1375_v45 = vrot.slane %v1371_v28, 1 }
  0xf9   :  { %v1350_v26 = vsel %vm212_vm0, %v1348_v51, %v1349_v36  ;;  %v6859_v41 = vadd.f32 %v1349_v36, %v6681_v21  ;;  %v1384_v35 = vmul.f32 %v1382_v10, %v6551_v0  ;;  %v1408_v16 = vstv %s6830_s7  ;;  %s7150_s7 = sld [smem:[#allocation7 + $0x509]] }
  0xfa   :  { %v6863_v48 = vadd.f32 %v1350_v26, %v6673_v31  ;;  %v1363_v40 = vsel %vm212_vm0, %v1361_v23, %v1362_v42  ;;  %v6867_v30 = vadd.f32 %v1362_v42, %v6687_v8  ;;  %v1387_v37 = vrot.slane %v1383_v50, 1 }
  0xfb   :  { %v6872_v56 = vadd.f32 %v1363_v40, %v6684_v13  ;;  %v1376_v21 = vsel %vm212_vm0, %v1374_v53, %v1375_v45  ;;  %v6876_v55 = vadd.f32 %v1375_v45, %v6695_v57  ;;  %v1388_v27 = vrot.slane %v1384_v35, 1 }
  0xfc   :  { %v6881_v31 = vadd.f32 %v1376_v21, %v6690_v12  ;;  %v1395_v8 = vstv %s6821_s0  ;;  %v1421_v52 = vstv %s6838_s8  ;;  %v1409_v12 = vmul.f32 %v1408_v16, %v6549_v63  ;;  %s7142_s0 = sld [smem:[#allocation7 + $0x489]] }
  0xfd   :  { %v1389_v13 = vsel %vm212_vm0, %v1387_v37, %v1388_v27  ;;  %v6890_v17 = vadd.f32 %v1388_v27, %v6710_v44  ;;  %v1396_v57 = vmul.f32 %v1395_v8, %v6549_v63  ;;  %v1397_v9 = vmul.f32 %v1395_v8, %v6551_v0  ;;  %s7170_s8 = sld [smem:[#allocation7 + $0x589]] }
  0xfe   :  { %v6895_v5 = vadd.f32 %v1389_v13, %v6707_v58  ;;  %v1410_v54 = vmul.f32 %v1408_v16, %v6551_v0  ;;  %v1422_v11 = vmul.f32 %v1421_v52, %v6549_v63  ;;  %v1423_v15 = vmul.f32 %v1421_v52, %v6551_v0 }
  0xff   :  { %v1400_v19 = vrot.slane %v1396_v57, 1  ;;  %v1401_v25 = vrot.slane %v1397_v9, 1  ;;  %v1434_v60 = vstv %s6854_s9  ;;  %v1413_v44 = vrot.slane %v1409_v12, 1  ;;  %s7178_s9 = sld [smem:[#allocation7 + $0x609]] }
 0x100   :  { %v1414_v51 = vrot.slane %v1410_v54, 1  ;;  %v1426_v36 = vrot.slane %v1422_v11, 1  ;;  %v1435_v28 = vmul.f32 %v1434_v60, %v6549_v63  ;;  %v1427_v23 = vrot.slane %v1423_v15, 1 }
 0x101   :  { %v1402_v58 = vsel %vm212_vm0, %v1400_v19, %v1401_v25  ;;  %v6907_v10 = vadd.f32 %v1401_v25, %v6717_v39  ;;  %v1436_v42 = vmul.f32 %v1434_v60, %v6551_v0  ;;  %v1460_v21 = vstv %s6878_s1  ;;  %s7194_s1 = sld [smem:[#allocation7 + $0x709]] }
 0x102   :  { %v6911_v53 = vadd.f32 %v1402_v58, %v6713_v24  ;;  %v1415_v50 = vsel %vm212_vm0, %v1413_v44, %v1414_v51  ;;  %v6915_v26 = vadd.f32 %v1414_v51, %v6733_v3  ;;  %v1439_v45 = vrot.slane %v1435_v28, 1 }
 0x103   :  { %v6920_v35 = vadd.f32 %v1415_v50, %v6725_v38  ;;  %v1428_v39 = vsel %vm212_vm0, %v1426_v36, %v1427_v23  ;;  %v6924_v40 = vadd.f32 %v1427_v23, %v6739_v18  ;;  %v1440_v37 = vrot.slane %v1436_v42, 1 }
 0x104   :  { %v6929_v24 = vadd.f32 %v1428_v39, %v6736_v20  ;;  %v1447_v3 = vstv %s6869_s10  ;;  %v1473_v27 = vstv %s6886_s2  ;;  %v1461_v20 = vmul.f32 %v1460_v21, %v6549_v63  ;;  %s7186_s10 = sld [smem:[#allocation7 + $0x689]] }
 0x105   :  { %v1441_v38 = vsel %vm212_vm0, %v1439_v45, %v1440_v37  ;;  %v6938_v8 = vadd.f32 %v1440_v37, %v6748_v43  ;;  %v1448_v18 = vmul.f32 %v1447_v3, %v6549_v63  ;;  %v1449_v16 = vmul.f32 %v1447_v3, %v6551_v0  ;;  %s7206_s2 = sld [smem:[#allocation7 + $0x789]] }
 0x106   :  { %v6943_v52 = vadd.f32 %v1441_v38, %v6745_v6  ;;  %v1462_v13 = vmul.f32 %v1460_v21, %v6551_v0  ;;  %v1474_v57 = vmul.f32 %v1473_v27, %v6549_v63  ;;  %v1475_v54 = vmul.f32 %v1473_v27, %v6551_v0 }
 0x107   :  { %v1452_v9 = vrot.slane %v1448_v18, 2  ;;  %v1453_v12 = vrot.slane %v1449_v16, 2  ;;  %v1486_v11 = vstv %s6902_s11  ;;  %v1465_v43 = vrot.slane %v1461_v20, 2  ;;  %s7230_s11 = sld [smem:[#allocation7 + $0xa]] }
 0x108   :  { %v1466_v19 = vrot.slane %v1462_v13, 2  ;;  %v1478_v25 = vrot.slane %v1474_v57, 2  ;;  %v1487_v15 = vmul.f32 %v1486_v11, %v6549_v63  ;;  %v1479_v44 = vrot.slane %v1475_v54, 2 }
 0x109   :  { %v1454_v6 = vsel %vm421_vm1, %v1452_v9, %v1453_v12  ;;  %v6955_v60 = vadd.f32 %v1453_v12, %v6764_v61  ;;  %v1488_v51 = vmul.f32 %v1486_v11, %v6551_v0  ;;  %v1512_v39 = vstv %s6926_s3  ;;  %s7256_s3 = sld [smem:[#allocation7 + $0x10a]] }
 0x10a   :  { %v6959_v36 = vadd.f32 %v1454_v6, %v6767_v29  ;;  %v1467_v28 = vsel %vm421_vm1, %v1465_v43, %v1466_v19  ;;  %v6963_v58 = vadd.f32 %v1466_v19, %v6771_v62  ;;  %v1491_v23 = vrot.slane %v1487_v15, 2 }
 0x10b   :  { %v6968_v42 = vadd.f32 %v1467_v28, %v6776_v59  ;;  %v1480_v61 = vsel %vm421_vm1, %v1478_v25, %v1479_v44  ;;  %v6972_v50 = vadd.f32 %v1479_v44, %v6780_v32  ;;  %v1492_v45 = vrot.slane %v1488_v51, 2 }
 0x10c   :  { %v6977_v29 = vadd.f32 %v1480_v61, %v6785_v14  ;;  %v1499_v62 = vstv %s6917_s12  ;;  %v1525_v37 = vstv %s6934_s13  ;;  %v1513_v14 = vmul.f32 %v1512_v39, %v6549_v63  ;;  %s7242_s12 = sld [smem:[#allocation7 + $0x8a]] }
 0x10d   :  { %v1493_v59 = vsel %vm421_vm1, %v1491_v23, %v1492_v45  ;;  %v6986_v3 = vadd.f32 %v1492_v45, %v6794_v46  ;;  %v1500_v32 = vmul.f32 %v1499_v62, %v6549_v63  ;;  %v1501_v21 = vmul.f32 %v1499_v62, %v6551_v0  ;;  %s7264_s13 = sld [smem:[#allocation7 + $0x18a]] }
 0x10e   :  { %v6991_v27 = vadd.f32 %v1493_v59, %v6799_v22  ;;  %v1514_v38 = vmul.f32 %v1512_v39, %v6551_v0  ;;  %v1526_v18 = vmul.f32 %v1525_v37, %v6549_v63  ;;  %v1527_v13 = vmul.f32 %v1525_v37, %v6551_v0 }
 0x10f   :  { %v1504_v16 = vrot.slane %v1500_v32, 2  ;;  %v1505_v20 = vrot.slane %v1501_v21, 2  ;;  %v1538_v57 = vstv %s6950_s14  ;;  %v1517_v46 = vrot.slane %v1513_v14, 2  ;;  %s7286_s14 = sld [smem:[#allocation7 + $0x20a]] }
 0x110   :  { %v1518_v9 = vrot.slane %v1514_v38, 2  ;;  %v1530_v12 = vrot.slane %v1526_v18, 2  ;;  %v1539_v54 = vmul.f32 %v1538_v57, %v6549_v63  ;;  %v1531_v43 = vrot.slane %v1527_v13, 2 }
 0x111   :  { %v1506_v22 = vsel %vm421_vm1, %v1504_v16, %v1505_v20  ;;  %v7003_v11 = vadd.f32 %v1505_v20, %v6811_v47  ;;  %v1540_v19 = vmul.f32 %v1538_v57, %v6551_v0  ;;  %v1564_v61 = vstv %s6974_s16  ;;  %s7306_s16 = sld [smem:[#allocation7 + $0x30a]] }
 0x112   :  { %v7007_v25 = vadd.f32 %v1506_v22, %v6815_v4  ;;  %v1519_v15 = vsel %vm421_vm1, %v1517_v46, %v1518_v9  ;;  %v7011_v6 = vadd.f32 %v1518_v9, %v6819_v1  ;;  %v1543_v44 = vrot.slane %v1539_v54, 2 }
 0x113   :  { %v7016_v51 = vadd.f32 %v1519_v15, %v6824_v34  ;;  %v1532_v47 = vsel %vm421_vm1, %v1530_v12, %v1531_v43  ;;  %v7020_v28 = vadd.f32 %v1531_v43, %v6828_v49  ;;  %v1544_v23 = vrot.slane %v1540_v19, 2 }
 0x114   :  { %v7025_v4 = vadd.f32 %v1532_v47, %v6833_v33  ;;  %v1551_v1 = vstv %s6965_s15  ;;  %v1577_v45 = vstv %s6982_s17  ;;  %v1565_v33 = vmul.f32 %v1564_v61, %v6549_v63  ;;  %s7294_s15 = sld [smem:[#allocation7 + $0x28a]] }
 0x115   :  { %v1545_v34 = vsel %vm421_vm1, %v1543_v44, %v1544_v23  ;;  %v7034_v62 = vadd.f32 %v1544_v23, %v6842_v7  ;;  %v1552_v49 = vmul.f32 %v1551_v1, %v6549_v63  ;;  %v1553_v39 = vmul.f32 %v1551_v1, %v6551_v0  ;;  %s7322_s17 = sld [smem:[#allocation7 + $0x38a]] }
 0x116   :  { %v7039_v37 = vadd.f32 %v1545_v34, %v6847_v2  ;;  %v1566_v59 = vmul.f32 %v1564_v61, %v6551_v0  ;;  %v1578_v32 = vmul.f32 %v1577_v45, %v6549_v63  ;;  %v1579_v38 = vmul.f32 %v1577_v45, %v6551_v0 }
 0x117   :  { %v1556_v21 = vrot.slane %v1552_v49, 2  ;;  %v1557_v14 = vrot.slane %v1553_v39, 2  ;;  %v1590_v18 = vstv %s6998_s18  ;;  %v1569_v7 = vrot.slane %v1565_v33, 2  ;;  %s7337_s18 = sld [smem:[#allocation7 + $0x40a]] }
 0x118   :  { %v1570_v16 = vrot.slane %v1566_v59, 2  ;;  %v1582_v20 = vrot.slane %v1578_v32, 2  ;;  %v1591_v13 = vmul.f32 %v1590_v18, %v6549_v63  ;;  %v1583_v46 = vrot.slane %v1579_v38, 2 }
 0x119   :  { %v1558_v2 = vsel %vm421_vm1, %v1556_v21, %v1557_v14  ;;  %v7051_v57 = vadd.f32 %v1557_v14, %v6859_v41  ;;  %v1592_v9 = vmul.f32 %v1590_v18, %v6551_v0  ;;  %v1616_v47 = vstv %s7022_s20  ;;  %s7354_s20 = sld [smem:[#allocation7 + $0x50a]] }
 0x11a   :  { %v7055_v12 = vadd.f32 %v1558_v2, %v6863_v48  ;;  %v1571_v54 = vsel %vm421_vm1, %v1569_v7, %v1570_v16  ;;  %v7059_v22 = vadd.f32 %v1570_v16, %v6867_v30  ;;  %v1595_v43 = vrot.slane %v1591_v13, 2 }
 0x11b   :  { %v7064_v19 = vadd.f32 %v1571_v54, %v6872_v56  ;;  %v1584_v41 = vsel %vm421_vm1, %v1582_v20, %v1583_v46  ;;  %v7068_v15 = vadd.f32 %v1583_v46, %v6876_v55  ;;  %v1596_v44 = vrot.slane %v1592_v9, 2  ;;  %v7113_v46 = vld [vmem:[#allocation3 + $0x30] sm:$0xff] }
 0x11c   :  { %v7073_v48 = vadd.f32 %v1584_v41, %v6881_v31  ;;  %v1603_v30 = vstv %s7013_s19  ;;  %v1629_v23 = vstv %s7030_s21  ;;  %v1617_v31 = vmul.f32 %v1616_v47, %v6549_v63  ;;  %s7346_s19 = sld [smem:[#allocation7 + $0x48a]] }
 0x11d   :  { %v1597_v56 = vsel %vm421_vm1, %v1595_v43, %v1596_v44  ;;  %v7082_v1 = vadd.f32 %v1596_v44, %v6890_v17  ;;  %v1604_v55 = vmul.f32 %v1603_v30, %v6549_v63  ;;  %v1605_v61 = vmul.f32 %v1603_v30, %v6551_v0  ;;  %s7370_s21 = sld [smem:[#allocation7 + $0x58a]] }
 0x11e   :  { %v7087_v45 = vadd.f32 %v1597_v56, %v6895_v5  ;;  %v1618_v34 = vmul.f32 %v1616_v47, %v6551_v0  ;;  %v1630_v49 = vmul.f32 %v1629_v23, %v6549_v63  ;;  %v1631_v59 = vmul.f32 %v1629_v23, %v6551_v0 }
 0x11f   :  { %v1608_v39 = vrot.slane %v1604_v55, 2  ;;  %v1609_v33 = vrot.slane %v1605_v61, 2  ;;  %v1642_v32 = vstv %s7046_s22  ;;  %v1621_v17 = vrot.slane %v1617_v31, 2  ;;  %s7385_s22 = sld [smem:[#allocation7 + $0x60a]] }
 0x120   :  { %v1622_v21 = vrot.slane %v1618_v34, 2  ;;  %v1634_v14 = vrot.slane %v1630_v49, 2  ;;  %v1643_v38 = vmul.f32 %v1642_v32, %v6549_v63  ;;  %v1635_v7 = vrot.slane %v1631_v59, 2 }
 0x121   :  { %v1610_v5 = vsel %vm421_vm1, %v1608_v39, %v1609_v33  ;;  %v7101_v18 = vadd.f32 %v1609_v33, %v6907_v10  ;;  %v1644_v16 = vmul.f32 %v1642_v32, %v6551_v0  ;;  %v7115_v10 = vld [vmem:[#allocation3 + $0x38] sm:$0xff]  ;;  %v1658_v43 = vstv %s7061_s23  ;;  %s7394_s23 = sld [smem:[#allocation7 + $0x68a]] }
 0x122   :  { %v7107_v20 = vadd.f32 %v1610_v5, %v6911_v53  ;;  %v1623_v63 = vsel %vm421_vm1, %v1621_v17, %v1622_v21  ;;  %v7111_v13 = vadd.f32 %v1622_v21, %v6915_v26  ;;  %v1647_v2 = vrot.slane %v1643_v38, 2 }
 0x123   :  { %v7120_v0 = vadd.f32 %v1623_v63, %v6920_v35  ;;  %v1636_v9 = vsel %vm421_vm1, %v1634_v14, %v1635_v7  ;;  %v7124_v53 = vadd.f32 %v1635_v7, %v6924_v40  ;;  %v1648_v54 = vrot.slane %v1644_v16, 2 }
 0x124   :  { %v7129_v26 = vadd.f32 %v1636_v9, %v6929_v24  ;;  %v1664_v41 = vstv %s7070_s24  ;;  %v1670_v44 = vstv %s7078_s25  ;;  %v1659_v40 = vmul.f32 %v1658_v43, %v7113_v46  ;;  %s7402_s24 = sld [smem:[#allocation7 + $0x70a]] }
 0x125   :  { %v1649_v35 = vsel %vm421_vm1, %v1647_v2, %v1648_v54  ;;  %v7138_v30 = vadd.f32 %v1648_v54, %v6938_v8  ;;  %v1660_v47 = vmul.f32 %v1658_v43, %v7115_v10  ;;  %v1665_v23 = vmul.f32 %v1664_v41, %v7113_v46  ;;  %s7418_s25 = sld [smem:[#allocation7 + $0x78a]] }
 0x126   :  { %v7145_v24 = vadd.f32 %v1649_v35, %v6943_v52  ;;  %v1666_v56 = vmul.f32 %v1664_v41, %v7115_v10  ;;  %v1671_v55 = vmul.f32 %v1670_v44, %v7113_v46  ;;  %v7153_v8 = vadd.f32 %v1659_v40, %v6959_v36 }
 0x127   :  { %v7156_v61 = vadd.f32 %v1660_v47, %v6955_v60  ;;  %v1672_v31 = vmul.f32 %v1670_v44, %v7115_v10  ;;  %v1676_v52 = vstv %s7094_s26  ;;  %v7161_v34 = vadd.f32 %v1665_v23, %v6968_v42  ;;  %s7433_s26 = sld [smem:[#allocation7 + $0xb]] }
 0x128   :  { %v7164_v49 = vadd.f32 %v1666_v56, %v6963_v58  ;;  %v7167_v39 = vadd.f32 %v1671_v55, %v6977_v29  ;;  %v1677_v36 = vmul.f32 %v1676_v52, %v7113_v46  ;;  %v1678_v33 = vmul.f32 %v1676_v52, %v7115_v10 }
 0x129   :  { %v7173_v60 = vadd.f32 %v1672_v31, %v6972_v50  ;;  %v1682_v59 = vstv %s7097_s27  ;;  %v1688_v42 = vstv %s7104_s28  ;;  %v1694_v14 = vstv %s7117_s29  ;;  %s7442_s27 = sld [smem:[#allocation7 + $0x8b]] }
 0x12a   :  { %v7181_v58 = vadd.f32 %v1677_v36, %v6991_v27  ;;  %v1683_v29 = vmul.f32 %v1682_v59, %v7113_v46  ;;  %v1684_v32 = vmul.f32 %v1682_v59, %v7115_v10  ;;  %v1689_v17 = vmul.f32 %v1688_v42, %v7113_v46  ;;  %s7450_s28 = sld [smem:[#allocation7 + $0x10b]] }
 0x12b   :  { %v7189_v50 = vadd.f32 %v1678_v33, %v6986_v3  ;;  %v1690_v21 = vmul.f32 %v1688_v42, %v7115_v10  ;;  %v1700_v38 = vstv %s7126_s30  ;;  %v1695_v3 = vmul.f32 %v1694_v14, %v7113_v46  ;;  %s7466_s29 = sld [smem:[#allocation7 + $0x18b]] }
 0x12c   :  { %v7197_v27 = vadd.f32 %v1683_v29, %v7007_v25  ;;  %v7200_v5 = vadd.f32 %v1684_v32, %v7003_v11  ;;  %v7203_v7 = vadd.f32 %v1689_v17, %v7016_v51  ;;  %v1696_v63 = vmul.f32 %v1694_v14, %v7115_v10  ;;  %s7481_s30 = sld [smem:[#allocation7 + $0x20b]] }
 0x12d   :  { %v7209_v16 = vadd.f32 %v1690_v21, %v7011_v6  ;;  %v1701_v2 = vmul.f32 %v1700_v38, %v7113_v46  ;;  %v1702_v25 = vmul.f32 %v1700_v38, %v7115_v10  ;;  %v7215_v11 = vadd.f32 %v1695_v3, %v7025_v4 }
 0x12e   :  { %v1706_v51 = vstv %s7134_s6  ;;  %v1712_v9 = vstv %s7142_s0  ;;  %v1718_v54 = vstv %s7150_s7  ;;  %v7221_v43 = vadd.f32 %v1696_v63, %v7020_v28  ;;  %s7490_s6 = sld [smem:[#allocation7 + $0x28b]] }
 0x12f   :  { %v7224_v6 = vadd.f32 %v1701_v2, %v7039_v37  ;;  %v7227_v41 = vadd.f32 %v1702_v25, %v7034_v62  ;;  %v1707_v44 = vmul.f32 %v1706_v51, %v7113_v46  ;;  %v1708_v4 = vmul.f32 %v1706_v51, %v7115_v10  ;;  %s7498_s0 = sld [smem:[#allocation7 + $0x30b]] }
 0x130   :  { %v1713_v35 = vmul.f32 %v1712_v9, %v7113_v46  ;;  %v1714_v40 = vmul.f32 %v1712_v9, %v7115_v10  ;;  %v1719_v47 = vmul.f32 %v1718_v54, %v7113_v46  ;;  %v1720_v37 = vmul.f32 %v1718_v54, %v7115_v10  ;;  %s7514_s7 = sld [smem:[#allocation7 + $0x38b]] }
 0x131   :  { %v7237_v28 = vadd.f32 %v1707_v44, %v7055_v12  ;;  %v1724_v62 = vstv %s7170_s8  ;;  %v1730_v23 = vstv %s7178_s9  ;;  %v7245_v56 = vadd.f32 %v1708_v4, %v7051_v57  ;;  %s7529_s8 = sld [smem:[#allocation7 + $0x40b]] }
 0x132   :  { %v7248_v55 = vadd.f32 %v1713_v35, %v7064_v19  ;;  %v7251_v31 = vadd.f32 %v1714_v40, %v7059_v22  ;;  %v7254_v12 = vadd.f32 %v1719_v47, %v7073_v48  ;;  %v7259_v52 = vadd.f32 %v1720_v37, %v7068_v15  ;;  %s7538_s9 = sld [smem:[#allocation7 + $0x48b]] }
 0x133   :  { %v1725_v36 = vmul.f32 %v1724_v62, %v7113_v46  ;;  %v1726_v33 = vmul.f32 %v1724_v62, %v7115_v10  ;;  %v1731_v57 = vmul.f32 %v1730_v23, %v7113_v46  ;;  %v1732_v19 = vmul.f32 %v1730_v23, %v7115_v10 }
 0x134   :  { %v1736_v22 = vstv %s7186_s10  ;;  %v1742_v59 = vstv %s7194_s1  ;;  %v1748_v48 = vstv %s7206_s2  ;;  %v1754_v3 = vstv %s7230_s11  ;;  %s7546_s10 = sld [smem:[#allocation7 + $0x50b]] }
 0x135   :  { %v7271_v42 = vadd.f32 %v1725_v36, %v7087_v45  ;;  %v7274_v15 = vadd.f32 %v1726_v33, %v7082_v1  ;;  %v7277_v29 = vadd.f32 %v1731_v57, %v7107_v20  ;;  %v1737_v32 = vmul.f32 %v1736_v22, %v7113_v46  ;;  %s7562_s1 = sld [smem:[#allocation7 + $0x58b]] }
 0x136   :  { %v7281_v17 = vadd.f32 %v1732_v19, %v7101_v18  ;;  %v1738_v21 = vmul.f32 %v1736_v22, %v7115_v10  ;;  %v1743_v14 = vmul.f32 %v1742_v59, %v7113_v46  ;;  %v1744_v38 = vmul.f32 %v1742_v59, %v7115_v10  ;;  %s7577_s2 = sld [smem:[#allocation7 + $0x60b]] }
 0x137   :  { %v7289_v1 = vadd.f32 %v1737_v32, %v7120_v0  ;;  %v1749_v45 = vmul.f32 %v1748_v48, %v7113_v46  ;;  %v1750_v20 = vmul.f32 %v1748_v48, %v7115_v10  ;;  %v1755_v0 = vmul.f32 %v1754_v3, %v7113_v46  ;;  %s7586_s11 = sld [smem:[#allocation7 + $0x68b]] }
 0x138   :  { %v7297_v18 = vadd.f32 %v1738_v21, %v7111_v13  ;;  %v7300_v63 = vadd.f32 %v1743_v14, %v7129_v26  ;;  %v7303_v2 = vadd.f32 %v1744_v38, %v7124_v53  ;;  %v1756_v13 = vmul.f32 %v1754_v3, %v7115_v10 }
 0x139   :  { %v7309_v25 = vadd.f32 %v1749_v45, %v7145_v24  ;;  %v7312_v51 = vadd.f32 %v1750_v20, %v7138_v30  ;;  %v1767_v9 = vstv %s7242_s12  ;;  %v1759_v54 = vrot.slane %v1755_v0, 1  ;;  %s7594_s12 = sld [smem:[#allocation7 + $0x70b]] }
 0x13a   :  { %v1768_v26 = vmul.f32 %v1767_v9, %v7113_v46  ;;  %v1769_v44 = vmul.f32 %v1767_v9, %v7115_v10  ;;  %v1780_v53 = vstv %s7256_s3  ;;  %v1760_v4 = vrot.slane %v1756_v13, 1  ;;  %s7610_s3 = sld [smem:[#allocation7 + $0x78b]] }
 0x13b   :  { %v1781_v35 = vmul.f32 %v1780_v53, %v7113_v46  ;;  %v1782_v40 = vmul.f32 %v1780_v53, %v7115_v10  ;;  %v1793_v47 = vstv %s7264_s13  ;;  %v1819_v38 = vstv %s7294_s15  ;;  %s7625_s13 = sld [smem:[#allocation7 + $0xc]] }
 0x13c   :  { %v1772_v24 = vrot.slane %v1768_v26, 1  ;;  %v1773_v30 = vrot.slane %v1769_v44, 1  ;;  %v1794_v37 = vmul.f32 %v1793_v47, %v7113_v46  ;;  %v1795_v62 = vmul.f32 %v1793_v47, %v7115_v10  ;;  %s7642_s15 = sld [smem:[#allocation7 + $0x10c]] }
 0x13d   :  { %v1761_v23 = vsel %vm212_vm0, %v1759_v54, %v1760_v4  ;;  %v7328_v36 = vadd.f32 %v1760_v4, %v7156_v61  ;;  %v1785_v33 = vrot.slane %v1781_v35, 1  ;;  %v1786_v57 = vrot.slane %v1782_v40, 1 }
 0x13e   :  { %v7331_v19 = vadd.f32 %v1761_v23, %v7153_v8  ;;  %v1774_v22 = vsel %vm212_vm0, %v1772_v24, %v1773_v30  ;;  %v7335_v59 = vadd.f32 %v1773_v30, %v7164_v49  ;;  %v1798_v48 = vrot.slane %v1794_v37, 1 }
 0x13f   :  { %v7340_v32 = vadd.f32 %v1774_v22, %v7161_v34  ;;  %v1787_v61 = vsel %vm212_vm0, %v1785_v33, %v1786_v57  ;;  %v7344_v21 = vadd.f32 %v1786_v57, %v7173_v60  ;;  %v1799_v14 = vrot.slane %v1795_v62, 1 }
 0x140   :  { %v7349_v8 = vadd.f32 %v1787_v61, %v7167_v39  ;;  %v1806_v49 = vstv %s7286_s14  ;;  %v1832_v45 = vstv %s7306_s16  ;;  %v1820_v39 = vmul.f32 %v1819_v38, %v7113_v46  ;;  %s7634_s14 = sld [smem:[#allocation7 + $0x8c]] }
 0x141   :  { %v1800_v34 = vsel %vm212_vm0, %v1798_v48, %v1799_v14  ;;  %v7358_v20 = vadd.f32 %v1799_v14, %v7189_v50  ;;  %v1807_v60 = vmul.f32 %v1806_v49, %v7113_v46  ;;  %v1808_v3 = vmul.f32 %v1806_v49, %v7115_v10  ;;  %s7658_s16 = sld [smem:[#allocation7 + $0x18c]] }
 0x142   :  { %v7363_v0 = vadd.f32 %v1800_v34, %v7181_v58  ;;  %v1821_v13 = vmul.f32 %v1819_v38, %v7115_v10  ;;  %v1833_v9 = vmul.f32 %v1832_v45, %v7113_v46  ;;  %v1834_v44 = vmul.f32 %v1832_v45, %v7115_v10 }
 0x143   :  { %v1811_v54 = vrot.slane %v1807_v60, 1  ;;  %v1812_v26 = vrot.slane %v1808_v3, 1  ;;  %v1845_v53 = vstv %s7322_s17  ;;  %v1824_v50 = vrot.slane %v1820_v39, 1  ;;  %s7661_s17 = sld [smem:[#allocation7 + $0x20c]] }
 0x144   :  { %v1825_v4 = vrot.slane %v1821_v13, 1  ;;  %v1837_v35 = vrot.slane %v1833_v9, 1  ;;  %v1846_v40 = vmul.f32 %v1845_v53, %v7113_v46  ;;  %v1838_v24 = vrot.slane %v1834_v44, 1 }
 0x145   :  { %v1813_v58 = vsel %vm212_vm0, %v1811_v54, %v1812_v26  ;;  %v7375_v47 = vadd.f32 %v1812_v26, %v7200_v5  ;;  %v1847_v30 = vmul.f32 %v1845_v53, %v7115_v10  ;;  %v1871_v61 = vstv %s7346_s19  ;;  %s7681_s19 = sld [smem:[#allocation7 + $0x30c]] }
 0x146   :  { %v7379_v37 = vadd.f32 %v1813_v58, %v7197_v27  ;;  %v1826_v62 = vsel %vm212_vm0, %v1824_v50, %v1825_v4  ;;  %v7383_v23 = vadd.f32 %v1825_v4, %v7209_v16  ;;  %v1850_v33 = vrot.slane %v1846_v40, 1 }
 0x147   :  { %v7388_v57 = vadd.f32 %v1826_v62, %v7203_v7  ;;  %v1839_v5 = vsel %vm212_vm0, %v1837_v35, %v1838_v24  ;;  %v7392_v22 = vadd.f32 %v1838_v24, %v7221_v43  ;;  %v1851_v48 = vrot.slane %v1847_v30, 1 }
 0x148   :  { %v7397_v27 = vadd.f32 %v1839_v5, %v7215_v11  ;;  %v1858_v16 = vstv %s7337_s18  ;;  %v1884_v14 = vstv %s7354_s20  ;;  %v1872_v11 = vmul.f32 %v1871_v61, %v7113_v46  ;;  %s7668_s18 = sld [smem:[#allocation7 + $0x28c]] }
 0x149   :  { %v1852_v7 = vsel %vm212_vm0, %v1850_v33, %v1851_v48  ;;  %v7406_v49 = vadd.f32 %v1851_v48, %v7227_v41  ;;  %v1859_v43 = vmul.f32 %v1858_v16, %v7113_v46  ;;  %v1860_v38 = vmul.f32 %v1858_v16, %v7115_v10  ;;  %s7690_s20 = sld [smem:[#allocation7 + $0x38c]] }
 0x14a   :  { %v7411_v45 = vadd.f32 %v1852_v7, %v7224_v6  ;;  %v1873_v34 = vmul.f32 %v1871_v61, %v7115_v10  ;;  %v1885_v60 = vmul.f32 %v1884_v14, %v7113_v46  ;;  %v1886_v13 = vmul.f32 %v1884_v14, %v7115_v10 }
 0x14b   :  { %v1863_v3 = vrot.slane %v1859_v43, 1  ;;  %v1864_v39 = vrot.slane %v1860_v38, 1  ;;  %v1897_v9 = vstv %s7370_s21  ;;  %v1876_v41 = vrot.slane %v1872_v11, 1  ;;  %s7698_s21 = sld [smem:[#allocation7 + $0x40c]] }
 0x14c   :  { %v1877_v54 = vrot.slane %v1873_v34, 1  ;;  %v1889_v26 = vrot.slane %v1885_v60, 1  ;;  %v1898_v44 = vmul.f32 %v1897_v9, %v7113_v46  ;;  %v1890_v50 = vrot.slane %v1886_v13, 1 }
 0x14d   :  { %v1865_v6 = vsel %vm212_vm0, %v1863_v3, %v1864_v39  ;;  %v7423_v53 = vadd.f32 %v1864_v39, %v7245_v56  ;;  %v1899_v4 = vmul.f32 %v1897_v9, %v7115_v10  ;;  %v1923_v5 = vstv %s7394_s23  ;;  %s7714_s23 = sld [smem:[#allocation7 + $0x50c]] }
 0x14e   :  { %v7427_v35 = vadd.f32 %v1865_v6, %v7237_v28  ;;  %v1878_v40 = vsel %vm212_vm0, %v1876_v41, %v1877_v54  ;;  %v7431_v58 = vadd.f32 %v1877_v54, %v7251_v31  ;;  %v1902_v24 = vrot.slane %v1898_v44, 1 }
 0x14f   :  { %v7436_v30 = vadd.f32 %v1878_v40, %v7248_v55  ;;  %v1891_v56 = vsel %vm212_vm0, %v1889_v26, %v1890_v50  ;;  %v7440_v62 = vadd.f32 %v1890_v50, %v7259_v52  ;;  %v1903_v33 = vrot.slane %v1899_v4, 1 }
 0x150   :  { %v7445_v28 = vadd.f32 %v1891_v56, %v7254_v12  ;;  %v1910_v31 = vstv %s7385_s22  ;;  %v1936_v48 = vstv %s7402_s24  ;;  %v1924_v12 = vmul.f32 %v1923_v5, %v7113_v46  ;;  %s7706_s22 = sld [smem:[#allocation7 + $0x48c]] }
 0x151   :  { %v1904_v55 = vsel %vm212_vm0, %v1902_v24, %v1903_v33  ;;  %v7454_v16 = vadd.f32 %v1903_v33, %v7274_v15  ;;  %v1911_v52 = vmul.f32 %v1910_v31, %v7113_v46  ;;  %v1912_v61 = vmul.f32 %v1910_v31, %v7115_v10  ;;  %s7734_s24 = sld [smem:[#allocation7 + $0x58c]] }
 0x152   :  { %v7459_v14 = vadd.f32 %v1904_v55, %v7271_v42  ;;  %v1925_v7 = vmul.f32 %v1923_v5, %v7115_v10  ;;  %v1937_v43 = vmul.f32 %v1936_v48, %v7113_v46  ;;  %v1938_v34 = vmul.f32 %v1936_v48, %v7115_v10 }
 0x153   :  { %v1915_v38 = vrot.slane %v1911_v52, 1  ;;  %v1916_v11 = vrot.slane %v1912_v61, 1  ;;  %v1949_v60 = vstv %s7418_s25  ;;  %v1928_v15 = vrot.slane %v1924_v12, 1  ;;  %s7742_s25 = sld [smem:[#allocation7 + $0x60c]] }
 0x154   :  { %v1929_v3 = vrot.slane %v1925_v7, 1  ;;  %v1941_v39 = vrot.slane %v1937_v43, 1  ;;  %v1950_v13 = vmul.f32 %v1949_v60, %v7113_v46  ;;  %v1942_v41 = vrot.slane %v1938_v34, 1 }
 0x155   :  { %v1917_v42 = vsel %vm212_vm0, %v1915_v38, %v1916_v11  ;;  %v7471_v9 = vadd.f32 %v1916_v11, %v7281_v17  ;;  %v1951_v54 = vmul.f32 %v1949_v60, %v7115_v10  ;;  %v1975_v56 = vstv %s7442_s27  ;;  %s7758_s27 = sld [smem:[#allocation7 + $0x70c]] }
 0x156   :  { %v7475_v26 = vadd.f32 %v1917_v42, %v7277_v29  ;;  %v1930_v44 = vsel %vm212_vm0, %v1928_v15, %v1929_v3  ;;  %v7479_v6 = vadd.f32 %v1929_v3, %v7297_v18  ;;  %v1954_v50 = vrot.slane %v1950_v13, 1 }
 0x157   :  { %v7484_v4 = vadd.f32 %v1930_v44, %v7289_v1  ;;  %v1943_v17 = vsel %vm212_vm0, %v1941_v39, %v1942_v41  ;;  %v7488_v40 = vadd.f32 %v1942_v41, %v7303_v2  ;;  %v1955_v24 = vrot.slane %v1951_v54, 1 }
 0x158   :  { %v7493_v29 = vadd.f32 %v1943_v17, %v7300_v63  ;;  %v1962_v18 = vstv %s7433_s26  ;;  %v1988_v33 = vstv %s7450_s28  ;;  %v1976_v63 = vmul.f32 %v1975_v56, %v7113_v46  ;;  %s7750_s26 = sld [smem:[#allocation7 + $0x68c]] }
 0x159   :  { %v1956_v1 = vsel %vm212_vm0, %v1954_v50, %v1955_v24  ;;  %v7502_v31 = vadd.f32 %v1955_v24, %v7312_v51  ;;  %v1963_v2 = vmul.f32 %v1962_v18, %v7113_v46  ;;  %v1964_v5 = vmul.f32 %v1962_v18, %v7115_v10  ;;  %s7770_s28 = sld [smem:[#allocation7 + $0x78c]] }
 0x15a   :  { %v7507_v48 = vadd.f32 %v1956_v1, %v7309_v25  ;;  %v1977_v55 = vmul.f32 %v1975_v56, %v7115_v10  ;;  %v1989_v52 = vmul.f32 %v1988_v33, %v7113_v46  ;;  %v1990_v7 = vmul.f32 %v1988_v33, %v7115_v10 }
 0x15b   :  { %v1967_v61 = vrot.slane %v1963_v2, 2  ;;  %v1968_v12 = vrot.slane %v1964_v5, 2  ;;  %v2001_v43 = vstv %s7466_s29  ;;  %v1980_v51 = vrot.slane %v1976_v63, 2  ;;  %s7794_s29 = sld [smem:[#allocation7 + $0xd]] }
 0x15c   :  { %v1981_v38 = vrot.slane %v1977_v55, 2  ;;  %v1993_v11 = vrot.slane %v1989_v52, 2  ;;  %v2002_v34 = vmul.f32 %v2001_v43, %v7113_v46  ;;  %v1994_v15 = vrot.slane %v1990_v7, 2 }
 0x15d   :  { %v1969_v25 = vsel %vm421_vm1, %v1967_v61, %v1968_v12  ;;  %v7519_v60 = vadd.f32 %v1968_v12, %v7328_v36  ;;  %v2003_v3 = vmul.f32 %v2001_v43, %v7115_v10  ;;  %v2027_v17 = vstv %s7490_s6  ;;  %s7820_s6 = sld [smem:[#allocation7 + $0x10d]] }
 0x15e   :  { %v7523_v39 = vadd.f32 %v1969_v25, %v7331_v19  ;;  %v1982_v13 = vsel %vm421_vm1, %v1980_v51, %v1981_v38  ;;  %v7527_v42 = vadd.f32 %v1981_v38, %v7335_v59  ;;  %v2006_v41 = vrot.slane %v2002_v34, 2 }
 0x15f   :  { %v7532_v54 = vadd.f32 %v1982_v13, %v7340_v32  ;;  %v1995_v36 = vsel %vm421_vm1, %v1993_v11, %v1994_v15  ;;  %v7536_v44 = vadd.f32 %v1994_v15, %v7344_v21  ;;  %v2007_v50 = vrot.slane %v2003_v3, 2 }
 0x160   :  { %v7541_v19 = vadd.f32 %v1995_v36, %v7349_v8  ;;  %v2014_v59 = vstv %s7481_s30  ;;  %v2040_v24 = vstv %s7498_s0  ;;  %v2028_v8 = vmul.f32 %v2027_v17, %v7113_v46  ;;  %s7806_s30 = sld [smem:[#allocation7 + $0x8d]] }
 0x161   :  { %v2008_v32 = vsel %vm421_vm1, %v2006_v41, %v2007_v50  ;;  %v7550_v18 = vadd.f32 %v2007_v50, %v7358_v20  ;;  %v2015_v21 = vmul.f32 %v2014_v59, %v7113_v46  ;;  %v2016_v56 = vmul.f32 %v2014_v59, %v7115_v10  ;;  %s7828_s0 = sld [smem:[#allocation7 + $0x18d]] }
 0x162   :  { %v7555_v33 = vadd.f32 %v2008_v32, %v7363_v0  ;;  %v2029_v1 = vmul.f32 %v2027_v17, %v7115_v10  ;;  %v2041_v2 = vmul.f32 %v2040_v24, %v7113_v46  ;;  %v2042_v55 = vmul.f32 %v2040_v24, %v7115_v10 }
 0x163   :  { %v2019_v5 = vrot.slane %v2015_v21, 2  ;;  %v2020_v63 = vrot.slane %v2016_v56, 2  ;;  %v2053_v52 = vstv %s7514_s7  ;;  %v2032_v20 = vrot.slane %v2028_v8, 2  ;;  %s7850_s7 = sld [smem:[#allocation7 + $0x20d]] }
 0x164   :  { %v2033_v61 = vrot.slane %v2029_v1, 2  ;;  %v2045_v12 = vrot.slane %v2041_v2, 2  ;;  %v2054_v7 = vmul.f32 %v2053_v52, %v7113_v46  ;;  %v2046_v51 = vrot.slane %v2042_v55, 2 }
 0x165   :  { %v2021_v0 = vsel %vm421_vm1, %v2019_v5, %v2020_v63  ;;  %v7567_v43 = vadd.f32 %v2020_v63, %v7375_v47  ;;  %v2055_v38 = vmul.f32 %v2053_v52, %v7115_v10  ;;  %v2079_v36 = vstv %s7538_s9  ;;  %s7870_s9 = sld [smem:[#allocation7 + $0x30d]] }
 0x166   :  { %v7571_v11 = vadd.f32 %v2021_v0, %v7379_v37  ;;  %v2034_v34 = vsel %vm421_vm1, %v2032_v20, %v2033_v61  ;;  %v7575_v25 = vadd.f32 %v2033_v61, %v7383_v23  ;;  %v2058_v15 = vrot.slane %v2054_v7, 2 }
 0x167   :  { %v7580_v3 = vadd.f32 %v2034_v34, %v7388_v57  ;;  %v2047_v47 = vsel %vm421_vm1, %v2045_v12, %v2046_v51  ;;  %v7584_v13 = vadd.f32 %v2046_v51, %v7392_v22  ;;  %v2059_v41 = vrot.slane %v2055_v38, 2 }
 0x168   :  { %v7589_v37 = vadd.f32 %v2047_v47, %v7397_v27  ;;  %v2066_v23 = vstv %s7529_s8  ;;  %v2092_v50 = vstv %s7546_s10  ;;  %v2080_v27 = vmul.f32 %v2079_v36, %v7113_v46  ;;  %s7858_s8 = sld [smem:[#allocation7 + $0x28d]] }
 0x169   :  { %v2060_v57 = vsel %vm421_vm1, %v2058_v15, %v2059_v41  ;;  %v7598_v59 = vadd.f32 %v2059_v41, %v7406_v49  ;;  %v2067_v22 = vmul.f32 %v2066_v23, %v7113_v46  ;;  %v2068_v17 = vmul.f32 %v2066_v23, %v7115_v10  ;;  %s7886_s10 = sld [smem:[#allocation7 + $0x38d]] }
 0x16a   :  { %v7603_v24 = vadd.f32 %v2060_v57, %v7411_v45  ;;  %v2081_v32 = vmul.f32 %v2079_v36, %v7115_v10  ;;  %v2093_v21 = vmul.f32 %v2092_v50, %v7113_v46  ;;  %v2094_v1 = vmul.f32 %v2092_v50, %v7115_v10 }
 0x16b   :  { %v2071_v56 = vrot.slane %v2067_v22, 2  ;;  %v2072_v8 = vrot.slane %v2068_v17, 2  ;;  %v2105_v2 = vstv %s7562_s1  ;;  %v2084_v49 = vrot.slane %v2080_v27, 2  ;;  %s7901_s1 = sld [smem:[#allocation7 + $0x40d]] }
 0x16c   :  { %v2085_v5 = vrot.slane %v2081_v32, 2  ;;  %v2097_v63 = vrot.slane %v2093_v21, 2  ;;  %v2106_v55 = vmul.f32 %v2105_v2, %v7113_v46  ;;  %v2098_v20 = vrot.slane %v2094_v1, 2 }
 0x16d   :  { %v2073_v45 = vsel %vm421_vm1, %v2071_v56, %v2072_v8  ;;  %v7615_v52 = vadd.f32 %v2072_v8, %v7423_v53  ;;  %v2107_v61 = vmul.f32 %v2105_v2, %v7115_v10  ;;  %v2131_v47 = vstv %s7586_s11  ;;  %s7918_s11 = sld [smem:[#allocation7 + $0x50d]] }
 0x16e   :  { %v7619_v12 = vadd.f32 %v2073_v45, %v7427_v35  ;;  %v2086_v7 = vsel %vm421_vm1, %v2084_v49, %v2085_v5  ;;  %v7623_v0 = vadd.f32 %v2085_v5, %v7431_v58  ;;  %v2110_v51 = vrot.slane %v2106_v55, 2 }
 0x16f   :  { %v7628_v38 = vadd.f32 %v2086_v7, %v7436_v30  ;;  %v2099_v53 = vsel %vm421_vm1, %v2097_v63, %v2098_v20  ;;  %v7632_v34 = vadd.f32 %v2098_v20, %v7440_v62  ;;  %v2111_v15 = vrot.slane %v2107_v61, 2  ;;  %v7677_v20 = vld [vmem:[#allocation3 + $0x40] sm:$0xff] }
 0x170   :  { %v7637_v35 = vadd.f32 %v2099_v53, %v7445_v28  ;;  %v2118_v58 = vstv %s7577_s2  ;;  %v2144_v41 = vstv %s7594_s12  ;;  %v2132_v28 = vmul.f32 %v2131_v47, %v7113_v46  ;;  %s7910_s2 = sld [smem:[#allocation7 + $0x48d]] }
 0x171   :  { %v2112_v30 = vsel %vm421_vm1, %v2110_v51, %v2111_v15  ;;  %v7646_v23 = vadd.f32 %v2111_v15, %v7454_v16  ;;  %v2119_v62 = vmul.f32 %v2118_v58, %v7113_v46  ;;  %v2120_v36 = vmul.f32 %v2118_v58, %v7115_v10  ;;  %s7934_s12 = sld [smem:[#allocation7 + $0x58d]] }
 0x172   :  { %v7651_v50 = vadd.f32 %v2112_v30, %v7459_v14  ;;  %v2133_v57 = vmul.f32 %v2131_v47, %v7115_v10  ;;  %v2145_v22 = vmul.f32 %v2144_v41, %v7113_v46  ;;  %v2146_v32 = vmul.f32 %v2144_v41, %v7115_v10 }
 0x173   :  { %v2123_v17 = vrot.slane %v2119_v62, 2  ;;  %v2124_v27 = vrot.slane %v2120_v36, 2  ;;  %v2157_v21 = vstv %s7610_s3  ;;  %v2136_v16 = vrot.slane %v2132_v28, 2  ;;  %s7949_s3 = sld [smem:[#allocation7 + $0x60d]] }
 0x174   :  { %v2137_v56 = vrot.slane %v2133_v57, 2  ;;  %v2149_v8 = vrot.slane %v2145_v22, 2  ;;  %v2158_v1 = vmul.f32 %v2157_v21, %v7113_v46  ;;  %v2150_v49 = vrot.slane %v2146_v32, 2 }
 0x175   :  { %v2125_v14 = vsel %vm421_vm1, %v2123_v17, %v2124_v27  ;;  %v7665_v2 = vadd.f32 %v2124_v27, %v7471_v9  ;;  %v2159_v5 = vmul.f32 %v2157_v21, %v7115_v10  ;;  %v7679_v9 = vld [vmem:[#allocation3 + $0x48] sm:$0xff]  ;;  %v2173_v51 = vstv %s7625_s13  ;;  %s7958_s13 = sld [smem:[#allocation7 + $0x68d]] }
 0x176   :  { %v7671_v63 = vadd.f32 %v2125_v14, %v7475_v26  ;;  %v2138_v46 = vsel %vm421_vm1, %v2136_v16, %v2137_v56  ;;  %v7675_v55 = vadd.f32 %v2137_v56, %v7479_v6  ;;  %v2162_v45 = vrot.slane %v2158_v1, 2 }
 0x177   :  { %v7684_v10 = vadd.f32 %v2138_v46, %v7484_v4  ;;  %v2151_v61 = vsel %vm421_vm1, %v2149_v8, %v2150_v49  ;;  %v7688_v26 = vadd.f32 %v2150_v49, %v7488_v40  ;;  %v2163_v7 = vrot.slane %v2159_v5, 2 }
 0x178   :  { %v7693_v6 = vadd.f32 %v2151_v61, %v7493_v29  ;;  %v2179_v53 = vstv %s7634_s14  ;;  %v2185_v15 = vstv %s7642_s15  ;;  %v2174_v40 = vmul.f32 %v2173_v51, %v7677_v20  ;;  %s7966_s14 = sld [smem:[#allocation7 + $0x70d]] }
 0x179   :  { %v2164_v4 = vsel %vm421_vm1, %v2162_v45, %v2163_v7  ;;  %v7702_v58 = vadd.f32 %v2163_v7, %v7502_v31  ;;  %v2175_v47 = vmul.f32 %v2173_v51, %v7679_v9  ;;  %v2180_v41 = vmul.f32 %v2179_v53, %v7677_v20  ;;  %s7982_s15 = sld [smem:[#allocation7 + $0x78d]] }
 0x17a   :  { %v7709_v29 = vadd.f32 %v2164_v4, %v7507_v48  ;;  %v2181_v30 = vmul.f32 %v2179_v53, %v7679_v9  ;;  %v2186_v62 = vmul.f32 %v2185_v15, %v7677_v20  ;;  %v7717_v31 = vadd.f32 %v2174_v40, %v7523_v39 }
 0x17b   :  { %v7720_v36 = vadd.f32 %v2175_v47, %v7519_v60  ;;  %v2187_v28 = vmul.f32 %v2185_v15, %v7679_v9  ;;  %v2191_v48 = vstv %s7658_s16  ;;  %v7725_v57 = vadd.f32 %v2180_v41, %v7532_v54  ;;  %s7997_s16 = sld [smem:[#allocation7 + $0xe]] }
 0x17c   :  { %v7728_v22 = vadd.f32 %v2181_v30, %v7527_v42  ;;  %v7731_v17 = vadd.f32 %v2186_v62, %v7541_v19  ;;  %v2192_v39 = vmul.f32 %v2191_v48, %v7677_v20  ;;  %v2193_v27 = vmul.f32 %v2191_v48, %v7679_v9 }
 0x17d   :  { %v7737_v60 = vadd.f32 %v2187_v28, %v7536_v44  ;;  %v2197_v32 = vstv %s7661_s17  ;;  %v2203_v54 = vstv %s7668_s18  ;;  %v2209_v8 = vstv %s7681_s19  ;;  %s8006_s17 = sld [smem:[#allocation7 + $0x8e]] }
 0x17e   :  { %v7745_v42 = vadd.f32 %v2192_v39, %v7555_v33  ;;  %v2198_v19 = vmul.f32 %v2197_v32, %v7677_v20  ;;  %v2199_v21 = vmul.f32 %v2197_v32, %v7679_v9  ;;  %v2204_v16 = vmul.f32 %v2203_v54, %v7677_v20  ;;  %s8014_s18 = sld [smem:[#allocation7 + $0x10e]] }
 0x17f   :  { %v7753_v44 = vadd.f32 %v2193_v27, %v7550_v18  ;;  %v2205_v56 = vmul.f32 %v2203_v54, %v7679_v9  ;;  %v2215_v1 = vstv %s7690_s20  ;;  %v2210_v18 = vmul.f32 %v2209_v8, %v7677_v20  ;;  %s8030_s19 = sld [smem:[#allocation7 + $0x18e]] }
 0x180   :  { %v7761_v33 = vadd.f32 %v2198_v19, %v7571_v11  ;;  %v7764_v14 = vadd.f32 %v2199_v21, %v7567_v43  ;;  %v7767_v49 = vadd.f32 %v2204_v16, %v7580_v3  ;;  %v2211_v46 = vmul.f32 %v2209_v8, %v7679_v9  ;;  %s8045_s20 = sld [smem:[#allocation7 + $0x20e]] }
 0x181   :  { %v7773_v5 = vadd.f32 %v2205_v56, %v7575_v25  ;;  %v2216_v45 = vmul.f32 %v2215_v1, %v7677_v20  ;;  %v2217_v11 = vmul.f32 %v2215_v1, %v7679_v9  ;;  %v7779_v43 = vadd.f32 %v2210_v18, %v7589_v37 }
 0x182   :  { %v2221_v3 = vstv %s7698_s21  ;;  %v2227_v61 = vstv %s7706_s22  ;;  %v2233_v7 = vstv %s7714_s23  ;;  %v7785_v51 = vadd.f32 %v2211_v46, %v7584_v13  ;;  %s8054_s21 = sld [smem:[#allocation7 + $0x28e]] }
 0x183   :  { %v7788_v25 = vadd.f32 %v2216_v45, %v7603_v24  ;;  %v7791_v53 = vadd.f32 %v2217_v11, %v7598_v59  ;;  %v2222_v15 = vmul.f32 %v2221_v3, %v7677_v20  ;;  %v2223_v37 = vmul.f32 %v2221_v3, %v7679_v9  ;;  %s8062_s22 = sld [smem:[#allocation7 + $0x30e]] }
 0x184   :  { %v2228_v4 = vmul.f32 %v2227_v61, %v7677_v20  ;;  %v2229_v40 = vmul.f32 %v2227_v61, %v7679_v9  ;;  %v2234_v47 = vmul.f32 %v2233_v7, %v7677_v20  ;;  %v2235_v24 = vmul.f32 %v2233_v7, %v7679_v9  ;;  %s8078_s23 = sld [smem:[#allocation7 + $0x38e]] }
 0x185   :  { %v7801_v13 = vadd.f32 %v2222_v15, %v7619_v12  ;;  %v2239_v59 = vstv %s7734_s24  ;;  %v2245_v41 = vstv %s7742_s25  ;;  %v7809_v30 = vadd.f32 %v2223_v37, %v7615_v52  ;;  %s8093_s24 = sld [smem:[#allocation7 + $0x40e]] }
 0x186   :  { %v7812_v62 = vadd.f32 %v2228_v4, %v7628_v38  ;;  %v7815_v28 = vadd.f32 %v2229_v40, %v7623_v0  ;;  %v7818_v12 = vadd.f32 %v2234_v47, %v7637_v35  ;;  %v7823_v48 = vadd.f32 %v2235_v24, %v7632_v34  ;;  %s8102_s25 = sld [smem:[#allocation7 + $0x48e]] }
 0x187   :  { %v2240_v39 = vmul.f32 %v2239_v59, %v7677_v20  ;;  %v2241_v27 = vmul.f32 %v2239_v59, %v7679_v9  ;;  %v2246_v52 = vmul.f32 %v2245_v41, %v7677_v20  ;;  %v2247_v38 = vmul.f32 %v2245_v41, %v7679_v9 }
 0x188   :  { %v2251_v0 = vstv %s7750_s26  ;;  %v2257_v32 = vstv %s7758_s27  ;;  %v2263_v35 = vstv %s7770_s28  ;;  %v2269_v18 = vstv %s7794_s29  ;;  %s8110_s26 = sld [smem:[#allocation7 + $0x50e]] }
 0x189   :  { %v7835_v54 = vadd.f32 %v2240_v39, %v7651_v50  ;;  %v7838_v34 = vadd.f32 %v2241_v27, %v7646_v23  ;;  %v7841_v19 = vadd.f32 %v2246_v52, %v7671_v63  ;;  %v2252_v21 = vmul.f32 %v2251_v0, %v7677_v20  ;;  %s8126_s27 = sld [smem:[#allocation7 + $0x58e]] }
 0x18a   :  { %v7845_v16 = vadd.f32 %v2247_v38, %v7665_v2  ;;  %v2253_v56 = vmul.f32 %v2251_v0, %v7679_v9  ;;  %v2258_v8 = vmul.f32 %v2257_v32, %v7677_v20  ;;  %v2259_v1 = vmul.f32 %v2257_v32, %v7679_v9  ;;  %s8141_s28 = sld [smem:[#allocation7 + $0x60e]] }
 0x18b   :  { %v7853_v23 = vadd.f32 %v2252_v21, %v7684_v10  ;;  %v2264_v50 = vmul.f32 %v2263_v35, %v7677_v20  ;;  %v2265_v63 = vmul.f32 %v2263_v35, %v7679_v9  ;;  %v2270_v10 = vmul.f32 %v2269_v18, %v7677_v20  ;;  %s8150_s29 = sld [smem:[#allocation7 + $0x68e]] }
 0x18c   :  { %v7861_v2 = vadd.f32 %v2253_v56, %v7675_v55  ;;  %v7864_v46 = vadd.f32 %v2258_v8, %v7693_v6  ;;  %v7867_v45 = vadd.f32 %v2259_v1, %v7688_v26  ;;  %v2271_v55 = vmul.f32 %v2269_v18, %v7679_v9 }
 0x18d   :  { %v7873_v11 = vadd.f32 %v2264_v50, %v7709_v29  ;;  %v7876_v3 = vadd.f32 %v2265_v63, %v7702_v58  ;;  %v2282_v61 = vstv %s7806_s30  ;;  %v2274_v7 = vrot.slane %v2270_v10, 1  ;;  %s8158_s30 = sld [smem:[#allocation7 + $0x70e]] }
 0x18e   :  { %v2283_v6 = vmul.f32 %v2282_v61, %v7677_v20  ;;  %v2284_v15 = vmul.f32 %v2282_v61, %v7679_v9  ;;  %v2295_v26 = vstv %s7820_s6  ;;  %v2275_v37 = vrot.slane %v2271_v55, 1  ;;  %s8174_s6 = sld [smem:[#allocation7 + $0x78e]] }
 0x18f   :  { %v2296_v4 = vmul.f32 %v2295_v26, %v7677_v20  ;;  %v2297_v40 = vmul.f32 %v2295_v26, %v7679_v9  ;;  %v2308_v47 = vstv %s7828_s0  ;;  %v2334_v1 = vstv %s7858_s8  ;;  %s8189_s0 = sld [smem:[#allocation7 + $0xf]] }
 0x190   :  { %v2287_v29 = vrot.slane %v2283_v6, 1  ;;  %v2288_v58 = vrot.slane %v2284_v15, 1  ;;  %v2309_v24 = vmul.f32 %v2308_v47, %v7677_v20  ;;  %v2310_v59 = vmul.f32 %v2308_v47, %v7679_v9  ;;  %s8206_s8 = sld [smem:[#allocation7 + $0x10f]] }
 0x191   :  { %v2276_v41 = vsel %vm212_vm0, %v2274_v7, %v2275_v37  ;;  %v7892_v39 = vadd.f32 %v2275_v37, %v7720_v36  ;;  %v2300_v27 = vrot.slane %v2296_v4, 1  ;;  %v2301_v52 = vrot.slane %v2297_v40, 1 }
 0x192   :  { %v7895_v38 = vadd.f32 %v2276_v41, %v7717_v31  ;;  %v2289_v0 = vsel %vm212_vm0, %v2287_v29, %v2288_v58  ;;  %v7899_v32 = vadd.f32 %v2288_v58, %v7728_v22  ;;  %v2313_v35 = vrot.slane %v2309_v24, 1 }
 0x193   :  { %v7904_v21 = vadd.f32 %v2289_v0, %v7725_v57  ;;  %v2302_v36 = vsel %vm212_vm0, %v2300_v27, %v2301_v52  ;;  %v7908_v56 = vadd.f32 %v2301_v52, %v7737_v60  ;;  %v2314_v8 = vrot.slane %v2310_v59, 1 }
 0x194   :  { %v7913_v31 = vadd.f32 %v2302_v36, %v7731_v17  ;;  %v2321_v22 = vstv %s7850_s7  ;;  %v2347_v50 = vstv %s7870_s9  ;;  %v2335_v17 = vmul.f32 %v2334_v1, %v7677_v20  ;;  %s8198_s7 = sld [smem:[#allocation7 + $0x8f]] }
 0x195   :  { %v2315_v57 = vsel %vm212_vm0, %v2313_v35, %v2314_v8  ;;  %v7922_v63 = vadd.f32 %v2314_v8, %v7753_v44  ;;  %v2322_v60 = vmul.f32 %v2321_v22, %v7677_v20  ;;  %v2323_v18 = vmul.f32 %v2321_v22, %v7679_v9  ;;  %s8222_s9 = sld [smem:[#allocation7 + $0x18f]] }
 0x196   :  { %v7927_v10 = vadd.f32 %v2315_v57, %v7745_v42  ;;  %v2336_v55 = vmul.f32 %v2334_v1, %v7679_v9  ;;  %v2348_v61 = vmul.f32 %v2347_v50, %v7677_v20  ;;  %v2349_v15 = vmul.f32 %v2347_v50, %v7679_v9 }
 0x197   :  { %v2326_v7 = vrot.slane %v2322_v60, 1  ;;  %v2327_v6 = vrot.slane %v2323_v18, 1  ;;  %v2360_v26 = vstv %s7886_s10  ;;  %v2339_v44 = vrot.slane %v2335_v17, 1  ;;  %s8225_s10 = sld [smem:[#allocation7 + $0x20f]] }
 0x198   :  { %v2340_v37 = vrot.slane %v2336_v55, 1  ;;  %v2352_v4 = vrot.slane %v2348_v61, 1  ;;  %v2361_v40 = vmul.f32 %v2360_v26, %v7677_v20  ;;  %v2353_v29 = vrot.slane %v2349_v15, 1 }
 0x199   :  { %v2328_v42 = vsel %vm212_vm0, %v2326_v7, %v2327_v6  ;;  %v7939_v47 = vadd.f32 %v2327_v6, %v7764_v14  ;;  %v2362_v58 = vmul.f32 %v2360_v26, %v7679_v9  ;;  %v2386_v36 = vstv %s7910_s2  ;;  %s8245_s2 = sld [smem:[#allocation7 + $0x30f]] }
 0x19a   :  { %v7943_v24 = vadd.f32 %v2328_v42, %v7761_v33  ;;  %v2341_v59 = vsel %vm212_vm0, %v2339_v44, %v2340_v37  ;;  %v7947_v41 = vadd.f32 %v2340_v37, %v7773_v5  ;;  %v2365_v27 = vrot.slane %v2361_v40, 1 }
 0x19b   :  { %v7952_v52 = vadd.f32 %v2341_v59, %v7767_v49  ;;  %v2354_v14 = vsel %vm212_vm0, %v2352_v4, %v2353_v29  ;;  %v7956_v0 = vadd.f32 %v2353_v29, %v7785_v51  ;;  %v2366_v35 = vrot.slane %v2362_v58, 1 }
 0x19c   :  { %v7961_v33 = vadd.f32 %v2354_v14, %v7779_v43  ;;  %v2373_v5 = vstv %s7901_s1  ;;  %v2399_v8 = vstv %s7918_s11  ;;  %v2387_v43 = vmul.f32 %v2386_v36, %v7677_v20  ;;  %s8232_s1 = sld [smem:[#allocation7 + $0x28f]] }
 0x19d   :  { %v2367_v49 = vsel %vm212_vm0, %v2365_v27, %v2366_v35  ;;  %v7970_v22 = vadd.f32 %v2366_v35, %v7791_v53  ;;  %v2374_v51 = vmul.f32 %v2373_v5, %v7677_v20  ;;  %v2375_v1 = vmul.f32 %v2373_v5, %v7679_v9  ;;  %s8254_s11 = sld [smem:[#allocation7 + $0x38f]] }
 0x19e   :  { %v7975_v50 = vadd.f32 %v2367_v49, %v7788_v25  ;;  %v2388_v57 = vmul.f32 %v2386_v36, %v7679_v9  ;;  %v2400_v60 = vmul.f32 %v2399_v8, %v7677_v20  ;;  %v2401_v55 = vmul.f32 %v2399_v8, %v7679_v9 }
 0x19f   :  { %v2378_v18 = vrot.slane %v2374_v51, 1  ;;  %v2379_v17 = vrot.slane %v2375_v1, 1  ;;  %v2412_v61 = vstv %s7934_s12  ;;  %v2391_v53 = vrot.slane %v2387_v43, 1  ;;  %s8262_s12 = sld [smem:[#allocation7 + $0x40f]] }
 0x1a0   :  { %v2392_v7 = vrot.slane %v2388_v57, 1  ;;  %v2404_v6 = vrot.slane %v2400_v60, 1  ;;  %v2413_v15 = vmul.f32 %v2412_v61, %v7677_v20  ;;  %v2405_v44 = vrot.slane %v2401_v55, 1 }
 0x1a1   :  { %v2380_v25 = vsel %vm212_vm0, %v2378_v18, %v2379_v17  ;;  %v7987_v26 = vadd.f32 %v2379_v17, %v7809_v30  ;;  %v2414_v37 = vmul.f32 %v2412_v61, %v7679_v9  ;;  %v2438_v14 = vstv %s7958_s13  ;;  %s8278_s13 = sld [smem:[#allocation7 + $0x50f]] }
 0x1a2   :  { %v7991_v4 = vadd.f32 %v2380_v25, %v7801_v13  ;;  %v2393_v40 = vsel %vm212_vm0, %v2391_v53, %v2392_v7  ;;  %v7995_v42 = vadd.f32 %v2392_v7, %v7815_v28  ;;  %v2417_v29 = vrot.slane %v2413_v15, 1 }
 0x1a3   :  { %v8000_v58 = vadd.f32 %v2393_v40, %v7812_v62  ;;  %v2406_v30 = vsel %vm212_vm0, %v2404_v6, %v2405_v44  ;;  %v8004_v59 = vadd.f32 %v2405_v44, %v7823_v48  ;;  %v2418_v27 = vrot.slane %v2414_v37, 1 }
 0x1a4   :  { %v8009_v13 = vadd.f32 %v2406_v30, %v7818_v12  ;;  %v2425_v28 = vstv %s7949_s3  ;;  %v2451_v35 = vstv %s7966_s14  ;;  %v2439_v12 = vmul.f32 %v2438_v14, %v7677_v20  ;;  %s8270_s3 = sld [smem:[#allocation7 + $0x48f]] }
 0x1a5   :  { %v2419_v62 = vsel %vm212_vm0, %v2417_v29, %v2418_v27  ;;  %v8018_v5 = vadd.f32 %v2418_v27, %v7838_v34  ;;  %v2426_v48 = vmul.f32 %v2425_v28, %v7677_v20  ;;  %v2427_v36 = vmul.f32 %v2425_v28, %v7679_v9  ;;  %s8298_s14 = sld [smem:[#allocation7 + $0x58f]] }
 0x1a6   :  { %v8023_v8 = vadd.f32 %v2419_v62, %v7835_v54  ;;  %v2440_v49 = vmul.f32 %v2438_v14, %v7679_v9  ;;  %v2452_v51 = vmul.f32 %v2451_v35, %v7677_v20  ;;  %v2453_v57 = vmul.f32 %v2451_v35, %v7679_v9 }
 0x1a7   :  { %v2430_v1 = vrot.slane %v2426_v48, 1  ;;  %v2431_v43 = vrot.slane %v2427_v36, 1  ;;  %v2464_v60 = vstv %s7982_s15  ;;  %v2443_v34 = vrot.slane %v2439_v12, 1  ;;  %s8306_s15 = sld [smem:[#allocation7 + $0x60f]] }
 0x1a8   :  { %v2444_v18 = vrot.slane %v2440_v49, 1  ;;  %v2456_v17 = vrot.slane %v2452_v51, 1  ;;  %v2465_v55 = vmul.f32 %v2464_v60, %v7677_v20  ;;  %v2457_v53 = vrot.slane %v2453_v57, 1 }
 0x1a9   :  { %v2432_v54 = vsel %vm212_vm0, %v2430_v1, %v2431_v43  ;;  %v8035_v61 = vadd.f32 %v2431_v43, %v7845_v16  ;;  %v2466_v7 = vmul.f32 %v2464_v60, %v7679_v9  ;;  %v2490_v30 = vstv %s8006_s17  ;;  %s8322_s17 = sld [smem:[#allocation7 + $0x70f]] }
 0x1aa   :  { %v8039_v6 = vadd.f32 %v2432_v54, %v7841_v19  ;;  %v2445_v15 = vsel %vm212_vm0, %v2443_v34, %v2444_v18  ;;  %v8043_v25 = vadd.f32 %v2444_v18, %v7861_v2  ;;  %v2469_v44 = vrot.slane %v2465_v55, 1 }
 0x1ab   :  { %v8048_v37 = vadd.f32 %v2445_v15, %v7853_v23  ;;  %v2458_v16 = vsel %vm212_vm0, %v2456_v17, %v2457_v53  ;;  %v8052_v40 = vadd.f32 %v2457_v53, %v7867_v45  ;;  %v2470_v29 = vrot.slane %v2466_v7, 1 }
 0x1ac   :  { %v8057_v19 = vadd.f32 %v2458_v16, %v7864_v46  ;;  %v2477_v2 = vstv %s7997_s16  ;;  %v2503_v27 = vstv %s8014_s18  ;;  %v2491_v46 = vmul.f32 %v2490_v30, %v7677_v20  ;;  %s8314_s16 = sld [smem:[#allocation7 + $0x68f]] }
 0x1ad   :  { %v2471_v23 = vsel %vm212_vm0, %v2469_v44, %v2470_v29  ;;  %v8066_v28 = vadd.f32 %v2470_v29, %v7876_v3  ;;  %v2478_v45 = vmul.f32 %v2477_v2, %v7677_v20  ;;  %v2479_v14 = vmul.f32 %v2477_v2, %v7679_v9  ;;  %s8334_s18 = sld [smem:[#allocation7 + $0x78f]] }
 0x1ae   :  { %v8071_v35 = vadd.f32 %v2471_v23, %v7873_v11  ;;  %v2492_v62 = vmul.f32 %v2490_v30, %v7679_v9  ;;  %v2504_v48 = vmul.f32 %v2503_v27, %v7677_v20  ;;  %v2505_v49 = vmul.f32 %v2503_v27, %v7679_v9 }
 0x1af   :  { %v2482_v36 = vrot.slane %v2478_v45, 2  ;;  %v2483_v12 = vrot.slane %v2479_v14, 2  ;;  %v2516_v51 = vstv %s8030_s19  ;;  %v2495_v3 = vrot.slane %v2491_v46, 2  ;;  %s8358_s19 = sld [smem:[#allocation7 + $0x10]] }
 0x1b0   :  { %v2496_v1 = vrot.slane %v2492_v62, 2  ;;  %v2508_v43 = vrot.slane %v2504_v48, 2  ;;  %v2517_v57 = vmul.f32 %v2516_v51, %v7677_v20  ;;  %v2509_v34 = vrot.slane %v2505_v49, 2 }
 0x1b1   :  { %v2484_v11 = vsel %vm421_vm1, %v2482_v36, %v2483_v12  ;;  %v8083_v60 = vadd.f32 %v2483_v12, %v7892_v39  ;;  %v2518_v18 = vmul.f32 %v2516_v51, %v7679_v9  ;;  %v2542_v16 = vstv %s8054_s21  ;;  %s8384_s21 = sld [smem:[#allocation7 + $0x110]] }
 0x1b2   :  { %v8087_v17 = vadd.f32 %v2484_v11, %v7895_v38  ;;  %v2497_v55 = vsel %vm421_vm1, %v2495_v3, %v2496_v1  ;;  %v8091_v54 = vadd.f32 %v2496_v1, %v7899_v32  ;;  %v2521_v53 = vrot.slane %v2517_v57, 2 }
 0x1b3   :  { %v8096_v7 = vadd.f32 %v2497_v55, %v7904_v21  ;;  %v2510_v39 = vsel %vm421_vm1, %v2508_v43, %v2509_v34  ;;  %v8100_v15 = vadd.f32 %v2509_v34, %v7908_v56  ;;  %v2522_v44 = vrot.slane %v2518_v18, 2 }
 0x1b4   :  { %v8105_v38 = vadd.f32 %v2510_v39, %v7913_v31  ;;  %v2529_v32 = vstv %s8045_s20  ;;  %v2555_v29 = vstv %s8062_s22  ;;  %v2543_v31 = vmul.f32 %v2542_v16, %v7677_v20  ;;  %s8370_s20 = sld [smem:[#allocation7 + $0x90]] }
 0x1b5   :  { %v2523_v21 = vsel %vm421_vm1, %v2521_v53, %v2522_v44  ;;  %v8114_v2 = vadd.f32 %v2522_v44, %v7922_v63  ;;  %v2530_v56 = vmul.f32 %v2529_v32, %v7677_v20  ;;  %v2531_v30 = vmul.f32 %v2529_v32, %v7679_v9  ;;  %s8392_s22 = sld [smem:[#allocation7 + $0x190]] }
 0x1b6   :  { %v8119_v27 = vadd.f32 %v2523_v21, %v7927_v10  ;;  %v2544_v23 = vmul.f32 %v2542_v16, %v7679_v9  ;;  %v2556_v45 = vmul.f32 %v2555_v29, %v7677_v20  ;;  %v2557_v62 = vmul.f32 %v2555_v29, %v7679_v9 }
 0x1b7   :  { %v2534_v14 = vrot.slane %v2530_v56, 2  ;;  %v2535_v46 = vrot.slane %v2531_v30, 2  ;;  %v2568_v48 = vstv %s8078_s23  ;;  %v2547_v63 = vrot.slane %v2543_v31, 2  ;;  %s8414_s23 = sld [smem:[#allocation7 + $0x210]] }
 0x1b8   :  { %v2548_v36 = vrot.slane %v2544_v23, 2  ;;  %v2560_v12 = vrot.slane %v2556_v45, 2  ;;  %v2569_v49 = vmul.f32 %v2568_v48, %v7677_v20  ;;  %v2561_v3 = vrot.slane %v2557_v62, 2 }
 0x1b9   :  { %v2536_v10 = vsel %vm421_vm1, %v2534_v14, %v2535_v46  ;;  %v8131_v51 = vadd.f32 %v2535_v46, %v7939_v47  ;;  %v2570_v1 = vmul.f32 %v2568_v48, %v7679_v9  ;;  %v2594_v39 = vstv %s8102_s25  ;;  %s8434_s25 = sld [smem:[#allocation7 + $0x310]] }
 0x1ba   :  { %v8135_v43 = vadd.f32 %v2536_v10, %v7943_v24  ;;  %v2549_v57 = vsel %vm421_vm1, %v2547_v63, %v2548_v36  ;;  %v8139_v11 = vadd.f32 %v2548_v36, %v7947_v41  ;;  %v2573_v34 = vrot.slane %v2569_v49, 2 }
 0x1bb   :  { %v8144_v18 = vadd.f32 %v2549_v57, %v7952_v52  ;;  %v2562_v47 = vsel %vm421_vm1, %v2560_v12, %v2561_v3  ;;  %v8148_v55 = vadd.f32 %v2561_v3, %v7956_v0  ;;  %v2574_v53 = vrot.slane %v2570_v1, 2 }
 0x1bc   :  { %v8153_v24 = vadd.f32 %v2562_v47, %v7961_v33  ;;  %v2581_v41 = vstv %s8093_s24  ;;  %v2607_v44 = vstv %s8110_s26  ;;  %v2595_v33 = vmul.f32 %v2594_v39, %v7677_v20  ;;  %s8422_s24 = sld [smem:[#allocation7 + $0x290]] }
 0x1bd   :  { %v2575_v52 = vsel %vm421_vm1, %v2573_v34, %v2574_v53  ;;  %v8162_v32 = vadd.f32 %v2574_v53, %v7970_v22  ;;  %v2582_v0 = vmul.f32 %v2581_v41, %v7677_v20  ;;  %v2583_v16 = vmul.f32 %v2581_v41, %v7679_v9  ;;  %s8450_s26 = sld [smem:[#allocation7 + $0x390]] }
 0x1be   :  { %v8167_v29 = vadd.f32 %v2575_v52, %v7975_v50  ;;  %v2596_v21 = vmul.f32 %v2594_v39, %v7679_v9  ;;  %v2608_v56 = vmul.f32 %v2607_v44, %v7677_v20  ;;  %v2609_v23 = vmul.f32 %v2607_v44, %v7679_v9 }
 0x1bf   :  { %v2586_v30 = vrot.slane %v2582_v0, 2  ;;  %v2587_v31 = vrot.slane %v2583_v16, 2  ;;  %v2620_v45 = vstv %s8126_s27  ;;  %v2599_v22 = vrot.slane %v2595_v33, 2  ;;  %s8465_s27 = sld [smem:[#allocation7 + $0x410]] }
 0x1c0   :  { %v2600_v14 = vrot.slane %v2596_v21, 2  ;;  %v2612_v46 = vrot.slane %v2608_v56, 2  ;;  %v2621_v62 = vmul.f32 %v2620_v45, %v7677_v20  ;;  %v2613_v63 = vrot.slane %v2609_v23, 2 }
 0x1c1   :  { %v2588_v50 = vsel %vm421_vm1, %v2586_v30, %v2587_v31  ;;  %v8179_v48 = vadd.f32 %v2587_v31, %v7987_v26  ;;  %v2622_v36 = vmul.f32 %v2620_v45, %v7679_v9  ;;  %v2646_v47 = vstv %s8150_s29  ;;  %s8482_s29 = sld [smem:[#allocation7 + $0x510]] }
 0x1c2   :  { %v8183_v12 = vadd.f32 %v2588_v50, %v7991_v4  ;;  %v2601_v49 = vsel %vm421_vm1, %v2599_v22, %v2600_v14  ;;  %v8187_v10 = vadd.f32 %v2600_v14, %v7995_v42  ;;  %v2625_v3 = vrot.slane %v2621_v62, 2 }
 0x1c3   :  { %v8192_v1 = vadd.f32 %v2601_v49, %v8000_v58  ;;  %v2614_v26 = vsel %vm421_vm1, %v2612_v46, %v2613_v63  ;;  %v8196_v57 = vadd.f32 %v2613_v63, %v8004_v59  ;;  %v2626_v34 = vrot.slane %v2622_v36, 2  ;;  %v8241_v63 = vld [vmem:[#allocation3 + $0x50] sm:$0xff] }
 0x1c4   :  { %v8201_v4 = vadd.f32 %v2614_v26, %v8009_v13  ;;  %v2633_v42 = vstv %s8141_s28  ;;  %v2659_v53 = vstv %s8158_s30  ;;  %v2647_v13 = vmul.f32 %v2646_v47, %v7677_v20  ;;  %s8474_s28 = sld [smem:[#allocation7 + $0x490]] }
 0x1c5   :  { %v2627_v58 = vsel %vm421_vm1, %v2625_v3, %v2626_v34  ;;  %v8210_v41 = vadd.f32 %v2626_v34, %v8018_v5  ;;  %v2634_v59 = vmul.f32 %v2633_v42, %v7677_v20  ;;  %v2635_v39 = vmul.f32 %v2633_v42, %v7679_v9  ;;  %s8498_s30 = sld [smem:[#allocation7 + $0x590]] }
 0x1c6   :  { %v8215_v44 = vadd.f32 %v2627_v58, %v8023_v8  ;;  %v2648_v52 = vmul.f32 %v2646_v47, %v7679_v9  ;;  %v2660_v0 = vmul.f32 %v2659_v53, %v7677_v20  ;;  %v2661_v21 = vmul.f32 %v2659_v53, %v7679_v9 }
 0x1c7   :  { %v2638_v16 = vrot.slane %v2634_v59, 2  ;;  %v2639_v33 = vrot.slane %v2635_v39, 2  ;;  %v2672_v56 = vstv %s8174_s6  ;;  %v2651_v5 = vrot.slane %v2647_v13, 2  ;;  %s8513_s6 = sld [smem:[#allocation7 + $0x610]] }
 0x1c8   :  { %v2652_v30 = vrot.slane %v2648_v52, 2  ;;  %v2664_v31 = vrot.slane %v2660_v0, 2  ;;  %v2673_v23 = vmul.f32 %v2672_v56, %v7677_v20  ;;  %v2665_v22 = vrot.slane %v2661_v21, 2 }
 0x1c9   :  { %v2640_v8 = vsel %vm421_vm1, %v2638_v16, %v2639_v33  ;;  %v8229_v45 = vadd.f32 %v2639_v33, %v8035_v61  ;;  %v2674_v14 = vmul.f32 %v2672_v56, %v7679_v9  ;;  %v8243_v61 = vld [vmem:[#allocation3 + $0x58] sm:$0xff]  ;;  %v2688_v3 = vstv %s8189_s0  ;;  %s8522_s0 = sld [smem:[#allocation7 + $0x690]] }
 0x1ca   :  { %v8235_v46 = vadd.f32 %v2640_v8, %v8039_v6  ;;  %v2653_v20 = vsel %vm421_vm1, %v2651_v5, %v2652_v30  ;;  %v8239_v62 = vadd.f32 %v2652_v30, %v8043_v25  ;;  %v2677_v50 = vrot.slane %v2673_v23, 2 }
 0x1cb   :  { %v8248_v9 = vadd.f32 %v2653_v20, %v8048_v37  ;;  %v2666_v36 = vsel %vm421_vm1, %v2664_v31, %v2665_v22  ;;  %v8252_v6 = vadd.f32 %v2665_v22, %v8052_v40  ;;  %v2678_v49 = vrot.slane %v2674_v14, 2 }
 0x1cc   :  { %v8257_v25 = vadd.f32 %v2666_v36, %v8057_v19  ;;  %v2694_v26 = vstv %s8198_s7  ;;  %v2700_v34 = vstv %s8206_s8  ;;  %v2689_v40 = vmul.f32 %v2688_v3, %v8241_v63  ;;  %s8530_s7 = sld [smem:[#allocation7 + $0x710]] }
 0x1cd   :  { %v2679_v37 = vsel %vm421_vm1, %v2677_v50, %v2678_v49  ;;  %v8266_v42 = vadd.f32 %v2678_v49, %v8066_v28  ;;  %v2690_v47 = vmul.f32 %v2688_v3, %v8243_v61  ;;  %v2695_v53 = vmul.f32 %v2694_v26, %v8241_v63  ;;  %s8546_s8 = sld [smem:[#allocation7 + $0x790]] }
 0x1ce   :  { %v8273_v19 = vadd.f32 %v2679_v37, %v8071_v35  ;;  %v2696_v58 = vmul.f32 %v2694_v26, %v8243_v61  ;;  %v2701_v59 = vmul.f32 %v2700_v34, %v8241_v63  ;;  %v8281_v28 = vadd.f32 %v2689_v40, %v8087_v17 }
 0x1cf   :  { %v8284_v39 = vadd.f32 %v2690_v47, %v8083_v60  ;;  %v2702_v13 = vmul.f32 %v2700_v34, %v8243_v61  ;;  %v2706_v35 = vstv %s8222_s9  ;;  %v8289_v52 = vadd.f32 %v2695_v53, %v8096_v7  ;;  %s8561_s9 = sld [smem:[#allocation7 + $0x11]] }
 0x1d0   :  { %v8292_v0 = vadd.f32 %v2696_v58, %v8091_v54  ;;  %v8295_v16 = vadd.f32 %v2701_v59, %v8105_v38  ;;  %v2707_v17 = vmul.f32 %v2706_v35, %v8241_v63  ;;  %v2708_v33 = vmul.f32 %v2706_v35, %v8243_v61 }
 0x1d1   :  { %v8301_v60 = vadd.f32 %v2702_v13, %v8100_v15  ;;  %v2712_v21 = vstv %s8225_s10  ;;  %v2718_v7 = vstv %s8232_s1  ;;  %v2724_v31 = vstv %s8245_s2  ;;  %s8570_s10 = sld [smem:[#allocation7 + $0x91]] }
 0x1d2   :  { %v8309_v54 = vadd.f32 %v2707_v17, %v8119_v27  ;;  %v2713_v38 = vmul.f32 %v2712_v21, %v8241_v63  ;;  %v2714_v56 = vmul.f32 %v2712_v21, %v8243_v61  ;;  %v2719_v5 = vmul.f32 %v2718_v7, %v8241_v63  ;;  %s8578_s1 = sld [smem:[#allocation7 + $0x111]] }
 0x1d3   :  { %v8317_v15 = vadd.f32 %v2708_v33, %v8114_v2  ;;  %v2720_v30 = vmul.f32 %v2718_v7, %v8243_v61  ;;  %v2730_v23 = vstv %s8254_s11  ;;  %v2725_v2 = vmul.f32 %v2724_v31, %v8241_v63  ;;  %s8594_s2 = sld [smem:[#allocation7 + $0x191]] }
 0x1d4   :  { %v8325_v27 = vadd.f32 %v2713_v38, %v8135_v43  ;;  %v8328_v8 = vadd.f32 %v2714_v56, %v8131_v51  ;;  %v8331_v22 = vadd.f32 %v2719_v5, %v8144_v18  ;;  %v2726_v20 = vmul.f32 %v2724_v31, %v8243_v61  ;;  %s8609_s11 = sld [smem:[#allocation7 + $0x211]] }
 0x1d5   :  { %v8337_v14 = vadd.f32 %v2720_v30, %v8139_v11  ;;  %v2731_v50 = vmul.f32 %v2730_v23, %v8241_v63  ;;  %v2732_v43 = vmul.f32 %v2730_v23, %v8243_v61  ;;  %v8343_v51 = vadd.f32 %v2725_v2, %v8153_v24 }
 0x1d6   :  { %v2736_v18 = vstv %s8262_s12  ;;  %v2742_v36 = vstv %s8270_s3  ;;  %v2748_v49 = vstv %s8278_s13  ;;  %v8349_v3 = vadd.f32 %v2726_v20, %v8148_v55  ;;  %s8618_s12 = sld [smem:[#allocation7 + $0x291]] }
 0x1d7   :  { %v8352_v11 = vadd.f32 %v2731_v50, %v8167_v29  ;;  %v8355_v26 = vadd.f32 %v2732_v43, %v8162_v32  ;;  %v2737_v34 = vmul.f32 %v2736_v18, %v8241_v63  ;;  %v2738_v24 = vmul.f32 %v2736_v18, %v8243_v61  ;;  %s8626_s3 = sld [smem:[#allocation7 + $0x311]] }
 0x1d8   :  { %v2743_v37 = vmul.f32 %v2742_v36, %v8241_v63  ;;  %v2744_v40 = vmul.f32 %v2742_v36, %v8243_v61  ;;  %v2749_v47 = vmul.f32 %v2748_v49, %v8241_v63  ;;  %v2750_v29 = vmul.f32 %v2748_v49, %v8243_v61  ;;  %s8642_s13 = sld [smem:[#allocation7 + $0x391]] }
 0x1d9   :  { %v8365_v55 = vadd.f32 %v2737_v34, %v8183_v12  ;;  %v2754_v32 = vstv %s8298_s14  ;;  %v2760_v53 = vstv %s8306_s15  ;;  %v8373_v58 = vadd.f32 %v2738_v24, %v8179_v48  ;;  %s8657_s14 = sld [smem:[#allocation7 + $0x411]] }
 0x1da   :  { %v8376_v59 = vadd.f32 %v2743_v37, %v8192_v1  ;;  %v8379_v13 = vadd.f32 %v2744_v40, %v8187_v10  ;;  %v8382_v12 = vadd.f32 %v2749_v47, %v8201_v4  ;;  %v8387_v35 = vadd.f32 %v2750_v29, %v8196_v57  ;;  %s8666_s15 = sld [smem:[#allocation7 + $0x491]] }
 0x1db   :  { %v2755_v17 = vmul.f32 %v2754_v32, %v8241_v63  ;;  %v2756_v33 = vmul.f32 %v2754_v32, %v8243_v61  ;;  %v2761_v48 = vmul.f32 %v2760_v53, %v8241_v63  ;;  %v2762_v1 = vmul.f32 %v2760_v53, %v8243_v61 }
 0x1dc   :  { %v2766_v10 = vstv %s8314_s16  ;;  %v2772_v21 = vstv %s8322_s17  ;;  %v2778_v4 = vstv %s8334_s18  ;;  %v2784_v2 = vstv %s8358_s19  ;;  %s8674_s16 = sld [smem:[#allocation7 + $0x511]] }
 0x1dd   :  { %v8399_v7 = vadd.f32 %v2755_v17, %v8215_v44  ;;  %v8402_v57 = vadd.f32 %v2756_v33, %v8210_v41  ;;  %v8405_v38 = vadd.f32 %v2761_v48, %v8235_v46  ;;  %v2767_v56 = vmul.f32 %v2766_v10, %v8241_v63  ;;  %s8690_s17 = sld [smem:[#allocation7 + $0x591]] }
 0x1de   :  { %v8409_v5 = vadd.f32 %v2762_v1, %v8229_v45  ;;  %v2768_v30 = vmul.f32 %v2766_v10, %v8243_v61  ;;  %v2773_v31 = vmul.f32 %v2772_v21, %v8241_v63  ;;  %v2774_v23 = vmul.f32 %v2772_v21, %v8243_v61  ;;  %s8705_s18 = sld [smem:[#allocation7 + $0x611]] }
 0x1df   :  { %v8417_v41 = vadd.f32 %v2767_v56, %v8248_v9  ;;  %v2779_v44 = vmul.f32 %v2778_v4, %v8241_v63  ;;  %v2780_v46 = vmul.f32 %v2778_v4, %v8243_v61  ;;  %v2785_v9 = vmul.f32 %v2784_v2, %v8241_v63  ;;  %s8714_s19 = sld [smem:[#allocation7 + $0x691]] }
 0x1e0   :  { %v8425_v45 = vadd.f32 %v2768_v30, %v8239_v62  ;;  %v8428_v20 = vadd.f32 %v2773_v31, %v8257_v25  ;;  %v8431_v50 = vadd.f32 %v2774_v23, %v8252_v6  ;;  %v2786_v62 = vmul.f32 %v2784_v2, %v8243_v61 }
 0x1e1   :  { %v8437_v43 = vadd.f32 %v2779_v44, %v8273_v19  ;;  %v8440_v18 = vadd.f32 %v2780_v46, %v8266_v42  ;;  %v2797_v36 = vstv %s8370_s20  ;;  %v2789_v49 = vrot.slane %v2785_v9, 1  ;;  %s8722_s20 = sld [smem:[#allocation7 + $0x711]] }
 0x1e2   :  { %v2798_v25 = vmul.f32 %v2797_v36, %v8241_v63  ;;  %v2799_v34 = vmul.f32 %v2797_v36, %v8243_v61  ;;  %v2810_v6 = vstv %s8384_s21  ;;  %v2790_v24 = vrot.slane %v2786_v62, 1  ;;  %s8738_s21 = sld [smem:[#allocation7 + $0x791]] }
 0x1e3   :  { %v2811_v37 = vmul.f32 %v2810_v6, %v8241_v63  ;;  %v2812_v40 = vmul.f32 %v2810_v6, %v8243_v61  ;;  %v2823_v47 = vstv %s8392_s22  ;;  %v2849_v23 = vstv %s8422_s24  ;;  %s8753_s22 = sld [smem:[#allocation7 + $0x12]] }
 0x1e4   :  { %v2802_v19 = vrot.slane %v2798_v25, 1  ;;  %v2803_v42 = vrot.slane %v2799_v34, 1  ;;  %v2824_v29 = vmul.f32 %v2823_v47, %v8241_v63  ;;  %v2825_v32 = vmul.f32 %v2823_v47, %v8243_v61  ;;  %s8770_s24 = sld [smem:[#allocation7 + $0x112]] }
 0x1e5   :  { %v2791_v53 = vsel %vm212_vm0, %v2789_v49, %v2790_v24  ;;  %v8456_v17 = vadd.f32 %v2790_v24, %v8284_v39  ;;  %v2815_v33 = vrot.slane %v2811_v37, 1  ;;  %v2816_v48 = vrot.slane %v2812_v40, 1 }
 0x1e6   :  { %v8459_v1 = vadd.f32 %v2791_v53, %v8281_v28  ;;  %v2804_v10 = vsel %vm212_vm0, %v2802_v19, %v2803_v42  ;;  %v8463_v21 = vadd.f32 %v2803_v42, %v8292_v0  ;;  %v2828_v4 = vrot.slane %v2824_v29, 1 }
 0x1e7   :  { %v8468_v56 = vadd.f32 %v2804_v10, %v8289_v52  ;;  %v2817_v39 = vsel %vm212_vm0, %v2815_v33, %v2816_v48  ;;  %v8472_v30 = vadd.f32 %v2816_v48, %v8301_v60  ;;  %v2829_v31 = vrot.slane %v2825_v32, 1 }
 0x1e8   :  { %v8477_v28 = vadd.f32 %v2817_v39, %v8295_v16  ;;  %v2836_v0 = vstv %s8414_s23  ;;  %v2862_v44 = vstv %s8434_s25  ;;  %v2850_v16 = vmul.f32 %v2849_v23, %v8241_v63  ;;  %s8762_s23 = sld [smem:[#allocation7 + $0x92]] }
 0x1e9   :  { %v2830_v52 = vsel %vm212_vm0, %v2828_v4, %v2829_v31  ;;  %v8486_v46 = vadd.f32 %v2829_v31, %v8317_v15  ;;  %v2837_v60 = vmul.f32 %v2836_v0, %v8241_v63  ;;  %v2838_v2 = vmul.f32 %v2836_v0, %v8243_v61  ;;  %s8786_s25 = sld [smem:[#allocation7 + $0x192]] }
 0x1ea   :  { %v8491_v9 = vadd.f32 %v2830_v52, %v8309_v54  ;;  %v2851_v62 = vmul.f32 %v2849_v23, %v8243_v61  ;;  %v2863_v36 = vmul.f32 %v2862_v44, %v8241_v63  ;;  %v2864_v34 = vmul.f32 %v2862_v44, %v8243_v61 }
 0x1eb   :  { %v2841_v49 = vrot.slane %v2837_v60, 1  ;;  %v2842_v25 = vrot.slane %v2838_v2, 1  ;;  %v2875_v6 = vstv %s8450_s26  ;;  %v2854_v15 = vrot.slane %v2850_v16, 1  ;;  %s8789_s26 = sld [smem:[#allocation7 + $0x212]] }
 0x1ec   :  { %v2855_v24 = vrot.slane %v2851_v62, 1  ;;  %v2867_v37 = vrot.slane %v2863_v36, 1  ;;  %v2876_v40 = vmul.f32 %v2875_v6, %v8241_v63  ;;  %v2868_v19 = vrot.slane %v2864_v34, 1 }
 0x1ed   :  { %v2843_v54 = vsel %vm212_vm0, %v2841_v49, %v2842_v25  ;;  %v8503_v47 = vadd.f32 %v2842_v25, %v8328_v8  ;;  %v2877_v42 = vmul.f32 %v2875_v6, %v8243_v61  ;;  %v2901_v39 = vstv %s8474_s28  ;;  %s8809_s28 = sld [smem:[#allocation7 + $0x312]] }
 0x1ee   :  { %v8507_v29 = vadd.f32 %v2843_v54, %v8325_v27  ;;  %v2856_v32 = vsel %vm212_vm0, %v2854_v15, %v2855_v24  ;;  %v8511_v53 = vadd.f32 %v2855_v24, %v8337_v14  ;;  %v2880_v33 = vrot.slane %v2876_v40, 1 }
 0x1ef   :  { %v8516_v48 = vadd.f32 %v2856_v32, %v8331_v22  ;;  %v2869_v8 = vsel %vm212_vm0, %v2867_v37, %v2868_v19  ;;  %v8520_v10 = vadd.f32 %v2868_v19, %v8349_v3  ;;  %v2881_v4 = vrot.slane %v2877_v42, 1 }
 0x1f0   :  { %v8525_v27 = vadd.f32 %v2869_v8, %v8343_v51  ;;  %v2888_v14 = vstv %s8465_s27  ;;  %v2914_v31 = vstv %s8482_s29  ;;  %v2902_v51 = vmul.f32 %v2901_v39, %v8241_v63  ;;  %s8796_s27 = sld [smem:[#allocation7 + $0x292]] }
 0x1f1   :  { %v2882_v22 = vsel %vm212_vm0, %v2880_v33, %v2881_v4  ;;  %v8534_v0 = vadd.f32 %v2881_v4, %v8355_v26  ;;  %v2889_v3 = vmul.f32 %v2888_v14, %v8241_v63  ;;  %v2890_v23 = vmul.f32 %v2888_v14, %v8243_v61  ;;  %s8818_s29 = sld [smem:[#allocation7 + $0x392]] }
 0x1f2   :  { %v8539_v44 = vadd.f32 %v2882_v22, %v8352_v11  ;;  %v2903_v52 = vmul.f32 %v2901_v39, %v8243_v61  ;;  %v2915_v60 = vmul.f32 %v2914_v31, %v8241_v63  ;;  %v2916_v62 = vmul.f32 %v2914_v31, %v8243_v61 }
 0x1f3   :  { %v2893_v2 = vrot.slane %v2889_v3, 1  ;;  %v2894_v16 = vrot.slane %v2890_v23, 1  ;;  %v2927_v36 = vstv %s8498_s30  ;;  %v2906_v26 = vrot.slane %v2902_v51, 1  ;;  %s8826_s30 = sld [smem:[#allocation7 + $0x412]] }
 0x1f4   :  { %v2907_v49 = vrot.slane %v2903_v52, 1  ;;  %v2919_v25 = vrot.slane %v2915_v60, 1  ;;  %v2928_v34 = vmul.f32 %v2927_v36, %v8241_v63  ;;  %v2920_v15 = vrot.slane %v2916_v62, 1 }
 0x1f5   :  { %v2895_v11 = vsel %vm212_vm0, %v2893_v2, %v2894_v16  ;;  %v8551_v6 = vadd.f32 %v2894_v16, %v8373_v58  ;;  %v2929_v24 = vmul.f32 %v2927_v36, %v8243_v61  ;;  %v2953_v8 = vstv %s8522_s0  ;;  %s8842_s0 = sld [smem:[#allocation7 + $0x512]] }
 0x1f6   :  { %v8555_v37 = vadd.f32 %v2895_v11, %v8365_v55  ;;  %v2908_v40 = vsel %vm212_vm0, %v2906_v26, %v2907_v49  ;;  %v8559_v54 = vadd.f32 %v2907_v49, %v8379_v13  ;;  %v2932_v19 = vrot.slane %v2928_v34, 1 }
 0x1f7   :  { %v8564_v42 = vadd.f32 %v2908_v40, %v8376_v59  ;;  %v2921_v58 = vsel %vm212_vm0, %v2919_v25, %v2920_v15  ;;  %v8568_v32 = vadd.f32 %v2920_v15, %v8387_v35  ;;  %v2933_v33 = vrot.slane %v2929_v24, 1 }
 0x1f8   :  { %v8573_v55 = vadd.f32 %v2921_v58, %v8382_v12  ;;  %v2940_v13 = vstv %s8513_s6  ;;  %v2966_v4 = vstv %s8530_s7  ;;  %v2954_v12 = vmul.f32 %v2953_v8, %v8241_v63  ;;  %s8834_s6 = sld [smem:[#allocation7 + $0x492]] }
 0x1f9   :  { %v2934_v59 = vsel %vm212_vm0, %v2932_v19, %v2933_v33  ;;  %v8582_v14 = vadd.f32 %v2933_v33, %v8402_v57  ;;  %v2941_v35 = vmul.f32 %v2940_v13, %v8241_v63  ;;  %v2942_v39 = vmul.f32 %v2940_v13, %v8243_v61  ;;  %s8862_s7 = sld [smem:[#allocation7 + $0x592]] }
 0x1fa   :  { %v8587_v31 = vadd.f32 %v2934_v59, %v8399_v7  ;;  %v2955_v22 = vmul.f32 %v2953_v8, %v8243_v61  ;;  %v2967_v3 = vmul.f32 %v2966_v4, %v8241_v63  ;;  %v2968_v52 = vmul.f32 %v2966_v4, %v8243_v61 }
 0x1fb   :  { %v2945_v23 = vrot.slane %v2941_v35, 1  ;;  %v2946_v51 = vrot.slane %v2942_v39, 1  ;;  %v2979_v60 = vstv %s8546_s8  ;;  %v2958_v57 = vrot.slane %v2954_v12, 1  ;;  %s8870_s8 = sld [smem:[#allocation7 + $0x612]] }
 0x1fc   :  { %v2959_v2 = vrot.slane %v2955_v22, 1  ;;  %v2971_v16 = vrot.slane %v2967_v3, 1  ;;  %v2980_v62 = vmul.f32 %v2979_v60, %v8241_v63  ;;  %v2972_v26 = vrot.slane %v2968_v52, 1 }
 0x1fd   :  { %v2947_v7 = vsel %vm212_vm0, %v2945_v23, %v2946_v51  ;;  %v8599_v36 = vadd.f32 %v2946_v51, %v8409_v5  ;;  %v2981_v49 = vmul.f32 %v2979_v60, %v8243_v61  ;;  %v3005_v58 = vstv %s8570_s10  ;;  %s8886_s10 = sld [smem:[#allocation7 + $0x712]] }
 0x1fe   :  { %v8603_v25 = vadd.f32 %v2947_v7, %v8405_v38  ;;  %v2960_v34 = vsel %vm212_vm0, %v2958_v57, %v2959_v2  ;;  %v8607_v11 = vadd.f32 %v2959_v2, %v8425_v45  ;;  %v2984_v15 = vrot.slane %v2980_v62, 1 }
 0x1ff   :  { %v8612_v24 = vadd.f32 %v2960_v34, %v8417_v41  ;;  %v2973_v5 = vsel %vm212_vm0, %v2971_v16, %v2972_v26  ;;  %v8616_v40 = vadd.f32 %v2972_v26, %v8431_v50  ;;  %v2985_v19 = vrot.slane %v2981_v49, 1 }
 0x200   :  { %v8621_v38 = vadd.f32 %v2973_v5, %v8428_v20  ;;  %v2992_v45 = vstv %s8561_s9  ;;  %v3018_v33 = vstv %s8578_s1  ;;  %v3006_v20 = vmul.f32 %v3005_v58, %v8241_v63  ;;  %s8878_s9 = sld [smem:[#allocation7 + $0x692]] }
 0x201   :  { %v2986_v41 = vsel %vm212_vm0, %v2984_v15, %v2985_v19  ;;  %v8630_v13 = vadd.f32 %v2985_v19, %v8440_v18  ;;  %v2993_v50 = vmul.f32 %v2992_v45, %v8241_v63  ;;  %v2994_v8 = vmul.f32 %v2992_v45, %v8243_v61  ;;  %s8898_s1 = sld [smem:[#allocation7 + $0x792]] }
 0x202   :  { %v8635_v4 = vadd.f32 %v2986_v41, %v8437_v43  ;;  %v3007_v59 = vmul.f32 %v3005_v58, %v8243_v61  ;;  %v3019_v35 = vmul.f32 %v3018_v33, %v8241_v63  ;;  %v3020_v22 = vmul.f32 %v3018_v33, %v8243_v61 }
 0x203   :  { %v2997_v39 = vrot.slane %v2993_v50, 2  ;;  %v2998_v12 = vrot.slane %v2994_v8, 2  ;;  %v3031_v3 = vstv %s8594_s2  ;;  %v3010_v18 = vrot.slane %v3006_v20, 2  ;;  %s8922_s2 = sld [smem:[#allocation7 + $0x13]] }
 0x204   :  { %v3011_v23 = vrot.slane %v3007_v59, 2  ;;  %v3023_v51 = vrot.slane %v3019_v35, 2  ;;  %v3032_v52 = vmul.f32 %v3031_v3, %v8241_v63  ;;  %v3024_v57 = vrot.slane %v3020_v22, 2 }
 0x205   :  { %v2999_v43 = vsel %vm421_vm1, %v2997_v39, %v2998_v12  ;;  %v8647_v60 = vadd.f32 %v2998_v12, %v8456_v17  ;;  %v3033_v2 = vmul.f32 %v3031_v3, %v8243_v61  ;;  %v3057_v5 = vstv %s8618_s12  ;;  %s8948_s12 = sld [smem:[#allocation7 + $0x113]] }
 0x206   :  { %v8651_v16 = vadd.f32 %v2999_v43, %v8459_v1  ;;  %v3012_v62 = vsel %vm421_vm1, %v3010_v18, %v3011_v23  ;;  %v8655_v7 = vadd.f32 %v3011_v23, %v8463_v21  ;;  %v3036_v26 = vrot.slane %v3032_v52, 2 }
 0x207   :  { %v8660_v49 = vadd.f32 %v3012_v62, %v8468_v56  ;;  %v3025_v17 = vsel %vm421_vm1, %v3023_v51, %v3024_v57  ;;  %v8664_v34 = vadd.f32 %v3024_v57, %v8472_v30  ;;  %v3037_v15 = vrot.slane %v3033_v2, 2 }
 0x208   :  { %v8669_v1 = vadd.f32 %v3025_v17, %v8477_v28  ;;  %v3044_v21 = vstv %s8609_s11  ;;  %v3070_v19 = vstv %s8626_s3  ;;  %v3058_v28 = vmul.f32 %v3057_v5, %v8241_v63  ;;  %s8934_s11 = sld [smem:[#allocation7 + $0x93]] }
 0x209   :  { %v3038_v56 = vsel %vm421_vm1, %v3036_v26, %v3037_v15  ;;  %v8678_v45 = vadd.f32 %v3037_v15, %v8486_v46  ;;  %v3045_v30 = vmul.f32 %v3044_v21, %v8241_v63  ;;  %v3046_v58 = vmul.f32 %v3044_v21, %v8243_v61  ;;  %s8956_s3 = sld [smem:[#allocation7 + $0x193]] }
 0x20a   :  { %v8683_v33 = vadd.f32 %v3038_v56, %v8491_v9  ;;  %v3059_v41 = vmul.f32 %v3057_v5, %v8243_v61  ;;  %v3071_v50 = vmul.f32 %v3070_v19, %v8241_v63  ;;  %v3072_v59 = vmul.f32 %v3070_v19, %v8243_v61 }
 0x20b   :  { %v3049_v8 = vrot.slane %v3045_v30, 2  ;;  %v3050_v20 = vrot.slane %v3046_v58, 2  ;;  %v3083_v35 = vstv %s8642_s13  ;;  %v3062_v46 = vrot.slane %v3058_v28, 2  ;;  %s8978_s13 = sld [smem:[#allocation7 + $0x213]] }
 0x20c   :  { %v3063_v39 = vrot.slane %v3059_v41, 2  ;;  %v3075_v12 = vrot.slane %v3071_v50, 2  ;;  %v3084_v22 = vmul.f32 %v3083_v35, %v8241_v63  ;;  %v3076_v18 = vrot.slane %v3072_v59, 2 }
 0x20d   :  { %v3051_v9 = vsel %vm421_vm1, %v3049_v8, %v3050_v20  ;;  %v8695_v3 = vadd.f32 %v3050_v20, %v8503_v47  ;;  %v3085_v23 = vmul.f32 %v3083_v35, %v8243_v61  ;;  %v3109_v17 = vstv %s8666_s15  ;;  %s8998_s15 = sld [smem:[#allocation7 + $0x313]] }
 0x20e   :  { %v8699_v51 = vadd.f32 %v3051_v9, %v8507_v29  ;;  %v3064_v52 = vsel %vm421_vm1, %v3062_v46, %v3063_v39  ;;  %v8703_v43 = vadd.f32 %v3063_v39, %v8511_v53  ;;  %v3088_v57 = vrot.slane %v3084_v22, 2 }
 0x20f   :  { %v8708_v2 = vadd.f32 %v3064_v52, %v8516_v48  ;;  %v3077_v47 = vsel %vm421_vm1, %v3075_v12, %v3076_v18  ;;  %v8712_v62 = vadd.f32 %v3076_v18, %v8520_v10  ;;  %v3089_v26 = vrot.slane %v3085_v23, 2 }
 0x210   :  { %v8717_v29 = vadd.f32 %v3077_v47, %v8525_v27  ;;  %v3096_v53 = vstv %s8657_s14  ;;  %v3122_v15 = vstv %s8674_s16  ;;  %v3110_v27 = vmul.f32 %v3109_v17, %v8241_v63  ;;  %s8986_s14 = sld [smem:[#allocation7 + $0x293]] }
 0x211   :  { %v3090_v48 = vsel %vm421_vm1, %v3088_v57, %v3089_v26  ;;  %v8726_v21 = vadd.f32 %v3089_v26, %v8534_v0  ;;  %v3097_v10 = vmul.f32 %v3096_v53, %v8241_v63  ;;  %v3098_v5 = vmul.f32 %v3096_v53, %v8243_v61  ;;  %s9014_s16 = sld [smem:[#allocation7 + $0x393]] }
 0x212   :  { %v8731_v19 = vadd.f32 %v3090_v48, %v8539_v44  ;;  %v3111_v56 = vmul.f32 %v3109_v17, %v8243_v61  ;;  %v3123_v30 = vmul.f32 %v3122_v15, %v8241_v63  ;;  %v3124_v41 = vmul.f32 %v3122_v15, %v8243_v61 }
 0x213   :  { %v3101_v58 = vrot.slane %v3097_v10, 2  ;;  %v3102_v28 = vrot.slane %v3098_v5, 2  ;;  %v3135_v50 = vstv %s8690_s17  ;;  %v3114_v0 = vrot.slane %v3110_v27, 2  ;;  %s9029_s17 = sld [smem:[#allocation7 + $0x413]] }
 0x214   :  { %v3115_v8 = vrot.slane %v3111_v56, 2  ;;  %v3127_v20 = vrot.slane %v3123_v30, 2  ;;  %v3136_v59 = vmul.f32 %v3135_v50, %v8241_v63  ;;  %v3128_v46 = vrot.slane %v3124_v41, 2 }
 0x215   :  { %v3103_v44 = vsel %vm421_vm1, %v3101_v58, %v3102_v28  ;;  %v8743_v35 = vadd.f32 %v3102_v28, %v8551_v6  ;;  %v3137_v39 = vmul.f32 %v3135_v50, %v8243_v61  ;;  %v3161_v47 = vstv %s8714_s19  ;;  %s9046_s19 = sld [smem:[#allocation7 + $0x513]] }
 0x216   :  { %v8747_v12 = vadd.f32 %v3103_v44, %v8555_v37  ;;  %v3116_v22 = vsel %vm421_vm1, %v3114_v0, %v3115_v8  ;;  %v8751_v9 = vadd.f32 %v3115_v8, %v8559_v54  ;;  %v3140_v18 = vrot.slane %v3136_v59, 2 }
 0x217   :  { %v8756_v23 = vadd.f32 %v3116_v22, %v8564_v42  ;;  %v3129_v6 = vsel %vm421_vm1, %v3127_v20, %v3128_v46  ;;  %v8760_v52 = vadd.f32 %v3128_v46, %v8568_v32  ;;  %v3141_v57 = vrot.slane %v3137_v39, 2  ;;  %v8805_v46 = vld [vmem:[#allocation3 + $0x60] sm:$0xff] }
 0x218   :  { %v8765_v37 = vadd.f32 %v3129_v6, %v8573_v55  ;;  %v3148_v54 = vstv %s8705_s18  ;;  %v3174_v26 = vstv %s8722_s20  ;;  %v3162_v55 = vmul.f32 %v3161_v47, %v8241_v63  ;;  %s9038_s18 = sld [smem:[#allocation7 + $0x493]] }
 0x219   :  { %v3142_v42 = vsel %vm421_vm1, %v3140_v18, %v3141_v57  ;;  %v8774_v53 = vadd.f32 %v3141_v57, %v8582_v14  ;;  %v3149_v32 = vmul.f32 %v3148_v54, %v8241_v63  ;;  %v3150_v17 = vmul.f32 %v3148_v54, %v8243_v61  ;;  %s9062_s20 = sld [smem:[#allocation7 + $0x593]] }
 0x21a   :  { %v8779_v15 = vadd.f32 %v3142_v42, %v8587_v31  ;;  %v3163_v48 = vmul.f32 %v3161_v47, %v8243_v61  ;;  %v3175_v10 = vmul.f32 %v3174_v26, %v8241_v63  ;;  %v3176_v56 = vmul.f32 %v3174_v26, %v8243_v61 }
 0x21b   :  { %v3153_v5 = vrot.slane %v3149_v32, 2  ;;  %v3154_v27 = vrot.slane %v3150_v17, 2  ;;  %v3187_v30 = vstv %s8738_s21  ;;  %v3166_v14 = vrot.slane %v3162_v55, 2  ;;  %s9077_s21 = sld [smem:[#allocation7 + $0x613]] }
 0x21c   :  { %v3167_v58 = vrot.slane %v3163_v48, 2  ;;  %v3179_v28 = vrot.slane %v3175_v10, 2  ;;  %v3188_v41 = vmul.f32 %v3187_v30, %v8241_v63  ;;  %v3180_v0 = vrot.slane %v3176_v56, 2 }
 0x21d   :  { %v3155_v31 = vsel %vm421_vm1, %v3153_v5, %v3154_v27  ;;  %v8793_v50 = vadd.f32 %v3154_v27, %v8599_v36  ;;  %v3189_v8 = vmul.f32 %v3187_v30, %v8243_v61  ;;  %v8807_v36 = vld [vmem:[#allocation3 + $0x68] sm:$0xff]  ;;  %v3203_v18 = vstv %s8753_s22  ;;  %s9086_s22 = sld [smem:[#allocation7 + $0x693]] }
 0x21e   :  { %v8799_v20 = vadd.f32 %v3155_v31, %v8603_v25  ;;  %v3168_v63 = vsel %vm421_vm1, %v3166_v14, %v3167_v58  ;;  %v8803_v59 = vadd.f32 %v3167_v58, %v8607_v11  ;;  %v3192_v44 = vrot.slane %v3188_v41, 2 }
 0x21f   :  { %v8812_v61 = vadd.f32 %v3168_v63, %v8612_v24  ;;  %v3181_v39 = vsel %vm421_vm1, %v3179_v28, %v3180_v0  ;;  %v8816_v25 = vadd.f32 %v3180_v0, %v8616_v40  ;;  %v3193_v22 = vrot.slane %v3189_v8, 2 }
 0x220   :  { %v8821_v11 = vadd.f32 %v3181_v39, %v8621_v38  ;;  %v3209_v6 = vstv %s8762_s23  ;;  %v3215_v57 = vstv %s8770_s24  ;;  %v3204_v40 = vmul.f32 %v3203_v18, %v8805_v46  ;;  %s9094_s23 = sld [smem:[#allocation7 + $0x713]] }
 0x221   :  { %v3194_v24 = vsel %vm421_vm1, %v3192_v44, %v3193_v22  ;;  %v8830_v54 = vadd.f32 %v3193_v22, %v8630_v13  ;;  %v3205_v47 = vmul.f32 %v3203_v18, %v8807_v36  ;;  %v3210_v26 = vmul.f32 %v3209_v6, %v8805_v46  ;;  %s9110_s24 = sld [smem:[#allocation7 + $0x793]] }
 0x222   :  { %v8837_v38 = vadd.f32 %v3194_v24, %v8635_v4  ;;  %v3211_v42 = vmul.f32 %v3209_v6, %v8807_v36  ;;  %v3216_v32 = vmul.f32 %v3215_v57, %v8805_v46  ;;  %v8845_v13 = vadd.f32 %v3204_v40, %v8651_v16 }
 0x223   :  { %v8848_v17 = vadd.f32 %v3205_v47, %v8647_v60  ;;  %v3217_v55 = vmul.f32 %v3215_v57, %v8807_v36  ;;  %v3221_v4 = vstv %s8786_s25  ;;  %v8853_v48 = vadd.f32 %v3210_v26, %v8660_v49  ;;  %s9125_s25 = sld [smem:[#allocation7 + $0x14]] }
 0x224   :  { %v8856_v10 = vadd.f32 %v3211_v42, %v8655_v7  ;;  %v8859_v5 = vadd.f32 %v3216_v32, %v8669_v1  ;;  %v3222_v16 = vmul.f32 %v3221_v4, %v8805_v46  ;;  %v3223_v27 = vmul.f32 %v3221_v4, %v8807_v36 }
 0x225   :  { %v8865_v60 = vadd.f32 %v3217_v55, %v8664_v34  ;;  %v3227_v56 = vstv %s8789_s26  ;;  %v3233_v49 = vstv %s8796_s27  ;;  %v3239_v28 = vstv %s8809_s28  ;;  %s9134_s26 = sld [smem:[#allocation7 + $0x94]] }
 0x226   :  { %v8873_v7 = vadd.f32 %v3222_v16, %v8683_v33  ;;  %v3228_v1 = vmul.f32 %v3227_v56, %v8805_v46  ;;  %v3229_v30 = vmul.f32 %v3227_v56, %v8807_v36  ;;  %v3234_v14 = vmul.f32 %v3233_v49, %v8805_v46  ;;  %s9142_s27 = sld [smem:[#allocation7 + $0x114]] }
 0x227   :  { %v8881_v34 = vadd.f32 %v3223_v27, %v8678_v45  ;;  %v3235_v58 = vmul.f32 %v3233_v49, %v8807_v36  ;;  %v3245_v41 = vstv %s8818_s29  ;;  %v3240_v45 = vmul.f32 %v3239_v28, %v8805_v46  ;;  %s9158_s28 = sld [smem:[#allocation7 + $0x194]] }
 0x228   :  { %v8889_v33 = vadd.f32 %v3228_v1, %v8699_v51  ;;  %v8892_v31 = vadd.f32 %v3229_v30, %v8695_v3  ;;  %v8895_v0 = vadd.f32 %v3234_v14, %v8708_v2  ;;  %v3241_v63 = vmul.f32 %v3239_v28, %v8807_v36  ;;  %s9173_s29 = sld [smem:[#allocation7 + $0x214]] }
 0x229   :  { %v8901_v8 = vadd.f32 %v3235_v58, %v8703_v43  ;;  %v3246_v44 = vmul.f32 %v3245_v41, %v8805_v46  ;;  %v3247_v51 = vmul.f32 %v3245_v41, %v8807_v36  ;;  %v8907_v3 = vadd.f32 %v3240_v45, %v8717_v29 }
 0x22a   :  { %v3251_v2 = vstv %s8826_s30  ;;  %v3257_v39 = vstv %s8834_s6  ;;  %v3263_v22 = vstv %s8842_s0  ;;  %v8913_v18 = vadd.f32 %v3241_v63, %v8712_v62  ;;  %s9182_s30 = sld [smem:[#allocation7 + $0x294]] }
 0x22b   :  { %v8916_v43 = vadd.f32 %v3246_v44, %v8731_v19  ;;  %v8919_v6 = vadd.f32 %v3247_v51, %v8726_v21  ;;  %v3252_v57 = vmul.f32 %v3251_v2, %v8805_v46  ;;  %v3253_v29 = vmul.f32 %v3251_v2, %v8807_v36  ;;  %s9190_s6 = sld [smem:[#allocation7 + $0x314]] }
 0x22c   :  { %v3258_v24 = vmul.f32 %v3257_v39, %v8805_v46  ;;  %v3259_v40 = vmul.f32 %v3257_v39, %v8807_v36  ;;  %v3264_v47 = vmul.f32 %v3263_v22, %v8805_v46  ;;  %v3265_v19 = vmul.f32 %v3263_v22, %v8807_v36  ;;  %s9206_s0 = sld [smem:[#allocation7 + $0x394]] }
 0x22d   :  { %v8929_v62 = vadd.f32 %v3252_v57, %v8747_v12  ;;  %v3269_v21 = vstv %s8862_s7  ;;  %v3275_v26 = vstv %s8870_s8  ;;  %v8937_v42 = vadd.f32 %v3253_v29, %v8743_v35  ;;  %s9221_s7 = sld [smem:[#allocation7 + $0x414]] }
 0x22e   :  { %v8940_v32 = vadd.f32 %v3258_v24, %v8756_v23  ;;  %v8943_v55 = vadd.f32 %v3259_v40, %v8751_v9  ;;  %v8946_v12 = vadd.f32 %v3264_v47, %v8765_v37  ;;  %v8951_v4 = vadd.f32 %v3265_v19, %v8760_v52  ;;  %s9230_s8 = sld [smem:[#allocation7 + $0x494]] }
 0x22f   :  { %v3270_v16 = vmul.f32 %v3269_v21, %v8805_v46  ;;  %v3271_v27 = vmul.f32 %v3269_v21, %v8807_v36  ;;  %v3276_v35 = vmul.f32 %v3275_v26, %v8805_v46  ;;  %v3277_v23 = vmul.f32 %v3275_v26, %v8807_v36 }
 0x230   :  { %v3281_v9 = vstv %s8878_s9  ;;  %v3287_v56 = vstv %s8886_s10  ;;  %v3293_v37 = vstv %s8898_s1  ;;  %v3299_v45 = vstv %s8922_s2  ;;  %s9238_s9 = sld [smem:[#allocation7 + $0x514]] }
 0x231   :  { %v8963_v49 = vadd.f32 %v3270_v16, %v8779_v15  ;;  %v8966_v52 = vadd.f32 %v3271_v27, %v8774_v53  ;;  %v8969_v1 = vadd.f32 %v3276_v35, %v8799_v20  ;;  %v3282_v30 = vmul.f32 %v3281_v9, %v8805_v46  ;;  %s9254_s10 = sld [smem:[#allocation7 + $0x594]] }
 0x232   :  { %v8973_v14 = vadd.f32 %v3277_v23, %v8793_v50  ;;  %v3283_v58 = vmul.f32 %v3281_v9, %v8807_v36  ;;  %v3288_v28 = vmul.f32 %v3287_v56, %v8805_v46  ;;  %v3289_v41 = vmul.f32 %v3287_v56, %v8807_v36  ;;  %s9269_s1 = sld [smem:[#allocation7 + $0x614]] }
 0x233   :  { %v8981_v53 = vadd.f32 %v3282_v30, %v8812_v61  ;;  %v3294_v15 = vmul.f32 %v3293_v37, %v8805_v46  ;;  %v3295_v20 = vmul.f32 %v3293_v37, %v8807_v36  ;;  %v3300_v61 = vmul.f32 %v3299_v45, %v8805_v46  ;;  %s9278_s2 = sld [smem:[#allocation7 + $0x694]] }
 0x234   :  { %v8989_v50 = vadd.f32 %v3283_v58, %v8803_v59  ;;  %v8992_v63 = vadd.f32 %v3288_v28, %v8821_v11  ;;  %v8995_v44 = vadd.f32 %v3289_v41, %v8816_v25  ;;  %v3301_v59 = vmul.f32 %v3299_v45, %v8807_v36 }
 0x235   :  { %v9001_v51 = vadd.f32 %v3294_v15, %v8837_v38  ;;  %v9004_v2 = vadd.f32 %v3295_v20, %v8830_v54  ;;  %v3312_v39 = vstv %s8934_s11  ;;  %v3304_v22 = vrot.slane %v3300_v61, 1  ;;  %s9286_s11 = sld [smem:[#allocation7 + $0x714]] }
 0x236   :  { %v3313_v11 = vmul.f32 %v3312_v39, %v8805_v46  ;;  %v3314_v57 = vmul.f32 %v3312_v39, %v8807_v36  ;;  %v3325_v25 = vstv %s8948_s12  ;;  %v3305_v29 = vrot.slane %v3301_v59, 1  ;;  %s9302_s12 = sld [smem:[#allocation7 + $0x794]] }
 0x237   :  { %v3326_v24 = vmul.f32 %v3325_v25, %v8805_v46  ;;  %v3327_v40 = vmul.f32 %v3325_v25, %v8807_v36  ;;  %v3338_v47 = vstv %s8956_s3  ;;  %v3364_v41 = vstv %s8986_s14  ;;  %s9317_s3 = sld [smem:[#allocation7 + $0x15]] }
 0x238   :  { %v3317_v38 = vrot.slane %v3313_v11, 1  ;;  %v3318_v54 = vrot.slane %v3314_v57, 1  ;;  %v3339_v19 = vmul.f32 %v3338_v47, %v8805_v46  ;;  %v3340_v21 = vmul.f32 %v3338_v47, %v8807_v36  ;;  %s9334_s14 = sld [smem:[#allocation7 + $0x115]] }
 0x239   :  { %v3306_v26 = vsel %vm212_vm0, %v3304_v22, %v3305_v29  ;;  %v9020_v16 = vadd.f32 %v3305_v29, %v8848_v17  ;;  %v3330_v27 = vrot.slane %v3326_v24, 1  ;;  %v3331_v35 = vrot.slane %v3327_v40, 1 }
 0x23a   :  { %v9023_v23 = vadd.f32 %v3306_v26, %v8845_v13  ;;  %v3319_v9 = vsel %vm212_vm0, %v3317_v38, %v3318_v54  ;;  %v9027_v56 = vadd.f32 %v3318_v54, %v8856_v10  ;;  %v3343_v37 = vrot.slane %v3339_v19, 1 }
 0x23b   :  { %v9032_v30 = vadd.f32 %v3319_v9, %v8853_v48  ;;  %v3332_v17 = vsel %vm212_vm0, %v3330_v27, %v3331_v35  ;;  %v9036_v58 = vadd.f32 %v3331_v35, %v8865_v60  ;;  %v3344_v28 = vrot.slane %v3340_v21, 1 }
 0x23c   :  { %v9041_v13 = vadd.f32 %v3332_v17, %v8859_v5  ;;  %v3351_v10 = vstv %s8978_s13  ;;  %v3377_v15 = vstv %s8998_s15  ;;  %v3365_v5 = vmul.f32 %v3364_v41, %v8805_v46  ;;  %s9326_s13 = sld [smem:[#allocation7 + $0x95]] }
 0x23d   :  { %v3345_v48 = vsel %vm212_vm0, %v3343_v37, %v3344_v28  ;;  %v9050_v20 = vadd.f32 %v3344_v28, %v8881_v34  ;;  %v3352_v60 = vmul.f32 %v3351_v10, %v8805_v46  ;;  %v3353_v45 = vmul.f32 %v3351_v10, %v8807_v36  ;;  %s9350_s15 = sld [smem:[#allocation7 + $0x195]] }
 0x23e   :  { %v9055_v61 = vadd.f32 %v3345_v48, %v8873_v7  ;;  %v3366_v59 = vmul.f32 %v3364_v41, %v8807_v36  ;;  %v3378_v39 = vmul.f32 %v3377_v15, %v8805_v46  ;;  %v3379_v57 = vmul.f32 %v3377_v15, %v8807_v36 }
 0x23f   :  { %v3356_v22 = vrot.slane %v3352_v60, 1  ;;  %v3357_v11 = vrot.slane %v3353_v45, 1  ;;  %v3390_v25 = vstv %s9014_s16  ;;  %v3369_v34 = vrot.slane %v3365_v5, 1  ;;  %s9353_s16 = sld [smem:[#allocation7 + $0x215]] }
 0x240   :  { %v3370_v29 = vrot.slane %v3366_v59, 1  ;;  %v3382_v24 = vrot.slane %v3378_v39, 1  ;;  %v3391_v40 = vmul.f32 %v3390_v25, %v8805_v46  ;;  %v3383_v38 = vrot.slane %v3379_v57, 1 }
 0x241   :  { %v3358_v7 = vsel %vm212_vm0, %v3356_v22, %v3357_v11  ;;  %v9067_v47 = vadd.f32 %v3357_v11, %v8892_v31  ;;  %v3392_v54 = vmul.f32 %v3390_v25, %v8807_v36  ;;  %v3416_v17 = vstv %s9038_s18  ;;  %s9373_s18 = sld [smem:[#allocation7 + $0x315]] }
 0x242   :  { %v9071_v19 = vadd.f32 %v3358_v7, %v8889_v33  ;;  %v3371_v21 = vsel %vm212_vm0, %v3369_v34, %v3370_v29  ;;  %v9075_v26 = vadd.f32 %v3370_v29, %v8901_v8  ;;  %v3395_v27 = vrot.slane %v3391_v40, 1 }
 0x243   :  { %v9080_v35 = vadd.f32 %v3371_v21, %v8895_v0  ;;  %v3384_v31 = vsel %vm212_vm0, %v3382_v24, %v3383_v38  ;;  %v9084_v9 = vadd.f32 %v3383_v38, %v8913_v18  ;;  %v3396_v37 = vrot.slane %v3392_v54, 1 }
 0x244   :  { %v9089_v33 = vadd.f32 %v3384_v31, %v8907_v3  ;;  %v3403_v8 = vstv %s9029_s17  ;;  %v3429_v28 = vstv %s9046_s19  ;;  %v3417_v3 = vmul.f32 %v3416_v17, %v8805_v46  ;;  %s9360_s17 = sld [smem:[#allocation7 + $0x295]] }
 0x245   :  { %v3397_v0 = vsel %vm212_vm0, %v3395_v27, %v3396_v37  ;;  %v9098_v10 = vadd.f32 %v3396_v37, %v8919_v6  ;;  %v3404_v18 = vmul.f32 %v3403_v8, %v8805_v46  ;;  %v3405_v41 = vmul.f32 %v3403_v8, %v8807_v36  ;;  %s9382_s19 = sld [smem:[#allocation7 + $0x395]] }
 0x246   :  { %v9103_v15 = vadd.f32 %v3397_v0, %v8916_v43  ;;  %v3418_v48 = vmul.f32 %v3416_v17, %v8807_v36  ;;  %v3430_v60 = vmul.f32 %v3429_v28, %v8805_v46  ;;  %v3431_v59 = vmul.f32 %v3429_v28, %v8807_v36 }
 0x247   :  { %v3408_v45 = vrot.slane %v3404_v18, 1  ;;  %v3409_v5 = vrot.slane %v3405_v41, 1  ;;  %v3442_v39 = vstv %s9062_s20  ;;  %v3421_v6 = vrot.slane %v3417_v3, 1  ;;  %s9390_s20 = sld [smem:[#allocation7 + $0x415]] }
 0x248   :  { %v3422_v22 = vrot.slane %v3418_v48, 1  ;;  %v3434_v11 = vrot.slane %v3430_v60, 1  ;;  %v3443_v57 = vmul.f32 %v3442_v39, %v8805_v46  ;;  %v3435_v34 = vrot.slane %v3431_v59, 1 }
 0x249   :  { %v3410_v43 = vsel %vm212_vm0, %v3408_v45, %v3409_v5  ;;  %v9115_v25 = vadd.f32 %v3409_v5, %v8937_v42  ;;  %v3444_v29 = vmul.f32 %v3442_v39, %v8807_v36  ;;  %v3468_v31 = vstv %s9086_s22  ;;  %s9406_s22 = sld [smem:[#allocation7 + $0x515]] }
 0x24a   :  { %v9119_v24 = vadd.f32 %v3410_v43, %v8929_v62  ;;  %v3423_v40 = vsel %vm212_vm0, %v3421_v6, %v3422_v22  ;;  %v9123_v7 = vadd.f32 %v3422_v22, %v8943_v55  ;;  %v3447_v38 = vrot.slane %v3443_v57, 1 }
 0x24b   :  { %v9128_v54 = vadd.f32 %v3423_v40, %v8940_v32  ;;  %v3436_v42 = vsel %vm212_vm0, %v3434_v11, %v3435_v34  ;;  %v9132_v21 = vadd.f32 %v3435_v34, %v8951_v4  ;;  %v3448_v27 = vrot.slane %v3444_v29, 1 }
 0x24c   :  { %v9137_v62 = vadd.f32 %v3436_v42, %v8946_v12  ;;  %v3455_v55 = vstv %s9077_s21  ;;  %v3481_v37 = vstv %s9094_s23  ;;  %v3469_v12 = vmul.f32 %v3468_v31, %v8805_v46  ;;  %s9398_s21 = sld [smem:[#allocation7 + $0x495]] }
 0x24d   :  { %v3449_v32 = vsel %vm212_vm0, %v3447_v38, %v3448_v27  ;;  %v9146_v8 = vadd.f32 %v3448_v27, %v8966_v52  ;;  %v3456_v4 = vmul.f32 %v3455_v55, %v8805_v46  ;;  %v3457_v17 = vmul.f32 %v3455_v55, %v8807_v36  ;;  %s9426_s23 = sld [smem:[#allocation7 + $0x595]] }
 0x24e   :  { %v9151_v28 = vadd.f32 %v3449_v32, %v8963_v49  ;;  %v3470_v0 = vmul.f32 %v3468_v31, %v8807_v36  ;;  %v3482_v18 = vmul.f32 %v3481_v37, %v8805_v46  ;;  %v3483_v48 = vmul.f32 %v3481_v37, %v8807_v36 }
 0x24f   :  { %v3460_v41 = vrot.slane %v3456_v4, 1  ;;  %v3461_v3 = vrot.slane %v3457_v17, 1  ;;  %v3494_v60 = vstv %s9110_s24  ;;  %v3473_v52 = vrot.slane %v3469_v12, 1  ;;  %s9434_s24 = sld [smem:[#allocation7 + $0x615]] }
 0x250   :  { %v3474_v45 = vrot.slane %v3470_v0, 1  ;;  %v3486_v5 = vrot.slane %v3482_v18, 1  ;;  %v3495_v59 = vmul.f32 %v3494_v60, %v8805_v46  ;;  %v3487_v6 = vrot.slane %v3483_v48, 1 }
 0x251   :  { %v3462_v49 = vsel %vm212_vm0, %v3460_v41, %v3461_v3  ;;  %v9163_v39 = vadd.f32 %v3461_v3, %v8973_v14  ;;  %v3496_v22 = vmul.f32 %v3494_v60, %v8807_v36  ;;  %v3520_v42 = vstv %s9134_s26  ;;  %s9450_s26 = sld [smem:[#allocation7 + $0x715]] }
 0x252   :  { %v9167_v11 = vadd.f32 %v3462_v49, %v8969_v1  ;;  %v3475_v57 = vsel %vm212_vm0, %v3473_v52, %v3474_v45  ;;  %v9171_v43 = vadd.f32 %v3474_v45, %v8989_v50  ;;  %v3499_v34 = vrot.slane %v3495_v59, 1 }
 0x253   :  { %v9176_v29 = vadd.f32 %v3475_v57, %v8981_v53  ;;  %v3488_v14 = vsel %vm212_vm0, %v3486_v5, %v3487_v6  ;;  %v9180_v40 = vadd.f32 %v3487_v6, %v8995_v44  ;;  %v3500_v38 = vrot.slane %v3496_v22, 1 }
 0x254   :  { %v9185_v1 = vadd.f32 %v3488_v14, %v8992_v63  ;;  %v3507_v50 = vstv %s9125_s25  ;;  %v3533_v27 = vstv %s9142_s27  ;;  %v3521_v63 = vmul.f32 %v3520_v42, %v8805_v46  ;;  %s9442_s25 = sld [smem:[#allocation7 + $0x695]] }
 0x255   :  { %v3501_v53 = vsel %vm212_vm0, %v3499_v34, %v3500_v38  ;;  %v9194_v55 = vadd.f32 %v3500_v38, %v9004_v2  ;;  %v3508_v44 = vmul.f32 %v3507_v50, %v8805_v46  ;;  %v3509_v31 = vmul.f32 %v3507_v50, %v8807_v36  ;;  %s9462_s27 = sld [smem:[#allocation7 + $0x795]] }
 0x256   :  { %v9199_v37 = vadd.f32 %v3501_v53, %v9001_v51  ;;  %v3522_v32 = vmul.f32 %v3520_v42, %v8807_v36  ;;  %v3534_v4 = vmul.f32 %v3533_v27, %v8805_v46  ;;  %v3535_v0 = vmul.f32 %v3533_v27, %v8807_v36 }
 0x257   :  { %v3512_v17 = vrot.slane %v3508_v44, 2  ;;  %v3513_v12 = vrot.slane %v3509_v31, 2  ;;  %v3546_v18 = vstv %s9158_s28  ;;  %v3525_v2 = vrot.slane %v3521_v63, 2  ;;  %s9486_s28 = sld [smem:[#allocation7 + $0x16]] }
 0x258   :  { %v3526_v41 = vrot.slane %v3522_v32, 2  ;;  %v3538_v3 = vrot.slane %v3534_v4, 2  ;;  %v3547_v48 = vmul.f32 %v3546_v18, %v8805_v46  ;;  %v3539_v52 = vrot.slane %v3535_v0, 2 }
 0x259   :  { %v3514_v51 = vsel %vm421_vm1, %v3512_v17, %v3513_v12  ;;  %v9211_v60 = vadd.f32 %v3513_v12, %v9020_v16  ;;  %v3548_v45 = vmul.f32 %v3546_v18, %v8807_v36  ;;  %v3572_v14 = vstv %s9182_s30  ;;  %s9512_s30 = sld [smem:[#allocation7 + $0x116]] }
 0x25a   :  { %v9215_v5 = vadd.f32 %v3514_v51, %v9023_v23  ;;  %v3527_v59 = vsel %vm421_vm1, %v3525_v2, %v3526_v41  ;;  %v9219_v49 = vadd.f32 %v3526_v41, %v9027_v56  ;;  %v3551_v6 = vrot.slane %v3547_v48, 2 }
 0x25b   :  { %v9224_v22 = vadd.f32 %v3527_v59, %v9032_v30  ;;  %v3540_v16 = vsel %vm421_vm1, %v3538_v3, %v3539_v52  ;;  %v9228_v57 = vadd.f32 %v3539_v52, %v9036_v58  ;;  %v3552_v34 = vrot.slane %v3548_v45, 2 }
 0x25c   :  { %v9233_v23 = vadd.f32 %v3540_v16, %v9041_v13  ;;  %v3559_v56 = vstv %s9173_s29  ;;  %v3585_v38 = vstv %s9190_s6  ;;  %v3573_v13 = vmul.f32 %v3572_v14, %v8805_v46  ;;  %s9498_s29 = sld [smem:[#allocation7 + $0x96]] }
 0x25d   :  { %v3553_v30 = vsel %vm421_vm1, %v3551_v6, %v3552_v34  ;;  %v9242_v50 = vadd.f32 %v3552_v34, %v9050_v20  ;;  %v3560_v58 = vmul.f32 %v3559_v56, %v8805_v46  ;;  %v3561_v42 = vmul.f32 %v3559_v56, %v8807_v36  ;;  %s9520_s6 = sld [smem:[#allocation7 + $0x196]] }
 0x25e   :  { %v9247_v27 = vadd.f32 %v3553_v30, %v9055_v61  ;;  %v3574_v53 = vmul.f32 %v3572_v14, %v8807_v36  ;;  %v3586_v44 = vmul.f32 %v3585_v38, %v8805_v46  ;;  %v3587_v32 = vmul.f32 %v3585_v38, %v8807_v36 }
 0x25f   :  { %v3564_v31 = vrot.slane %v3560_v58, 2  ;;  %v3565_v63 = vrot.slane %v3561_v42, 2  ;;  %v3598_v4 = vstv %s9206_s0  ;;  %v3577_v20 = vrot.slane %v3573_v13, 2  ;;  %s9542_s0 = sld [smem:[#allocation7 + $0x216]] }
 0x260   :  { %v3578_v17 = vrot.slane %v3574_v53, 2  ;;  %v3590_v12 = vrot.slane %v3586_v44, 2  ;;  %v3599_v0 = vmul.f32 %v3598_v4, %v8805_v46  ;;  %v3591_v2 = vrot.slane %v3587_v32, 2 }
 0x261   :  { %v3566_v61 = vsel %vm421_vm1, %v3564_v31, %v3565_v63  ;;  %v9259_v18 = vadd.f32 %v3565_v63, %v9067_v47  ;;  %v3600_v41 = vmul.f32 %v3598_v4, %v8807_v36  ;;  %v3624_v16 = vstv %s9230_s8  ;;  %s9562_s8 = sld [smem:[#allocation7 + $0x316]] }
 0x262   :  { %v9263_v3 = vadd.f32 %v3566_v61, %v9071_v19  ;;  %v3579_v48 = vsel %vm421_vm1, %v3577_v20, %v3578_v17  ;;  %v9267_v51 = vadd.f32 %v3578_v17, %v9075_v26  ;;  %v3603_v52 = vrot.slane %v3599_v0, 2 }
 0x263   :  { %v9272_v45 = vadd.f32 %v3579_v48, %v9080_v35  ;;  %v3592_v47 = vsel %vm421_vm1, %v3590_v12, %v3591_v2  ;;  %v9276_v59 = vadd.f32 %v3591_v2, %v9084_v9  ;;  %v3604_v6 = vrot.slane %v3600_v41, 2 }
 0x264   :  { %v9281_v19 = vadd.f32 %v3592_v47, %v9089_v33  ;;  %v3611_v26 = vstv %s9221_s7  ;;  %v3637_v34 = vstv %s9238_s9  ;;  %v3625_v33 = vmul.f32 %v3624_v16, %v8805_v46  ;;  %s9550_s7 = sld [smem:[#allocation7 + $0x296]] }
 0x265   :  { %v3605_v35 = vsel %vm421_vm1, %v3603_v52, %v3604_v6  ;;  %v9290_v56 = vadd.f32 %v3604_v6, %v9098_v10  ;;  %v3612_v9 = vmul.f32 %v3611_v26, %v8805_v46  ;;  %v3613_v14 = vmul.f32 %v3611_v26, %v8807_v36  ;;  %s9578_s9 = sld [smem:[#allocation7 + $0x396]] }
 0x266   :  { %v9295_v38 = vadd.f32 %v3605_v35, %v9103_v15  ;;  %v3626_v30 = vmul.f32 %v3624_v16, %v8807_v36  ;;  %v3638_v58 = vmul.f32 %v3637_v34, %v8805_v46  ;;  %v3639_v53 = vmul.f32 %v3637_v34, %v8807_v36 }
 0x267   :  { %v3616_v42 = vrot.slane %v3612_v9, 2  ;;  %v3617_v13 = vrot.slane %v3613_v14, 2  ;;  %v3650_v44 = vstv %s9254_s10  ;;  %v3629_v10 = vrot.slane %v3625_v33, 2  ;;  %s9593_s10 = sld [smem:[#allocation7 + $0x416]] }
 0x268   :  { %v3630_v31 = vrot.slane %v3626_v30, 2  ;;  %v3642_v63 = vrot.slane %v3638_v58, 2  ;;  %v3651_v32 = vmul.f32 %v3650_v44, %v8805_v46  ;;  %v3643_v20 = vrot.slane %v3639_v53, 2 }
 0x269   :  { %v3618_v15 = vsel %vm421_vm1, %v3616_v42, %v3617_v13  ;;  %v9307_v4 = vadd.f32 %v3617_v13, %v9115_v25  ;;  %v3652_v17 = vmul.f32 %v3650_v44, %v8807_v36  ;;  %v3676_v47 = vstv %s9278_s2  ;;  %s9610_s2 = sld [smem:[#allocation7 + $0x516]] }
 0x26a   :  { %v9311_v12 = vadd.f32 %v3618_v15, %v9119_v24  ;;  %v3631_v0 = vsel %vm421_vm1, %v3629_v10, %v3630_v31  ;;  %v9315_v61 = vadd.f32 %v3630_v31, %v9123_v7  ;;  %v3655_v2 = vrot.slane %v3651_v32, 2 }
 0x26b   :  { %v9320_v41 = vadd.f32 %v3631_v0, %v9128_v54  ;;  %v3644_v25 = vsel %vm421_vm1, %v3642_v63, %v3643_v20  ;;  %v9324_v48 = vadd.f32 %v3643_v20, %v9132_v21  ;;  %v3656_v52 = vrot.slane %v3652_v17, 2  ;;  %v9369_v20 = vld [vmem:[#allocation3 + $0x70] sm:$0xff] }
 0x26c   :  { %v9329_v24 = vadd.f32 %v3644_v25, %v9137_v62  ;;  %v3663_v7 = vstv %s9269_s1  ;;  %v3689_v6 = vstv %s9286_s11  ;;  %v3677_v62 = vmul.f32 %v3676_v47, %v8805_v46  ;;  %s9602_s1 = sld [smem:[#allocation7 + $0x496]] }
 0x26d   :  { %v3657_v54 = vsel %vm421_vm1, %v3655_v2, %v3656_v52  ;;  %v9338_v26 = vadd.f32 %v3656_v52, %v9146_v8  ;;  %v3664_v21 = vmul.f32 %v3663_v7, %v8805_v46  ;;  %v3665_v16 = vmul.f32 %v3663_v7, %v8807_v36  ;;  %s9626_s11 = sld [smem:[#allocation7 + $0x596]] }
 0x26e   :  { %v9343_v34 = vadd.f32 %v3657_v54, %v9151_v28  ;;  %v3678_v35 = vmul.f32 %v3676_v47, %v8807_v36  ;;  %v3690_v9 = vmul.f32 %v3689_v6, %v8805_v46  ;;  %v3691_v30 = vmul.f32 %v3689_v6, %v8807_v36 }
 0x26f   :  { %v3668_v14 = vrot.slane %v3664_v21, 2  ;;  %v3669_v33 = vrot.slane %v3665_v16, 2  ;;  %v3702_v58 = vstv %s9302_s12  ;;  %v3681_v8 = vrot.slane %v3677_v62, 2  ;;  %s9641_s12 = sld [smem:[#allocation7 + $0x616]] }
 0x270   :  { %v3682_v42 = vrot.slane %v3678_v35, 2  ;;  %v3694_v13 = vrot.slane %v3690_v9, 2  ;;  %v3703_v53 = vmul.f32 %v3702_v58, %v8805_v46  ;;  %v3695_v10 = vrot.slane %v3691_v30, 2 }
 0x271   :  { %v3670_v28 = vsel %vm421_vm1, %v3668_v14, %v3669_v33  ;;  %v9357_v44 = vadd.f32 %v3669_v33, %v9163_v39  ;;  %v3704_v31 = vmul.f32 %v3702_v58, %v8807_v36  ;;  %v9371_v39 = vld [vmem:[#allocation3 + $0x78] sm:$0xff]  ;;  %v3718_v2 = vstv %s9317_s3  ;;  %s9650_s3 = sld [smem:[#allocation7 + $0x696]] }
 0x272   :  { %v9363_v63 = vadd.f32 %v3670_v28, %v9167_v11  ;;  %v3683_v46 = vsel %vm421_vm1, %v3681_v8, %v3682_v42  ;;  %v9367_v32 = vadd.f32 %v3682_v42, %v9171_v43  ;;  %v3707_v15 = vrot.slane %v3703_v53, 2 }
 0x273   :  { %v9376_v36 = vadd.f32 %v3683_v46, %v9176_v29  ;;  %v3696_v17 = vsel %vm421_vm1, %v3694_v13, %v3695_v10  ;;  %v9380_v11 = vadd.f32 %v3695_v10, %v9180_v40  ;;  %v3708_v0 = vrot.slane %v3704_v31, 2 }
 0x274   :  { %v9385_v43 = vadd.f32 %v3696_v17, %v9185_v1  ;;  %v3724_v25 = vstv %s9326_s13  ;;  %v3730_v52 = vstv %s9334_s14  ;;  %v3719_v40 = vmul.f32 %v3718_v2, %v9369_v20  ;;  %s9658_s13 = sld [smem:[#allocation7 + $0x716]] }
 0x275   :  { %v3709_v29 = vsel %vm421_vm1, %v3707_v15, %v3708_v0  ;;  %v9394_v7 = vadd.f32 %v3708_v0, %v9194_v55  ;;  %v3720_v47 = vmul.f32 %v3718_v2, %v9371_v39  ;;  %v3725_v6 = vmul.f32 %v3724_v25, %v9369_v20  ;;  %s9674_s14 = sld [smem:[#allocation7 + $0x796]] }
 0x276   :  { %v9401_v1 = vadd.f32 %v3709_v29, %v9199_v37  ;;  %v3726_v54 = vmul.f32 %v3724_v25, %v9371_v39  ;;  %v3731_v21 = vmul.f32 %v3730_v52, %v9369_v20  ;;  %v9409_v55 = vadd.f32 %v3719_v40, %v9215_v5 }
 0x277   :  { %v9412_v16 = vadd.f32 %v3720_v47, %v9211_v60  ;;  %v3732_v62 = vmul.f32 %v3730_v52, %v9371_v39  ;;  %v3736_v37 = vstv %s9350_s15  ;;  %v9417_v35 = vadd.f32 %v3725_v6, %v9224_v22  ;;  %s9689_s15 = sld [smem:[#allocation7 + $0x17]] }
 0x278   :  { %v9420_v9 = vadd.f32 %v3726_v54, %v9219_v49  ;;  %v9423_v14 = vadd.f32 %v3731_v21, %v9233_v23  ;;  %v3737_v5 = vmul.f32 %v3736_v37, %v9369_v20  ;;  %v3738_v33 = vmul.f32 %v3736_v37, %v9371_v39 }
 0x279   :  { %v9429_v60 = vadd.f32 %v3732_v62, %v9228_v57  ;;  %v3742_v30 = vstv %s9353_s16  ;;  %v3748_v22 = vstv %s9360_s17  ;;  %v3754_v13 = vstv %s9373_s18  ;;  %s9698_s16 = sld [smem:[#allocation7 + $0x97]] }
 0x27a   :  { %v9437_v49 = vadd.f32 %v3737_v5, %v9247_v27  ;;  %v3743_v23 = vmul.f32 %v3742_v30, %v9369_v20  ;;  %v3744_v58 = vmul.f32 %v3742_v30, %v9371_v39  ;;  %v3749_v8 = vmul.f32 %v3748_v22, %v9369_v20  ;;  %s9706_s17 = sld [smem:[#allocation7 + $0x117]] }
 0x27b   :  { %v9445_v57 = vadd.f32 %v3738_v33, %v9242_v50  ;;  %v3750_v42 = vmul.f32 %v3748_v22, %v9371_v39  ;;  %v3760_v53 = vstv %s9382_s19  ;;  %v3755_v50 = vmul.f32 %v3754_v13, %v9369_v20  ;;  %s9722_s18 = sld [smem:[#allocation7 + $0x197]] }
 0x27c   :  { %v9453_v27 = vadd.f32 %v3743_v23, %v9263_v3  ;;  %v9456_v28 = vadd.f32 %v3744_v58, %v9259_v18  ;;  %v9459_v10 = vadd.f32 %v3749_v8, %v9272_v45  ;;  %v3756_v46 = vmul.f32 %v3754_v13, %v9371_v39  ;;  %s9737_s19 = sld [smem:[#allocation7 + $0x217]] }
 0x27d   :  { %v9465_v31 = vadd.f32 %v3750_v42, %v9267_v51  ;;  %v3761_v15 = vmul.f32 %v3760_v53, %v9369_v20  ;;  %v3762_v3 = vmul.f32 %v3760_v53, %v9371_v39  ;;  %v9471_v18 = vadd.f32 %v3755_v50, %v9281_v19 }
 0x27e   :  { %v3766_v45 = vstv %s9390_s20  ;;  %v3772_v17 = vstv %s9398_s21  ;;  %v3778_v0 = vstv %s9406_s22  ;;  %v9477_v2 = vadd.f32 %v3756_v46, %v9276_v59  ;;  %s9746_s20 = sld [smem:[#allocation7 + $0x297]] }
 0x27f   :  { %v9480_v51 = vadd.f32 %v3761_v15, %v9295_v38  ;;  %v9483_v25 = vadd.f32 %v3762_v3, %v9290_v56  ;;  %v3767_v52 = vmul.f32 %v3766_v45, %v9369_v20  ;;  %v3768_v19 = vmul.f32 %v3766_v45, %v9371_v39  ;;  %s9754_s21 = sld [smem:[#allocation7 + $0x317]] }
 0x280   :  { %v3773_v29 = vmul.f32 %v3772_v17, %v9369_v20  ;;  %v3774_v40 = vmul.f32 %v3772_v17, %v9371_v39  ;;  %v3779_v47 = vmul.f32 %v3778_v0, %v9369_v20  ;;  %v3780_v38 = vmul.f32 %v3778_v0, %v9371_v39  ;;  %s9770_s22 = sld [smem:[#allocation7 + $0x397]] }
 0x281   :  { %v9493_v59 = vadd.f32 %v3767_v52, %v9311_v12  ;;  %v3784_v56 = vstv %s9426_s23  ;;  %v3790_v6 = vstv %s9434_s24  ;;  %v9501_v54 = vadd.f32 %v3768_v19, %v9307_v4  ;;  %s9785_s23 = sld [smem:[#allocation7 + $0x417]] }
 0x282   :  { %v9504_v21 = vadd.f32 %v3773_v29, %v9320_v41  ;;  %v9507_v62 = vadd.f32 %v3774_v40, %v9315_v61  ;;  %v9510_v12 = vadd.f32 %v3779_v47, %v9329_v24  ;;  %v9515_v37 = vadd.f32 %v3780_v38, %v9324_v48  ;;  %s9794_s24 = sld [smem:[#allocation7 + $0x497]] }
 0x283   :  { %v3785_v5 = vmul.f32 %v3784_v56, %v9369_v20  ;;  %v3786_v33 = vmul.f32 %v3784_v56, %v9371_v39  ;;  %v3791_v4 = vmul.f32 %v3790_v6, %v9369_v20  ;;  %v3792_v41 = vmul.f32 %v3790_v6, %v9371_v39 }
 0x284   :  { %v3796_v61 = vstv %s9442_s25  ;;  %v3802_v30 = vstv %s9450_s26  ;;  %v3808_v24 = vstv %s9462_s27  ;;  %v3814_v50 = vstv %s9486_s28  ;;  %s9802_s25 = sld [smem:[#allocation7 + $0x517]] }
 0x285   :  { %v9527_v22 = vadd.f32 %v3785_v5, %v9343_v34  ;;  %v9530_v48 = vadd.f32 %v3786_v33, %v9338_v26  ;;  %v9533_v23 = vadd.f32 %v3791_v4, %v9363_v63  ;;  %v3797_v58 = vmul.f32 %v3796_v61, %v9369_v20  ;;  %s9818_s26 = sld [smem:[#allocation7 + $0x597]] }
 0x286   :  { %v9537_v8 = vadd.f32 %v3792_v41, %v9357_v44  ;;  %v3798_v42 = vmul.f32 %v3796_v61, %v9371_v39  ;;  %v3803_v13 = vmul.f32 %v3802_v30, %v9369_v20  ;;  %v3804_v53 = vmul.f32 %v3802_v30, %v9371_v39  ;;  %s9833_s27 = sld [smem:[#allocation7 + $0x617]] }
 0x287   :  { %v9545_v26 = vadd.f32 %v3797_v58, %v9376_v36  ;;  %v3809_v34 = vmul.f32 %v3808_v24, %v9369_v20  ;;  %v3810_v63 = vmul.f32 %v3808_v24, %v9371_v39  ;;  %v3815_v36 = vmul.f32 %v3814_v50, %v9369_v20  ;;  %s9842_s28 = sld [smem:[#allocation7 + $0x697]] }
 0x288   :  { %v9553_v44 = vadd.f32 %v3798_v42, %v9367_v32  ;;  %v9556_v46 = vadd.f32 %v3803_v13, %v9385_v43  ;;  %v9559_v15 = vadd.f32 %v3804_v53, %v9380_v11  ;;  %v3816_v32 = vmul.f32 %v3814_v50, %v9371_v39 }
 0x289   :  { %v9565_v3 = vadd.f32 %v3809_v34, %v9401_v1  ;;  %v9568_v45 = vadd.f32 %v3810_v63, %v9394_v7  ;;  %v3827_v17 = vstv %s9498_s29  ;;  %v3819_v0 = vrot.slane %v3815_v36, 1  ;;  %s9850_s29 = sld [smem:[#allocation7 + $0x717]] }
 0x28a   :  { %v3828_v43 = vmul.f32 %v3827_v17, %v9369_v20  ;;  %v3829_v52 = vmul.f32 %v3827_v17, %v9371_v39  ;;  %v3840_v11 = vstv %s9512_s30  ;;  %v3820_v19 = vrot.slane %v3816_v32, 1  ;;  %s9866_s30 = sld [smem:[#allocation7 + $0x797]] }
 0x28b   :  { %v3841_v29 = vmul.f32 %v3840_v11, %v9369_v20  ;;  %v3842_v40 = vmul.f32 %v3840_v11, %v9371_v39  ;;  %v3853_v47 = vstv %s9520_s6  ;;  %v3879_v53 = vstv %s9550_s7  ;;  %s9888_s6 = sld [smem:[#allocation9]] }
 0x28c   :  { %v3832_v1 = vrot.slane %v3828_v43, 1  ;;  %v3833_v7 = vrot.slane %v3829_v52, 1  ;;  %v3854_v38 = vmul.f32 %v3853_v47, %v9369_v20  ;;  %v3855_v56 = vmul.f32 %v3853_v47, %v9371_v39  ;;  %s9904_s7 = sld [smem:[#allocation9 + $0x2]] }
 0x28d   :  { %v3821_v6 = vsel %vm212_vm0, %v3819_v0, %v3820_v19  ;;  %v9584_v5 = vadd.f32 %v3820_v19, %v9412_v16  ;;  %v3845_v33 = vrot.slane %v3841_v29, 1  ;;  %v3846_v4 = vrot.slane %v3842_v40, 1 }
 0x28e   :  { %v9587_v41 = vadd.f32 %v3821_v6, %v9409_v55  ;;  %v3834_v61 = vsel %vm212_vm0, %v3832_v1, %v3833_v7  ;;  %v9591_v30 = vadd.f32 %v3833_v7, %v9420_v9  ;;  %v3858_v24 = vrot.slane %v3854_v38, 1 }
 0x28f   :  { %v9596_v58 = vadd.f32 %v3834_v61, %v9417_v35  ;;  %v3847_v16 = vsel %vm212_vm0, %v3845_v33, %v3846_v4  ;;  %v9600_v42 = vadd.f32 %v3846_v4, %v9429_v60  ;;  %v3859_v13 = vrot.slane %v3855_v56, 1 }
 0x290   :  { %v9605_v55 = vadd.f32 %v3847_v16, %v9423_v14  ;;  %v3866_v9 = vstv %s9542_s0  ;;  %v3892_v34 = vstv %s9562_s8  ;;  %v3880_v14 = vmul.f32 %v3879_v53, %v9369_v20  ;;  %s9896_s0 = sld [smem:[#allocation9 + $0x1]] }
 0x291   :  { %v3860_v35 = vsel %vm212_vm0, %v3858_v24, %v3859_v13  ;;  %v9614_v63 = vadd.f32 %v3859_v13, %v9445_v57  ;;  %v3867_v60 = vmul.f32 %v3866_v9, %v9369_v20  ;;  %v3868_v50 = vmul.f32 %v3866_v9, %v9371_v39  ;;  %s9912_s8 = sld [smem:[#allocation9 + $0x3]] }
 0x292   :  { %v9619_v36 = vadd.f32 %v3860_v35, %v9437_v49  ;;  %v3881_v32 = vmul.f32 %v3879_v53, %v9371_v39  ;;  %v3893_v17 = vmul.f32 %v3892_v34, %v9369_v20  ;;  %v3894_v52 = vmul.f32 %v3892_v34, %v9371_v39 }
 0x293   :  { %v3871_v0 = vrot.slane %v3867_v60, 1  ;;  %v3872_v43 = vrot.slane %v3868_v50, 1  ;;  %v3905_v11 = vstv %s9578_s9  ;;  %v3884_v57 = vrot.slane %v3880_v14, 1  ;;  %s9916_s9 = sld [smem:[#allocation9 + $0x4]] }
 0x294   :  { %v3885_v19 = vrot.slane %v3881_v32, 1  ;;  %v3897_v29 = vrot.slane %v3893_v17, 1  ;;  %v3906_v40 = vmul.f32 %v3905_v11, %v9369_v20  ;;  %v3898_v1 = vrot.slane %v3894_v52, 1 }
 0x295   :  { %v3873_v49 = vsel %vm212_vm0, %v3871_v0, %v3872_v43  ;;  %v9631_v47 = vadd.f32 %v3872_v43, %v9456_v28  ;;  %v3907_v7 = vmul.f32 %v3905_v11, %v9371_v39  ;;  %v3931_v16 = vstv %s9602_s1  ;;  %s10100_s1 = sld [smem:[#allocation9 + $0x22]] }
 0x296   :  { %v9635_v38 = vadd.f32 %v3873_v49, %v9453_v27  ;;  %v3886_v56 = vsel %vm212_vm0, %v3884_v57, %v3885_v19  ;;  %v9639_v6 = vadd.f32 %v3885_v19, %v9465_v31  ;;  %v3910_v33 = vrot.slane %v3906_v40, 1 }
 0x297   :  { %v9644_v4 = vadd.f32 %v3886_v56, %v9459_v10  ;;  %v3899_v28 = vsel %vm212_vm0, %v3897_v29, %v3898_v1  ;;  %v9648_v61 = vadd.f32 %v3898_v1, %v9477_v2  ;;  %v3911_v24 = vrot.slane %v3907_v7, 1 }
 0x298   :  { %v9653_v27 = vadd.f32 %v3899_v28, %v9471_v18  ;;  %v3918_v31 = vstv %s9593_s10  ;;  %v3944_v13 = vstv %s9610_s2  ;;  %v3932_v18 = vmul.f32 %v3931_v16, %v9369_v20  ;;  %s9952_s2 = sld [smem:[#allocation9 + $0x5]] }
 0x299   :  { %v3912_v10 = vsel %vm212_vm0, %v3910_v33, %v3911_v24  ;;  %v9662_v9 = vadd.f32 %v3911_v24, %v9483_v25  ;;  %v3919_v2 = vmul.f32 %v3918_v31, %v9369_v20  ;;  %v3920_v53 = vmul.f32 %v3918_v31, %v9371_v39  ;;  %s10097_s10 = sld [smem:[#allocation9 + $0x21]] }
 0x29a   :  { %v9667_v34 = vadd.f32 %v3912_v10, %v9480_v51  ;;  %v3933_v35 = vmul.f32 %v3931_v16, %v9371_v39  ;;  %v3945_v60 = vmul.f32 %v3944_v13, %v9369_v20  ;;  %v3946_v32 = vmul.f32 %v3944_v13, %v9371_v39 }
 0x29b   :  { %v3923_v50 = vrot.slane %v3919_v2, 1  ;;  %v3924_v14 = vrot.slane %v3920_v53, 1  ;;  %v3957_v17 = vstv %s9626_s11  ;;  %v3936_v25 = vrot.slane %v3932_v18, 1  ;;  %s9968_s11 = sld [smem:[#allocation9 + $0x7]] }
 0x29c   :  { %v3937_v0 = vrot.slane %v3933_v35, 1  ;;  %v3949_v43 = vrot.slane %v3945_v60, 1  ;;  %v3958_v52 = vmul.f32 %v3957_v17, %v9369_v20  ;;  %v3950_v57 = vrot.slane %v3946_v32, 1 }
 0x29d   :  { %v3925_v51 = vsel %vm212_vm0, %v3923_v50, %v3924_v14  ;;  %v9679_v11 = vadd.f32 %v3924_v14, %v9501_v54  ;;  %v3959_v19 = vmul.f32 %v3957_v17, %v9371_v39  ;;  %v3983_v28 = vstv %s9650_s3  ;;  %s9976_s3 = sld [smem:[#allocation9 + $0x9]] }
 0x29e   :  { %v9683_v29 = vadd.f32 %v3925_v51, %v9493_v59  ;;  %v3938_v40 = vsel %vm212_vm0, %v3936_v25, %v3937_v0  ;;  %v9687_v49 = vadd.f32 %v3937_v0, %v9507_v62  ;;  %v3962_v1 = vrot.slane %v3958_v52, 1 }
 0x29f   :  { %v9692_v7 = vadd.f32 %v3938_v40, %v9504_v21  ;;  %v3951_v54 = vsel %vm212_vm0, %v3949_v43, %v3950_v57  ;;  %v9696_v56 = vadd.f32 %v3950_v57, %v9515_v37  ;;  %v3963_v33 = vrot.slane %v3959_v19, 1 }
 0x2a0   :  { %v9701_v59 = vadd.f32 %v3951_v54, %v9510_v12  ;;  %v3970_v62 = vstv %s9641_s12  ;;  %v3996_v24 = vstv %s9658_s13  ;;  %v3984_v12 = vmul.f32 %v3983_v28, %v9369_v20  ;;  %s9970_s12 = sld [smem:[#allocation9 + $0x8]] }
 0x2a1   :  { %v3964_v21 = vsel %vm212_vm0, %v3962_v1, %v3963_v33  ;;  %v9710_v31 = vadd.f32 %v3963_v33, %v9530_v48  ;;  %v3971_v37 = vmul.f32 %v3970_v62, %v9369_v20  ;;  %v3972_v16 = vmul.f32 %v3970_v62, %v9371_v39  ;;  %s9980_s13 = sld [smem:[#allocation9 + $0xa]] }
 0x2a2   :  { %v9715_v13 = vadd.f32 %v3964_v21, %v9527_v22  ;;  %v3985_v10 = vmul.f32 %v3983_v28, %v9371_v39  ;;  %v3997_v2 = vmul.f32 %v3996_v24, %v9369_v20  ;;  %v3998_v35 = vmul.f32 %v3996_v24, %v9371_v39 }
 0x2a3   :  { %v3975_v53 = vrot.slane %v3971_v37, 1  ;;  %v3976_v18 = vrot.slane %v3972_v16, 1  ;;  %v4009_v60 = vstv %s9674_s14  ;;  %v3988_v48 = vrot.slane %v3984_v12, 1  ;;  %s9988_s14 = sld [smem:[#allocation9 + $0xb]] }
 0x2a4   :  { %v3989_v50 = vrot.slane %v3985_v10, 1  ;;  %v4001_v14 = vrot.slane %v3997_v2, 1  ;;  %v4010_v32 = vmul.f32 %v4009_v60, %v9369_v20  ;;  %v4002_v25 = vrot.slane %v3998_v35, 1 }
 0x2a5   :  { %v3977_v22 = vsel %vm212_vm0, %v3975_v53, %v3976_v18  ;;  %v9727_v17 = vadd.f32 %v3976_v18, %v9537_v8  ;;  %v4011_v0 = vmul.f32 %v4009_v60, %v9371_v39  ;;  %v4035_v54 = vstv %s9698_s16  ;;  %s9995_s16 = sld [smem:[#allocation9 + $0xd]] }
 0x2a6   :  { %v9731_v43 = vadd.f32 %v3977_v22, %v9533_v23  ;;  %v3990_v52 = vsel %vm212_vm0, %v3988_v48, %v3989_v50  ;;  %v9735_v51 = vadd.f32 %v3989_v50, %v9553_v44  ;;  %v4014_v57 = vrot.slane %v4010_v32, 1 }
 0x2a7   :  { %v9740_v19 = vadd.f32 %v3990_v52, %v9545_v26  ;;  %v4003_v8 = vsel %vm212_vm0, %v4001_v14, %v4002_v25  ;;  %v9744_v40 = vadd.f32 %v4002_v25, %v9559_v15  ;;  %v4015_v1 = vrot.slane %v4011_v0, 1 }
 0x2a8   :  { %v9749_v23 = vadd.f32 %v4003_v8, %v9556_v46  ;;  %v4022_v44 = vstv %s9689_s15  ;;  %v4048_v33 = vstv %s9706_s17  ;;  %v4036_v46 = vmul.f32 %v4035_v54, %v9369_v20  ;;  %s9993_s15 = sld [smem:[#allocation9 + $0xc]] }
 0x2a9   :  { %v4016_v26 = vsel %vm212_vm0, %v4014_v57, %v4015_v1  ;;  %v9758_v62 = vadd.f32 %v4015_v1, %v9568_v45  ;;  %v4023_v15 = vmul.f32 %v4022_v44, %v9369_v20  ;;  %v4024_v28 = vmul.f32 %v4022_v44, %v9371_v39  ;;  %s10000_s17 = sld [smem:[#allocation9 + $0xe]] }
 0x2aa   :  { %v9763_v24 = vadd.f32 %v4016_v26, %v9565_v3  ;;  %v4037_v21 = vmul.f32 %v4035_v54, %v9371_v39  ;;  %v4049_v37 = vmul.f32 %v4048_v33, %v9369_v20  ;;  %v4050_v10 = vmul.f32 %v4048_v33, %v9371_v39 }
 0x2ab   :  { %v4027_v16 = vrot.slane %v4023_v15, 2  ;;  %v4028_v12 = vrot.slane %v4024_v28, 2  ;;  %v4061_v2 = vstv %s9722_s18  ;;  %v4040_v45 = vrot.slane %v4036_v46, 2  ;;  %s10007_s18 = sld [smem:[#allocation9 + $0xf]] }
 0x2ac   :  { %v4041_v53 = vrot.slane %v4037_v21, 2  ;;  %v4053_v18 = vrot.slane %v4049_v37, 2  ;;  %v4062_v35 = vmul.f32 %v4061_v2, %v9369_v20  ;;  %v4054_v48 = vrot.slane %v4050_v10, 2 }
 0x2ad   :  { %v4029_v3 = vsel %vm421_vm1, %v4027_v16, %v4028_v12  ;;  %v9775_v60 = vadd.f32 %v4028_v12, %v9584_v5  ;;  %v4063_v50 = vmul.f32 %v4061_v2, %v9371_v39  ;;  %v4087_v8 = vstv %s9746_s20  ;;  %s10015_s20 = sld [smem:[#allocation9 + $0x11]] }
 0x2ae   :  { %v9779_v14 = vadd.f32 %v4029_v3, %v9587_v41  ;;  %v4042_v32 = vsel %vm421_vm1, %v4040_v45, %v4041_v53  ;;  %v9783_v22 = vadd.f32 %v4041_v53, %v9591_v30  ;;  %v4066_v25 = vrot.slane %v4062_v35, 2 }
 0x2af   :  { %v9788_v0 = vadd.f32 %v4042_v32, %v9596_v58  ;;  %v4055_v5 = vsel %vm421_vm1, %v4053_v18, %v4054_v48  ;;  %v9792_v52 = vadd.f32 %v4054_v48, %v9600_v42  ;;  %v4067_v57 = vrot.slane %v4063_v50, 2 }
 0x2b0   :  { %v9797_v41 = vadd.f32 %v4055_v5, %v9605_v55  ;;  %v4074_v30 = vstv %s9737_s19  ;;  %v4100_v1 = vstv %s9754_s21  ;;  %v4088_v55 = vmul.f32 %v4087_v8, %v9369_v20  ;;  %s10011_s19 = sld [smem:[#allocation9 + $0x10]] }
 0x2b1   :  { %v4068_v58 = vsel %vm421_vm1, %v4066_v25, %v4067_v57  ;;  %v9806_v44 = vadd.f32 %v4067_v57, %v9614_v63  ;;  %v4075_v42 = vmul.f32 %v4074_v30, %v9369_v20  ;;  %v4076_v54 = vmul.f32 %v4074_v30, %v9371_v39  ;;  %s10023_s21 = sld [smem:[#allocation9 + $0x12]] }
 0x2b2   :  { %v9811_v33 = vadd.f32 %v4068_v58, %v9619_v36  ;;  %v4089_v26 = vmul.f32 %v4087_v8, %v9371_v39  ;;  %v4101_v15 = vmul.f32 %v4100_v1, %v9369_v20  ;;  %v4102_v21 = vmul.f32 %v4100_v1, %v9371_v39 }
 0x2b3   :  { %v4079_v28 = vrot.slane %v4075_v42, 2  ;;  %v4080_v46 = vrot.slane %v4076_v54, 2  ;;  %v4113_v37 = vstv %s9770_s22  ;;  %v4092_v63 = vrot.slane %v4088_v55, 2  ;;  %s10026_s22 = sld [smem:[#allocation9 + $0x13]] }
 0x2b4   :  { %v4093_v16 = vrot.slane %v4089_v26, 2  ;;  %v4105_v12 = vrot.slane %v4101_v15, 2  ;;  %v4114_v10 = vmul.f32 %v4113_v37, %v9369_v20  ;;  %v4106_v45 = vrot.slane %v4102_v21, 2 }
 0x2b5   :  { %v4081_v36 = vsel %vm421_vm1, %v4079_v28, %v4080_v46  ;;  %v9823_v2 = vadd.f32 %v4080_v46, %v9631_v47  ;;  %v4115_v53 = vmul.f32 %v4113_v37, %v9371_v39  ;;  %v4139_v5 = vstv %s9794_s24  ;;  %s10037_s24 = sld [smem:[#allocation9 + $0x15]] }
 0x2b6   :  { %v9827_v18 = vadd.f32 %v4081_v36, %v9635_v38  ;;  %v4094_v35 = vsel %vm421_vm1, %v4092_v63, %v4093_v16  ;;  %v9831_v3 = vadd.f32 %v4093_v16, %v9639_v6  ;;  %v4118_v48 = vrot.slane %v4114_v10, 2 }
 0x2b7   :  { %v9836_v50 = vadd.f32 %v4094_v35, %v9644_v4  ;;  %v4107_v47 = vsel %vm421_vm1, %v4105_v12, %v4106_v45  ;;  %v9840_v32 = vadd.f32 %v4106_v45, %v9648_v61  ;;  %v4119_v25 = vrot.slane %v4115_v53, 2 }
 0x2b8   :  { %v9845_v38 = vadd.f32 %v4107_v47, %v9653_v27  ;;  %v4126_v6 = vstv %s9785_s23  ;;  %v4152_v57 = vstv %s9802_s25  ;;  %v4140_v27 = vmul.f32 %v4139_v5, %v9369_v20  ;;  %s10032_s23 = sld [smem:[#allocation9 + $0x14]] }
 0x2b9   :  { %v4120_v4 = vsel %vm421_vm1, %v4118_v48, %v4119_v25  ;;  %v9854_v30 = vadd.f32 %v4119_v25, %v9662_v9  ;;  %v4127_v61 = vmul.f32 %v4126_v6, %v9369_v20  ;;  %v4128_v8 = vmul.f32 %v4126_v6, %v9371_v39  ;;  %s10040_s25 = sld [smem:[#allocation9 + $0x16]] }
 0x2ba   :  { %v9859_v1 = vadd.f32 %v4120_v4, %v9667_v34  ;;  %v4141_v58 = vmul.f32 %v4139_v5, %v9371_v39  ;;  %v4153_v42 = vmul.f32 %v4152_v57, %v9369_v20  ;;  %v4154_v26 = vmul.f32 %v4152_v57, %v9371_v39 }
 0x2bb   :  { %v4131_v54 = vrot.slane %v4127_v61, 2  ;;  %v4132_v55 = vrot.slane %v4128_v8, 2  ;;  %v4165_v15 = vstv %s9818_s26  ;;  %v4144_v9 = vrot.slane %v4140_v27, 2  ;;  %s10045_s26 = sld [smem:[#allocation9 + $0x17]] }
 0x2bc   :  { %v4145_v28 = vrot.slane %v4141_v58, 2  ;;  %v4157_v46 = vrot.slane %v4153_v42, 2  ;;  %v4166_v34 = vmul.f32 %v4165_v15, %v9369_v20  ;;  %v4158_v63 = vrot.slane %v4154_v26, 2 }
 0x2bd   :  { %v4133_v21 = vsel %vm421_vm1, %v4131_v54, %v4132_v55  ;;  %v9871_v37 = vadd.f32 %v4132_v55, %v9679_v11  ;;  %v4167_v16 = vmul.f32 %v4165_v15, %v9371_v39  ;;  %v4178_v47 = vstv %s9833_s27  ;;  %s10052_s27 = sld [smem:[#allocation9 + $0x18]] }
 0x2be   :  { %v9875_v12 = vadd.f32 %v4133_v21, %v9683_v29  ;;  %v4146_v10 = vsel %vm421_vm1, %v4144_v9, %v4145_v28  ;;  %v9879_v36 = vadd.f32 %v4145_v28, %v9687_v49  ;;  %v4170_v45 = vrot.slane %v4166_v34, 2 }
 0x2bf   :  { %v9882_v53 = vadd.f32 %v4146_v10, %v9692_v7  ;;  %v4159_v35 = vsel %vm421_vm1, %v4157_v46, %v4158_v63  ;;  %v9886_v11 = vadd.f32 %v4158_v63, %v9696_v56  ;;  %v4171_v48 = vrot.slane %v4167_v16, 2 }
 0x2c0   :  { %v9891_v29 = vadd.f32 %v4159_v35, %v9701_v59  ;;  %v4191_v25 = vstv %s9842_s28  ;;  %v4204_v49 = vstv %s9850_s29  ;;  %v4179_v56 = vmul.f32 %v4178_v47, %v9369_v20  ;;  %s10056_s28 = sld [smem:[#allocation9 + $0x19]] }
 0x2c1   :  { %v4172_v7 = vsel %vm421_vm1, %v4170_v45, %v4171_v48  ;;  %v9900_v6 = vadd.f32 %v4171_v48, %v9710_v31  ;;  %v4180_v5 = vmul.f32 %v4178_v47, %v9371_v39  ;;  %v4192_v57 = vmul.f32 %v4191_v25, %v9369_v20  ;;  %s10060_s29 = sld [smem:[#allocation9 + $0x1a]] }
 0x2c2   :  { %v9907_v59 = vadd.f32 %v4172_v7, %v9715_v13  ;;  %v4193_v4 = vmul.f32 %v4191_v25, %v9371_v39  ;;  %v4205_v61 = vmul.f32 %v4204_v49, %v9369_v20  ;;  %v4183_v8 = vrot.slane %v4179_v56, 2 }
 0x2c3   :  { %v4184_v31 = vrot.slane %v4180_v5, 2  ;;  %v4206_v27 = vmul.f32 %v4204_v49, %v9371_v39  ;;  %v4217_v58 = vstv %s9866_s30  ;;  %v4196_v42 = vrot.slane %v4192_v57, 2  ;;  %s10068_s30 = sld [smem:[#allocation9 + $0x1b]] }
 0x2c4   :  { %v4197_v54 = vrot.slane %v4193_v4, 2  ;;  %v4209_v55 = vrot.slane %v4205_v61, 2  ;;  %v4218_v13 = vmul.f32 %v4217_v58, %v9369_v20  ;;  %v4219_v28 = vmul.f32 %v4217_v58, %v9371_v39 }
 0x2c5   :  { %v4185_v26 = vsel %vm421_vm1, %v4183_v8, %v4184_v31  ;;  %v9921_v15 = vadd.f32 %v4184_v31, %v9727_v17  ;;  %v4210_v9 = vrot.slane %v4206_v27, 2  ;;  %v4229_v10 = vmul.f32 0.01, %v9779_v14 }
 0x2c6   :  { %v9925_v46 = vadd.f32 %v4185_v26, %v9731_v43  ;;  %v4198_v34 = vsel %vm421_vm1, %v4196_v42, %v4197_v54  ;;  %v9929_v21 = vadd.f32 %v4197_v54, %v9735_v51  ;;  %v4222_v63 = vrot.slane %v4218_v13, 2 }
 0x2c7   :  { %v9932_v20 = vadd.f32 %v4198_v34, %v9740_v19  ;;  %v4211_v17 = vsel %vm421_vm1, %v4209_v55, %v4210_v9  ;;  %v9936_v16 = vadd.f32 %v4210_v9, %v9744_v40  ;;  %v4223_v39 = vrot.slane %v4219_v28, 2 }
 0x2c8   :  { %v9939_v43 = vadd.f32 %v4211_v17, %v9749_v23  ;;  %v4230_v51 = vmul.f32 0.01, %v9775_v60  ;;  %v4234_v45 = vstv %s9888_s6  ;;  %v4238_v40 = vstv %s10193_s4  ;;  %s9964_s4 = sld [smem:[#allocation9 + $0x6]] }
 0x2c9   :  { %v4224_v19 = vsel %vm421_vm1, %v4222_v63, %v4223_v39  ;;  %v9946_v35 = vadd.f32 %v4223_v39, %v9758_v62  ;;  %v4242_v48 = vstv %s9896_s0  ;;  %v4231_v47 = vmax.f32 %v9779_v14, %v4229_v10  ;;  %s10071_s6 = sld [smem:[#allocation9 + $0x1c]] }
 0x2ca   :  { %v9955_v23 = vadd.f32 %v4224_v19, %v9763_v24  ;;  %v4232_v25 = vmax.f32 %v9775_v60, %v4230_v51  ;;  %v4255_v49 = vstv %s9904_s7  ;;  %v4267_v7 = vmul.f32 0.01, %v9788_v0  ;;  %s10075_s0 = sld [smem:[#allocation9 + $0x1d]] }
 0x2cb   :  { %v4268_v62 = vmul.f32 0.01, %v9783_v22  ;;  %v4272_v56 = vstv %s9912_s8  ;;  %v4278_v5 = vstv %s9916_s9  ;;  %v4235_v57 = vmul.f32 %v4234_v45, %v4231_v47  ;;  %s10082_s7 = sld [smem:[#allocation9 + $0x1e]] }
 0x2cc   :  { %v4236_v4 = vmul.f32 %v4234_v45, %v4232_v25  ;;  %v4243_v61 = vmul.f32 %v4242_v48, %v4231_v47  ;;  %v4244_v8 = vmul.f32 %v4242_v48, %v4232_v25  ;;  %v4256_v31 = vmul.f32 %v4255_v49, %v4231_v47  ;;  %s10086_s8 = sld [smem:[#allocation9 + $0x1f]] }
 0x2cd   :  { %v4257_v24 = vmul.f32 %v4255_v49, %v4232_v25  ;;  %v4269_v27 = vmax.f32 %v9788_v0, %v4267_v7  ;;  %v4270_v14 = vmax.f32 %v9783_v22, %v4268_v62  ;;  %v4239_v60 = vadd.f32 %v4238_v40, %v4235_v57  ;;  %s10092_s9 = sld [smem:[#allocation9 + $0x20]] }
 0x2ce   :  { %v4240_v58 = vadd.f32 %v4238_v40, %v4236_v4  ;;  %v4247_v42 = vrot.slane %v4243_v61, 1  ;;  %v4248_v54 = vrot.slane %v4244_v8, 1  ;;  %v4260_v55 = vrot.slane %v4256_v31, 2 }
 0x2cf   :  { %v4261_v13 = vrot.slane %v4257_v24, 2  ;;  %v4273_v26 = vmul.f32 %v4272_v56, %v4269_v27  ;;  %v4274_v9 = vmul.f32 %v4272_v56, %v4270_v14  ;;  %v4279_v63 = vmul.f32 %v4278_v5, %v4269_v27 }
 0x2d0   :  { %v4249_v28 = vsel %vm212_vm0, %v4247_v42, %v4248_v54  ;;  %v4253_v34 = vadd.f32 %v4248_v54, %v4240_v58  ;;  %v4280_v0 = vmul.f32 %v4278_v5, %v4270_v14  ;;  %v4291_v39 = vstv %s9952_s2  ;;  %s10105_s2 = sld [smem:[#allocation9 + $0x23]] }
 0x2d1   :  { %v4252_v17 = vadd.f32 %v4249_v28, %v4239_v60  ;;  %v4262_v22 = vsel %vm421_vm1, %v4260_v55, %v4261_v13  ;;  %v4303_v10 = vmul.f32 0.01, %v9797_v41  ;;  %v4283_v45 = vrot.slane %v4279_v63, 1 }
 0x2d2   :  { %v4266_v51 = vadd.f32 %v4261_v13, %v4253_v34  ;;  %v4284_v19 = vrot.slane %v4280_v0, 1  ;;  %v4292_v40 = vmul.f32 %v4291_v39, %v4269_v27  ;;  %v4293_v47 = vmul.f32 %v4291_v39, %v4270_v14 }
 0x2d3   :  { %v4265_v48 = vadd.f32 %v4262_v22, %v4252_v17  ;;  %v4304_v25 = vmul.f32 0.01, %v9792_v52  ;;  %v4305_v49 = vmax.f32 %v9797_v41, %v4303_v10  ;;  %v4308_v5 = vstv %s9964_s4  ;;  %s10112_s4 = sld [smem:[#allocation9 + $0x24]] }
 0x2d4   :  { %v4276_v7 = vadd.f32 %v4274_v9, %v4266_v51  ;;  %v4285_v62 = vsel %vm212_vm0, %v4283_v45, %v4284_v19  ;;  %v4296_v56 = vrot.slane %v4292_v40, 2  ;;  %v4297_v4 = vrot.slane %v4293_v47, 2 }
 0x2d5   :  { %v4275_v57 = vadd.f32 %v4273_v26, %v4265_v48  ;;  %v4306_v61 = vmax.f32 %v9792_v52, %v4304_v25  ;;  %v4309_v8 = vmul.f32 %v4308_v5, %v4305_v49  ;;  %v4314_v24 = vstv %s9968_s11  ;;  %s10116_s11 = sld [smem:[#allocation9 + $0x25]] }
 0x2d6   :  { %v4289_v31 = vadd.f32 %v4284_v19, %v4276_v7  ;;  %v4327_v27 = vstv %s9970_s12  ;;  %v4339_v14 = vmul.f32 0.01, %v9811_v33  ;;  %v4298_v60 = vsel %vm421_vm1, %v4296_v56, %v4297_v4  ;;  %s10120_s12 = sld [smem:[#allocation9 + $0x26]] }
 0x2d7   :  { %v4288_v41 = vadd.f32 %v4285_v62, %v4275_v57  ;;  %v4310_v58 = vmul.f32 %v4308_v5, %v4306_v61  ;;  %v4315_v42 = vmul.f32 %v4314_v24, %v4305_v49  ;;  %v4316_v55 = vmul.f32 %v4314_v24, %v4306_v61 }
 0x2d8   :  { %v4302_v54 = vadd.f32 %v4297_v4, %v4289_v31  ;;  %v4328_v13 = vmul.f32 %v4327_v27, %v4305_v49  ;;  %v4329_v26 = vmul.f32 %v4327_v27, %v4306_v61  ;;  %v4340_v28 = vmul.f32 0.01, %v9806_v44 }
 0x2d9   :  { %v4301_v52 = vadd.f32 %v4298_v60, %v4288_v41  ;;  %v4319_v9 = vrot.slane %v4315_v42, 1  ;;  %v4341_v34 = vmax.f32 %v9811_v33, %v4339_v14  ;;  %v4320_v0 = vrot.slane %v4316_v55, 1 }
 0x2da   :  { %v4312_v63 = vadd.f32 %v4310_v58, %v4302_v54  ;;  %v4332_v17 = vrot.slane %v4328_v13, 2  ;;  %v4333_v22 = vrot.slane %v4329_v26, 2  ;;  %v4342_v10 = vmax.f32 %v9806_v44, %v4340_v28 }
 0x2db   :  { %v4311_v39 = vadd.f32 %v4309_v8, %v4301_v52  ;;  %v4344_v51 = vstv %s9976_s3  ;;  %v4350_v45 = vstv %s9980_s13  ;;  %v4321_v19 = vsel %vm212_vm0, %v4319_v9, %v4320_v0  ;;  %s10128_s3 = sld [smem:[#allocation9 + $0x27]] }
 0x2dc   :  { %v4325_v40 = vadd.f32 %v4320_v0, %v4312_v63  ;;  %v4334_v33 = vsel %vm421_vm1, %v4332_v17, %v4333_v22  ;;  %v4345_v48 = vmul.f32 %v4344_v51, %v4341_v34  ;;  %v4346_v25 = vmul.f32 %v4344_v51, %v4342_v10  ;;  %s10131_s13 = sld [smem:[#allocation9 + $0x28]] }
 0x2dd   :  { %v4324_v47 = vadd.f32 %v4321_v19, %v4311_v39  ;;  %v4351_v49 = vmul.f32 %v4350_v45, %v4341_v34  ;;  %v4352_v7 = vmul.f32 %v4350_v45, %v4342_v10  ;;  %v4363_v56 = vstv %s9988_s14  ;;  %s10135_s14 = sld [smem:[#allocation9 + $0x29]] }
 0x2de   :  { %v4338_v62 = vadd.f32 %v4333_v22, %v4325_v40  ;;  %v4375_v5 = vmul.f32 0.01, %v9827_v18  ;;  %v4376_v44 = vmul.f32 0.01, %v9823_v2  ;;  %v4364_v8 = vmul.f32 %v4363_v56, %v4341_v34 }
 0x2df   :  { %v4337_v57 = vadd.f32 %v4334_v33, %v4324_v47  ;;  %v4355_v4 = vrot.slane %v4351_v49, 1  ;;  %v4356_v61 = vrot.slane %v4352_v7, 1  ;;  %v4365_v24 = vmul.f32 %v4363_v56, %v4342_v10 }
 0x2e0   :  { %v4348_v31 = vadd.f32 %v4346_v25, %v4338_v62  ;;  %v4377_v27 = vmax.f32 %v9827_v18, %v4375_v5  ;;  %v4378_v14 = vmax.f32 %v9823_v2, %v4376_v44  ;;  %v4368_v58 = vrot.slane %v4364_v8, 2 }
 0x2e1   :  { %v4347_v41 = vadd.f32 %v4345_v48, %v4337_v57  ;;  %v4357_v60 = vsel %vm212_vm0, %v4355_v4, %v4356_v61  ;;  %v4380_v42 = vstv %s9993_s15  ;;  %v4369_v55 = vrot.slane %v4365_v24, 2  ;;  %s10142_s15 = sld [smem:[#allocation9 + $0x2a]] }
 0x2e2   :  { %v4361_v54 = vadd.f32 %v4356_v61, %v4348_v31  ;;  %v4381_v13 = vmul.f32 %v4380_v42, %v4377_v27  ;;  %v4382_v26 = vmul.f32 %v4380_v42, %v4378_v14  ;;  %v4386_v9 = vstv %s9995_s16  ;;  %s10146_s16 = sld [smem:[#allocation9 + $0x2b]] }
 0x2e3   :  { %v4360_v52 = vadd.f32 %v4357_v60, %v4347_v41  ;;  %v4399_v28 = vstv %s10000_s17  ;;  %v4411_v18 = vmul.f32 0.01, %v9836_v50  ;;  %v4370_v2 = vsel %vm421_vm1, %v4368_v58, %v4369_v55  ;;  %s10152_s17 = sld [smem:[#allocation9 + $0x2c]] }
 0x2e4   :  { %v4374_v34 = vadd.f32 %v4369_v55, %v4361_v54  ;;  %v4387_v63 = vmul.f32 %v4386_v9, %v4377_v27  ;;  %v4388_v0 = vmul.f32 %v4386_v9, %v4378_v14  ;;  %v4400_v22 = vmul.f32 %v4399_v28, %v4377_v27 }
 0x2e5   :  { %v4373_v17 = vadd.f32 %v4370_v2, %v4360_v52  ;;  %v4401_v39 = vmul.f32 %v4399_v28, %v4378_v14  ;;  %v4412_v10 = vmul.f32 0.01, %v9831_v3  ;;  %v4413_v40 = vmax.f32 %v9836_v50, %v4411_v18 }
 0x2e6   :  { %v4384_v51 = vadd.f32 %v4382_v26, %v4374_v34  ;;  %v4391_v45 = vrot.slane %v4387_v63, 1  ;;  %v4392_v19 = vrot.slane %v4388_v0, 1  ;;  %v4404_v48 = vrot.slane %v4400_v22, 2 }
 0x2e7   :  { %v4383_v33 = vadd.f32 %v4381_v13, %v4373_v17  ;;  %v4405_v47 = vrot.slane %v4401_v39, 2  ;;  %v4414_v25 = vmax.f32 %v9831_v3, %v4412_v10  ;;  %v4416_v62 = vstv %s10007_s18  ;;  %s10157_s18 = sld [smem:[#allocation9 + $0x2d]] }
 0x2e8   :  { %v4393_v49 = vsel %vm212_vm0, %v4391_v45, %v4392_v19  ;;  %v4397_v7 = vadd.f32 %v4392_v19, %v4384_v51  ;;  %v4422_v56 = vstv %s10011_s19  ;;  %v4417_v57 = vmul.f32 %v4416_v62, %v4413_v40  ;;  %s10160_s19 = sld [smem:[#allocation9 + $0x2e]] }
 0x2e9   :  { %v4396_v5 = vadd.f32 %v4393_v49, %v4383_v33  ;;  %v4406_v44 = vsel %vm421_vm1, %v4404_v48, %v4405_v47  ;;  %v4418_v50 = vmul.f32 %v4416_v62, %v4414_v25  ;;  %v4423_v61 = vmul.f32 %v4422_v56, %v4413_v40 }
 0x2ea   :  { %v4410_v4 = vadd.f32 %v4405_v47, %v4397_v7  ;;  %v4424_v8 = vmul.f32 %v4422_v56, %v4414_v25  ;;  %v4435_v31 = vstv %s10015_s20  ;;  %v4447_v14 = vmul.f32 0.01, %v9845_v38  ;;  %s10165_s20 = sld [smem:[#allocation9 + $0x2f]] }
 0x2eb   :  { %v4409_v24 = vadd.f32 %v4406_v44, %v4396_v5  ;;  %v4436_v3 = vmul.f32 %v4435_v31, %v4413_v40  ;;  %v4437_v27 = vmul.f32 %v4435_v31, %v4414_v25  ;;  %v4427_v60 = vrot.slane %v4423_v61, 1 }
 0x2ec   :  { %v4420_v41 = vadd.f32 %v4418_v50, %v4410_v4  ;;  %v4428_v58 = vrot.slane %v4424_v8, 1  ;;  %v4448_v42 = vmul.f32 0.01, %v9840_v32  ;;  %v4449_v26 = vmax.f32 %v9845_v38, %v4447_v14 }
 0x2ed   :  { %v4419_v54 = vadd.f32 %v4417_v57, %v4409_v24  ;;  %v4440_v55 = vrot.slane %v4436_v3, 2  ;;  %v4441_v13 = vrot.slane %v4437_v27, 2  ;;  %v4452_v18 = vstv %s10023_s21 }
 0x2ee   :  { %v4429_v52 = vsel %vm212_vm0, %v4427_v60, %v4428_v58  ;;  %v4433_v9 = vadd.f32 %v4428_v58, %v4420_v41  ;;  %v4450_v28 = vmax.f32 %v9840_v32, %v4448_v42  ;;  %v4453_v63 = vmul.f32 %v4452_v18, %v4449_v26 }
 0x2ef   :  { %v4432_v2 = vadd.f32 %v4429_v52, %v4419_v54  ;;  %v4442_v34 = vsel %vm421_vm1, %v4440_v55, %v4441_v13  ;;  %v4458_v0 = vstv %s10026_s22  ;;  %v4471_v51 = vstv %s10032_s23 }
 0x2f0   :  { %v4446_v17 = vadd.f32 %v4441_v13, %v4433_v9  ;;  %v4454_v22 = vmul.f32 %v4452_v18, %v4450_v28  ;;  %v4459_v39 = vmul.f32 %v4458_v0, %v4449_v26  ;;  %v4460_v38 = vmul.f32 %v4458_v0, %v4450_v28 }
 0x2f1   :  { %v4445_v10 = vadd.f32 %v4442_v34, %v4432_v2  ;;  %v4483_v45 = vmul.f32 0.01, %v9859_v1  ;;  %v4484_v19 = vmul.f32 0.01, %v9854_v30  ;;  %v4472_v48 = vmul.f32 %v4471_v51, %v4449_v26 }
 0x2f2   :  { %v4456_v32 = vadd.f32 %v4454_v22, %v4446_v17  ;;  %v4463_v40 = vrot.slane %v4459_v39, 1  ;;  %v4464_v33 = vrot.slane %v4460_v38, 1  ;;  %v4473_v25 = vmul.f32 %v4471_v51, %v4450_v28 }
 0x2f3   :  { %v4455_v47 = vadd.f32 %v4453_v63, %v4445_v10  ;;  %v4485_v49 = vmax.f32 %v9859_v1, %v4483_v45  ;;  %v4486_v7 = vmax.f32 %v9854_v30, %v4484_v19  ;;  %v4476_v5 = vrot.slane %v4472_v48, 2 }
 0x2f4   :  { %v4465_v62 = vsel %vm212_vm0, %v4463_v40, %v4464_v33  ;;  %v4469_v56 = vadd.f32 %v4464_v33, %v4456_v32  ;;  %v4488_v44 = vstv %s10037_s24  ;;  %v4477_v50 = vrot.slane %v4473_v25, 2 }
 0x2f5   :  { %v4468_v57 = vadd.f32 %v4465_v62, %v4455_v47  ;;  %v4489_v4 = vmul.f32 %v4488_v44, %v4485_v49  ;;  %v4490_v61 = vmul.f32 %v4488_v44, %v4486_v7  ;;  %v4494_v8 = vstv %s10040_s25 }
 0x2f6   :  { %v4507_v31 = vstv %s10045_s26  ;;  %v4519_v24 = vmul.f32 0.01, %v9875_v12  ;;  %v4520_v1 = vmul.f32 0.01, %v9871_v37  ;;  %v4478_v30 = vsel %vm421_vm1, %v4476_v5, %v4477_v50 }
 0x2f7   :  { %v4482_v3 = vadd.f32 %v4477_v50, %v4469_v56  ;;  %v4495_v27 = vmul.f32 %v4494_v8, %v4485_v49  ;;  %v4496_v14 = vmul.f32 %v4494_v8, %v4486_v7  ;;  %v4481_v41 = vadd.f32 %v4478_v30, %v4468_v57 }
 0x2f8   :  { %v4508_v60 = vmul.f32 %v4507_v31, %v4485_v49  ;;  %v4509_v58 = vmul.f32 %v4507_v31, %v4486_v7  ;;  %v4521_v42 = vmax.f32 %v9875_v12, %v4519_v24  ;;  %v4522_v26 = vmax.f32 %v9871_v37, %v4520_v1 }
 0x2f9   :  { %v4492_v54 = vadd.f32 %v4490_v61, %v4482_v3  ;;  %v4499_v55 = vrot.slane %v4495_v27, 1  ;;  %v4500_v13 = vrot.slane %v4496_v14, 1  ;;  %v4491_v52 = vadd.f32 %v4489_v4, %v4481_v41 }
 0x2fa   :  { %v4512_v9 = vrot.slane %v4508_v60, 2  ;;  %v4513_v28 = vrot.slane %v4509_v58, 2  ;;  %v4524_v18 = vstv %s10052_s27  ;;  %v4530_v22 = vstv %s10056_s28 }
 0x2fb   :  { %v4501_v2 = vsel %vm212_vm0, %v4499_v55, %v4500_v13  ;;  %v4505_v34 = vadd.f32 %v4500_v13, %v4492_v54  ;;  %v4525_v63 = vmul.f32 %v4524_v18, %v4521_v42  ;;  %v4526_v12 = vmul.f32 %v4524_v18, %v4522_v26 }
 0x2fc   :  { %v4504_v0 = vadd.f32 %v4501_v2, %v4491_v52  ;;  %v4514_v17 = vsel %vm421_vm1, %v4512_v9, %v4513_v28  ;;  %v4543_v39 = vstv %s10060_s29  ;;  %v4531_v37 = vmul.f32 %v4530_v22, %v4521_v42 }
 0x2fd   :  { %v4518_v38 = vadd.f32 %v4513_v28, %v4505_v34  ;;  %v4532_v10 = vmul.f32 %v4530_v22, %v4522_v26  ;;  %v4544_v51 = vmul.f32 %v4543_v39, %v4521_v42  ;;  %v4545_v19 = vmul.f32 %v4543_v39, %v4522_v26 }
 0x2fe   :  { %v4517_v45 = vadd.f32 %v4514_v17, %v4504_v0  ;;  %v4555_v32 = vmul.f32 0.01, %v9882_v53  ;;  %v4556_v40 = vmul.f32 0.01, %v9879_v36  ;;  %v4535_v48 = vrot.slane %v4531_v37, 1 }
 0x2ff   :  { %v4528_v33 = vadd.f32 %v4526_v12, %v4518_v38  ;;  %v4536_v47 = vrot.slane %v4532_v10, 1  ;;  %v4548_v25 = vrot.slane %v4544_v51, 2  ;;  %v4549_v7 = vrot.slane %v4545_v19, 2 }
 0x300   :  { %v4527_v49 = vadd.f32 %v4525_v63, %v4517_v45  ;;  %v4557_v62 = vmax.f32 %v9882_v53, %v4555_v32  ;;  %v4558_v56 = vmax.f32 %v9879_v36, %v4556_v40  ;;  %v4560_v57 = vstv %s10068_s30 }
 0x301   :  { %v4537_v5 = vsel %vm212_vm0, %v4535_v48, %v4536_v47  ;;  %v4541_v44 = vadd.f32 %v4536_v47, %v4528_v33  ;;  %v4566_v50 = vstv %s10071_s6  ;;  %v4550_v61 = vsel %vm421_vm1, %v4548_v25, %v4549_v7 }
 0x302   :  { %v4540_v4 = vadd.f32 %v4537_v5, %v4527_v49  ;;  %v4561_v8 = vmul.f32 %v4560_v57, %v4557_v62  ;;  %v4562_v31 = vmul.f32 %v4560_v57, %v4558_v56  ;;  %v4567_v1 = vmul.f32 %v4566_v50, %v4557_v62 }
 0x303   :  { %v4554_v24 = vadd.f32 %v4549_v7, %v4541_v44  ;;  %v4568_v30 = vmul.f32 %v4566_v50, %v4558_v56  ;;  %v4579_v53 = vstv %s10075_s0  ;;  %v4591_v14 = vmul.f32 0.01, %v9891_v29 }
 0x304   :  { %v4553_v3 = vadd.f32 %v4550_v61, %v4540_v4  ;;  %v4580_v36 = vmul.f32 %v4579_v53, %v4557_v62  ;;  %v4581_v27 = vmul.f32 %v4579_v53, %v4558_v56  ;;  %v4571_v60 = vrot.slane %v4567_v1, 1 }
 0x305   :  { %v4564_v41 = vadd.f32 %v4562_v31, %v4554_v24  ;;  %v4572_v58 = vrot.slane %v4568_v30, 1  ;;  %v4592_v42 = vmul.f32 0.01, %v9886_v11  ;;  %v4593_v26 = vmax.f32 %v9891_v29, %v4591_v14 }
 0x306   :  { %v4563_v54 = vadd.f32 %v4561_v8, %v4553_v3  ;;  %v4584_v55 = vrot.slane %v4580_v36, 2  ;;  %v4585_v13 = vrot.slane %v4581_v27, 2  ;;  %v4596_v18 = vstv %s10082_s7 }
 0x307   :  { %v4573_v52 = vsel %vm212_vm0, %v4571_v60, %v4572_v58  ;;  %v4577_v9 = vadd.f32 %v4572_v58, %v4564_v41  ;;  %v4594_v28 = vmax.f32 %v9886_v11, %v4592_v42  ;;  %v4597_v63 = vmul.f32 %v4596_v18, %v4593_v26 }
 0x308   :  { %v4576_v2 = vadd.f32 %v4573_v52, %v4563_v54  ;;  %v4586_v34 = vsel %vm421_vm1, %v4584_v55, %v4585_v13  ;;  %v4602_v12 = vstv %s10086_s8  ;;  %v4615_v38 = vstv %s10092_s9 }
 0x309   :  { %v4590_v0 = vadd.f32 %v4585_v13, %v4577_v9  ;;  %v4598_v17 = vmul.f32 %v4596_v18, %v4594_v28  ;;  %v4603_v22 = vmul.f32 %v4602_v12, %v4593_v26  ;;  %v4604_v29 = vmul.f32 %v4602_v12, %v4594_v28 }
 0x30a   :  { %v4589_v39 = vadd.f32 %v4586_v34, %v4576_v2  ;;  %v4627_v37 = vmul.f32 0.01, %v9907_v59  ;;  %v4628_v10 = vmul.f32 0.01, %v9900_v6  ;;  %v4616_v19 = vmul.f32 %v4615_v38, %v4593_v26 }
 0x30b   :  { %v4600_v11 = vadd.f32 %v4598_v17, %v4590_v0  ;;  %v4607_v51 = vrot.slane %v4603_v22, 1  ;;  %v4608_v45 = vrot.slane %v4604_v29, 1  ;;  %v4617_v40 = vmul.f32 %v4615_v38, %v4594_v28 }
 0x30c   :  { %v4599_v32 = vadd.f32 %v4597_v63, %v4589_v39  ;;  %v4629_v33 = vmax.f32 %v9907_v59, %v4627_v37  ;;  %v4630_v48 = vmax.f32 %v9900_v6, %v4628_v10  ;;  %v4620_v49 = vrot.slane %v4616_v19, 2 }
 0x30d   :  { %v4609_v47 = vsel %vm212_vm0, %v4607_v51, %v4608_v45  ;;  %v4613_v25 = vadd.f32 %v4608_v45, %v4600_v11  ;;  %v4632_v7 = vstv %s10097_s10  ;;  %v4621_v56 = vrot.slane %v4617_v40, 2 }
 0x30e   :  { %v4612_v62 = vadd.f32 %v4609_v47, %v4599_v32  ;;  %v4633_v5 = vmul.f32 %v4632_v7, %v4629_v33  ;;  %v4634_v44 = vmul.f32 %v4632_v7, %v4630_v48  ;;  %v4638_v57 = vstv %s10100_s1 }
 0x30f   :  { %v4651_v50 = vstv %s10105_s2  ;;  %v4663_v4 = vmul.f32 0.01, %v9925_v46  ;;  %v4664_v59 = vmul.f32 0.01, %v9921_v15  ;;  %v4622_v6 = vsel %vm421_vm1, %v4620_v49, %v4621_v56 }
 0x310   :  { %v4626_v61 = vadd.f32 %v4621_v56, %v4613_v25  ;;  %v4639_v8 = vmul.f32 %v4638_v57, %v4629_v33  ;;  %v4640_v31 = vmul.f32 %v4638_v57, %v4630_v48  ;;  %v4625_v24 = vadd.f32 %v4622_v6, %v4612_v62 }
 0x311   :  { %v4652_v1 = vmul.f32 %v4651_v50, %v4629_v33  ;;  %v4653_v30 = vmul.f32 %v4651_v50, %v4630_v48  ;;  %v4665_v53 = vmax.f32 %v9925_v46, %v4663_v4  ;;  %v4666_v14 = vmax.f32 %v9921_v15, %v4664_v59 }
 0x312   :  { %v4636_v3 = vadd.f32 %v4634_v44, %v4626_v61  ;;  %v4643_v36 = vrot.slane %v4639_v8, 1  ;;  %v4644_v27 = vrot.slane %v4640_v31, 1  ;;  %v4635_v41 = vadd.f32 %v4633_v5, %v4625_v24 }
 0x313   :  { %v4656_v60 = vrot.slane %v4652_v1, 2  ;;  %v4657_v58 = vrot.slane %v4653_v30, 2  ;;  %v4668_v42 = vstv %s10112_s4  ;;  %v4674_v9 = vstv %s10116_s11 }
 0x314   :  { %v4645_v54 = vsel %vm212_vm0, %v4643_v36, %v4644_v27  ;;  %v4649_v55 = vadd.f32 %v4644_v27, %v4636_v3  ;;  %v4669_v13 = vmul.f32 %v4668_v42, %v4665_v53  ;;  %v4670_v46 = vmul.f32 %v4668_v42, %v4666_v14 }
 0x315   :  { %v4648_v26 = vadd.f32 %v4645_v54, %v4635_v41  ;;  %v4658_v52 = vsel %vm421_vm1, %v4656_v60, %v4657_v58  ;;  %v4687_v28 = vstv %s10120_s12  ;;  %v4675_v15 = vmul.f32 %v4674_v9, %v4665_v53 }
 0x316   :  { %v4662_v18 = vadd.f32 %v4657_v58, %v4649_v55  ;;  %v4676_v2 = vmul.f32 %v4674_v9, %v4666_v14  ;;  %v4688_v34 = vmul.f32 %v4687_v28, %v4665_v53  ;;  %v4689_v12 = vmul.f32 %v4687_v28, %v4666_v14 }
 0x317   :  { %v4661_v63 = vadd.f32 %v4658_v52, %v4648_v26  ;;  %v4699_v0 = vmul.f32 0.01, %v9932_v20  ;;  %v4700_v17 = vmul.f32 0.01, %v9929_v21  ;;  %v4679_v29 = vrot.slane %v4675_v15, 1 }
 0x318   :  { %v4672_v22 = vadd.f32 %v4670_v46, %v4662_v18  ;;  %v4680_v39 = vrot.slane %v4676_v2, 1  ;;  %v4692_v38 = vrot.slane %v4688_v34, 2  ;;  %v4693_v10 = vrot.slane %v4689_v12, 2 }
 0x319   :  { %v4671_v37 = vadd.f32 %v4669_v13, %v4661_v63  ;;  %v4701_v11 = vmax.f32 %v9932_v20, %v4699_v0  ;;  %v4702_v51 = vmax.f32 %v9929_v21, %v4700_v17  ;;  %v4704_v32 = vstv %s10128_s3 }
 0x31a   :  { %v4681_v45 = vsel %vm212_vm0, %v4679_v29, %v4680_v39  ;;  %v4685_v19 = vadd.f32 %v4680_v39, %v4672_v22  ;;  %v4710_v40 = vstv %s10131_s13  ;;  %v4694_v48 = vsel %vm421_vm1, %v4692_v38, %v4693_v10 }
 0x31b   :  { %v4684_v33 = vadd.f32 %v4681_v45, %v4671_v37  ;;  %v4705_v47 = vmul.f32 %v4704_v32, %v4701_v11  ;;  %v4706_v25 = vmul.f32 %v4704_v32, %v4702_v51  ;;  %v4711_v7 = vmul.f32 %v4710_v40, %v4701_v11 }
 0x31c   :  { %v4698_v49 = vadd.f32 %v4693_v10, %v4685_v19  ;;  %v4712_v62 = vmul.f32 %v4710_v40, %v4702_v51  ;;  %v4723_v20 = vstv %s10135_s14  ;;  %v4735_v44 = vmul.f32 0.01, %v9939_v43 }
 0x31d   :  { %v4697_v56 = vadd.f32 %v4694_v48, %v4684_v33  ;;  %v4724_v21 = vmul.f32 %v4723_v20, %v4701_v11  ;;  %v4725_v5 = vmul.f32 %v4723_v20, %v4702_v51  ;;  %v4715_v50 = vrot.slane %v4711_v7, 1 }
 0x31e   :  { %v4708_v57 = vadd.f32 %v4706_v25, %v4698_v49  ;;  %v4716_v4 = vrot.slane %v4712_v62, 1  ;;  %v4736_v59 = vmul.f32 0.01, %v9936_v16  ;;  %v4737_v31 = vmax.f32 %v9939_v43, %v4735_v44 }
 0x31f   :  { %v4707_v6 = vadd.f32 %v4705_v47, %v4697_v56  ;;  %v4728_v61 = vrot.slane %v4724_v21, 2  ;;  %v4729_v8 = vrot.slane %v4725_v5, 2  ;;  %v4740_v53 = vstv %s10142_s15 }
 0x320   :  { %v4717_v24 = vsel %vm212_vm0, %v4715_v50, %v4716_v4  ;;  %v4721_v1 = vadd.f32 %v4716_v4, %v4708_v57  ;;  %v4738_v30 = vmax.f32 %v9936_v16, %v4736_v59  ;;  %v4741_v27 = vmul.f32 %v4740_v53, %v4737_v31 }
 0x321   :  { %v4720_v3 = vadd.f32 %v4717_v24, %v4707_v6  ;;  %v4730_v36 = vsel %vm421_vm1, %v4728_v61, %v4729_v8  ;;  %v4746_v14 = vstv %s10146_s16  ;;  %v4759_v54 = vstv %s10152_s17 }
 0x322   :  { %v4734_v41 = vadd.f32 %v4729_v8, %v4721_v1  ;;  %v4742_v60 = vmul.f32 %v4740_v53, %v4738_v30  ;;  %v4747_v58 = vmul.f32 %v4746_v14, %v4737_v31  ;;  %v4748_v43 = vmul.f32 %v4746_v14, %v4738_v30 }
 0x323   :  { %v4733_v42 = vadd.f32 %v4730_v36, %v4720_v3  ;;  %v4771_v55 = vmul.f32 0.01, %v9955_v23  ;;  %v4772_v13 = vmul.f32 0.01, %v9946_v35  ;;  %v4760_v52 = vmul.f32 %v4759_v54, %v4737_v31 }
 0x324   :  { %v4744_v16 = vadd.f32 %v4742_v60, %v4734_v41  ;;  %v4751_v46 = vrot.slane %v4747_v58, 1  ;;  %v4752_v26 = vrot.slane %v4748_v43, 1  ;;  %v4761_v28 = vmul.f32 %v4759_v54, %v4738_v30 }
 0x325   :  { %v4743_v9 = vadd.f32 %v4741_v27, %v4733_v42  ;;  %v4773_v18 = vmax.f32 %v9955_v23, %v4771_v55  ;;  %v4774_v15 = vmax.f32 %v9946_v35, %v4772_v13  ;;  %v4764_v63 = vrot.slane %v4760_v52, 2 }
 0x326   :  { %v4753_v2 = vsel %vm212_vm0, %v4751_v46, %v4752_v26  ;;  %v4757_v34 = vadd.f32 %v4752_v26, %v4744_v16  ;;  %v4776_v12 = vstv %s10157_s18  ;;  %v4765_v17 = vrot.slane %v4761_v28, 2 }
 0x327   :  { %v4756_v0 = vadd.f32 %v4753_v2, %v4743_v9  ;;  %v4778_v22 = vmul.f32 %v4776_v12, %v4774_v15  ;;  %v4777_v29 = vmul.f32 %v4776_v12, %v4773_v18  ;;  %v4782_v39 = vstv %s10160_s19 }
 0x328   :  { %v4795_v38 = vstv %s10165_s20  ;;  %v4766_v37 = vsel %vm421_vm1, %v4764_v63, %v4765_v17  ;;  %v4770_v10 = vadd.f32 %v4765_v17, %v4757_v34  ;;  %v4783_v11 = vmul.f32 %v4782_v39, %v4773_v18 }
 0x329   :  { %v4784_v51 = vmul.f32 %v4782_v39, %v4774_v15  ;;  %v4769_v45 = vadd.f32 %v4766_v37, %v4756_v0  ;;  %v4796_v23 = vmul.f32 %v4795_v38, %v4773_v18  ;;  %v4797_v19 = vmul.f32 %v4795_v38, %v4774_v15 }
 0x32a   :  { %v4780_v35 = vadd.f32 %v4778_v22, %v4770_v10  ;;  %v4787_v32 = vrot.slane %v4783_v11, 1 }
 0x32b   :  { %v4788_v40 = vrot.slane %v4784_v51, 1  ;;  %v4779_v33 = vadd.f32 %v4777_v29, %v4769_v45  ;;  %v4800_v48 = vrot.slane %v4796_v23, 2  ;;  %v4801_v47 = vrot.slane %v4797_v19, 2 }
 0x32d   :  { %v4789_v25 = vsel %vm212_vm0, %v4787_v32, %v4788_v40  ;;  %v4793_v49 = vadd.f32 %v4788_v40, %v4780_v35  ;;  %v4802_v62 = vsel %vm421_vm1, %v4800_v48, %v4801_v47 }
 0x32e   :  { %v4792_v7 = vadd.f32 %v4789_v25, %v4779_v33 }
 0x32f   :  { %v4806_v20 = vadd.f32 %v4801_v47, %v4793_v49 }
 0x330   :  { %v4805_v56 = vadd.f32 %v4802_v62, %v4792_v7 }
 0x331   :  { %v4808_v21 = vsel %vm4807_vm2, %v4806_v20, -inf }
 0x332   :  { %v4809_v5 = vmax.f32 %v4805_v56, %v4808_v21 }
 0x334   :  { %v4810_v44 = vrot.slane %v4809_v5, 4 }
 0x336   :  { %v4811_v57 = vmax.f32 %v4809_v5, %v4810_v44 }
 0x338   :  { %v4812_v50 = vrot.slane %v4811_v57, 2 }
 0x33a   :  { %v4813_v4 = vmax.f32 %v4811_v57, %v4812_v50 }
 0x33c   :  { %v4814_v59 = vrot.slane %v4813_v4, 1 }
 0x33e   :  { %v4815_v6 = vmax.f32 %v4813_v4, %v4814_v59 }
 0x340   :  { %v4816_v61 = vsub.f32 %v4805_v56, %v4815_v6  ;;  %v4817_v8 = vsub.f32 %v4806_v20, %v4815_v6 }
 0x342   :  { %v4818_v31 = vmul.f32 1.442695, %v4816_v61  ;;  %v4820_v24 = vmul.f32 1.442695, %v4817_v8 }
 0x344   :  { %5297 = vpow2.f32 %v4818_v31 }
 0x345   :  { %5299 = vpow2.f32 %v4820_v24 }
 0x34a   :  { %v5298_v1 = vpop.eup %5297 }
 0x34b   :  { %v5300_v30 = vpop.eup %5299 }
 0x34c   :  { %v4822_v53 = vsel %vm4807_vm2, %v5300_v30, 0.0 }
 0x34d   :  { %v4823_v3 = vadd.f32 %v5298_v1, %v4822_v53 }
 0x34f   :  { %v4824_v36 = vrot.slane %v4823_v3, 4 }
 0x351   :  { %v4825_v27 = vadd.f32 %v4824_v36, %v4823_v3 }
 0x353   :  { %v4826_v14 = vrot.slane %v4825_v27, 2 }
 0x355   :  { %v4827_v41 = vadd.f32 %v4826_v14, %v4825_v27 }
 0x357   :  { %v4828_v60 = vrot.slane %v4827_v41, 1 }
 0x359   :  { %v4829_v58 = vadd.f32 %v4828_v60, %v4827_v41 }
 0x35b   :  { %5301 = vrcp.f32 %v4829_v58 }
 0x361   :  { %v5302_v43 = vpop.eup %5301 }
 0x362   :  { %v4831_v42 = vmul.f32 %v5302_v43, %v4829_v58 }
 0x364   :  { %v4832_v54 = vsub.f32 2.0, %v4831_v42 }
 0x366   :  { %v4833_v55 = vmul.f32 %v5302_v43, %v4832_v54 }
 0x368   :  { %v4834_v13 = vmul.f32 %v5298_v1, %v4833_v55  ;;  %v4835_v16 = vmul.f32 %v5300_v30, %v4833_v55 }
 0x36a   :  { %4836 = vst [vmem:[%s10194_s5] sm:$0xff] %v4834_v13 }
 0x36b   :  { %4837 = vst [vmem:[%s10194_s5 + $0x8] sm:$0xf] %v4835_v16 }
 0x36c   :  { %4842 = vsyncpa [#allocation4], 1 }
 0x36d   :  { %4843 = vsyncpa [#allocation5], 1 }
 0x36e   :  { %4844 = vsyncpa [#allocation6], 1 }
 0x36f   :  { %4845 = vsyncpa [#allocation10], 1 }

</bundles_post_ra>
